<compile_context>
chip_gen: v6e
topology: v6e:2x2x1
jax: 0.10.0
libtpu: 0.0.40
codegen_flags: <defaults>
</compile_context>

<pallas_src>
import numpy as np
import jax
import jax.numpy as jnp
from jax.experimental import pallas as pl
from jax.experimental.pallas import tpu as pltpu


# ------------------------------ Pallas kernel ------------------------------ #
def _net2_kernel(x_ref, w1_ref, b1_ref, s1_ref, e1_ref,
                 w2_ref, b2_ref, s2_ref, e2_ref,
                 w3_ref, b3_ref, wf1_ref, bf1_ref, wf2_ref, bf2_ref,
                 o_ref):
    f32 = jnp.float32

    def conv(src, w_ref, b_ref, pitch, m):
        # k=2 / stride=1 conv on an (already space-to-depth'd) 2D activation:
        # 4 unit-stride tap slices, one MXU matmul each, fused bias + ReLU.
        acc = None
        for t, (da, db) in enumerate(((0, 0), (0, 1), (1, 0), (1, 1))):
            off = da * pitch + db
            part = jnp.dot(src[off:off + m, :], w_ref[t],
                           preferred_element_type=f32)
            acc = part if acc is None else acc + part
        return jnp.maximum(acc + b_ref[...], 0.0)

    def space_to_depth(y, s_ref, e_ref):
        # z[:, ph*C:(ph+1)*C] = Sel[ph] @ y ; the lane placement is done with a
        # 0/1 embedding matmul so only plain 2D dots are emitted.
        acc = None
        for ph in range(4):
            part = jnp.dot(jnp.dot(s_ref[ph], y, preferred_element_type=f32),
                           e_ref[ph], preferred_element_type=f32)
            acc = part if acc is None else acc + part
        return acc

    x = x_ref[0]                                    # (408, 64)
    y1 = conv(x, w1_ref, b1_ref, pitch=20, m=384)   # (384, 32)
    z1 = space_to_depth(y1, s1_ref, e1_ref)         # ( 88, 128)
    y2 = conv(z1, w2_ref, b2_ref, pitch=9, m=72)    # ( 72, 64)
    z2 = space_to_depth(y2, s2_ref, e2_ref)         # ( 24, 256)
    y3 = conv(z2, w3_ref, b3_ref, pitch=4, m=16)    # ( 16, 64)

    # fc1: the PyTorch NCHW flatten order is folded into wf1 (9, 64, 512);
    # contract the 9 valid spatial rows of y3 one at a time and sum.
    acc = bf1_ref[...]                              # (1, 512)
    for p, r in enumerate((0, 1, 2, 4, 5, 6, 8, 9, 10)):
        acc = acc + jnp.dot(y3[r:r + 1, :], wf1_ref[p],
                            preferred_element_type=f32)
    h = jnp.maximum(acc, 0.0)                       # (1, 512)
    out = jnp.dot(h, wf2_ref[...], preferred_element_type=f32) + bf2_ref[...]
    o_ref[0] = out                                  # (1, 128) lane-dense


# ------------------------- parameter / constant prep ----------------------- #
def init_params(key):
    """PyTorch-layout parameters (same convention as nn.Conv2d / nn.Linear)."""
    def uniform(k, shape, fan_in):
        bound = 1.0 / jnp.sqrt(float(fan_in))
        return jax.random.uniform(k, shape, jnp.float32, -bound, bound)

    ks = jax.random.split(key, 10)
    p = {}
    p["conv1_w"] = uniform(ks[0], (32, 4, 8, 8), 4 * 8 * 8)
    p["conv1_b"] = uniform(ks[1], (32,), 4 * 8 * 8)
    p["conv2_w"] = uniform(ks[2], (64, 32, 4, 4), 32 * 4 * 4)
    p["conv2_b"] = uniform(ks[3], (64,), 32 * 4 * 4)
    p["conv3_w"] = uniform(ks[4], (64, 64, 4, 4), 64 * 4 * 4)
    p["conv3_b"] = uniform(ks[5], (64,), 64 * 4 * 4)
    p["fc1_w"] = uniform(ks[6], (576, 512), 576)   # (in, out), in-index = o*9+i*3+j
    p["fc1_b"] = uniform(ks[7], (512,), 576)
    p["fc2_w"] = uniform(ks[8], (512, 6), 512)
    p["fc2_b"] = uniform(ks[9], (6,), 512)
    return p


def _selection_constants():
    # Sel1[pi*2+pj, I*9+J, (2I+pi)*20 + (2J+pj)] = 1  (rows >= 81 stay zero)
    sel1 = np.zeros((4, 88, 384), np.float32)
    for pi in range(2):
        for pj in range(2):
            ph = pi * 2 + pj
            for i in range(9):
                for j in range(9):
                    sel1[ph, i * 9 + j, (2 * i + pi) * 20 + (2 * j + pj)] = 1.0
    e1 = np.zeros((4, 32, 128), np.float32)
    for ph in range(4):
        e1[ph, np.arange(32), ph * 32 + np.arange(32)] = 1.0
    # Sel2[qi*2+qj, I*4+J, (2I+qi)*9 + (2J+qj)] = 1  (rows >= 16 stay zero)
    sel2 = np.zeros((4, 24, 72), np.float32)
    for qi in range(2):
        for qj in range(2):
            ph = qi * 2 + qj
            for i in range(4):
                for j in range(4):
                    sel2[ph, i * 4 + j, (2 * i + qi) * 9 + (2 * j + qj)] = 1.0
    e2 = np.zeros((4, 64, 256), np.float32)
    for ph in range(4):
        e2[ph, np.arange(64), ph * 64 + np.arange(64)] = 1.0
    return (jnp.asarray(sel1), jnp.asarray(e1),
            jnp.asarray(sel2), jnp.asarray(e2))


def prepare_kernel_params(p):
    """All weight-layout transforms, hoisted out of the jitted forward."""
    # conv1: kh = 4*da + ra, kw = 4*db + rb  ->  tap (da,db), feat (ra,rb,c)
    w1 = p["conv1_w"].reshape(32, 4, 2, 4, 2, 4).transpose(
        2, 4, 3, 5, 1, 0).reshape(4, 64, 32)
    # conv2: kh = 2*da + pi, kw = 2*db + pj  ->  tap (da,db), feat (pi,pj,c)
    w2 = p["conv2_w"].reshape(64, 32, 2, 2, 2, 2).transpose(
        2, 4, 3, 5, 1, 0).reshape(4, 128, 64)
    # conv3: same decomposition as conv2
    w3 = p["conv3_w"].reshape(64, 64, 2, 2, 2, 2).transpose(
        2, 4, 3, 5, 1, 0).reshape(4, 256, 64)
    # fc1: input index o*9 + p  ->  (p, o, out); NCHW flatten folded in here.
    wfc1 = p["fc1_w"].reshape(64, 9, 512).transpose(1, 0, 2)       # (9, 64, 512)
    # fc2: pad to 128 output lanes for an unmasked lane-dense HBM store.
    wfc2 = jnp.zeros((512, 128), jnp.float32).at[:, :6].set(p["fc2_w"])
    bfc2 = jnp.zeros((1, 128), jnp.float32).at[0, :6].set(p["fc2_b"])
    sel1, e1, sel2, e2 = _selection_constants()
    return dict(
        w1=w1, b1=p["conv1_b"].reshape(1, 32), sel1=sel1, e1=e1,
        w2=w2, b2=p["conv2_b"].reshape(1, 64), sel2=sel2, e2=e2,
        w3=w3, b3=p["conv3_b"].reshape(1, 64),
        wfc1=wfc1, bfc1=p["fc1_b"].reshape(1, 512),
        wfc2=wfc2, bfc2=bfc2,
    )


# --------------------------------- forward --------------------------------- #
def net2_forward(kp, x_nchw):
    N = x_nchw.shape[0]
    # Input layout plumbing (one fused XLA transpose of the 400 KB input):
    # NCHW -> space-to-depth(4): rows a*20+b, feats (ra, rb, c); pad 400 -> 408.
    x4 = x_nchw.reshape(N, 4, 20, 4, 20, 4).transpose(0, 2, 4, 3, 5, 1)
    x4 = x4.reshape(N, 400, 64)
    x4 = jnp.pad(x4, ((0, 0), (0, 8), (0, 0)))

    def full(a):
        nd = a.ndim
        return pl.BlockSpec(a.shape, lambda n, _nd=nd: (0,) * _nd)

    out = pl.pallas_call(
        _net2_kernel,
        grid=(N,),
        out_shape=jax.ShapeDtypeStruct((N, 1, 128), jnp.float32),
        in_specs=[
            pl.BlockSpec((1, 408, 64), lambda n: (n, 0, 0)),
            full(kp["w1"]), full(kp["b1"]), full(kp["sel1"]), full(kp["e1"]),
            full(kp["w2"]), full(kp["b2"]), full(kp["sel2"]), full(kp["e2"]),
            full(kp["w3"]), full(kp["b3"]),
            full(kp["wfc1"]), full(kp["bfc1"]),
            full(kp["wfc2"]), full(kp["bfc2"]),
        ],
        out_specs=pl.BlockSpec((1, 1, 128), lambda n: (n, 0, 0)),
        compiler_params=pltpu.CompilerParams(
            dimension_semantics=("parallel",),
            vmem_limit_bytes=32 * 1024 * 1024),
    )(x4, kp["w1"], kp["b1"], kp["sel1"], kp["e1"],
      kp["w2"], kp["b2"], kp["sel2"], kp["e2"],
      kp["w3"], kp["b3"], kp["wfc1"], kp["bfc1"], kp["wfc2"], kp["bfc2"])
    # NOTE: at large batch (training/replay) the M dims should be tiled with a
    # BlockSpec grid instead of whole-image blocks; at N=2 this is optimal.
    return out.reshape(N, 128)[:, :6]


if __name__ == "__main__":
    key = jax.random.PRNGKey(0)
    pkey, xkey = jax.random.split(key)
    params = init_params(pkey)
    kparams = prepare_kernel_params(params)   # layout transforms hoisted here
    # Atari Pong frame stack: batch=2, 4 stacked 80x80 frames (NCHW);
    # 80x80 is what fc1's input size of 576 = 64*3*3 implies.
    x = jax.random.normal(xkey, (2, 4, 80, 80), jnp.float32)

    fwd = jax.jit(net2_forward)
    out = jax.block_until_ready(fwd(kparams, x))
    assert out.shape == (2, 6), out.shape
    assert out.dtype == jnp.float32
    assert bool(jnp.isfinite(out).all())
    print("KERNEL_OK")
</pallas_src>

<mosaic_0001>
module attributes {stable_mosaic.version = 11 : i64} {
  func.func @_net2_kernel(%arg0: i32, %arg1: memref<1x408x64xf32, #tpu.memory_space<vmem>>, %arg2: memref<4x64x32xf32, #tpu.memory_space<vmem>>, %arg3: memref<1x32xf32, #tpu.memory_space<vmem>>, %arg4: memref<4x88x384xf32, #tpu.memory_space<vmem>>, %arg5: memref<4x32x128xf32, #tpu.memory_space<vmem>>, %arg6: memref<4x128x64xf32, #tpu.memory_space<vmem>>, %arg7: memref<1x64xf32, #tpu.memory_space<vmem>>, %arg8: memref<4x24x72xf32, #tpu.memory_space<vmem>>, %arg9: memref<4x64x256xf32, #tpu.memory_space<vmem>>, %arg10: memref<4x256x64xf32, #tpu.memory_space<vmem>>, %arg11: memref<1x64xf32, #tpu.memory_space<vmem>>, %arg12: memref<9x64x512xf32, #tpu.memory_space<vmem>>, %arg13: memref<1x512xf32, #tpu.memory_space<vmem>>, %arg14: memref<512x128xf32, #tpu.memory_space<vmem>>, %arg15: memref<1x128xf32, #tpu.memory_space<vmem>>, %arg16: memref<1x1x128xf32, #tpu.memory_space<vmem>>) attributes {dimension_semantics = [#tpu.dimension_semantics<parallel>], iteration_bounds = array<i64: 2>, scalar_prefetch = 0 : i64, scratch_operands = 0 : i64, tpu.core_type = #tpu.core_type<tc>, window_params = [{transform_indices = @transform_0, window_bounds = array<i64: 1, 408, 64>}, {pipeline_mode = #tpu.pipeline_mode<synchronous>, transform_indices = @transform_1, window_bounds = array<i64: 4, 64, 32>}, {pipeline_mode = #tpu.pipeline_mode<synchronous>, transform_indices = @transform_2, window_bounds = array<i64: 1, 32>}, {pipeline_mode = #tpu.pipeline_mode<synchronous>, transform_indices = @transform_3, window_bounds = array<i64: 4, 88, 384>}, {pipeline_mode = #tpu.pipeline_mode<synchronous>, transform_indices = @transform_4, window_bounds = array<i64: 4, 32, 128>}, {pipeline_mode = #tpu.pipeline_mode<synchronous>, transform_indices = @transform_5, window_bounds = array<i64: 4, 128, 64>}, {pipeline_mode = #tpu.pipeline_mode<synchronous>, transform_indices = @transform_6, window_bounds = array<i64: 1, 64>}, {pipeline_mode = #tpu.pipeline_mode<synchronous>, transform_indices = @transform_7, window_bounds = array<i64: 4, 24, 72>}, {pipeline_mode = #tpu.pipeline_mode<synchronous>, transform_indices = @transform_8, window_bounds = array<i64: 4, 64, 256>}, {pipeline_mode = #tpu.pipeline_mode<synchronous>, transform_indices = @transform_9, window_bounds = array<i64: 4, 256, 64>}, {pipeline_mode = #tpu.pipeline_mode<synchronous>, transform_indices = @transform_10, window_bounds = array<i64: 1, 64>}, {pipeline_mode = #tpu.pipeline_mode<synchronous>, transform_indices = @transform_11, window_bounds = array<i64: 9, 64, 512>}, {pipeline_mode = #tpu.pipeline_mode<synchronous>, transform_indices = @transform_12, window_bounds = array<i64: 1, 512>}, {pipeline_mode = #tpu.pipeline_mode<synchronous>, transform_indices = @transform_13, window_bounds = array<i64: 512, 128>}, {pipeline_mode = #tpu.pipeline_mode<synchronous>, transform_indices = @transform_14, window_bounds = array<i64: 1, 128>}, {transform_indices = @transform_15, window_bounds = array<i64: 1, 1, 128>}]} {
    %c0 = arith.constant 0 : index
    %c0_0 = arith.constant 0 : index
    %c0_1 = arith.constant 0 : index
    %0 = vector.load %arg1[%c0, %c0_0, %c0_1] : memref<1x408x64xf32, #tpu.memory_space<vmem>>, vector<1x408x64xf32>
    %1 = vector.shape_cast %0 : vector<1x408x64xf32> to vector<408x64xf32>
    %2 = vector.extract_strided_slice %1 {offsets = [0, 0], sizes = [384, 64], strides = [1, 1]} : vector<408x64xf32> to vector<384x64xf32>
    %c0_2 = arith.constant 0 : index
    %c0_3 = arith.constant 0 : index
    %c0_4 = arith.constant 0 : index
    %3 = vector.load %arg2[%c0_2, %c0_3, %c0_4] : memref<4x64x32xf32, #tpu.memory_space<vmem>>, vector<1x64x32xf32>
    %4 = vector.shape_cast %3 : vector<1x64x32xf32> to vector<64x32xf32>
    %cst = arith.constant dense<0.000000e+00> : vector<384x32xf32>
    %5 = tpu.matmul %2, %4, %cst {dimension_numbers = #tpu.dot_dimension_numbers<[1], [0], [0], [1], [0, 0, 1, 1], [], []>} : vector<384x64xf32>, vector<64x32xf32>, vector<384x32xf32> -> vector<384x32xf32>
    %6 = vector.extract_strided_slice %1 {offsets = [1, 0], sizes = [384, 64], strides = [1, 1]} : vector<408x64xf32> to vector<384x64xf32>
    %c1 = arith.constant 1 : index
    %c0_5 = arith.constant 0 : index
    %c0_6 = arith.constant 0 : index
    %7 = vector.load %arg2[%c1, %c0_5, %c0_6] : memref<4x64x32xf32, #tpu.memory_space<vmem>>, vector<1x64x32xf32>
    %8 = vector.shape_cast %7 : vector<1x64x32xf32> to vector<64x32xf32>
    %cst_7 = arith.constant dense<0.000000e+00> : vector<384x32xf32>
    %9 = tpu.matmul %6, %8, %cst_7 {dimension_numbers = #tpu.dot_dimension_numbers<[1], [0], [0], [1], [0, 0, 1, 1], [], []>} : vector<384x64xf32>, vector<64x32xf32>, vector<384x32xf32> -> vector<384x32xf32>
    %10 = arith.addf %5, %9 : vector<384x32xf32>
    %11 = vector.extract_strided_slice %1 {offsets = [20, 0], sizes = [384, 64], strides = [1, 1]} : vector<408x64xf32> to vector<384x64xf32>
    %c2 = arith.constant 2 : index
    %c0_8 = arith.constant 0 : index
    %c0_9 = arith.constant 0 : index
    %12 = vector.load %arg2[%c2, %c0_8, %c0_9] : memref<4x64x32xf32, #tpu.memory_space<vmem>>, vector<1x64x32xf32>
    %13 = vector.shape_cast %12 : vector<1x64x32xf32> to vector<64x32xf32>
    %cst_10 = arith.constant dense<0.000000e+00> : vector<384x32xf32>
    %14 = tpu.matmul %11, %13, %cst_10 {dimension_numbers = #tpu.dot_dimension_numbers<[1], [0], [0], [1], [0, 0, 1, 1], [], []>} : vector<384x64xf32>, vector<64x32xf32>, vector<384x32xf32> -> vector<384x32xf32>
    %15 = arith.addf %10, %14 : vector<384x32xf32>
    %16 = vector.extract_strided_slice %1 {offsets = [21, 0], sizes = [384, 64], strides = [1, 1]} : vector<408x64xf32> to vector<384x64xf32>
    %c3 = arith.constant 3 : index
    %c0_11 = arith.constant 0 : index
    %c0_12 = arith.constant 0 : index
    %17 = vector.load %arg2[%c3, %c0_11, %c0_12] : memref<4x64x32xf32, #tpu.memory_space<vmem>>, vector<1x64x32xf32>
    %18 = vector.shape_cast %17 : vector<1x64x32xf32> to vector<64x32xf32>
    %cst_13 = arith.constant dense<0.000000e+00> : vector<384x32xf32>
    %19 = tpu.matmul %16, %18, %cst_13 {dimension_numbers = #tpu.dot_dimension_numbers<[1], [0], [0], [1], [0, 0, 1, 1], [], []>} : vector<384x64xf32>, vector<64x32xf32>, vector<384x32xf32> -> vector<384x32xf32>
    %20 = arith.addf %15, %19 : vector<384x32xf32>
    %c0_14 = arith.constant 0 : index
    %c0_15 = arith.constant 0 : index
    %21 = vector.load %arg3[%c0_14, %c0_15] : memref<1x32xf32, #tpu.memory_space<vmem>>, vector<1x32xf32>
    %22 = vector.broadcast %21 : vector<1x32xf32> to vector<384x32xf32>
    %23 = arith.addf %20, %22 : vector<384x32xf32>
    %cst_16 = arith.constant 0.000000e+00 : f32
    %24 = vector.broadcast %cst_16 : f32 to vector<384x32xf32>
    %25 = arith.maximumf %23, %24 : vector<384x32xf32>
    %c0_17 = arith.constant 0 : index
    %c0_18 = arith.constant 0 : index
    %c0_19 = arith.constant 0 : index
    %26 = vector.load %arg4[%c0_17, %c0_18, %c0_19] : memref<4x88x384xf32, #tpu.memory_space<vmem>>, vector<1x88x384xf32>
    %27 = vector.shape_cast %26 : vector<1x88x384xf32> to vector<88x384xf32>
    %cst_20 = arith.constant dense<0.000000e+00> : vector<88x32xf32>
    %28 = tpu.matmul %27, %25, %cst_20 {dimension_numbers = #tpu.dot_dimension_numbers<[1], [0], [0], [1], [0, 0, 1, 1], [], []>} : vector<88x384xf32>, vector<384x32xf32>, vector<88x32xf32> -> vector<88x32xf32>
    %c0_21 = arith.constant 0 : index
    %c0_22 = arith.constant 0 : index
    %c0_23 = arith.constant 0 : index
    %29 = vector.load %arg5[%c0_21, %c0_22, %c0_23] : memref<4x32x128xf32, #tpu.memory_space<vmem>>, vector<1x32x128xf32>
    %30 = vector.shape_cast %29 : vector<1x32x128xf32> to vector<32x128xf32>
    %cst_24 = arith.constant dense<0.000000e+00> : vector<88x128xf32>
    %31 = tpu.matmul %28, %30, %cst_24 {dimension_numbers = #tpu.dot_dimension_numbers<[1], [0], [0], [1], [0, 0, 1, 1], [], []>} : vector<88x32xf32>, vector<32x128xf32>, vector<88x128xf32> -> vector<88x128xf32>
    %c1_25 = arith.constant 1 : index
    %c0_26 = arith.constant 0 : index
    %c0_27 = arith.constant 0 : index
    %32 = vector.load %arg4[%c1_25, %c0_26, %c0_27] : memref<4x88x384xf32, #tpu.memory_space<vmem>>, vector<1x88x384xf32>
    %33 = vector.shape_cast %32 : vector<1x88x384xf32> to vector<88x384xf32>
    %cst_28 = arith.constant dense<0.000000e+00> : vector<88x32xf32>
    %34 = tpu.matmul %33, %25, %cst_28 {dimension_numbers = #tpu.dot_dimension_numbers<[1], [0], [0], [1], [0, 0, 1, 1], [], []>} : vector<88x384xf32>, vector<384x32xf32>, vector<88x32xf32> -> vector<88x32xf32>
    %c1_29 = arith.constant 1 : index
    %c0_30 = arith.constant 0 : index
    %c0_31 = arith.constant 0 : index
    %35 = vector.load %arg5[%c1_29, %c0_30, %c0_31] : memref<4x32x128xf32, #tpu.memory_space<vmem>>, vector<1x32x128xf32>
    %36 = vector.shape_cast %35 : vector<1x32x128xf32> to vector<32x128xf32>
    %cst_32 = arith.constant dense<0.000000e+00> : vector<88x128xf32>
    %37 = tpu.matmul %34, %36, %cst_32 {dimension_numbers = #tpu.dot_dimension_numbers<[1], [0], [0], [1], [0, 0, 1, 1], [], []>} : vector<88x32xf32>, vector<32x128xf32>, vector<88x128xf32> -> vector<88x128xf32>
    %38 = arith.addf %31, %37 : vector<88x128xf32>
    %c2_33 = arith.constant 2 : index
    %c0_34 = arith.constant 0 : index
    %c0_35 = arith.constant 0 : index
    %39 = vector.load %arg4[%c2_33, %c0_34, %c0_35] : memref<4x88x384xf32, #tpu.memory_space<vmem>>, vector<1x88x384xf32>
    %40 = vector.shape_cast %39 : vector<1x88x384xf32> to vector<88x384xf32>
    %cst_36 = arith.constant dense<0.000000e+00> : vector<88x32xf32>
    %41 = tpu.matmul %40, %25, %cst_36 {dimension_numbers = #tpu.dot_dimension_numbers<[1], [0], [0], [1], [0, 0, 1, 1], [], []>} : vector<88x384xf32>, vector<384x32xf32>, vector<88x32xf32> -> vector<88x32xf32>
    %c2_37 = arith.constant 2 : index
    %c0_38 = arith.constant 0 : index
    %c0_39 = arith.constant 0 : index
    %42 = vector.load %arg5[%c2_37, %c0_38, %c0_39] : memref<4x32x128xf32, #tpu.memory_space<vmem>>, vector<1x32x128xf32>
    %43 = vector.shape_cast %42 : vector<1x32x128xf32> to vector<32x128xf32>
    %cst_40 = arith.constant dense<0.000000e+00> : vector<88x128xf32>
    %44 = tpu.matmul %41, %43, %cst_40 {dimension_numbers = #tpu.dot_dimension_numbers<[1], [0], [0], [1], [0, 0, 1, 1], [], []>} : vector<88x32xf32>, vector<32x128xf32>, vector<88x128xf32> -> vector<88x128xf32>
    %45 = arith.addf %38, %44 : vector<88x128xf32>
    %c3_41 = arith.constant 3 : index
    %c0_42 = arith.constant 0 : index
    %c0_43 = arith.constant 0 : index
    %46 = vector.load %arg4[%c3_41, %c0_42, %c0_43] : memref<4x88x384xf32, #tpu.memory_space<vmem>>, vector<1x88x384xf32>
    %47 = vector.shape_cast %46 : vector<1x88x384xf32> to vector<88x384xf32>
    %cst_44 = arith.constant dense<0.000000e+00> : vector<88x32xf32>
    %48 = tpu.matmul %47, %25, %cst_44 {dimension_numbers = #tpu.dot_dimension_numbers<[1], [0], [0], [1], [0, 0, 1, 1], [], []>} : vector<88x384xf32>, vector<384x32xf32>, vector<88x32xf32> -> vector<88x32xf32>
    %c3_45 = arith.constant 3 : index
    %c0_46 = arith.constant 0 : index
    %c0_47 = arith.constant 0 : index
    %49 = vector.load %arg5[%c3_45, %c0_46, %c0_47] : memref<4x32x128xf32, #tpu.memory_space<vmem>>, vector<1x32x128xf32>
    %50 = vector.shape_cast %49 : vector<1x32x128xf32> to vector<32x128xf32>
    %cst_48 = arith.constant dense<0.000000e+00> : vector<88x128xf32>
    %51 = tpu.matmul %48, %50, %cst_48 {dimension_numbers = #tpu.dot_dimension_numbers<[1], [0], [0], [1], [0, 0, 1, 1], [], []>} : vector<88x32xf32>, vector<32x128xf32>, vector<88x128xf32> -> vector<88x128xf32>
    %52 = arith.addf %45, %51 : vector<88x128xf32>
    %53 = vector.extract_strided_slice %52 {offsets = [0, 0], sizes = [72, 128], strides = [1, 1]} : vector<88x128xf32> to vector<72x128xf32>
    %c0_49 = arith.constant 0 : index
    %c0_50 = arith.constant 0 : index
    %c0_51 = arith.constant 0 : index
    %54 = vector.load %arg6[%c0_49, %c0_50, %c0_51] : memref<4x128x64xf32, #tpu.memory_space<vmem>>, vector<1x128x64xf32>
    %55 = vector.shape_cast %54 : vector<1x128x64xf32> to vector<128x64xf32>
    %cst_52 = arith.constant dense<0.000000e+00> : vector<72x64xf32>
    %56 = tpu.matmul %53, %55, %cst_52 {dimension_numbers = #tpu.dot_dimension_numbers<[1], [0], [0], [1], [0, 0, 1, 1], [], []>} : vector<72x128xf32>, vector<128x64xf32>, vector<72x64xf32> -> vector<72x64xf32>
    %57 = vector.extract_strided_slice %52 {offsets = [1, 0], sizes = [72, 128], strides = [1, 1]} : vector<88x128xf32> to vector<72x128xf32>
    %c1_53 = arith.constant 1 : index
    %c0_54 = arith.constant 0 : index
    %c0_55 = arith.constant 0 : index
    %58 = vector.load %arg6[%c1_53, %c0_54, %c0_55] : memref<4x128x64xf32, #tpu.memory_space<vmem>>, vector<1x128x64xf32>
    %59 = vector.shape_cast %58 : vector<1x128x64xf32> to vector<128x64xf32>
    %cst_56 = arith.constant dense<0.000000e+00> : vector<72x64xf32>
    %60 = tpu.matmul %57, %59, %cst_56 {dimension_numbers = #tpu.dot_dimension_numbers<[1], [0], [0], [1], [0, 0, 1, 1], [], []>} : vector<72x128xf32>, vector<128x64xf32>, vector<72x64xf32> -> vector<72x64xf32>
    %61 = arith.addf %56, %60 : vector<72x64xf32>
    %62 = vector.extract_strided_slice %52 {offsets = [9, 0], sizes = [72, 128], strides = [1, 1]} : vector<88x128xf32> to vector<72x128xf32>
    %c2_57 = arith.constant 2 : index
    %c0_58 = arith.constant 0 : index
    %c0_59 = arith.constant 0 : index
    %63 = vector.load %arg6[%c2_57, %c0_58, %c0_59] : memref<4x128x64xf32, #tpu.memory_space<vmem>>, vector<1x128x64xf32>
    %64 = vector.shape_cast %63 : vector<1x128x64xf32> to vector<128x64xf32>
    %cst_60 = arith.constant dense<0.000000e+00> : vector<72x64xf32>
    %65 = tpu.matmul %62, %64, %cst_60 {dimension_numbers = #tpu.dot_dimension_numbers<[1], [0], [0], [1], [0, 0, 1, 1], [], []>} : vector<72x128xf32>, vector<128x64xf32>, vector<72x64xf32> -> vector<72x64xf32>
    %66 = arith.addf %61, %65 : vector<72x64xf32>
    %67 = vector.extract_strided_slice %52 {offsets = [10, 0], sizes = [72, 128], strides = [1, 1]} : vector<88x128xf32> to vector<72x128xf32>
    %c3_61 = arith.constant 3 : index
    %c0_62 = arith.constant 0 : index
    %c0_63 = arith.constant 0 : index
    %68 = vector.load %arg6[%c3_61, %c0_62, %c0_63] : memref<4x128x64xf32, #tpu.memory_space<vmem>>, vector<1x128x64xf32>
    %69 = vector.shape_cast %68 : vector<1x128x64xf32> to vector<128x64xf32>
    %cst_64 = arith.constant dense<0.000000e+00> : vector<72x64xf32>
    %70 = tpu.matmul %67, %69, %cst_64 {dimension_numbers = #tpu.dot_dimension_numbers<[1], [0], [0], [1], [0, 0, 1, 1], [], []>} : vector<72x128xf32>, vector<128x64xf32>, vector<72x64xf32> -> vector<72x64xf32>
    %71 = arith.addf %66, %70 : vector<72x64xf32>
    %c0_65 = arith.constant 0 : index
    %c0_66 = arith.constant 0 : index
    %72 = vector.load %arg7[%c0_65, %c0_66] : memref<1x64xf32, #tpu.memory_space<vmem>>, vector<1x64xf32>
    %73 = vector.broadcast %72 : vector<1x64xf32> to vector<72x64xf32>
    %74 = arith.addf %71, %73 : vector<72x64xf32>
    %cst_67 = arith.constant 0.000000e+00 : f32
    %75 = vector.broadcast %cst_67 : f32 to vector<72x64xf32>
    %76 = arith.maximumf %74, %75 : vector<72x64xf32>
    %c0_68 = arith.constant 0 : index
    %c0_69 = arith.constant 0 : index
    %c0_70 = arith.constant 0 : index
    %77 = vector.load %arg8[%c0_68, %c0_69, %c0_70] : memref<4x24x72xf32, #tpu.memory_space<vmem>>, vector<1x24x72xf32>
    %78 = vector.shape_cast %77 : vector<1x24x72xf32> to vector<24x72xf32>
    %cst_71 = arith.constant dense<0.000000e+00> : vector<24x64xf32>
    %79 = tpu.matmul %78, %76, %cst_71 {dimension_numbers = #tpu.dot_dimension_numbers<[1], [0], [0], [1], [0, 0, 1, 1], [], []>} : vector<24x72xf32>, vector<72x64xf32>, vector<24x64xf32> -> vector<24x64xf32>
    %c0_72 = arith.constant 0 : index
    %c0_73 = arith.constant 0 : index
    %c0_74 = arith.constant 0 : index
    %80 = vector.load %arg9[%c0_72, %c0_73, %c0_74] : memref<4x64x256xf32, #tpu.memory_space<vmem>>, vector<1x64x256xf32>
    %81 = vector.shape_cast %80 : vector<1x64x256xf32> to vector<64x256xf32>
    %cst_75 = arith.constant dense<0.000000e+00> : vector<24x256xf32>
    %82 = tpu.matmul %79, %81, %cst_75 {dimension_numbers = #tpu.dot_dimension_numbers<[1], [0], [0], [1], [0, 0, 1, 1], [], []>} : vector<24x64xf32>, vector<64x256xf32>, vector<24x256xf32> -> vector<24x256xf32>
    %c1_76 = arith.constant 1 : index
    %c0_77 = arith.constant 0 : index
    %c0_78 = arith.constant 0 : index
    %83 = vector.load %arg8[%c1_76, %c0_77, %c0_78] : memref<4x24x72xf32, #tpu.memory_space<vmem>>, vector<1x24x72xf32>
    %84 = vector.shape_cast %83 : vector<1x24x72xf32> to vector<24x72xf32>
    %cst_79 = arith.constant dense<0.000000e+00> : vector<24x64xf32>
    %85 = tpu.matmul %84, %76, %cst_79 {dimension_numbers = #tpu.dot_dimension_numbers<[1], [0], [0], [1], [0, 0, 1, 1], [], []>} : vector<24x72xf32>, vector<72x64xf32>, vector<24x64xf32> -> vector<24x64xf32>
    %c1_80 = arith.constant 1 : index
    %c0_81 = arith.constant 0 : index
    %c0_82 = arith.constant 0 : index
    %86 = vector.load %arg9[%c1_80, %c0_81, %c0_82] : memref<4x64x256xf32, #tpu.memory_space<vmem>>, vector<1x64x256xf32>
    %87 = vector.shape_cast %86 : vector<1x64x256xf32> to vector<64x256xf32>
    %cst_83 = arith.constant dense<0.000000e+00> : vector<24x256xf32>
    %88 = tpu.matmul %85, %87, %cst_83 {dimension_numbers = #tpu.dot_dimension_numbers<[1], [0], [0], [1], [0, 0, 1, 1], [], []>} : vector<24x64xf32>, vector<64x256xf32>, vector<24x256xf32> -> vector<24x256xf32>
    %89 = arith.addf %82, %88 : vector<24x256xf32>
    %c2_84 = arith.constant 2 : index
    %c0_85 = arith.constant 0 : index
    %c0_86 = arith.constant 0 : index
    %90 = vector.load %arg8[%c2_84, %c0_85, %c0_86] : memref<4x24x72xf32, #tpu.memory_space<vmem>>, vector<1x24x72xf32>
    %91 = vector.shape_cast %90 : vector<1x24x72xf32> to vector<24x72xf32>
    %cst_87 = arith.constant dense<0.000000e+00> : vector<24x64xf32>
    %92 = tpu.matmul %91, %76, %cst_87 {dimension_numbers = #tpu.dot_dimension_numbers<[1], [0], [0], [1], [0, 0, 1, 1], [], []>} : vector<24x72xf32>, vector<72x64xf32>, vector<24x64xf32> -> vector<24x64xf32>
    %c2_88 = arith.constant 2 : index
    %c0_89 = arith.constant 0 : index
    %c0_90 = arith.constant 0 : index
    %93 = vector.load %arg9[%c2_88, %c0_89, %c0_90] : memref<4x64x256xf32, #tpu.memory_space<vmem>>, vector<1x64x256xf32>
    %94 = vector.shape_cast %93 : vector<1x64x256xf32> to vector<64x256xf32>
    %cst_91 = arith.constant dense<0.000000e+00> : vector<24x256xf32>
    %95 = tpu.matmul %92, %94, %cst_91 {dimension_numbers = #tpu.dot_dimension_numbers<[1], [0], [0], [1], [0, 0, 1, 1], [], []>} : vector<24x64xf32>, vector<64x256xf32>, vector<24x256xf32> -> vector<24x256xf32>
    %96 = arith.addf %89, %95 : vector<24x256xf32>
    %c3_92 = arith.constant 3 : index
    %c0_93 = arith.constant 0 : index
    %c0_94 = arith.constant 0 : index
    %97 = vector.load %arg8[%c3_92, %c0_93, %c0_94] : memref<4x24x72xf32, #tpu.memory_space<vmem>>, vector<1x24x72xf32>
    %98 = vector.shape_cast %97 : vector<1x24x72xf32> to vector<24x72xf32>
    %cst_95 = arith.constant dense<0.000000e+00> : vector<24x64xf32>
    %99 = tpu.matmul %98, %76, %cst_95 {dimension_numbers = #tpu.dot_dimension_numbers<[1], [0], [0], [1], [0, 0, 1, 1], [], []>} : vector<24x72xf32>, vector<72x64xf32>, vector<24x64xf32> -> vector<24x64xf32>
    %c3_96 = arith.constant 3 : index
    %c0_97 = arith.constant 0 : index
    %c0_98 = arith.constant 0 : index
    %100 = vector.load %arg9[%c3_96, %c0_97, %c0_98] : memref<4x64x256xf32, #tpu.memory_space<vmem>>, vector<1x64x256xf32>
    %101 = vector.shape_cast %100 : vector<1x64x256xf32> to vector<64x256xf32>
    %cst_99 = arith.constant dense<0.000000e+00> : vector<24x256xf32>
    %102 = tpu.matmul %99, %101, %cst_99 {dimension_numbers = #tpu.dot_dimension_numbers<[1], [0], [0], [1], [0, 0, 1, 1], [], []>} : vector<24x64xf32>, vector<64x256xf32>, vector<24x256xf32> -> vector<24x256xf32>
    %103 = arith.addf %96, %102 : vector<24x256xf32>
    %104 = vector.extract_strided_slice %103 {offsets = [0, 0], sizes = [16, 256], strides = [1, 1]} : vector<24x256xf32> to vector<16x256xf32>
    %c0_100 = arith.constant 0 : index
    %c0_101 = arith.constant 0 : index
    %c0_102 = arith.constant 0 : index
    %105 = vector.load %arg10[%c0_100, %c0_101, %c0_102] : memref<4x256x64xf32, #tpu.memory_space<vmem>>, vector<1x256x64xf32>
    %106 = vector.shape_cast %105 : vector<1x256x64xf32> to vector<256x64xf32>
    %cst_103 = arith.constant dense<0.000000e+00> : vector<16x64xf32>
    %107 = tpu.matmul %104, %106, %cst_103 {dimension_numbers = #tpu.dot_dimension_numbers<[1], [0], [0], [1], [0, 0, 1, 1], [], []>} : vector<16x256xf32>, vector<256x64xf32>, vector<16x64xf32> -> vector<16x64xf32>
    %108 = vector.extract_strided_slice %103 {offsets = [1, 0], sizes = [16, 256], strides = [1, 1]} : vector<24x256xf32> to vector<16x256xf32>
    %c1_104 = arith.constant 1 : index
    %c0_105 = arith.constant 0 : index
    %c0_106 = arith.constant 0 : index
    %109 = vector.load %arg10[%c1_104, %c0_105, %c0_106] : memref<4x256x64xf32, #tpu.memory_space<vmem>>, vector<1x256x64xf32>
    %110 = vector.shape_cast %109 : vector<1x256x64xf32> to vector<256x64xf32>
    %cst_107 = arith.constant dense<0.000000e+00> : vector<16x64xf32>
    %111 = tpu.matmul %108, %110, %cst_107 {dimension_numbers = #tpu.dot_dimension_numbers<[1], [0], [0], [1], [0, 0, 1, 1], [], []>} : vector<16x256xf32>, vector<256x64xf32>, vector<16x64xf32> -> vector<16x64xf32>
    %112 = arith.addf %107, %111 : vector<16x64xf32>
    %113 = vector.extract_strided_slice %103 {offsets = [4, 0], sizes = [16, 256], strides = [1, 1]} : vector<24x256xf32> to vector<16x256xf32>
    %c2_108 = arith.constant 2 : index
    %c0_109 = arith.constant 0 : index
    %c0_110 = arith.constant 0 : index
    %114 = vector.load %arg10[%c2_108, %c0_109, %c0_110] : memref<4x256x64xf32, #tpu.memory_space<vmem>>, vector<1x256x64xf32>
    %115 = vector.shape_cast %114 : vector<1x256x64xf32> to vector<256x64xf32>
    %cst_111 = arith.constant dense<0.000000e+00> : vector<16x64xf32>
    %116 = tpu.matmul %113, %115, %cst_111 {dimension_numbers = #tpu.dot_dimension_numbers<[1], [0], [0], [1], [0, 0, 1, 1], [], []>} : vector<16x256xf32>, vector<256x64xf32>, vector<16x64xf32> -> vector<16x64xf32>
    %117 = arith.addf %112, %116 : vector<16x64xf32>
    %118 = vector.extract_strided_slice %103 {offsets = [5, 0], sizes = [16, 256], strides = [1, 1]} : vector<24x256xf32> to vector<16x256xf32>
    %c3_112 = arith.constant 3 : index
    %c0_113 = arith.constant 0 : index
    %c0_114 = arith.constant 0 : index
    %119 = vector.load %arg10[%c3_112, %c0_113, %c0_114] : memref<4x256x64xf32, #tpu.memory_space<vmem>>, vector<1x256x64xf32>
    %120 = vector.shape_cast %119 : vector<1x256x64xf32> to vector<256x64xf32>
    %cst_115 = arith.constant dense<0.000000e+00> : vector<16x64xf32>
    %121 = tpu.matmul %118, %120, %cst_115 {dimension_numbers = #tpu.dot_dimension_numbers<[1], [0], [0], [1], [0, 0, 1, 1], [], []>} : vector<16x256xf32>, vector<256x64xf32>, vector<16x64xf32> -> vector<16x64xf32>
    %122 = arith.addf %117, %121 : vector<16x64xf32>
    %c0_116 = arith.constant 0 : index
    %c0_117 = arith.constant 0 : index
    %123 = vector.load %arg11[%c0_116, %c0_117] : memref<1x64xf32, #tpu.memory_space<vmem>>, vector<1x64xf32>
    %124 = vector.broadcast %123 : vector<1x64xf32> to vector<16x64xf32>
    %125 = arith.addf %122, %124 : vector<16x64xf32>
    %cst_118 = arith.constant 0.000000e+00 : f32
    %126 = vector.broadcast %cst_118 : f32 to vector<16x64xf32>
    %127 = arith.maximumf %125, %126 : vector<16x64xf32>
    %c0_119 = arith.constant 0 : index
    %c0_120 = arith.constant 0 : index
    %128 = vector.load %arg13[%c0_119, %c0_120] : memref<1x512xf32, #tpu.memory_space<vmem>>, vector<1x512xf32>
    %129 = vector.extract_strided_slice %127 {offsets = [0, 0], sizes = [1, 64], strides = [1, 1]} : vector<16x64xf32> to vector<1x64xf32>
    %c0_121 = arith.constant 0 : index
    %c0_122 = arith.constant 0 : index
    %c0_123 = arith.constant 0 : index
    %130 = vector.load %arg12[%c0_121, %c0_122, %c0_123] : memref<9x64x512xf32, #tpu.memory_space<vmem>>, vector<1x64x512xf32>
    %131 = vector.shape_cast %130 : vector<1x64x512xf32> to vector<64x512xf32>
    %cst_124 = arith.constant dense<0.000000e+00> : vector<1x512xf32>
    %132 = tpu.matmul %129, %131, %cst_124 {dimension_numbers = #tpu.dot_dimension_numbers<[1], [0], [0], [1], [0, 0, 1, 1], [], []>} : vector<1x64xf32>, vector<64x512xf32>, vector<1x512xf32> -> vector<1x512xf32>
    %133 = arith.addf %128, %132 : vector<1x512xf32>
    %134 = vector.extract_strided_slice %127 {offsets = [1, 0], sizes = [1, 64], strides = [1, 1]} : vector<16x64xf32> to vector<1x64xf32>
    %c1_125 = arith.constant 1 : index
    %c0_126 = arith.constant 0 : index
    %c0_127 = arith.constant 0 : index
    %135 = vector.load %arg12[%c1_125, %c0_126, %c0_127] : memref<9x64x512xf32, #tpu.memory_space<vmem>>, vector<1x64x512xf32>
    %136 = vector.shape_cast %135 : vector<1x64x512xf32> to vector<64x512xf32>
    %cst_128 = arith.constant dense<0.000000e+00> : vector<1x512xf32>
    %137 = tpu.matmul %134, %136, %cst_128 {dimension_numbers = #tpu.dot_dimension_numbers<[1], [0], [0], [1], [0, 0, 1, 1], [], []>} : vector<1x64xf32>, vector<64x512xf32>, vector<1x512xf32> -> vector<1x512xf32>
    %138 = arith.addf %133, %137 : vector<1x512xf32>
    %139 = vector.extract_strided_slice %127 {offsets = [2, 0], sizes = [1, 64], strides = [1, 1]} : vector<16x64xf32> to vector<1x64xf32>
    %c2_129 = arith.constant 2 : index
    %c0_130 = arith.constant 0 : index
    %c0_131 = arith.constant 0 : index
    %140 = vector.load %arg12[%c2_129, %c0_130, %c0_131] : memref<9x64x512xf32, #tpu.memory_space<vmem>>, vector<1x64x512xf32>
    %141 = vector.shape_cast %140 : vector<1x64x512xf32> to vector<64x512xf32>
    %cst_132 = arith.constant dense<0.000000e+00> : vector<1x512xf32>
    %142 = tpu.matmul %139, %141, %cst_132 {dimension_numbers = #tpu.dot_dimension_numbers<[1], [0], [0], [1], [0, 0, 1, 1], [], []>} : vector<1x64xf32>, vector<64x512xf32>, vector<1x512xf32> -> vector<1x512xf32>
    %143 = arith.addf %138, %142 : vector<1x512xf32>
    %144 = vector.extract_strided_slice %127 {offsets = [4, 0], sizes = [1, 64], strides = [1, 1]} : vector<16x64xf32> to vector<1x64xf32>
    %c3_133 = arith.constant 3 : index
    %c0_134 = arith.constant 0 : index
    %c0_135 = arith.constant 0 : index
    %145 = vector.load %arg12[%c3_133, %c0_134, %c0_135] : memref<9x64x512xf32, #tpu.memory_space<vmem>>, vector<1x64x512xf32>
    %146 = vector.shape_cast %145 : vector<1x64x512xf32> to vector<64x512xf32>
    %cst_136 = arith.constant dense<0.000000e+00> : vector<1x512xf32>
    %147 = tpu.matmul %144, %146, %cst_136 {dimension_numbers = #tpu.dot_dimension_numbers<[1], [0], [0], [1], [0, 0, 1, 1], [], []>} : vector<1x64xf32>, vector<64x512xf32>, vector<1x512xf32> -> vector<1x512xf32>
    %148 = arith.addf %143, %147 : vector<1x512xf32>
    %149 = vector.extract_strided_slice %127 {offsets = [5, 0], sizes = [1, 64], strides = [1, 1]} : vector<16x64xf32> to vector<1x64xf32>
    %c4 = arith.constant 4 : index
    %c0_137 = arith.constant 0 : index
    %c0_138 = arith.constant 0 : index
    %150 = vector.load %arg12[%c4, %c0_137, %c0_138] : memref<9x64x512xf32, #tpu.memory_space<vmem>>, vector<1x64x512xf32>
    %151 = vector.shape_cast %150 : vector<1x64x512xf32> to vector<64x512xf32>
    %cst_139 = arith.constant dense<0.000000e+00> : vector<1x512xf32>
    %152 = tpu.matmul %149, %151, %cst_139 {dimension_numbers = #tpu.dot_dimension_numbers<[1], [0], [0], [1], [0, 0, 1, 1], [], []>} : vector<1x64xf32>, vector<64x512xf32>, vector<1x512xf32> -> vector<1x512xf32>
    %153 = arith.addf %148, %152 : vector<1x512xf32>
    %154 = vector.extract_strided_slice %127 {offsets = [6, 0], sizes = [1, 64], strides = [1, 1]} : vector<16x64xf32> to vector<1x64xf32>
    %c5 = arith.constant 5 : index
    %c0_140 = arith.constant 0 : index
    %c0_141 = arith.constant 0 : index
    %155 = vector.load %arg12[%c5, %c0_140, %c0_141] : memref<9x64x512xf32, #tpu.memory_space<vmem>>, vector<1x64x512xf32>
    %156 = vector.shape_cast %155 : vector<1x64x512xf32> to vector<64x512xf32>
    %cst_142 = arith.constant dense<0.000000e+00> : vector<1x512xf32>
    %157 = tpu.matmul %154, %156, %cst_142 {dimension_numbers = #tpu.dot_dimension_numbers<[1], [0], [0], [1], [0, 0, 1, 1], [], []>} : vector<1x64xf32>, vector<64x512xf32>, vector<1x512xf32> -> vector<1x512xf32>
    %158 = arith.addf %153, %157 : vector<1x512xf32>
    %159 = vector.extract_strided_slice %127 {offsets = [8, 0], sizes = [1, 64], strides = [1, 1]} : vector<16x64xf32> to vector<1x64xf32>
    %c6 = arith.constant 6 : index
    %c0_143 = arith.constant 0 : index
    %c0_144 = arith.constant 0 : index
    %160 = vector.load %arg12[%c6, %c0_143, %c0_144] : memref<9x64x512xf32, #tpu.memory_space<vmem>>, vector<1x64x512xf32>
    %161 = vector.shape_cast %160 : vector<1x64x512xf32> to vector<64x512xf32>
    %cst_145 = arith.constant dense<0.000000e+00> : vector<1x512xf32>
    %162 = tpu.matmul %159, %161, %cst_145 {dimension_numbers = #tpu.dot_dimension_numbers<[1], [0], [0], [1], [0, 0, 1, 1], [], []>} : vector<1x64xf32>, vector<64x512xf32>, vector<1x512xf32> -> vector<1x512xf32>
    %163 = arith.addf %158, %162 : vector<1x512xf32>
    %164 = vector.extract_strided_slice %127 {offsets = [9, 0], sizes = [1, 64], strides = [1, 1]} : vector<16x64xf32> to vector<1x64xf32>
    %c7 = arith.constant 7 : index
    %c0_146 = arith.constant 0 : index
    %c0_147 = arith.constant 0 : index
    %165 = vector.load %arg12[%c7, %c0_146, %c0_147] : memref<9x64x512xf32, #tpu.memory_space<vmem>>, vector<1x64x512xf32>
    %166 = vector.shape_cast %165 : vector<1x64x512xf32> to vector<64x512xf32>
    %cst_148 = arith.constant dense<0.000000e+00> : vector<1x512xf32>
    %167 = tpu.matmul %164, %166, %cst_148 {dimension_numbers = #tpu.dot_dimension_numbers<[1], [0], [0], [1], [0, 0, 1, 1], [], []>} : vector<1x64xf32>, vector<64x512xf32>, vector<1x512xf32> -> vector<1x512xf32>
    %168 = arith.addf %163, %167 : vector<1x512xf32>
    %169 = vector.extract_strided_slice %127 {offsets = [10, 0], sizes = [1, 64], strides = [1, 1]} : vector<16x64xf32> to vector<1x64xf32>
    %c8 = arith.constant 8 : index
    %c0_149 = arith.constant 0 : index
    %c0_150 = arith.constant 0 : index
    %170 = vector.load %arg12[%c8, %c0_149, %c0_150] : memref<9x64x512xf32, #tpu.memory_space<vmem>>, vector<1x64x512xf32>
    %171 = vector.shape_cast %170 : vector<1x64x512xf32> to vector<64x512xf32>
    %cst_151 = arith.constant dense<0.000000e+00> : vector<1x512xf32>
    %172 = tpu.matmul %169, %171, %cst_151 {dimension_numbers = #tpu.dot_dimension_numbers<[1], [0], [0], [1], [0, 0, 1, 1], [], []>} : vector<1x64xf32>, vector<64x512xf32>, vector<1x512xf32> -> vector<1x512xf32>
    %173 = arith.addf %168, %172 : vector<1x512xf32>
    %cst_152 = arith.constant 0.000000e+00 : f32
    %174 = vector.broadcast %cst_152 : f32 to vector<1x512xf32>
    %175 = arith.maximumf %173, %174 : vector<1x512xf32>
    %c0_153 = arith.constant 0 : index
    %c0_154 = arith.constant 0 : index
    %176 = vector.load %arg14[%c0_153, %c0_154] : memref<512x128xf32, #tpu.memory_space<vmem>>, vector<512x128xf32>
    %cst_155 = arith.constant dense<0.000000e+00> : vector<1x128xf32>
    %177 = tpu.matmul %175, %176, %cst_155 {dimension_numbers = #tpu.dot_dimension_numbers<[1], [0], [0], [1], [0, 0, 1, 1], [], []>} : vector<1x512xf32>, vector<512x128xf32>, vector<1x128xf32> -> vector<1x128xf32>
    %c0_156 = arith.constant 0 : index
    %c0_157 = arith.constant 0 : index
    %178 = vector.load %arg15[%c0_156, %c0_157] : memref<1x128xf32, #tpu.memory_space<vmem>>, vector<1x128xf32>
    %179 = arith.addf %177, %178 : vector<1x128xf32>
    %c0_158 = arith.constant 0 : index
    %c0_159 = arith.constant 0 : index
    %c0_160 = arith.constant 0 : index
    %180 = vector.load %arg16[%c0_158, %c0_159, %c0_160] : memref<1x1x128xf32, #tpu.memory_space<vmem>>, vector<1x1x128xf32>
    %181 = vector.shape_cast %180 : vector<1x1x128xf32> to vector<1x128xf32>
    %182 = vector.shape_cast %179 : vector<1x128xf32> to vector<1x1x128xf32>
    tpu.vector_store %arg16[%c0_158, %c0_159, %c0_160], %182 {strides = array<i32>} : memref<1x1x128xf32, #tpu.memory_space<vmem>>, vector<1x1x128xf32>,
    return
  }
  func.func @transform_0(%arg0: i32) -> (i32, i32, i32) {
    %c0_i32 = arith.constant 0 : i32
    %c0_i32_0 = arith.constant 0 : i32
    %c0_i32_1 = arith.constant 0 : i32
    return %arg0, %c0_i32, %c0_i32_0 : i32, i32, i32
  }
  func.func @transform_1(%arg0: i32) -> (i32, i32, i32) {
    %c0_i32 = arith.constant 0 : i32
    %c0_i32_0 = arith.constant 0 : i32
    %c0_i32_1 = arith.constant 0 : i32
    %c0_i32_2 = arith.constant 0 : i32
    return %c0_i32, %c0_i32_0, %c0_i32_1 : i32, i32, i32
  }
  func.func @transform_2(%arg0: i32) -> (i32, i32) {
    %c0_i32 = arith.constant 0 : i32
    %c0_i32_0 = arith.constant 0 : i32
    %c0_i32_1 = arith.constant 0 : i32
    return %c0_i32, %c0_i32_0 : i32, i32
  }
  func.func @transform_3(%arg0: i32) -> (i32, i32, i32) {
    %c0_i32 = arith.constant 0 : i32
    %c0_i32_0 = arith.constant 0 : i32
    %c0_i32_1 = arith.constant 0 : i32
    %c0_i32_2 = arith.constant 0 : i32
    return %c0_i32, %c0_i32_0, %c0_i32_1 : i32, i32, i32
  }
  func.func @transform_4(%arg0: i32) -> (i32, i32, i32) {
    %c0_i32 = arith.constant 0 : i32
    %c0_i32_0 = arith.constant 0 : i32
    %c0_i32_1 = arith.constant 0 : i32
    %c0_i32_2 = arith.constant 0 : i32
    return %c0_i32, %c0_i32_0, %c0_i32_1 : i32, i32, i32
  }
  func.func @transform_5(%arg0: i32) -> (i32, i32, i32) {
    %c0_i32 = arith.constant 0 : i32
    %c0_i32_0 = arith.constant 0 : i32
    %c0_i32_1 = arith.constant 0 : i32
    %c0_i32_2 = arith.constant 0 : i32
    return %c0_i32, %c0_i32_0, %c0_i32_1 : i32, i32, i32
  }
  func.func @transform_6(%arg0: i32) -> (i32, i32) {
    %c0_i32 = arith.constant 0 : i32
    %c0_i32_0 = arith.constant 0 : i32
    %c0_i32_1 = arith.constant 0 : i32
    return %c0_i32, %c0_i32_0 : i32, i32
  }
  func.func @transform_7(%arg0: i32) -> (i32, i32, i32) {
    %c0_i32 = arith.constant 0 : i32
    %c0_i32_0 = arith.constant 0 : i32
    %c0_i32_1 = arith.constant 0 : i32
    %c0_i32_2 = arith.constant 0 : i32
    return %c0_i32, %c0_i32_0, %c0_i32_1 : i32, i32, i32
  }
  func.func @transform_8(%arg0: i32) -> (i32, i32, i32) {
    %c0_i32 = arith.constant 0 : i32
    %c0_i32_0 = arith.constant 0 : i32
    %c0_i32_1 = arith.constant 0 : i32
    %c0_i32_2 = arith.constant 0 : i32
    return %c0_i32, %c0_i32_0, %c0_i32_1 : i32, i32, i32
  }
  func.func @transform_9(%arg0: i32) -> (i32, i32, i32) {
    %c0_i32 = arith.constant 0 : i32
    %c0_i32_0 = arith.constant 0 : i32
    %c0_i32_1 = arith.constant 0 : i32
    %c0_i32_2 = arith.constant 0 : i32
    return %c0_i32, %c0_i32_0, %c0_i32_1 : i32, i32, i32
  }
  func.func @transform_10(%arg0: i32) -> (i32, i32) {
    %c0_i32 = arith.constant 0 : i32
    %c0_i32_0 = arith.constant 0 : i32
    %c0_i32_1 = arith.constant 0 : i32
    return %c0_i32, %c0_i32_0 : i32, i32
  }
  func.func @transform_11(%arg0: i32) -> (i32, i32, i32) {
    %c0_i32 = arith.constant 0 : i32
    %c0_i32_0 = arith.constant 0 : i32
    %c0_i32_1 = arith.constant 0 : i32
    %c0_i32_2 = arith.constant 0 : i32
    return %c0_i32, %c0_i32_0, %c0_i32_1 : i32, i32, i32
  }
  func.func @transform_12(%arg0: i32) -> (i32, i32) {
    %c0_i32 = arith.constant 0 : i32
    %c0_i32_0 = arith.constant 0 : i32
    %c0_i32_1 = arith.constant 0 : i32
    return %c0_i32, %c0_i32_0 : i32, i32
  }
  func.func @transform_13(%arg0: i32) -> (i32, i32) {
    %c0_i32 = arith.constant 0 : i32
    %c0_i32_0 = arith.constant 0 : i32
    %c0_i32_1 = arith.constant 0 : i32
    return %c0_i32, %c0_i32_0 : i32, i32
  }
  func.func @transform_14(%arg0: i32) -> (i32, i32) {
    %c0_i32 = arith.constant 0 : i32
    %c0_i32_0 = arith.constant 0 : i32
    %c0_i32_1 = arith.constant 0 : i32
    return %c0_i32, %c0_i32_0 : i32, i32
  }
  func.func @transform_15(%arg0: i32) -> (i32, i32, i32) {
    %c0_i32 = arith.constant 0 : i32
    %c0_i32_0 = arith.constant 0 : i32
    %c0_i32_1 = arith.constant 0 : i32
    return %arg0, %c0_i32, %c0_i32_0 : i32, i32, i32
  }
}

</mosaic_0001>

<bundles_post_ra>
// kernel: net2_forward.1
= control target key start
LH: loop header
LB: loop body
LE: loop exit
PB: predicated region body
PF: predicated region fallthrough
CT: control target
= control target key end

     0   :  { %s16947_s0 = inlined_call_operand.vmem [shape: f32[2,408,64], index: 0, kind: input, shape index: {}]   ;;  %s16948_s1 = inlined_call_operand.vmem [shape: f32[4,64,32], index: 1, kind: input, shape index: {}]   ;;  %s16949_s2 = inlined_call_operand.vmem [shape: f32[1,32], index: 2, kind: input, shape index: {}]   ;;  %s16950_s3 = inlined_call_operand.vmem [shape: f32[4,88,384], index: 3, kind: input, shape index: {}]   ;;  %s16951_s4 = inlined_call_operand.vmem [shape: f32[4,32,128], index: 4, kind: input, shape index: {}]   ;;  %s16952_s5 = inlined_call_operand.vmem [shape: f32[4,128,64], index: 5, kind: input, shape index: {}]   ;;  %s16953_s6 = inlined_call_operand.vmem [shape: f32[1,64], index: 6, kind: input, shape index: {}]   ;;  %s16954_s7 = inlined_call_operand.vmem [shape: f32[4,24,72], index: 7, kind: input, shape index: {}]   ;;  %s16955_s8 = inlined_call_operand.vmem [shape: f32[4,64,256], index: 8, kind: input, shape index: {}]   ;;  %s16956_s9 = inlined_call_operand.vmem [shape: f32[4,256,64], index: 9, kind: input, shape index: {}]   ;;  %s16957_s10 = inlined_call_operand.vmem [shape: f32[1,64], index: 10, kind: input, shape index: {}]   ;;  %s16958_s11 = inlined_call_operand.vmem [shape: f32[9,64,512], index: 11, kind: input, shape index: {}]   ;;  %s16959_s12 = inlined_call_operand.vmem [shape: f32[1,512], index: 12, kind: input, shape index: {}]   ;;  %s16960_s13 = inlined_call_operand.vmem [shape: f32[512,128], index: 13, kind: input, shape index: {}]   ;;  %s16961_s14 = inlined_call_operand.vmem [shape: f32[1,128], index: 14, kind: input, shape index: {}]   ;;  %s16962_s15 = inlined_call_operand.hbm [shape: f32[2,1,128], index: 15, kind: output, shape index: {}]  }
   0x1   :  { %17006 = sst [smem:[#allocation82_spill]] %s16947_s0 }
   0x2   :  { %20 = vsyncpa [#allocation3], 0 }
   0x3   :  { %22 = vsyncpa [#allocation3 + $0x1], 0  ;;  %s11790_s18 = smov 0   ;;  %s11792_s19 = smov 0  }
   0x4   :  { %s11794_s20 = smov 0   ;;  %s11796_s21 = smov 0  }
   0x5 LB: > { %17007 = sst [smem:[#allocation5_spill]] %s11692_s18  ;;  %s11811_s22 = sadd.s32 4294967295, %s11704_s21   ;;  %s11704_s21 = sphi %s11796_s21, %s17257_s21   ;;  %s11700_s20 = sphi %s11794_s20, %s17259_s20   ;;  %s11696_s19 = sphi %s11792_s19, %s17261_s19   ;;  %s11692_s18 = sphi %s11790_s18, %s17260_s18  }
   0x6   : > { %17008 = sst [smem:[#allocation6_spill]] %s11700_s20  ;;  %s8578_s23 = sadd.s32 4294967294, %s11704_s21  }
   0x7   : > { %s11815_s24 = sadd.s32 1, %s11704_s21   ;;  %s355_s25 = sadd.s32 1, %s11700_s20 }
   0x8   : > { %17009 = sst [smem:[#allocation7_spill]] %s11815_s24  ;;  %s352_s26 = ssub.s32 %s11704_s21, %s11815_s24 }
   0x9   : > { %p365_p0 = scmp.ne.s32.totalorder %s11700_s20, %s11696_s19  ;;  %p353_p1 = scmp.eq.s32.totalorder %s352_s26, 0 }
   0xa   : > { %p366_p2 = scmp.eq.s32.totalorder %s11811_s22, 1  ;;  %p371_p3 = scmp.ne.s32.totalorder %s11696_s19, %s11692_s18 }
   0xb   : > { %p372_p4 = scmp.eq.s32.totalorder %s8578_s23, 1  ;;  %p8581_p7 = scmp.ge.s32.totalorder %s11704_s21, 1 }
   0xc   : > { %s11826_s27 = scalar_select %p353_p1, %s11700_s20, %s355_s25  }
   0xd   : > { %p11828_p5 = por %p366_p2, %p365_p0  ;;  %p11832_p6 = por %p372_p4, %p371_p3 }
   0xe   : > { %17010 = sst [smem:[#allocation8_spill]] %s11826_s27  ;;  %p440_p8 = scmp.lt.s32.totalorder %s11704_s21, 3 }
   0xf   : > { %s17012_s29 = scalar_select %p11832_p6, 1, 0 }
  0x10   : > { %p441_p9 = pnand %p8581_p7, %p440_p8 }
  0x11   : > { %17013 = sst [smem:[#allocation9_spill]] %s17012_s29 }
  0x12   : > { %444 = sbr.rel (%p441_p9) target bundleno = 3325 (0xcfd), region = 80 }
  0x17   : > { %v8590_v0 = vld [vmem:[%s16948_s1 + $0x78] sm:$0xff]  ;;  %v8589_v2 = vld [vmem:[%s16948_s1 + $0x70] sm:$0xff]  ;;  %p487_p10 = scmp.lt.s32.totalorder %s11811_s22, 1  ;;  %v8588_v4 = vld [vmem:[%s16948_s1 + $0x68] sm:$0xff]  ;;  %s17014_s0 = sld [smem:[#allocation82_spill]]  ;;  %vm609_vm0 = vcmask 1046528  }
  0x18   : > { %v550_v1 = vld [vmem:[%s16948_s1 + $0x38] sm:$0xff]  ;;  %10481 = vmatprep.subr.mxu0 %v8590_v0  ;;  %v549_v3 = vld [vmem:[%s16948_s1 + $0x30] sm:$0xff]  ;;  %v548_v5 = vld [vmem:[%s16948_s1 + $0x28] sm:$0xff]  ;;  %vm707_vm1 = vcmask 523264   ;;  %vm1521_vm2 = vcmask 1043456   ;;  %vm2077_vm3 = vcmask 1042432  }
  0x19   : > { %10569 = vmatprep.subr.mxu1 %v550_v1  ;;  %10482 = vmatpush3.msra.mxu0 %v8590_v0  ;;  %s488_s23 = scalar_select %p487_p10, %s11811_s22, 1  ;;  %v8587_v6 = vld [vmem:[%s16948_s1 + $0x60] sm:$0xff]  ;;  %v8586_v8 = vld [vmem:[%s16948_s1 + $0x58] sm:$0xff]  ;;  %v8585_v12 = vld [vmem:[%s16948_s1 + $0x50] sm:$0xff]  ;;  %vm11707_vm4 = vmmov 0   ;;  %vm3283_vm5 = vcmask 261120  }
  0x1a   : > { %10570 = vmatpush3.msra.mxu1 %v550_v1  ;;  %10483 = vmatprep.subr.mxu0 %v8589_v2  ;;  %v547_v7 = vld [vmem:[%s16948_s1 + $0x20] sm:$0xff]  ;;  %v546_v9 = vld [vmem:[%s16948_s1 + $0x18] sm:$0xff]  ;;  %v545_v13 = vld [vmem:[%s16948_s1 + $0x10] sm:$0xff]  ;;  %vm4924_vm6 = vcmask 1045504   ;;  %vm5100_vm7 = vcmask 588800   ;;  %s485_s16 = sand.u32 1, %s11696_s19  }
  0x1b   : > { %10571 = vmatprep.subr.mxu1 %v549_v3  ;;  %10484 = vmatpush3.msra.mxu0 %v8589_v2  ;;  %s11601_s29 = smul.u32 408, %s488_s23  ;;  %v8584_v18 = vld [vmem:[%s16948_s1 + $0x48] sm:$0xff]  ;;  %v8583_v21 = vld [vmem:[%s16948_s1 + $0x40] sm:$0xff]  ;;  %v8694_v34 = vld [vmem:[%s16948_s1 + $0xb8] sm:$0xff]  ;;  %s9456_s23 = sshll.u32 %s11811_s22, 4 }
  0x1c   : > { %10572 = vmatpush3.msra.mxu1 %v549_v3  ;;  %10485 = vmatprep.subr.mxu0 %v8588_v4  ;;  %v544_v19 = vld [vmem:[%s16948_s1 + $0x8] sm:$0xff]  ;;  %v543_v22 = vld [vmem:[%s16948_s1] sm:$0xff]  ;;  %v8750_v37 = vld [vmem:[%s16948_s1 + $0xf8] sm:$0xff]  ;;  %s486_s20 = scalar_lea.vmem [#allocation2], %s485_s16  ;;  %s8521_s18 = scalar_lea.hbm %s16962_s15, %s9456_s23 }
  0x1d   : > { %10573 = vmatprep.subr.mxu1 %v548_v5  ;;  %10486 = vmatpush3.msra.mxu0 %v8588_v4  ;;  %s11873_s26 = scalar_lea.vmem %s17014_s0, %s11601_s29  ;;  %v8693_v49 = vld [vmem:[%s16948_s1 + $0xb0] sm:$0xff]  ;;  %s8523_s27 = sshll.u32 %s486_s20, 4  ;;  %s8524_s27 = int_to_ptr.vmem [resolvable:$true] %s8523_s27 }
  0x1e   : > { %10574 = vmatpush3.msra.mxu1 %v548_v5  ;;  %10487 = vmatprep.subr.mxu0 %v8587_v6  ;;  %v492_v10 = vld [vmem:[%s11873_s26] sm:$0xff]  ;;  %v493_v11 = vld [vmem:[%s11873_s26 + $0x8] sm:$0xff]  ;;  %v11884_v14 = vld [vmem:[%s11873_s26 + $0x10] sm:$0xff]  ;;  %s8511_s29 = scalar_lea.sflag [#allocation3], %s485_s16  ;;  %s11644_s30 = scalar_lea.vmem %s8524_s27, 16 }
  0x1f   : > { %10575 = vmatprep.subr.mxu1 %v547_v7  ;;  %10488 = vmatpush3.msra.mxu0 %v8587_v6  ;;  %v610_v15 = vrot.slane %v492_v10, 1  ;;  %v611_v16 = vrot.slane %v493_v11, 1  ;;  %v11887_v17 = vld [vmem:[%s11873_s26 + $0x18] sm:$0xff]  ;;  %v613_v20 = vrot.slane %v11884_v14, 1  ;;  %v11904_v24 = vld [vmem:[%s11873_s26 + $0x20] sm:$0xff]  ;;  %v11908_v26 = vld [vmem:[%s11873_s26 + $0x28] sm:$0xff]  ;;  %p11645_p11 = scmp.ne.s32.totalorder %s8524_s27, %s11644_s30 }
  0x20   : > { %10576 = vmatpush3.msra.mxu1 %v547_v7  ;;  %10489 = vmatprep.subr.mxu0 %v8586_v8  ;;  %v615_v23 = vrot.slane %v11887_v17, 1  ;;  %v617_v28 = vrot.slane %v11904_v24, 1  ;;  %v11913_v29 = vld [vmem:[%s11873_s26 + $0x30] sm:$0xff]  ;;  %v619_v31 = vrot.slane %v11908_v26, 1  ;;  %v11919_v32 = vld [vmem:[%s11873_s26 + $0x38] sm:$0xff]  ;;  %v11922_v33 = vld [vmem:[%s11873_s26 + $0x40] sm:$0xff] }
  0x21   : > { %10577 = vmatprep.subr.mxu1 %v546_v9  ;;  %10490 = vmatpush3.msra.mxu0 %v8586_v8  ;;  %v612_v25 = vsel %vm609_vm0, %v610_v15, %v611_v16  ;;  %v614_v27 = vsel %vm609_vm0, %v611_v16, %v613_v20  ;;  %v11929_v35 = vld [vmem:[%s11873_s26 + $0x48] sm:$0xff]  ;;  %v11932_v36 = vld [vmem:[%s11873_s26 + $0x50] sm:$0xff]  ;;  %v621_v38 = vrot.slane %v11913_v29, 1  ;;  %v11941_v39 = vld [vmem:[%s11873_s26 + $0x58] sm:$0xff]  ;;  %v623_v41 = vrot.slane %v11919_v32, 1  ;;  %p11646_p12 = pnand %p11645_p11, %p11828_p5  ;;  %s11709_s17 = smov [#allocation2]  }
  0x22   : > { %10578 = vmatpush3.msra.mxu1 %v546_v9  ;;  %10491 = vmatprep.subr.mxu0 %v8585_v12  ;;  %v616_v30 = vsel %vm609_vm0, %v613_v20, %v615_v23  ;;  %v618_v40 = vsel %vm609_vm0, %v615_v23, %v617_v28  ;;  %v625_v42 = vrot.slane %v11922_v33, 1  ;;  %v11950_v43 = vld [vmem:[%s11873_s26 + $0x60] sm:$0xff]  ;;  %v620_v44 = vsel %vm609_vm0, %v617_v28, %v619_v31  ;;  %v11956_v47 = vld [vmem:[%s11873_s26 + $0x68] sm:$0xff]  ;;  %v11959_v48 = vld [vmem:[%s11873_s26 + $0x70] sm:$0xff]  ;;  %s11648_s25 = sshll.u32 %s11709_s17, 4  ;;  %s11649_s25 = int_to_ptr.vmem [resolvable:$false] %s11648_s25 }
  0x23   : > { %10579 = vmatprep.subr.mxu1 %v545_v13  ;;  %10492 = vmatpush3.msra.mxu0 %v8585_v12  ;;  %v627_v45 = vrot.slane %v11929_v35, 1  ;;  %v629_v46 = vrot.slane %v11932_v36, 1  ;;  %v631_v50 = vrot.slane %v11941_v39, 1  ;;  %v11966_v51 = vld [vmem:[%s11873_s26 + $0x78] sm:$0xff]  ;;  %v11969_v52 = vld [vmem:[%s11873_s26 + $0x80] sm:$0xff]  ;;  %v8749_v53 = vld [vmem:[%s16948_s1 + $0xf0] sm:$0xff]  ;;  %v622_v54 = vsel %vm609_vm0, %v619_v31, %v621_v38  ;;  %p11647_p13 = pneg %p11646_p12  ;;  %p11651_p0 = scmp.lt.s32.totalorder %s8524_s27, %s11649_s25 }
  0x24   : > { %10580 = vmatpush3.msra.mxu1 %v545_v13  ;;  %10493 = vmatprep.subr.mxu0 %v8584_v18  ;;  %v633_v55 = vrot.slane %v11950_v43, 1  ;;  %v11980_v56 = vld [vmem:[%s11873_s26 + $0x88] sm:$0xff]  ;;  %v11983_v57 = vld [vmem:[%s11873_s26 + $0x90] sm:$0xff]  ;;  %v11986_v58 = vld [vmem:[%s11873_s26 + $0x98] sm:$0xff]  ;;  %v624_v59 = vsel %vm609_vm0, %v621_v38, %v623_v41  ;;  %v626_v60 = vsel %vm609_vm0, %v623_v41, %v625_v42  ;;  %v635_v61 = vrot.slane %v11956_v47, 1  ;;  %s11650_s22 = scalar_lea.vmem %s11649_s25, 32 }
  0x25   : > { %10581 = vmatprep.subr.mxu1 %v544_v19  ;;  %10494 = vmatpush3.msra.mxu0 %v8584_v18  ;;  %v637_v62 = vrot.slane %v11959_v48, 1  ;;  %v11996_v63 = vld [vmem:[%s11873_s26 + $0xa0] sm:$0xff]  ;;  %v11999_v0 = vld [vmem:[%s11873_s26 + $0xa8] sm:$0xff]  ;;  %v12002_v1 = vld [vmem:[%s11873_s26 + $0xb0] sm:$0xff]  ;;  %v628_v2 = vsel %vm609_vm0, %v625_v42, %v627_v45  ;;  %v12006_v3 = vsel %vm609_vm0, %v627_v45, %v629_v46  ;;  %v639_v4 = vrot.slane %v11966_v51, 1  ;;  %p11652_p1 = scmp.lt.s32.totalorder %s11650_s22, %s11644_s30 }
  0x26   : > { %10582 = vmatpush3.msra.mxu1 %v544_v19  ;;  %10495 = vmatprep.subr.mxu0 %v8583_v21  ;;  %v641_v5 = vrot.slane %v11969_v52, 1  ;;  %v12011_v6 = vld [vmem:[%s11873_s26 + $0xb8] sm:$0xff]  ;;  %v12014_v7 = vld [vmem:[%s11873_s26 + $0xc0] sm:$0xff]  ;;  %v8692_v8 = vld [vmem:[%s16948_s1 + $0xa8] sm:$0xff]  ;;  %v12020_v9 = vsel %vm609_vm0, %v629_v46, %v631_v50  ;;  %v647_v12 = vrot.slane %v11986_v58, 1  ;;  %v12038_v18 = vsel %vm609_vm0, %v631_v50, %v633_v55 }
  0x27   : > { %10583 = vmatprep.subr.mxu1 %v543_v22  ;;  %10496 = vmatpush3.msra.mxu0 %v8583_v21  ;;  %v12026_v13 = vld [vmem:[%s11873_s26 + $0xc8] sm:$0xff]  ;;  %v12029_v15 = vld [vmem:[%s11873_s26 + $0xd0] sm:$0xff]  ;;  %v649_v19 = vrot.slane %v11996_v63, 1  ;;  %v651_v20 = vrot.slane %v11999_v0, 1  ;;  %v653_v21 = vrot.slane %v12002_v1, 1  ;;  %v12050_v23 = vsel %vm609_vm0, %v633_v55, %v635_v61  ;;  %v12066_v38 = vld [vmem:[%s11873_s26 + $0xe0] sm:$0xff]  ;;  %p11653_p2 = por %p11652_p1, %p11651_p0 }
  0x28   : > { %10497 = vmatprep.mubr.msk.f32.mxu0 %vm707_vm1, %v612_v25  ;;  %10584 = vmatpush3.msra.mxu1 %v543_v22  ;;  %v8748_v16 = vld [vmem:[%s16948_s1 + $0xe8] sm:$0xff]  ;;  %v12044_v22 = vld [vmem:[%s11873_s26 + $0xd8] sm:$0xff]  ;;  %v12053_v25 = vsel %vm609_vm0, %v635_v61, %v637_v62  ;;  %v657_v28 = vrot.slane %v12014_v7, 1  ;;  %v12061_v31 = vsel %vm609_vm0, %v639_v4, %v641_v5  ;;  %v8691_v46 = vld [vmem:[%s16948_s1 + $0xa0] sm:$0xff]  ;;  %v1549_v61 = vrot.slane %v11969_v52, 4 }
  0x29   : > { %10585 = vmatprep.mubr.msk.f32.mxu1 %vm707_vm1, %v492_v10  ;;  %10498 = vmatmul.mubr.msk.f32.vlgmr.msra.gmra.mxu0 %vm707_vm1, %v614_v27  ;;  %v643_v10 = vrot.slane %v11980_v56, 1  ;;  %v655_v27 = vrot.slane %v12011_v6, 1  ;;  %v16968_v45 = vrot.slane %v12044_v22, 1  ;;  %v12091_v50 = vsel %vm609_vm0, %v647_v12, %v649_v19  ;;  %p11654_p3 = pnand %p11653_p2, %p11647_p13 }
  0x2a   : > { %10586 = vmatmul.mubr.msk.f32.vlgmr.msra.gmra.mxu1 %vm707_vm1, %v493_v11  ;;  %10500 = vmatprep.mubr.msk.f32.mxu0 %vm707_vm1, %v616_v30  ;;  %v645_v11 = vrot.slane %v11983_v57, 1  ;;  %v12058_v30 = vsel %vm609_vm0, %v637_v62, %v639_v4 }
  0x2b   : > { %10588 = vmatprep.mubr.msk.f32.mxu1 %vm707_vm1, %v11884_v14  ;;  %10657 = vmatprep.subr.mxu0 %v8694_v34  ;;  %v12072_v41 = vsel %vm609_vm0, %v641_v5, %v643_v10  ;;  %v12103_v55 = vsel %vm609_vm0, %v653_v21, %v655_v27  ;;  %v1523_v5 = vrot.slane %v11887_v17, 4 }
  0x2c   : > { %10745 = vmatprep.subr.mxu1 %v8750_v37  ;;  %10658 = vmatpush3.msra.mxu0 %v8694_v34  ;;  %v659_v34 = vrot.slane %v12026_v13, 1  ;;  %v12075_v42 = vsel %vm609_vm0, %v643_v10, %v645_v11  ;;  %v8690_v10 = vld [vmem:[%s16948_s1 + $0x98] sm:$0xff] }
  0x2d   : > { %10746 = vmatpush3.msra.mxu1 %v8750_v37  ;;  %10501 = vmatmul.mubr.msk.f32.gmra.mxu0 %vm707_vm1, %v618_v40  ;;  %v661_v37 = vrot.slane %v12029_v15, 1  ;;  %v12069_v40 = vld [vmem:[%s11873_s26 + $0xe8] sm:$0xff] }
  0x2e   : > { %10589 = vmatmul.mubr.msk.f32.gmra.mxu1 %vm707_vm1, %v11887_v17  ;;  %10503 = vmatprep.mubr.msk.f32.mxu0 %vm707_vm1, %v620_v44  ;;  %v12078_v44 = vsel %vm609_vm0, %v645_v11, %v647_v12  ;;  %v12111_v62 = vsel %vm609_vm0, %v657_v28, %v659_v34  ;;  %v8746_v11 = vld [vmem:[%s16948_s1 + $0xd8] sm:$0xff]  ;;  %v2078_v12 = vrot.slane %v11884_v14, 5 }
  0x2f   : > { %10591 = vmatprep.mubr.msk.f32.mxu1 %vm707_vm1, %v11904_v24  ;;  %10659 = vmatprep.subr.mxu0 %v8693_v49  ;;  %v12114_v4 = vsel %vm609_vm0, %v659_v34, %v661_v37 }
  0x30   : > { %10747 = vmatprep.subr.mxu1 %v8749_v53  ;;  %10660 = vmatpush3.msra.mxu0 %v8693_v49  ;;  %v8747_v49 = vld [vmem:[%s16948_s1 + $0xe0] sm:$0xff] }
  0x31   : > { %10748 = vmatpush3.msra.mxu1 %v8749_v53  ;;  %10504 = vmatmul.mubr.msk.f32.gmra.mxu0 %vm707_vm1, %v622_v54  ;;  %v12094_v53 = vsel %vm609_vm0, %v649_v19, %v651_v20  ;;  %v12097_v54 = vsel %vm609_vm0, %v651_v20, %v653_v21  ;;  %v1525_v19 = vrot.slane %v11904_v24, 4  ;;  %v2081_v21 = vrot.slane %v11904_v24, 5 }
  0x32   : > { %10592 = vmatmul.mubr.msk.f32.gmra.mxu1 %vm707_vm1, %v11908_v26  ;;  %10506 = vmatprep.mubr.msk.f32.mxu0 %vm707_vm1, %v624_v59  ;;  %v12106_v59 = vsel %vm609_vm0, %v655_v27, %v657_v28  ;;  %v1527_v27 = vrot.slane %v11908_v26, 4  ;;  %v2083_v28 = vrot.slane %v11908_v26, 5  ;;  %v2085_v24 = vrot.slane %v11913_v29, 5 }
  0x33   : > { %10594 = vmatprep.mubr.msk.f32.mxu1 %vm707_vm1, %v11913_v29  ;;  %10661 = vmatprep.subr.mxu0 %v8692_v8 }
  0x34   : > { %10749 = vmatprep.subr.mxu1 %v8748_v16  ;;  %10662 = vmatpush3.msra.mxu0 %v8692_v8  ;;  %v12121_v8 = vsel %vm609_vm0, %v661_v37, %v16968_v45  ;;  %v12161_v34 = vsel %vm2077_vm3, %v2081_v21, %v2083_v28  ;;  %v1531_v37 = vrot.slane %v11919_v32, 4  ;;  %v2109_v45 = vrot.slane %v11983_v57, 5 }
  0x35   : > { %10750 = vmatpush3.msra.mxu1 %v8748_v16  ;;  %10507 = vmatmul.mubr.msk.f32.gmra.mxu0 %vm707_vm1, %v626_v60  ;;  %v2079_v16 = vrot.slane %v11887_v17, 5  ;;  %v12150_v17 = vsel %vm1521_vm2, %v1523_v5, %v1525_v19 }
  0x36   : > { %10595 = vmatmul.mubr.msk.f32.gmra.mxu1 %vm707_vm1, %v11919_v32  ;;  %10509 = vmatprep.mubr.msk.f32.mxu0 %vm707_vm1, %v628_v2  ;;  %v1522_v2 = vrot.slane %v11884_v14, 4 }
  0x37   : > { %10597 = vmatprep.mubr.msk.f32.mxu1 %vm707_vm1, %v11922_v33  ;;  %10663 = vmatprep.subr.mxu0 %v8691_v46  ;;  %v12147_v14 = vsel %vm2077_vm3, %v2078_v12, %v2079_v16  ;;  %v12155_v26 = vsel %vm2077_vm3, %v2079_v16, %v2081_v21  ;;  %v1533_v12 = vrot.slane %v11922_v33, 4  ;;  %v1535_v16 = vrot.slane %v11929_v35, 4 }
  0x38   : > { %10751 = vmatprep.subr.mxu1 %v8747_v49  ;;  %10664 = vmatpush3.msra.mxu0 %v8691_v46  ;;  %v12137_v20 = vsel %vm1521_vm2, %v1522_v2, %v1523_v5  ;;  %v8689_v46 = vld [vmem:[%s16948_s1 + $0x90] sm:$0xff]  ;;  %v12174_v2 = vsel %vm2077_vm3, %v2083_v28, %v2085_v24  ;;  %v2087_v5 = vrot.slane %v11919_v32, 5  ;;  %v1537_v21 = vrot.slane %v11932_v36, 4 }
  0x39   : > { %10752 = vmatpush3.msra.mxu1 %v8747_v49  ;;  %10510 = vmatmul.mubr.msk.f32.gmra.mxu0 %vm707_vm1, %v12006_v3  ;;  %v1529_v3 = vrot.slane %v11913_v29, 4  ;;  %v8745_v29 = vld [vmem:[%s16948_s1 + $0xd0] sm:$0xff]  ;;  %v1539_v28 = vrot.slane %v11941_v39, 4 }
  0x3a   : > { %10598 = vmatmul.mubr.msk.f32.gmra.mxu1 %vm707_vm1, %v11929_v35  ;;  %10512 = vmatprep.mubr.msk.f32.mxu0 %vm707_vm1, %v12020_v9  ;;  %v12158_v9 = vsel %vm1521_vm2, %v1525_v19, %v1527_v27  ;;  %v2091_v19 = vrot.slane %v11929_v35, 5  ;;  %v12193_v32 = vsel %vm2077_vm3, %v2085_v24, %v2087_v5  ;;  %v12217_v24 = vsel %vm1521_vm2, %v1535_v16, %v1537_v21 }
  0x3b   : > { %10600 = vmatprep.mubr.msk.f32.mxu1 %vm707_vm1, %v11932_v36  ;;  %10665 = vmatprep.subr.mxu0 %v8690_v10  ;;  %v12171_v49 = vsel %vm1521_vm2, %v1527_v27, %v1529_v3 }
  0x3c   : > { %10753 = vmatprep.subr.mxu1 %v8746_v11  ;;  %10666 = vmatpush3.msra.mxu0 %v8690_v10  ;;  %v12183_v10 = vsel %vm1521_vm2, %v1529_v3, %v1531_v37  ;;  %v8688_v3 = vld [vmem:[%s16948_s1 + $0x88] sm:$0xff] }
  0x3d   : > { %10754 = vmatpush3.msra.mxu1 %v8746_v11  ;;  %10513 = vmatmul.mubr.msk.f32.gmra.mxu0 %vm707_vm1, %v12038_v18  ;;  %v2089_v11 = vrot.slane %v11922_v33, 5  ;;  %v12196_v18 = vsel %vm1521_vm2, %v1531_v37, %v1533_v12  ;;  %v2093_v33 = vrot.slane %v11932_v36, 5  ;;  %v8744_v36 = vld [vmem:[%s16948_s1 + $0xc8] sm:$0xff] }
  0x3e   : > { %10601 = vmatmul.mubr.msk.f32.gmra.mxu1 %vm707_vm1, %v11941_v39  ;;  %10515 = vmatprep.mubr.msk.f32.mxu0 %vm707_vm1, %v12050_v23  ;;  %v12204_v23 = vsel %vm1521_vm2, %v1533_v12, %v1535_v16  ;;  %v1541_v12 = vrot.slane %v11950_v43, 4  ;;  %v2099_v16 = vrot.slane %v11956_v47, 5 }
  0x3f   : > { %10603 = vmatprep.mubr.msk.f32.mxu1 %vm707_vm1, %v11950_v43  ;;  %10667 = vmatprep.subr.mxu0 %v8689_v46  ;;  %v12201_v35 = vsel %vm2077_vm3, %v2087_v5, %v2089_v11  ;;  %v12207_v27 = vsel %vm2077_vm3, %v2089_v11, %v2091_v19  ;;  %v12220_v37 = vsel %vm2077_vm3, %v2091_v19, %v2093_v33  ;;  %v2095_v5 = vrot.slane %v11941_v39, 5 }
  0x40   : > { %10755 = vmatprep.subr.mxu1 %v8745_v29  ;;  %10668 = vmatpush3.msra.mxu0 %v8689_v46  ;;  %v12229_v46 = vsel %vm1521_vm2, %v1537_v21, %v1539_v28  ;;  %v1543_v11 = vrot.slane %v11956_v47, 4  ;;  %v1545_v19 = vrot.slane %v11959_v48, 4 }
  0x41   : > { %10756 = vmatpush3.msra.mxu1 %v8745_v29  ;;  %10516 = vmatmul.mubr.msk.f32.gmra.mxu0 %vm707_vm1, %v12053_v25  ;;  %v2097_v29 = vrot.slane %v11950_v43, 5  ;;  %v12239_v39 = vsel %vm2077_vm3, %v2093_v33, %v2095_v5  ;;  %v12242_v25 = vsel %vm1521_vm2, %v1539_v28, %v1541_v12  ;;  %v2101_v43 = vrot.slane %v11959_v48, 5  ;;  %v8687_v28 = vld [vmem:[%s16948_s1 + $0x80] sm:$0xff] }
  0x42   : > { %10604 = vmatmul.mubr.msk.f32.gmra.mxu1 %vm707_vm1, %v11956_v47  ;;  %10518 = vmatprep.mubr.msk.f32.mxu0 %vm707_vm1, %v12058_v30  ;;  %v12250_v30 = vsel %vm1521_vm2, %v1541_v12, %v1543_v11  ;;  %v1547_v33 = vrot.slane %v11966_v51, 4 }
  0x43   : > { %10606 = vmatprep.mubr.msk.f32.mxu1 %vm707_vm1, %v11959_v48  ;;  %10669 = vmatprep.subr.mxu0 %v8688_v3  ;;  %v12247_v47 = vsel %vm2077_vm3, %v2095_v5, %v2097_v29  ;;  %v12253_v21 = vsel %vm2077_vm3, %v2097_v29, %v2099_v16  ;;  %v8743_v48 = vld [vmem:[%s16948_s1 + $0xc0] sm:$0xff]  ;;  %v12263_v5 = vsel %vm1521_vm2, %v1543_v11, %v1545_v19  ;;  %v2103_v29 = vrot.slane %v11966_v51, 5 }
  0x44   : > { %10757 = vmatprep.subr.mxu1 %v8744_v36  ;;  %10670 = vmatpush3.msra.mxu0 %v8688_v3  ;;  %v12266_v12 = vsel %vm2077_vm3, %v2099_v16, %v2101_v43  ;;  %v12275_v3 = vsel %vm1521_vm2, %v1545_v19, %v1547_v33  ;;  %v1551_v11 = vrot.slane %v11980_v56, 4  ;;  %v2107_v16 = vrot.slane %v11980_v56, 5 }
  0x45   : > { %10758 = vmatpush3.msra.mxu1 %v8744_v36  ;;  %10519 = vmatmul.mubr.msk.f32.gmra.mxu0 %vm707_vm1, %v12061_v31  ;;  %v2105_v36 = vrot.slane %v11969_v52, 5  ;;  %v12285_v31 = vsel %vm2077_vm3, %v2101_v43, %v2103_v29  ;;  %v1553_v19 = vrot.slane %v11983_v57, 4  ;;  %v1555_v43 = vrot.slane %v11986_v58, 4 }
  0x46   : > { %10607 = vmatmul.mubr.msk.f32.gmra.mxu1 %vm707_vm1, %v11966_v51  ;;  %10521 = vmatprep.mubr.msk.f32.mxu0 %vm707_vm1, %v12072_v41  ;;  %17015 = vst [vmem:[#allocation10_spill] sm:$0xff] %v12285_v31  ;;  %v12288_v51 = vsel %vm1521_vm2, %v1547_v33, %v1549_v61  ;;  %v12296_v41 = vsel %vm1521_vm2, %v1549_v61, %v1551_v11  ;;  %v2111_v31 = vrot.slane %v11986_v58, 5 }
  0x47   : > { %10609 = vmatprep.mubr.msk.f32.mxu1 %vm707_vm1, %v11969_v52  ;;  %17016 = vst [vmem:[#allocation11_spill] sm:$0xff] %v12288_v51  ;;  %10671 = vmatprep.subr.mxu0 %v8687_v28  ;;  %v12293_v60 = vsel %vm2077_vm3, %v2103_v29, %v2105_v36  ;;  %v12299_v52 = vsel %vm2077_vm3, %v2105_v36, %v2107_v16  ;;  %v1557_v29 = vrot.slane %v11996_v63, 4  ;;  %v2115_v36 = vrot.slane %v11999_v0, 5 }
  0x48   : > { %10759 = vmatprep.subr.mxu1 %v8743_v48  ;;  %10672 = vmatpush3.msra.mxu0 %v8687_v28  ;;  %v12303_v33 = vsel %vm1521_vm2, %v1551_v11, %v1553_v19  ;;  %v12306_v51 = vsel %vm2077_vm3, %v2107_v16, %v2109_v45  ;;  %v12315_v61 = vsel %vm1521_vm2, %v1553_v19, %v1555_v43  ;;  %v2113_v28 = vrot.slane %v11996_v63, 5 }
  0x49   : > { %10760 = vmatpush3.msra.mxu1 %v8743_v48  ;;  %10522 = vmatmul.mubr.msk.f32.gmra.mxu0 %vm707_vm1, %v12075_v42  ;;  %17017 = vst [vmem:[#allocation12_spill] sm:$0xff] %v12315_v61  ;;  %v1559_v48 = vrot.slane %v11999_v0, 4  ;;  %v12325_v42 = vsel %vm2077_vm3, %v2109_v45, %v2111_v31  ;;  %v1561_v11 = vrot.slane %v12002_v1, 4  ;;  %v2117_v16 = vrot.slane %v12002_v1, 5 }
  0x4a   : > { %10610 = vmatmul.mubr.msk.f32.gmra.mxu1 %vm707_vm1, %v11980_v56  ;;  %10524 = vmatprep.mubr.msk.f32.mxu0 %vm707_vm1, %v12078_v44  ;;  %17018 = vst [vmem:[#allocation13_spill] sm:$0xff] %v12325_v42  ;;  %v12328_v56 = vsel %vm1521_vm2, %v1555_v43, %v1557_v29  ;;  %v12333_v19 = vsel %vm2077_vm3, %v2111_v31, %v2113_v28  ;;  %v1565_v42 = vrot.slane %v12014_v7, 4 }
  0x4b   : > { %10612 = vmatprep.mubr.msk.f32.mxu1 %vm707_vm1, %v11983_v57  ;;  %17019 = vst [vmem:[#allocation14_spill] sm:$0xff] %v12328_v56  ;;  %v12336_v61 = vsel %vm1521_vm2, %v1557_v29, %v1559_v48  ;;  %v12339_v44 = vsel %vm2077_vm3, %v2113_v28, %v2115_v36  ;;  %v1563_v57 = vrot.slane %v12011_v6, 4  ;;  %v12343_v45 = vsel %vm1521_vm2, %v1559_v48, %v1561_v11 }
  0x4c   : > { %v12346_v43 = vsel %vm2077_vm3, %v2115_v36, %v2117_v16  ;;  %v2119_v56 = vrot.slane %v12011_v6, 5  ;;  %v2121_v29 = vrot.slane %v12014_v7, 5  ;;  %v1567_v28 = vrot.slane %v12026_v13, 4 }
  0x4d   : > { %17020 = vst [vmem:[#allocation15_spill] sm:$0xff] %v12346_v43  ;;  %10525 = vmatmul.mubr.msk.f32.gmra.mxu0 %vm707_vm1, %v12091_v50  ;;  %v12355_v31 = vsel %vm1521_vm2, %v1561_v11, %v1563_v57  ;;  %v2123_v48 = vrot.slane %v12026_v13, 5  ;;  %v1569_v36 = vrot.slane %v12029_v15, 4  ;;  %v2125_v11 = vrot.slane %v12029_v15, 5 }
  0x4e   : > { %10613 = vmatmul.mubr.msk.f32.gmra.mxu1 %vm707_vm1, %v11986_v58  ;;  %17021 = vst [vmem:[#allocation16_spill] sm:$0xff] %v12355_v31  ;;  %10527 = vmatprep.mubr.msk.f32.mxu0 %vm707_vm1, %v12094_v53  ;;  %v12365_v50 = vsel %vm2077_vm3, %v2117_v16, %v2119_v56  ;;  %v12368_v58 = vsel %vm1521_vm2, %v1563_v57, %v1565_v42 }
  0x4f   : > { %10615 = vmatprep.mubr.msk.f32.mxu1 %vm707_vm1, %v11996_v63  ;;  %17022 = vst [vmem:[#allocation17_spill] sm:$0xff] %v12368_v58  ;;  %v12373_v31 = vsel %vm2077_vm3, %v2119_v56, %v2121_v29  ;;  %v12376_v43 = vsel %vm1521_vm2, %v1565_v42, %v1567_v28  ;;  %v12379_v53 = vsel %vm2077_vm3, %v2121_v29, %v2123_v48  ;;  %v1571_v63 = vrot.slane %v12044_v22, 4  ;;  %v12395_v42 = vld [vmem:[%s11873_s26 + $0xf0] sm:$0xff] }
  0x50   : > { %17023 = vst [vmem:[#allocation18_spill] sm:$0xff] %v12373_v31  ;;  %17024 = vst [vmem:[#allocation19_spill] sm:$0xff] %v12376_v43  ;;  %v12383_v16 = vsel %vm1521_vm2, %v1567_v28, %v1569_v36  ;;  %v12386_v57 = vsel %vm2077_vm3, %v2123_v48, %v2125_v11  ;;  %v2127_v58 = vrot.slane %v12044_v22, 5  ;;  %v1573_v56 = vrot.slane %v12066_v38, 4 }
  0x51   : > { %17025 = vst [vmem:[#allocation20_spill] sm:$0xff] %v12379_v53  ;;  %17026 = vst [vmem:[#allocation21_spill] sm:$0xff] %v12383_v16  ;;  %10528 = vmatmul.mubr.msk.f32.gmra.mxu0 %vm707_vm1, %v12097_v54  ;;  %v12398_v29 = vsel %vm1521_vm2, %v1569_v36, %v1571_v63  ;;  %v2129_v28 = vrot.slane %v12066_v38, 5  ;;  %v1575_v48 = vrot.slane %v12069_v40, 4  ;;  %v12408_v54 = vld [vmem:[%s11873_s26 + $0xf8] sm:$0xff]  ;;  %v2133_v16 = vrot.slane %v12395_v42, 5 }
  0x52   : > { %17027 = vst [vmem:[#allocation22_spill] sm:$0xff] %v12386_v57  ;;  %10616 = vmatmul.mubr.msk.f32.gmra.mxu1 %vm707_vm1, %v11999_v0  ;;  %17028 = vst [vmem:[#allocation23_spill] sm:$0xff] %v12398_v29  ;;  %v2131_v57 = vrot.slane %v12069_v40, 5  ;;  %10530 = vmatprep.mubr.msk.f32.mxu0 %vm707_vm1, %v12103_v55  ;;  %v12411_v0 = vsel %vm2077_vm3, %v2125_v11, %v2127_v58  ;;  %v12414_v36 = vsel %vm1521_vm2, %v1571_v63, %v1573_v56  ;;  %v12419_v53 = vld [vmem:[%s11873_s26 + $0x100] sm:$0xff]  ;;  %v12432_v63 = vld [vmem:[%s11873_s26 + $0x108] sm:$0xff] }
  0x53   : > { %10618 = vmatprep.mubr.msk.f32.mxu1 %vm707_vm1, %v12002_v1  ;;  %17029 = vst [vmem:[#allocation24_spill] sm:$0xff] %v12411_v0  ;;  %17030 = vst [vmem:[#allocation25_spill] sm:$0xff] %v12414_v36  ;;  %v1577_v29 = vrot.slane %v12395_v42, 4  ;;  %v12422_v55 = vsel %vm2077_vm3, %v2127_v58, %v2129_v28  ;;  %v12425_v1 = vsel %vm1521_vm2, %v1573_v56, %v1575_v48  ;;  %v1579_v11 = vrot.slane %v12408_v54, 4 }
  0x54   : > { %17031 = vst [vmem:[#allocation26_spill] sm:$0xff] %v12422_v55  ;;  %17032 = vst [vmem:[#allocation27_spill] sm:$0xff] %v12425_v1  ;;  %v12428_v43 = vsel %vm2077_vm3, %v2129_v28, %v2131_v57  ;;  %v12438_v0 = vsel %vm2077_vm3, %v2131_v57, %v2133_v16  ;;  %v2135_v58 = vrot.slane %v12408_v54, 5  ;;  %v1581_v56 = vrot.slane %v12419_v53, 4  ;;  %v12447_v28 = vld [vmem:[%s11873_s26 + $0x110] sm:$0xff]  ;;  %v12471_v1 = vld [vmem:[%s11873_s26 + $0x120] sm:$0xff] }
  0x55   : > { %17033 = vst [vmem:[#allocation28_spill] sm:$0xff] %v12428_v43  ;;  %v12435_v36 = vsel %vm1521_vm2, %v1575_v48, %v1577_v29  ;;  %17035 = vst [vmem:[#allocation30_spill] sm:$0xff] %v12438_v0  ;;  %10531 = vmatmul.mubr.msk.f32.gmra.mxu0 %vm707_vm1, %v12106_v59  ;;  %v12450_v43 = vsel %vm1521_vm2, %v1577_v29, %v1579_v11  ;;  %v2137_v48 = vrot.slane %v12419_v53, 5  ;;  %v1583_v57 = vrot.slane %v12432_v63, 4  ;;  %v12460_v59 = vld [vmem:[%s11873_s26 + $0x118] sm:$0xff] }
  0x56   : > { %17034 = vst [vmem:[#allocation29_spill] sm:$0xff] %v12435_v36  ;;  %10619 = vmatmul.mubr.msk.f32.gmra.mxu1 %vm707_vm1, %v12011_v6  ;;  %17036 = vst [vmem:[#allocation31_spill] sm:$0xff] %v12450_v43  ;;  %v2139_v0 = vrot.slane %v12432_v63, 5  ;;  %10533 = vmatprep.mubr.msk.f32.mxu0 %vm707_vm1, %v12111_v62  ;;  %v12463_v6 = vsel %vm2077_vm3, %v2133_v16, %v2135_v58  ;;  %v12466_v29 = vsel %vm1521_vm2, %v1579_v11, %v1581_v56 }
  0x57   : > { %10621 = vmatprep.mubr.msk.f32.mxu1 %vm707_vm1, %v12014_v7  ;;  %17037 = vst [vmem:[#allocation32_spill] sm:$0xff] %v12463_v6  ;;  %17038 = vst [vmem:[#allocation33_spill] sm:$0xff] %v12466_v29  ;;  %v1585_v43 = vrot.slane %v12447_v28, 4  ;;  %v2141_v36 = vrot.slane %v12447_v28, 5  ;;  %v12474_v55 = vsel %vm2077_vm3, %v2135_v58, %v2137_v48  ;;  %v12477_v62 = vsel %vm1521_vm2, %v1581_v56, %v1583_v57 }
  0x58   : > { %v12480_v7 = vsel %vm2077_vm3, %v2137_v48, %v2139_v0  ;;  %v1587_v16 = vrot.slane %v12460_v59, 4  ;;  %v2143_v6 = vrot.slane %v12460_v59, 5  ;;  %v16969_v31 = vrot.slane %v12471_v1, 4 }
  0x59   : > { %v12484_v11 = vsel %vm1521_vm2, %v1583_v57, %v1585_v43  ;;  %v12487_v29 = vsel %vm2077_vm3, %v2139_v0, %v2141_v36  ;;  %10534 = vmatmul.mubr.msk.f32.gmra.mxu0 %vm707_vm1, %v12114_v4  ;;  %v17040_v0 = vrot.slane %v12066_v38, 1  ;;  %v17041_v48 = vrot.slane %v12044_v22, 1 }
  0x5a   : > { %10622 = vmatmul.mubr.msk.f32.gmra.mxu1 %vm707_vm1, %v12026_v13  ;;  %v12496_v58 = vsel %vm1521_vm2, %v1585_v43, %v1587_v16  ;;  %10536 = vmatprep.mubr.msk.f32.mxu0 %vm707_vm1, %v12121_v8  ;;  %v669_v57 = vrot.slane %v12395_v42, 1  ;;  %v12510_v13 = vsel %vm2077_vm3, %v2141_v36, %v2143_v6  ;;  %v12515_v43 = vsel %vm1521_vm2, %v1587_v16, %v16969_v31 }
  0x5b   : > { %17039 = vst [vmem:[#allocation34_spill] sm:$0xff] %v12496_v58  ;;  %10624 = vmatprep.mubr.msk.f32.mxu1 %vm707_vm1, %v12029_v15  ;;  %v666_v4 = vsel %vm609_vm0, %v17041_v48, %v17040_v0  ;;  %v17042_v8 = vrot.slane %v12069_v40, 1  ;;  %v17043_v15 = vmov %v17040_v0  ;;  %v671_v58 = vrot.slane %v12408_v54, 1 }
  0x5c   : > { %v17044_v0 = vrot.slane %v12471_v1, 5 }
  0x5d   : > { %v668_v56 = vsel %vm609_vm0, %v17043_v15, %v17042_v8  ;;  %10537 = vmatmul.mubr.msk.f32.gmra.mxu0 %vm707_vm1, %v666_v4  ;;  %v17045_v36 = vmov %v17042_v8  ;;  %v673_v8 = vrot.slane %v12419_v53, 1  ;;  %v675_v15 = vrot.slane %v12432_v63, 1 }
  0x5e   : > { %v12526_v48 = vsel %vm2077_vm3, %v2143_v6, %v17044_v0  ;;  %10625 = vmatmul.mubr.msk.f32.gmra.mxu1 %vm707_vm1, %v12044_v22  ;;  %10539 = vmatprep.mubr.msk.f32.mxu0 %vm707_vm1, %v668_v56  ;;  %v670_v16 = vsel %vm609_vm0, %v17045_v36, %v669_v57  ;;  %v672_v6 = vsel %vm609_vm0, %v669_v57, %v671_v58  ;;  %v679_v4 = vrot.slane %v12460_v59, 1  ;;  %v12551_v57 = vld [vmem:[%s11873_s26 + $0x128] sm:$0xff]  ;;  %v12564_v36 = vld [vmem:[%s11873_s26 + $0x130] sm:$0xff] }
  0x5f   : > { %10627 = vmatprep.mubr.msk.f32.mxu1 %vm707_vm1, %v12066_v38  ;;  %v674_v22 = vsel %vm609_vm0, %v671_v58, %v673_v8  ;;  %v677_v38 = vrot.slane %v12447_v28, 1  ;;  %v676_v56 = vsel %vm609_vm0, %v673_v8, %v675_v15  ;;  %v683_v0 = vrot.slane %v12551_v57, 1 }
  0x61   : > { %10540 = vmatmul.mubr.msk.f32.gmra.mxu0 %vm707_vm1, %v670_v16  ;;  %v680_v58 = vsel %vm609_vm0, %v677_v38, %v679_v4  ;;  %v12567_v16 = vld [vmem:[%s11873_s26 + $0x138] sm:$0xff] }
  0x62   : > { %10628 = vmatmul.mubr.msk.f32.gmra.mxu1 %vm707_vm1, %v12069_v40  ;;  %10542 = vmatprep.mubr.msk.f32.mxu0 %vm707_vm1, %v672_v6  ;;  %v678_v40 = vsel %vm609_vm0, %v675_v15, %v677_v38  ;;  %v687_v6 = vrot.slane %v12567_v16, 1  ;;  %v12580_v15 = vld [vmem:[%s11873_s26 + $0x140] sm:$0xff] }
  0x63   : > { %10630 = vmatprep.mubr.msk.f32.mxu1 %vm707_vm1, %v12395_v42  ;;  %v681_v42 = vrot.slane %v12471_v1, 1  ;;  %17046 = vst [vmem:[#allocation35_spill] sm:$0xff] %v12580_v15 }
  0x65   : > { %10543 = vmatmul.mubr.msk.f32.gmra.mxu0 %vm707_vm1, %v674_v22  ;;  %v684_v8 = vsel %vm609_vm0, %v681_v42, %v683_v0  ;;  %v12583_v22 = vld [vmem:[%s11873_s26 + $0x148] sm:$0xff] }
  0x66   : > { %10631 = vmatmul.mubr.msk.f32.gmra.mxu1 %vm707_vm1, %v12408_v54  ;;  %10545 = vmatprep.mubr.msk.f32.mxu0 %vm707_vm1, %v676_v56  ;;  %v685_v54 = vrot.slane %v12564_v36, 1  ;;  %v691_v56 = vrot.slane %v12583_v22, 1 }
  0x67   : > { %10633 = vmatprep.mubr.msk.f32.mxu1 %vm707_vm1, %v12419_v53  ;;  %v682_v53 = vsel %vm609_vm0, %v679_v4, %v681_v42  ;;  %v12596_v4 = vld [vmem:[%s11873_s26 + $0x150] sm:$0xff] }
  0x68   : > { %v688_v38 = vsel %vm609_vm0, %v685_v54, %v687_v6  ;;  %v693_v42 = vrot.slane %v12596_v4, 1 }
  0x69   : > { %10546 = vmatmul.mubr.msk.f32.gmra.mxu0 %vm707_vm1, %v678_v40  ;;  %v12599_v40 = vld [vmem:[%s11873_s26 + $0x158] sm:$0xff] }
  0x6a   : > { %10634 = vmatmul.mubr.msk.f32.gmra.mxu1 %vm707_vm1, %v12432_v63  ;;  %10548 = vmatprep.mubr.msk.f32.mxu0 %vm707_vm1, %v680_v58  ;;  %v686_v63 = vsel %vm609_vm0, %v683_v0, %v685_v54  ;;  %v695_v0 = vrot.slane %v12599_v40, 1  ;;  %v12615_v54 = vld [vmem:[%s11873_s26 + $0x168] sm:$0xff] }
  0x6b   : > { %10636 = vmatprep.mubr.msk.f32.mxu1 %vm707_vm1, %v12447_v28  ;;  %v689_v28 = vrot.slane %v12580_v15, 1 }
  0x6d   : > { %10549 = vmatmul.mubr.msk.f32.gmra.mxu0 %vm707_vm1, %v682_v53  ;;  %v692_v58 = vsel %vm609_vm0, %v689_v28, %v691_v56  ;;  %v12612_v53 = vld [vmem:[%s11873_s26 + $0x160] sm:$0xff] }
  0x6e   : > { %10637 = vmatmul.mubr.msk.f32.gmra.mxu1 %vm707_vm1, %v12460_v59  ;;  %10551 = vmatprep.mubr.msk.f32.mxu0 %vm707_vm1, %v684_v8  ;;  %v690_v59 = vsel %vm609_vm0, %v687_v6, %v689_v28  ;;  %v694_v8 = vsel %vm609_vm0, %v691_v56, %v693_v42  ;;  %v697_v6 = vrot.slane %v12612_v53, 1  ;;  %v699_v28 = vrot.slane %v12615_v54, 1 }
  0x6f   : > { %10639 = vmatprep.mubr.msk.f32.mxu1 %vm707_vm1, %v12471_v1 }
  0x70   : > { %v698_v56 = vsel %vm609_vm0, %v695_v0, %v697_v6 }
  0x71   : > { %10552 = vmatmul.mubr.msk.f32.gmra.mxu0 %vm707_vm1, %v686_v63  ;;  %v696_v63 = vsel %vm609_vm0, %v693_v42, %v695_v0 }
  0x72   : > { %10640 = vmatmul.mubr.msk.f32.gmra.mxu1 %vm707_vm1, %v12551_v57  ;;  %10554 = vmatprep.mubr.msk.f32.mxu0 %vm707_vm1, %v688_v38  ;;  %v12628_v38 = vld [vmem:[%s11873_s26 + $0x170] sm:$0xff] }
  0x73   : > { %10642 = vmatprep.mubr.msk.f32.mxu1 %vm707_vm1, %v12564_v36  ;;  %v701_v42 = vrot.slane %v12628_v38, 1 }
  0x75   : > { %10555 = vmatmul.mubr.msk.f32.gmra.mxu0 %vm707_vm1, %v690_v59  ;;  %v12631_v59 = vld [vmem:[%s11873_s26 + $0x178] sm:$0xff]  ;;  %v702_v0 = vsel %vm609_vm0, %v699_v28, %v701_v42 }
  0x76   : > { %10643 = vmatmul.mubr.msk.f32.gmra.mxu1 %vm707_vm1, %v12567_v16  ;;  %10557 = vmatprep.mubr.msk.f32.mxu0 %vm707_vm1, %v692_v58  ;;  %v700_v58 = vsel %vm609_vm0, %v697_v6, %v699_v28  ;;  %v703_v31 = vrot.slane %v12631_v59, 1 }
  0x77   : > { %10645 = vmatprep.mubr.msk.f32.mxu1 %vm707_vm1, %v12580_v15  ;;  %v12644_v15 = vld [vmem:[%s11873_s26 + $0x180] sm:$0xff] }
  0x78   : > { %v704_v6 = vsel %vm609_vm0, %v701_v42, %v703_v31  ;;  %v2159_v42 = vrot.slane %v12599_v40, 5 }
  0x79   : > { %10558 = vmatmul.mubr.msk.f32.gmra.mxu0 %vm707_vm1, %v694_v8  ;;  %v705_v8 = vrot.slane %v12644_v15, 1 }
  0x7a   : > { %10646 = vmatmul.mubr.msk.f32.gmra.mxu1 %vm707_vm1, %v12583_v22  ;;  %10560 = vmatprep.mubr.msk.f32.mxu0 %vm707_vm1, %v696_v63 }
  0x7b   : > { %10648 = vmatprep.mubr.msk.f32.mxu1 %vm707_vm1, %v12596_v4  ;;  %v706_v63 = vsel %vm609_vm0, %v703_v31, %v705_v8  ;;  %v2151_v31 = vrot.slane %v12567_v16, 5  ;;  %v2161_v8 = vrot.slane %v12612_v53, 5 }
  0x7d   : > { %10561 = vmatmul.mubr.msk.f32.gmra.mxu0 %vm707_vm1, %v698_v56  ;;  %v1603_v56 = vrot.slane %v12599_v40, 4 }
  0x7e   : > { %10649 = vmatmul.mubr.msk.f32.gmra.mxu1 %vm707_vm1, %v12599_v40  ;;  %10563 = vmatprep.mubr.msk.f32.mxu0 %vm707_vm1, %v700_v58 }
  0x7f   : > { %10651 = vmatprep.mubr.msk.f32.mxu1 %vm707_vm1, %v12612_v53 }
  0x81   : > { %10564 = vmatmul.mubr.msk.f32.gmra.mxu0 %vm707_vm1, %v702_v0  ;;  %v1605_v0 = vrot.slane %v12612_v53, 4  ;;  %v2162_v53 = vsel %vm2077_vm3, %v2159_v42, %v2161_v8 }
  0x82   : > { %10652 = vmatmul.mubr.msk.f32.gmra.mxu1 %vm707_vm1, %v12615_v54  ;;  %10566 = vmatprep.mubr.msk.f32.mxu0 %vm707_vm1, %v704_v6 }
  0x83   : > { %10654 = vmatprep.mubr.msk.f32.mxu1 %vm707_vm1, %v12628_v38 }
  0x85   : > { %10567 = vmatmul.mubr.msk.f32.gmra.mxu0 %vm707_vm1, %v706_v63  ;;  %v1607_v63 = vrot.slane %v12615_v54, 4 }
  0x86   : > { %10655 = vmatmul.mubr.msk.f32.gmra.mxu1 %vm707_vm1, %v12631_v59  ;;  %10673 = vmatprep.mubr.msk.f32.mxu0 %vm707_vm1, %v12137_v20  ;;  %v17047_v20 = vld [vmem:[#allocation10_spill] sm:$0xff] }
  0x87   : > { %10761 = vmatprep.mubr.msk.f32.mxu1 %vm707_vm1, %v12147_v14  ;;  %v17048_v14 = vld [vmem:[#allocation11_spill] sm:$0xff] }
  0x89   : > { %10674 = vmatmul.mubr.msk.f32.vlgmr.msra.gmra.mxu0 %vm707_vm1, %v12150_v17  ;;  %v17049_v17 = vld [vmem:[#allocation12_spill] sm:$0xff] }
  0x8a   : > { %10762 = vmatmul.mubr.msk.f32.vlgmr.msra.gmra.mxu1 %vm707_vm1, %v12155_v26  ;;  %10676 = vmatprep.mubr.msk.f32.mxu0 %vm707_vm1, %v12158_v9  ;;  %v17050_v26 = vld [vmem:[#allocation13_spill] sm:$0xff]  ;;  %v17051_v9 = vld [vmem:[#allocation14_spill] sm:$0xff] }
  0x8b   : > { %10764 = vmatprep.mubr.msk.f32.mxu1 %vm707_vm1, %v12161_v34  ;;  %v17053_v34 = vld [vmem:[#allocation16_spill] sm:$0xff] }
  0x8d   : > { %10677 = vmatmul.mubr.msk.f32.gmra.mxu0 %vm707_vm1, %v12171_v49  ;;  %v17054_v49 = vld [vmem:[#allocation17_spill] sm:$0xff] }
  0x8e   : > { %10765 = vmatmul.mubr.msk.f32.gmra.mxu1 %vm707_vm1, %v12174_v2  ;;  %10679 = vmatprep.mubr.msk.f32.mxu0 %vm707_vm1, %v12183_v10  ;;  %v17055_v2 = vld [vmem:[#allocation18_spill] sm:$0xff]  ;;  %v17056_v10 = vld [vmem:[#allocation19_spill] sm:$0xff] }
  0x8f   : > { %10767 = vmatprep.mubr.msk.f32.mxu1 %vm707_vm1, %v12193_v32  ;;  %v17057_v32 = vld [vmem:[#allocation20_spill] sm:$0xff] }
  0x91   : > { %10680 = vmatmul.mubr.msk.f32.gmra.mxu0 %vm707_vm1, %v12196_v18  ;;  %v17058_v18 = vld [vmem:[#allocation21_spill] sm:$0xff] }
  0x92   : > { %10768 = vmatmul.mubr.msk.f32.gmra.mxu1 %vm707_vm1, %v12201_v35  ;;  %10682 = vmatprep.mubr.msk.f32.mxu0 %vm707_vm1, %v12204_v23  ;;  %v17059_v35 = vld [vmem:[#allocation22_spill] sm:$0xff]  ;;  %v17060_v23 = vld [vmem:[#allocation23_spill] sm:$0xff] }
  0x93   : > { %10770 = vmatprep.mubr.msk.f32.mxu1 %vm707_vm1, %v12207_v27  ;;  %v17061_v27 = vld [vmem:[#allocation24_spill] sm:$0xff] }
  0x95   : > { %10683 = vmatmul.mubr.msk.f32.gmra.mxu0 %vm707_vm1, %v12217_v24  ;;  %v17062_v24 = vld [vmem:[#allocation25_spill] sm:$0xff] }
  0x96   : > { %10771 = vmatmul.mubr.msk.f32.gmra.mxu1 %vm707_vm1, %v12220_v37  ;;  %10685 = vmatprep.mubr.msk.f32.mxu0 %vm707_vm1, %v12229_v46  ;;  %v17063_v37 = vld [vmem:[#allocation26_spill] sm:$0xff]  ;;  %v17064_v46 = vld [vmem:[#allocation27_spill] sm:$0xff] }
  0x97   : > { %10773 = vmatprep.mubr.msk.f32.mxu1 %vm707_vm1, %v12239_v39  ;;  %v17065_v39 = vld [vmem:[#allocation28_spill] sm:$0xff] }
  0x99   : > { %10686 = vmatmul.mubr.msk.f32.gmra.mxu0 %vm707_vm1, %v12242_v25  ;;  %v17066_v25 = vld [vmem:[#allocation29_spill] sm:$0xff] }
  0x9a   : > { %10774 = vmatmul.mubr.msk.f32.gmra.mxu1 %vm707_vm1, %v12247_v47  ;;  %10688 = vmatprep.mubr.msk.f32.mxu0 %vm707_vm1, %v12250_v30  ;;  %v17067_v47 = vld [vmem:[#allocation30_spill] sm:$0xff]  ;;  %v17068_v30 = vld [vmem:[#allocation31_spill] sm:$0xff] }
  0x9b   : > { %10776 = vmatprep.mubr.msk.f32.mxu1 %vm707_vm1, %v12253_v21  ;;  %v17069_v21 = vld [vmem:[#allocation32_spill] sm:$0xff] }
  0x9d   : > { %10689 = vmatmul.mubr.msk.f32.gmra.mxu0 %vm707_vm1, %v12263_v5  ;;  %v17070_v5 = vld [vmem:[#allocation33_spill] sm:$0xff] }
  0x9e   : > { %10777 = vmatmul.mubr.msk.f32.gmra.mxu1 %vm707_vm1, %v12266_v12  ;;  %10691 = vmatprep.mubr.msk.f32.mxu0 %vm707_vm1, %v12275_v3  ;;  %v1591_v12 = vrot.slane %v12551_v57, 4  ;;  %v2147_v3 = vrot.slane %v12551_v57, 5 }
  0x9f   : > { %10779 = vmatprep.mubr.msk.f32.mxu1 %vm707_vm1, %v17047_v20  ;;  %v2163_v20 = vrot.slane %v12615_v54, 5 }
  0xa1   : > { %10692 = vmatmul.mubr.msk.f32.gmra.mxu0 %vm707_vm1, %v17048_v14  ;;  %v1606_v14 = vsel %vm1521_vm2, %v1603_v56, %v1605_v0  ;;  %v2164_v54 = vsel %vm2077_vm3, %v2161_v8, %v2163_v20 }
  0xa2   : > { %10780 = vmatmul.mubr.msk.f32.gmra.mxu1 %vm707_vm1, %v12293_v60  ;;  %10694 = vmatprep.mubr.msk.f32.mxu0 %vm707_vm1, %v12296_v41  ;;  %v17052_v60 = vld [vmem:[#allocation15_spill] sm:$0xff]  ;;  %v1593_v41 = vrot.slane %v12564_v36, 4 }
  0xa3   : > { %10782 = vmatprep.mubr.msk.f32.mxu1 %vm707_vm1, %v12299_v52  ;;  %v2149_v52 = vrot.slane %v12564_v36, 5  ;;  %v1601_v36 = vrot.slane %v12596_v4, 4 }
  0xa5   : > { %10695 = vmatmul.mubr.msk.f32.gmra.mxu0 %vm707_vm1, %v12303_v33  ;;  %v17072_v33 = vrot.slane %v12471_v1, 4  ;;  %v1604_v6 = vsel %vm1521_vm2, %v1601_v36, %v1603_v56 }
  0xa6   : > { %10783 = vmatmul.mubr.msk.f32.gmra.mxu1 %vm707_vm1, %v12306_v51  ;;  %10697 = vmatprep.mubr.msk.f32.mxu0 %vm707_vm1, %v17049_v17  ;;  %v17071_v51 = vld [vmem:[#allocation34_spill] sm:$0xff]  ;;  %v1609_v17 = vrot.slane %v12628_v38, 4 }
  0xa7   : > { %10785 = vmatprep.mubr.msk.f32.mxu1 %vm707_vm1, %v17050_v26  ;;  %v2165_v26 = vrot.slane %v12628_v38, 5 }
  0xa8   : > { %v1610_v38 = vsel %vm1521_vm2, %v1607_v63, %v1609_v17 }
  0xa9   : > { %10698 = vmatmul.mubr.msk.f32.gmra.mxu0 %vm707_vm1, %v17051_v9  ;;  %v1608_v9 = vsel %vm1521_vm2, %v1605_v0, %v1607_v63 }
  0xaa   : > { %10786 = vmatmul.mubr.msk.f32.gmra.mxu1 %vm707_vm1, %v12333_v19  ;;  %10700 = vmatprep.mubr.msk.f32.mxu0 %vm707_vm1, %v12336_v61  ;;  %v1592_v61 = vsel %vm1521_vm2, %v17072_v33, %v1591_v12  ;;  %v17073_v19 = vrot.slane %v12471_v1, 5  ;;  %v17074_v1 = vld [vmem:[#allocation35_spill] sm:$0xff] }
  0xab   : > { %10788 = vmatprep.mubr.msk.f32.mxu1 %vm707_vm1, %v12339_v44 }
  0xac   : > { %v2148_v44 = vsel %vm2077_vm3, %v17073_v19, %v2147_v3 }
  0xad   : > { %10701 = vmatmul.mubr.msk.f32.gmra.mxu0 %vm707_vm1, %v12343_v45  ;;  %v1595_v45 = vrot.slane %v12567_v16, 4  ;;  %v2157_v16 = vrot.slane %v12596_v4, 5 }
  0xae   : > { %10789 = vmatmul.mubr.msk.f32.gmra.mxu1 %vm707_vm1, %v17052_v60  ;;  %10703 = vmatprep.mubr.msk.f32.mxu0 %vm707_vm1, %v17053_v34  ;;  %v1611_v60 = vrot.slane %v12631_v59, 4  ;;  %v2167_v34 = vrot.slane %v12631_v59, 5 }
  0xaf   : > { %10791 = vmatprep.mubr.msk.f32.mxu1 %vm707_vm1, %v12365_v50  ;;  %v1594_v50 = vsel %vm1521_vm2, %v1591_v12, %v1593_v41  ;;  %v2160_v40 = vsel %vm2077_vm3, %v2157_v16, %v2159_v42 }
  0xb0   : > { %v2168_v59 = vsel %vm2077_vm3, %v2165_v26, %v2167_v34 }
  0xb1   : > { %10704 = vmatmul.mubr.msk.f32.gmra.mxu0 %vm707_vm1, %v17054_v49  ;;  %v541_v49 = vld [vmem:[%s11873_s26 + $0x188] sm:$0xff] }
  0xb2   : > { %10792 = vmatmul.mubr.msk.f32.gmra.mxu1 %vm707_vm1, %v17055_v2  ;;  %10706 = vmatprep.mubr.msk.f32.mxu0 %vm707_vm1, %v17056_v10  ;;  %v2166_v2 = vsel %vm2077_vm3, %v2163_v20, %v2165_v26  ;;  %v1613_v10 = vrot.slane %v12644_v15, 4 }
  0xb3   : > { %10794 = vmatprep.mubr.msk.f32.mxu1 %vm707_vm1, %v17057_v32  ;;  %v2169_v32 = vrot.slane %v12644_v15, 5 }
  0xb5   : > { %10707 = vmatmul.mubr.msk.f32.gmra.mxu0 %vm707_vm1, %v17058_v18  ;;  %v1612_v18 = vsel %vm1521_vm2, %v1609_v17, %v1611_v60 }
  0xb6   : > { %10795 = vmatmul.mubr.msk.f32.gmra.mxu1 %vm707_vm1, %v17059_v35  ;;  %10709 = vmatprep.mubr.msk.f32.mxu0 %vm707_vm1, %v17060_v23  ;;  %v1615_v35 = vrot.slane %v541_v49, 4  ;;  %v2171_v23 = vrot.slane %v541_v49, 5 }
  0xb7   : > { %10797 = vmatprep.mubr.msk.f32.mxu1 %vm707_vm1, %v17061_v27  ;;  %v542_v27 = vld [vmem:[%s11873_s26 + $0x190] sm:$0xff] }
  0xb8   : > { %v1617_v15 = vrot.slane %v542_v27, 4 }
  0xb9   : > { %10710 = vmatmul.mubr.msk.f32.gmra.mxu0 %vm707_vm1, %v17062_v24  ;;  %v1614_v24 = vsel %vm1521_vm2, %v1611_v60, %v1613_v10 }
  0xba   : > { %10798 = vmatmul.mubr.msk.f32.gmra.mxu1 %vm707_vm1, %v17063_v37  ;;  %10712 = vmatprep.mubr.msk.f32.mxu0 %vm707_vm1, %v17064_v46  ;;  %v2170_v37 = vsel %vm2077_vm3, %v2167_v34, %v2169_v32  ;;  %v2173_v46 = vrot.slane %v542_v27, 5 }
  0xbb   : > { %10800 = vmatprep.mubr.msk.f32.mxu1 %vm707_vm1, %v17065_v39  ;;  %v1616_v39 = vsel %vm1521_vm2, %v1613_v10, %v1615_v35 }
  0xbd   : > { %10713 = vmatmul.mubr.msk.f32.gmra.mxu0 %vm707_vm1, %v17066_v25  ;;  %v2172_v25 = vsel %vm2077_vm3, %v2169_v32, %v2171_v23 }
  0xbe   : > { %10801 = vmatmul.mubr.msk.f32.gmra.mxu1 %vm707_vm1, %v17067_v47  ;;  %10715 = vmatprep.mubr.msk.f32.mxu0 %vm707_vm1, %v17068_v30  ;;  %v1618_v47 = vsel %vm1521_vm2, %v1615_v35, %v1617_v15  ;;  %v2174_v30 = vsel %vm2077_vm3, %v2171_v23, %v2173_v46 }
  0xbf   : > { %10803 = vmatprep.mubr.msk.f32.mxu1 %vm707_vm1, %v17069_v21 }
  0xc1   : > { %10716 = vmatmul.mubr.msk.f32.gmra.mxu0 %vm707_vm1, %v17070_v5 }
  0xc2   : > { %10804 = vmatmul.mubr.msk.f32.gmra.mxu1 %vm707_vm1, %v12474_v55  ;;  %10718 = vmatprep.mubr.msk.f32.mxu0 %vm707_vm1, %v12477_v62  ;;  %v2150_v55 = vsel %vm2077_vm3, %v2147_v3, %v2149_v52  ;;  %v2153_v62 = vrot.slane %v17074_v1, 5 }
  0xc3   : > { %10806 = vmatprep.mubr.msk.f32.mxu1 %vm707_vm1, %v12480_v7  ;;  %v1596_v7 = vsel %vm1521_vm2, %v1593_v41, %v1595_v45 }
  0xc4   : > { %v2154_v57 = vsel %vm2077_vm3, %v2151_v31, %v2153_v62 }
  0xc5   : > { %10719 = vmatmul.mubr.msk.f32.gmra.mxu0 %vm707_vm1, %v12484_v11  ;;  %v2152_v11 = vsel %vm2077_vm3, %v2149_v52, %v2151_v31 }
  0xc6   : > { %10807 = vmatmul.mubr.msk.f32.gmra.mxu1 %vm707_vm1, %v12487_v29  ;;  %10721 = vmatprep.mubr.msk.f32.mxu0 %vm707_vm1, %v17071_v51  ;;  %v1597_v29 = vrot.slane %v17074_v1, 4 }
  0xc7   : > { %10809 = vmatprep.mubr.msk.f32.mxu1 %vm707_vm1, %v12510_v13  ;;  %v1599_v13 = vrot.slane %v12583_v22, 4 }
  0xc9   : > { %10722 = vmatmul.mubr.msk.f32.gmra.mxu0 %vm707_vm1, %v12515_v43  ;;  %v2155_v43 = vrot.slane %v12583_v22, 5  ;;  %v1600_v28 = vsel %vm1521_vm2, %v1597_v29, %v1599_v13  ;;  %v1602_v58 = vsel %vm1521_vm2, %v1599_v13, %v1601_v36 }
  0xca   : > { %10810 = vmatmul.mubr.msk.f32.gmra.mxu1 %vm707_vm1, %v12526_v48  ;;  %10724 = vmatprep.mubr.msk.f32.mxu0 %vm707_vm1, %v1592_v61  ;;  %v1598_v48 = vsel %vm1521_vm2, %v1595_v45, %v1597_v29 }
  0xcb   : > { %10812 = vmatprep.mubr.msk.f32.mxu1 %vm707_vm1, %v2148_v44  ;;  %v2156_v22 = vsel %vm2077_vm3, %v2153_v62, %v2155_v43  ;;  %v2158_v4 = vsel %vm2077_vm3, %v2155_v43, %v2157_v16 }
  0xcd   : > { %10725 = vmatmul.mubr.msk.f32.gmra.mxu0 %vm707_vm1, %v1594_v50 }
  0xce   : > { %10813 = vmatmul.mubr.msk.f32.gmra.mxu1 %vm707_vm1, %v2150_v55  ;;  %10727 = vmatprep.mubr.msk.f32.mxu0 %vm707_vm1, %v1596_v7 }
  0xcf   : > { %10815 = vmatprep.mubr.msk.f32.mxu1 %vm707_vm1, %v2152_v11 }
  0xd1   : > { %10728 = vmatmul.mubr.msk.f32.gmra.mxu0 %vm707_vm1, %v1598_v48 }
  0xd2   : > { %10816 = vmatmul.mubr.msk.f32.gmra.mxu1 %vm707_vm1, %v2154_v57  ;;  %10730 = vmatprep.mubr.msk.f32.mxu0 %vm707_vm1, %v1600_v28 }
  0xd3   : > { %10818 = vmatprep.mubr.msk.f32.mxu1 %vm707_vm1, %v2156_v22 }
  0xd5   : > { %10731 = vmatmul.mubr.msk.f32.gmra.mxu0 %vm707_vm1, %v1602_v58 }
  0xd6   : > { %10819 = vmatmul.mubr.msk.f32.gmra.mxu1 %vm707_vm1, %v2158_v4  ;;  %10733 = vmatprep.mubr.msk.f32.mxu0 %vm707_vm1, %v1604_v6 }
  0xd7   : > { %10821 = vmatprep.mubr.msk.f32.mxu1 %vm707_vm1, %v2160_v40 }
  0xd9   : > { %10734 = vmatmul.mubr.msk.f32.gmra.mxu0 %vm707_vm1, %v1606_v14 }
  0xda   : > { %10822 = vmatmul.mubr.msk.f32.gmra.mxu1 %vm707_vm1, %v2162_v53  ;;  %10736 = vmatprep.mubr.msk.f32.mxu0 %vm707_vm1, %v1608_v9 }
  0xdb   : > { %10824 = vmatprep.mubr.msk.f32.mxu1 %vm707_vm1, %v2164_v54 }
  0xdd   : > { %10737 = vmatmul.mubr.msk.f32.gmra.mxu0 %vm707_vm1, %v1610_v38 }
  0xde   : > { %10825 = vmatmul.mubr.msk.f32.gmra.mxu1 %vm707_vm1, %v2166_v2  ;;  %10739 = vmatprep.mubr.msk.f32.mxu0 %vm707_vm1, %v1612_v18 }
  0xdf   : > { %10827 = vmatprep.mubr.msk.f32.mxu1 %vm707_vm1, %v2168_v59 }
  0xe1   : > { %10740 = vmatmul.mubr.msk.f32.gmra.mxu0 %vm707_vm1, %v1614_v24 }
  0xe2   : > { %10828 = vmatmul.mubr.msk.f32.gmra.mxu1 %vm707_vm1, %v2170_v37  ;;  %10742 = vmatprep.mubr.msk.f32.mxu0 %vm707_vm1, %v1616_v39 }
  0xe3   : > { %10830 = vmatprep.mubr.msk.f32.mxu1 %vm707_vm1, %v2172_v25 }
  0xe5   : > { %10743 = vmatmul.mubr.msk.f32.gmra.mxu0 %vm707_vm1, %v1618_v47 }
  0xe6   : > { %10831 = vmatmul.mubr.msk.f32.gmra.mxu1 %vm707_vm1, %v2174_v30 }
  0xe9   : > { %v10499_v21 = vpop.f32.mrf.mxu0 }
  0xea   : > { %v10587_v5 = vpop.f32.mrf.mxu1 }
  0xeb   : > { %v12887_v12 = vadd.f32 %v10587_v5, %v10499_v21  ;;  %v12889_v3 = vpop.f32.mrf.mxu0 }
  0xec   : > { %17075 = vst [vmem:[#allocation10_spill] sm:$0xff] %v12889_v3  ;;  %v12891_v51 = vpop.f32.mrf.mxu1 }
  0xed   : > { %17076 = vst [vmem:[#allocation11_spill] sm:$0xff] %v12891_v51  ;;  %v10502_v41 = vpop.f32.mrf.mxu0 }
  0xee   : > { %v10590_v52 = vpop.f32.mrf.mxu1 }
  0xef   : > { %v12893_v33 = vadd.f32 %v10590_v52, %v10502_v41  ;;  %v12895_v61 = vpop.f32.mrf.mxu0 }
  0xf0   : > { %17077 = vst [vmem:[#allocation12_spill] sm:$0xff] %v12895_v61  ;;  %v12897_v19 = vpop.f32.mrf.mxu1 }
  0xf1   : > { %17078 = vst [vmem:[#allocation13_spill] sm:$0xff] %v12897_v19  ;;  %v10505_v44 = vpop.f32.mrf.mxu0 }
  0xf2   : > { %v10593_v45 = vpop.f32.mrf.mxu1 }
  0xf3   : > { %v12899_v31 = vadd.f32 %v10593_v45, %v10505_v44  ;;  %v12901_v50 = vpop.f32.mrf.mxu0 }
  0xf4   : > { %17079 = vst [vmem:[#allocation14_spill] sm:$0xff] %v12901_v50  ;;  %v12903_v55 = vpop.f32.mrf.mxu1 }
  0xf5   : > { %17080 = vst [vmem:[#allocation15_spill] sm:$0xff] %v12903_v55  ;;  %v10508_v1 = vpop.f32.mrf.mxu0 }
  0xf6   : > { %v10596_v29 = vpop.f32.mrf.mxu1 }
  0xf7   : > { %v12905_v62 = vadd.f32 %v10596_v29, %v10508_v1  ;;  %v12907_v7 = vpop.f32.mrf.mxu0 }
  0xf8   : > { %v12909_v11 = vpop.f32.mrf.mxu1 }
  0xf9   : > { %v10511_v13 = vpop.f32.mrf.mxu0 }
  0xfa   : > { %v10599_v43 = vpop.f32.mrf.mxu1 }
  0xfb   : > { %v12911_v48 = vadd.f32 %v10599_v43, %v10511_v13  ;;  %v12913_v57 = vpop.f32.mrf.mxu0 }
  0xfc   : > { %v12915_v36 = vpop.f32.mrf.mxu1 }
  0xfd   : > { %v10514_v16 = vpop.f32.mrf.mxu0 }
  0xfe   : > { %v10602_v28 = vpop.f32.mrf.mxu1 }
  0xff   : > { %v12917_v22 = vadd.f32 %v10602_v28, %v10514_v16  ;;  %v12919_v56 = vpop.f32.mrf.mxu0 }
 0x100   : > { %v12921_v42 = vpop.f32.mrf.mxu1 }
 0x101   : > { %v10517_v58 = vpop.f32.mrf.mxu0 }
 0x102   : > { %v10605_v4 = vpop.f32.mrf.mxu1 }
 0x103   : > { %v12923_v0 = vadd.f32 %v10605_v4, %v10517_v58  ;;  %v12925_v8 = vpop.f32.mrf.mxu0 }
 0x104   : > { %v12927_v6 = vpop.f32.mrf.mxu1 }
 0x105   : > { %v10520_v40 = vpop.f32.mrf.mxu0 }
 0x106   : > { %v10608_v63 = vpop.f32.mrf.mxu1 }
 0x107   : > { %v12929_v20 = vadd.f32 %v10608_v63, %v10520_v40  ;;  %v12931_v14 = vpop.f32.mrf.mxu0 }
 0x108   : > { %v12933_v53 = vpop.f32.mrf.mxu1 }
 0x109   : > { %v10523_v17 = vpop.f32.mrf.mxu0 }
 0x10a   : > { %v10611_v26 = vpop.f32.mrf.mxu1 }
 0x10b   : > { %v12935_v9 = vadd.f32 %v10611_v26, %v10523_v17  ;;  %v12937_v54 = vpop.f32.mrf.mxu0 }
 0x10c   : > { %17082 = vst [vmem:[#allocation17_spill] sm:$0xff] %v12937_v54  ;;  %v12939_v60 = vpop.f32.mrf.mxu1 }
 0x10d   : > { %17081 = vst [vmem:[#allocation16_spill] sm:$0xff] %v12935_v9  ;;  %17083 = vst [vmem:[#allocation18_spill] sm:$0xff] %v12939_v60  ;;  %v10526_v34 = vpop.f32.mrf.mxu0 }
 0x10e   : > { %v10614_v49 = vpop.f32.mrf.mxu1 }
 0x10f   : > { %v12941_v38 = vadd.f32 %v10614_v49, %v10526_v34  ;;  %v12943_v2 = vpop.f32.mrf.mxu0 }
 0x110   : > { %17085 = vst [vmem:[#allocation20_spill] sm:$0xff] %v12943_v2  ;;  %v12945_v10 = vpop.f32.mrf.mxu1 }
 0x111   : > { %17084 = vst [vmem:[#allocation19_spill] sm:$0xff] %v12941_v38  ;;  %17086 = vst [vmem:[#allocation21_spill] sm:$0xff] %v12945_v10  ;;  %v10529_v32 = vpop.f32.mrf.mxu0 }
 0x112   : > { %v10617_v18 = vpop.f32.mrf.mxu1 }
 0x113   : > { %v12947_v59 = vadd.f32 %v10617_v18, %v10529_v32  ;;  %v12949_v35 = vpop.f32.mrf.mxu0  ;;  %v2728_v18 = vld [vmem:[%s16950_s3 + $0x8] sm:$0xff] }
 0x114   : > { %v12951_v23 = vpop.f32.mrf.mxu1  ;;  %2824 = vmatprep.mubr.f32.mxu0 %v2728_v18 }
 0x115   : > { %17087 = vst [vmem:[#allocation22_spill] sm:$0xff] %v12947_v59  ;;  %v10532_v27 = vpop.f32.mrf.mxu0 }
 0x116   : > { %v10620_v24 = vpop.f32.mrf.mxu1 }
 0x117   : > { %v12953_v37 = vadd.f32 %v10620_v24, %v10532_v27  ;;  %v12955_v15 = vpop.f32.mrf.mxu0 }
 0x118   : > { %v12957_v46 = vpop.f32.mrf.mxu1 }
 0x119   : > { %v10535_v39 = vpop.f32.mrf.mxu0 }
 0x11a   : > { %v10623_v25 = vpop.f32.mrf.mxu1 }
 0x11b   : > { %v12959_v47 = vadd.f32 %v10623_v25, %v10535_v39  ;;  %v12961_v30 = vpop.f32.mrf.mxu0  ;;  %v16972_v39 = vmov 0.0  }
 0x11c   : > { %v12963_v21 = vpop.f32.mrf.mxu1  ;;  %10833 = vmatprep.subr.mxu1 %v16972_v39 }
 0x11d   : > { %v10538_v5 = vpop.f32.mrf.mxu0 }
 0x11e   : > { %v10626_v41 = vpop.f32.mrf.mxu1 }
 0x11f   : > { %v12965_v52 = vadd.f32 %v10626_v41, %v10538_v5  ;;  %v12967_v44 = vpop.f32.mrf.mxu0 }
 0x120   : > { %v12969_v45 = vpop.f32.mrf.mxu1 }
 0x121   : > { %v10541_v1 = vpop.f32.mrf.mxu0 }
 0x122   : > { %v10629_v29 = vpop.f32.mrf.mxu1 }
 0x123   : > { %v12971_v13 = vadd.f32 %v10629_v29, %v10541_v1  ;;  %v12973_v43 = vpop.f32.mrf.mxu0 }
 0x124   : > { %v12975_v16 = vpop.f32.mrf.mxu1 }
 0x125   : > { %v10544_v28 = vpop.f32.mrf.mxu0 }
 0x126   : > { %v10632_v58 = vpop.f32.mrf.mxu1 }
 0x127   : > { %v12977_v4 = vadd.f32 %v10632_v58, %v10544_v28  ;;  %v12979_v40 = vpop.f32.mrf.mxu0 }
 0x128   : > { %v12981_v63 = vpop.f32.mrf.mxu1 }
 0x129   : > { %v10547_v17 = vpop.f32.mrf.mxu0 }
 0x12a   : > { %v10635_v26 = vpop.f32.mrf.mxu1 }
 0x12b   : > { %v12983_v34 = vadd.f32 %v10635_v26, %v10547_v17  ;;  %v12985_v49 = vpop.f32.mrf.mxu0 }
 0x12c   : > { %17089 = vst [vmem:[#allocation24_spill] sm:$0xff] %v12985_v49  ;;  %v12987_v32 = vpop.f32.mrf.mxu1 }
 0x12d   : > { %17088 = vst [vmem:[#allocation23_spill] sm:$0xff] %v12983_v34  ;;  %17090 = vst [vmem:[#allocation25_spill] sm:$0xff] %v12987_v32  ;;  %v10550_v27 = vpop.f32.mrf.mxu0 }
 0x12e   : > { %v10638_v24 = vpop.f32.mrf.mxu1 }
 0x12f   : > { %v12993_v25 = vadd.f32 %v10638_v24, %v10550_v27  ;;  %v12995_v5 = vpop.f32.mrf.mxu0 }
 0x130   : > { %17092 = vst [vmem:[#allocation27_spill] sm:$0xff] %v12995_v5  ;;  %v12997_v41 = vpop.f32.mrf.mxu1 }
 0x131   : > { %17091 = vst [vmem:[#allocation26_spill] sm:$0xff] %v12993_v25  ;;  %17093 = vst [vmem:[#allocation28_spill] sm:$0xff] %v12997_v41  ;;  %v10553_v1 = vpop.f32.mrf.mxu0 }
 0x132   : > { %v10641_v29 = vpop.f32.mrf.mxu1 }
 0x133   : > { %v12999_v28 = vadd.f32 %v10641_v29, %v10553_v1  ;;  %v13001_v58 = vpop.f32.mrf.mxu0 }
 0x134   : > { %17095 = vst [vmem:[#allocation30_spill] sm:$0xff] %v13001_v58  ;;  %v13003_v17 = vpop.f32.mrf.mxu1 }
 0x135   : > { %17094 = vst [vmem:[#allocation29_spill] sm:$0xff] %v12999_v28  ;;  %17096 = vst [vmem:[#allocation31_spill] sm:$0xff] %v13003_v17  ;;  %v10556_v26 = vpop.f32.mrf.mxu0 }
 0x136   : > { %v10644_v34 = vpop.f32.mrf.mxu1 }
 0x137   : > { %v13005_v18 = vadd.f32 %v10644_v34, %v10556_v26  ;;  %v13007_v32 = vpop.f32.mrf.mxu0 }
 0x138   : > { %17098 = vst [vmem:[#allocation33_spill] sm:$0xff] %v13007_v32  ;;  %v13009_v27 = vpop.f32.mrf.mxu1 }
 0x139   : > { %17097 = vst [vmem:[#allocation32_spill] sm:$0xff] %v13005_v18  ;;  %17099 = vst [vmem:[#allocation34_spill] sm:$0xff] %v13009_v27  ;;  %v10559_v24 = vpop.f32.mrf.mxu0 }
 0x13a   : > { %v10647_v39 = vpop.f32.mrf.mxu1 }
 0x13b   : > { %v13011_v49 = vadd.f32 %v10647_v39, %v10559_v24  ;;  %v13013_v25 = vpop.f32.mrf.mxu0 }
 0x13c   : > { %17101 = vst [vmem:[#allocation36_spill] sm:$0xff] %v13013_v25  ;;  %v13015_v1 = vpop.f32.mrf.mxu1 }
 0x13d   : > { %17100 = vst [vmem:[#allocation35_spill] sm:$0xff] %v13011_v49  ;;  %17102 = vst [vmem:[#allocation37_spill] sm:$0xff] %v13015_v1  ;;  %v10562_v29 = vpop.f32.mrf.mxu0 }
 0x13e   : > { %v10650_v41 = vpop.f32.mrf.mxu1 }
 0x13f   : > { %v13017_v5 = vadd.f32 %v10650_v41, %v10562_v29  ;;  %v13019_v28 = vpop.f32.mrf.mxu0 }
 0x140   : > { %17104 = vst [vmem:[#allocation39_spill] sm:$0xff] %v13019_v28  ;;  %v13021_v34 = vpop.f32.mrf.mxu1 }
 0x141   : > { %17103 = vst [vmem:[#allocation38_spill] sm:$0xff] %v13017_v5  ;;  %17105 = vst [vmem:[#allocation40_spill] sm:$0xff] %v13021_v34  ;;  %v10565_v26 = vpop.f32.mrf.mxu0 }
 0x142   : > { %v10653_v17 = vpop.f32.mrf.mxu1 }
 0x143   : > { %v13023_v58 = vadd.f32 %v10653_v17, %v10565_v26  ;;  %v13025_v18 = vpop.f32.mrf.mxu0 }
 0x144   : > { %17107 = vst [vmem:[#allocation42_spill] sm:$0xff] %v13025_v18  ;;  %v13027_v39 = vpop.f32.mrf.mxu1 }
 0x145   : > { %17106 = vst [vmem:[#allocation41_spill] sm:$0xff] %v13023_v58  ;;  %17108 = vst [vmem:[#allocation43_spill] sm:$0xff] %v13027_v39  ;;  %v10568_v24 = vpop.f32.mrf.mxu0 }
 0x146   : > { %v10656_v27 = vpop.f32.mrf.mxu1 }
 0x147   : > { %v13029_v32 = vadd.f32 %v10656_v27, %v10568_v24  ;;  %v13031_v49 = vpop.f32.mrf.mxu0 }
 0x148   : > { %17110 = vst [vmem:[#allocation45_spill] sm:$0xff] %v13031_v49  ;;  %v13033_v41 = vpop.f32.mrf.mxu1 }
 0x149   : > { %17109 = vst [vmem:[#allocation44_spill] sm:$0xff] %v13029_v32  ;;  %17111 = vst [vmem:[#allocation46_spill] sm:$0xff] %v13033_v41  ;;  %v10675_v29 = vpop.f32.mrf.mxu0 }
 0x14a   : > { %v10763_v1 = vpop.f32.mrf.mxu1  ;;  %v2021_v25 = vadd.f32 %v10675_v29, %v12887_v12 }
 0x14b   : > { %v13036_v5 = vpop.f32.mrf.mxu0 }
 0x14c   : > { %17112 = vst [vmem:[#allocation47_spill] sm:$0xff] %v13036_v5  ;;  %v13038_v17 = vpop.f32.mrf.mxu1  ;;  %v13040_v26 = vadd.f32 %v10763_v1, %v2021_v25  ;;  %v17121_v1 = vmov 0.0  }
 0x14d   : > { %17113 = vst [vmem:[#allocation48_spill] sm:$0xff] %v13038_v17  ;;  %v10678_v34 = vpop.f32.mrf.mxu0  ;;  %10865 = vmatprep.mubr.msk.f32.mxu1 %vm11707_vm4, %v17121_v1 }
 0x14e   : > { %17114 = vst [vmem:[#allocation49_spill] sm:$0xff] %v13040_v26  ;;  %v10766_v28 = vpop.f32.mrf.mxu1  ;;  %v2023_v58 = vadd.f32 %v10678_v34, %v12893_v33 }
 0x14f   : > { %v13043_v27 = vpop.f32.mrf.mxu0 }
 0x150   : > { %17115 = vst [vmem:[#allocation50_spill] sm:$0xff] %v13043_v27  ;;  %v13045_v24 = vpop.f32.mrf.mxu1  ;;  %v13047_v32 = vadd.f32 %v10766_v28, %v2023_v58 }
 0x151   : > { %17116 = vst [vmem:[#allocation51_spill] sm:$0xff] %v13045_v24  ;;  %v10681_v41 = vpop.f32.mrf.mxu0 }
 0x152   : > { %17117 = vst [vmem:[#allocation52_spill] sm:$0xff] %v13047_v32  ;;  %v10769_v49 = vpop.f32.mrf.mxu1  ;;  %v2025_v12 = vadd.f32 %v10681_v41, %v12899_v31 }
 0x153   : > { %v13050_v29 = vpop.f32.mrf.mxu0 }
 0x154   : > { %17118 = vst [vmem:[#allocation53_spill] sm:$0xff] %v13050_v29  ;;  %v13052_v39 = vpop.f32.mrf.mxu1  ;;  %v13054_v25 = vadd.f32 %v10769_v49, %v2025_v12 }
 0x155   : > { %17119 = vst [vmem:[#allocation54_spill] sm:$0xff] %v13052_v39  ;;  %v10684_v33 = vpop.f32.mrf.mxu0 }
 0x156   : > { %17120 = vst [vmem:[#allocation55_spill] sm:$0xff] %v13054_v25  ;;  %v10772_v34 = vpop.f32.mrf.mxu1  ;;  %v2027_v26 = vadd.f32 %v10684_v33, %v12905_v62 }
 0x157   : > { %v13059_v28 = vpop.f32.mrf.mxu0 }
 0x158   : > { %17122 = vst [vmem:[#allocation56_spill] sm:$0xff] %v13059_v28  ;;  %v13061_v58 = vpop.f32.mrf.mxu1  ;;  %v13063_v18 = vadd.f32 %v10772_v34, %v2027_v26  ;;  %v13128_v28 = vadd.f32 %v12909_v11, %v12907_v7  ;;  %v1322_v7 = vadd.f32 %v12921_v42, %v12919_v56  ;;  %v1422_v11 = vadd.f32 %v12981_v63, %v12979_v40  ;;  %v13150_v56 = vld [vmem:[%s16949_s2] ss:$0 sm:$0xff] }
 0x159   : > { %17123 = vst [vmem:[#allocation57_spill] sm:$0xff] %v13061_v58  ;;  %v13065_v31 = vpop.f32.mrf.mxu0 }
 0x15a   : > { %17124 = vst [vmem:[#allocation58_spill] sm:$0xff] %v13063_v18  ;;  %v13067_v41 = vpop.f32.mrf.mxu1 }
 0x15b   : > { %17125 = vst [vmem:[#allocation59_spill] sm:$0xff] %v13067_v41  ;;  %v13069_v49 = vpop.f32.mrf.mxu0  ;;  %v1312_v41 = vadd.f32 %v12915_v36, %v12913_v57  ;;  %v1382_v57 = vadd.f32 %v12957_v46, %v12955_v15  ;;  %v1402_v36 = vadd.f32 %v12969_v45, %v12967_v44  ;;  %v1392_v15 = vadd.f32 %v12963_v21, %v12961_v30 }
 0x15c   : > { %v13071_v12 = vpop.f32.mrf.mxu1 }
 0x15d   : > { %17126 = vst [vmem:[#allocation60_spill] sm:$0xff] %v13071_v12  ;;  %v13073_v17 = vpop.f32.mrf.mxu0 }
 0x15e   : > { %v13075_v1 = vpop.f32.mrf.mxu1  ;;  %v2031_v46 = vadd.f32 %v13073_v17, %v12917_v22 }
 0x15f   : > { %v13077_v32 = vpop.f32.mrf.mxu0 }
 0x160   : > { %v13079_v62 = vpop.f32.mrf.mxu1  ;;  %v2030_v63 = vadd.f32 %v13077_v32, %v1322_v7  ;;  %v2029_v32 = vadd.f32 %v13065_v31, %v12911_v48  ;;  %v2028_v48 = vadd.f32 %v13069_v49, %v1312_v41  ;;  %v1372_v49 = vadd.f32 %v12951_v23, %v12949_v35  ;;  %v17151_v35 = vld [vmem:[#allocation56_spill] sm:$0xff] }
 0x161   : > { %v10693_v33 = vpop.f32.mrf.mxu0  ;;  %v2026_v23 = vadd.f32 %v17151_v35, %v13128_v28  ;;  %v17167_v35 = vld [vmem:[#allocation12_spill] sm:$0xff] }
 0x162   : > { %v13081_v24 = vpop.f32.mrf.mxu1 }
 0x163   : > { %v1841_v26 = vpop.f32.mrf.mxu0 }
 0x164   : > { %v13083_v34 = vpop.f32.mrf.mxu1 }
 0x165   : > { %v10696_v5 = vpop.f32.mrf.mxu0 }
 0x166   : > { %v10784_v25 = vpop.f32.mrf.mxu1  ;;  %v2035_v50 = vadd.f32 %v10696_v5, %v12929_v20  ;;  %v1332_v20 = vadd.f32 %v12927_v6, %v12925_v8 }
 0x167   : > { %v1851_v51 = vpop.f32.mrf.mxu0 }
 0x168   : > { %v2407_v3 = vpop.f32.mrf.mxu1  ;;  %v2032_v8 = vadd.f32 %v1841_v26, %v1332_v20 }
 0x169   : > { %v13085_v9 = vpop.f32.mrf.mxu0 }
 0x16a   : > { %17127 = vst [vmem:[#allocation61_spill] sm:$0xff] %v13085_v9  ;;  %v13087_v39 = vpop.f32.mrf.mxu1  ;;  %v2588_v30 = vadd.f32 %v13083_v34, %v2032_v8 }
 0x16b   : > { %17128 = vst [vmem:[#allocation62_spill] sm:$0xff] %v13087_v39  ;;  %v13089_v27 = vpop.f32.mrf.mxu0 }
 0x16c   : > { %17129 = vst [vmem:[#allocation63_spill] sm:$0xff] %v13089_v27  ;;  %v13091_v18 = vpop.f32.mrf.mxu1  ;;  %v2643_v31 = vadd.f32 %v13150_v56, %v2588_v30  ;;  %v17159_v30 = vld [vmem:[#allocation21_spill] sm:$0xff] }
 0x16d   : > { %17130 = vst [vmem:[#allocation64_spill] sm:$0xff] %v13091_v18  ;;  %v13093_v60 = vpop.f32.mrf.mxu0 }
 0x16e   : > { %17131 = vst [vmem:[#allocation65_spill] sm:$0xff] %v13093_v60  ;;  %v13095_v54 = vpop.f32.mrf.mxu1 }
 0x16f   : > { %17132 = vst [vmem:[#allocation66_spill] sm:$0xff] %v13095_v54  ;;  %v13097_v19 = vpop.f32.mrf.mxu0 }
 0x170   : > { %17133 = vst [vmem:[#allocation67_spill] sm:$0xff] %v13097_v19  ;;  %v13099_v61 = vpop.f32.mrf.mxu1 }
 0x171   : > { %17134 = vst [vmem:[#allocation68_spill] sm:$0xff] %v13099_v61  ;;  %v13101_v38 = vpop.f32.mrf.mxu0 }
 0x172   : > { %17135 = vst [vmem:[#allocation69_spill] sm:$0xff] %v13101_v38  ;;  %v13103_v58 = vpop.f32.mrf.mxu1 }
 0x173   : > { %17136 = vst [vmem:[#allocation70_spill] sm:$0xff] %v13103_v58  ;;  %v13105_v29 = vpop.f32.mrf.mxu0 }
 0x174   : > { %17137 = vst [vmem:[#allocation71_spill] sm:$0xff] %v13105_v29  ;;  %v13107_v9 = vpop.f32.mrf.mxu1 }
 0x175   : > { %17138 = vst [vmem:[#allocation72_spill] sm:$0xff] %v13107_v9  ;;  %v13109_v39 = vpop.f32.mrf.mxu0  ;;  %v1342_v9 = vadd.f32 %v12933_v53, %v12931_v14  ;;  %v2033_v14 = vadd.f32 %v10693_v33, %v12923_v0 }
 0x176   : > { %v13111_v27 = vpop.f32.mrf.mxu1 }
 0x177   : > { %17139 = vst [vmem:[#allocation73_spill] sm:$0xff] %v13111_v27  ;;  %v13113_v18 = vpop.f32.mrf.mxu0  ;;  %v2034_v59 = vadd.f32 %v1851_v51, %v1342_v9  ;;  %v2591_v51 = vadd.f32 %v10784_v25, %v2035_v50  ;;  %v2587_v25 = vadd.f32 %v13075_v1, %v2031_v46  ;;  %v2586_v1 = vadd.f32 %v13079_v62, %v2030_v63  ;;  %v17148_v62 = vld [vmem:[#allocation59_spill] sm:$0xff]  ;;  %v17158_v63 = vld [vmem:[#allocation20_spill] sm:$0xff] }
 0x178   : > { %17140 = vst [vmem:[#allocation74_spill] sm:$0xff] %v13113_v18  ;;  %v13115_v60 = vpop.f32.mrf.mxu1 }
 0x179   : > { %17141 = vst [vmem:[#allocation75_spill] sm:$0xff] %v13115_v60  ;;  %v10711_v54 = vpop.f32.mrf.mxu0  ;;  %v2590_v0 = vadd.f32 %v2407_v3, %v2034_v59  ;;  %v2589_v3 = vadd.f32 %v13081_v24, %v2033_v14  ;;  %v2646_v59 = vadd.f32 %v13150_v56, %v2591_v51  ;;  %v2642_v7 = vadd.f32 %v13150_v56, %v2587_v25 }
 0x17a   : > { %v13117_v19 = vpop.f32.mrf.mxu1  ;;  %v2045_v22 = vadd.f32 %v10711_v54, %v12959_v47 }
 0x17b   : > { %v13119_v61 = vpop.f32.mrf.mxu0  ;;  %v2645_v21 = vadd.f32 %v13150_v56, %v2590_v0 }
 0x17c   : > { %v13121_v10 = vpop.f32.mrf.mxu1 }
 0x17d   : > { %17142 = vst [vmem:[#allocation76_spill] sm:$0xff] %v13121_v10  ;;  %v10714_v58 = vpop.f32.mrf.mxu0  ;;  %v1412_v10 = vadd.f32 %v12975_v16, %v12973_v43  ;;  %v13194_v20 = vmax.f32 %v2645_v21, 0.0  ;;  %v1362_v21 = vadd.f32 %v17159_v30, %v17158_v63 }
 0x17e   : > { %v10802_v2 = vpop.f32.mrf.mxu1  ;;  %v2047_v42 = vadd.f32 %v10714_v58, %v12965_v52  ;;  %v2644_v58 = vadd.f32 %v13150_v56, %v2589_v3  ;;  %v17155_v3 = vld [vmem:[#allocation73_spill] sm:$0xff] }
 0x17f   : > { %v1911_v29 = vpop.f32.mrf.mxu0 }
 0x180   : > { %v2467_v55 = vpop.f32.mrf.mxu1  ;;  %v2603_v17 = vadd.f32 %v10802_v2, %v2047_v42  ;;  %v2044_v2 = vadd.f32 %v13119_v61, %v1392_v15  ;;  %v2043_v61 = vadd.f32 %v13109_v39, %v12953_v37  ;;  %v2641_v42 = vadd.f32 %v13150_v56, %v2586_v1  ;;  %v17154_v15 = vld [vmem:[#allocation69_spill] sm:$0xff] }
 0x181   : > { %v10717_v27 = vpop.f32.mrf.mxu0 }
 0x182   : > { %v10805_v38 = vpop.f32.mrf.mxu1  ;;  %v2049_v18 = vadd.f32 %v10717_v27, %v12971_v13 }
 0x183   : > { %v1921_v60 = vpop.f32.mrf.mxu0 }
 0x184   : > { %v2477_v12 = vpop.f32.mrf.mxu1  ;;  %v2048_v43 = vadd.f32 %v1921_v60, %v1412_v10  ;;  %v2605_v60 = vadd.f32 %v10805_v38, %v2049_v18 }
 0x185   : > { %v10720_v53 = vpop.f32.mrf.mxu0 }
 0x186   : > { %v10808_v9 = vpop.f32.mrf.mxu1  ;;  %v2051_v13 = vadd.f32 %v10720_v53, %v12977_v4  ;;  %v2046_v4 = vadd.f32 %v1911_v29, %v1402_v36  ;;  %v2604_v40 = vadd.f32 %v2477_v12, %v2048_v43  ;;  %v2660_v27 = vadd.f32 %v13150_v56, %v2605_v60 }
 0x187   : > { %v1931_v50 = vpop.f32.mrf.mxu0  ;;  %v13180_v12 = vmax.f32 %v2646_v59, 0.0  ;;  %v2658_v53 = vadd.f32 %v13150_v56, %v2603_v17  ;;  %v13229_v60 = vmax.f32 %v2643_v31, 0.0  ;;  %v2599_v59 = vadd.f32 %v17155_v3, %v2043_v61  ;;  %v17163_v31 = vld [vmem:[#allocation57_spill] sm:$0xff] }
 0x188   : > { %v2487_v6 = vpop.f32.mrf.mxu1  ;;  %v2607_v10 = vadd.f32 %v10808_v9, %v2051_v13  ;;  %v2050_v16 = vadd.f32 %v1931_v50, %v1422_v11  ;;  %v2602_v33 = vadd.f32 %v2467_v55, %v2046_v4  ;;  %v2659_v26 = vadd.f32 %v13150_v56, %v2604_v40  ;;  %v17150_v13 = vld [vmem:[#allocation76_spill] sm:$0xff]  ;;  %v17156_v40 = vld [vmem:[#allocation14_spill] sm:$0xff] }
 0x189   : > { %v13159_v44 = vpop.f32.mrf.mxu0  ;;  %v2601_v55 = vadd.f32 %v13117_v19, %v2045_v22  ;;  %v13205_v41 = vmax.f32 %v2660_v27, 0.0  ;;  %v2585_v9 = vadd.f32 %v17148_v62, %v2029_v32  ;;  %v13212_v11 = vmax.f32 %v2644_v58, 0.0  ;;  %v17149_v19 = vld [vmem:[#allocation74_spill] sm:$0xff]  ;;  %v17152_v50 = vld [vmem:[#allocation60_spill] sm:$0xff]  ;;  %v17160_v32 = vld [vmem:[#allocation71_spill] sm:$0xff] }
 0x18a   : > { %17143 = vst [vmem:[#allocation77_spill] sm:$0xff] %v13159_v44  ;;  %v13161_v45 = vpop.f32.mrf.mxu1  ;;  %v2662_v38 = vadd.f32 %v13150_v56, %v2607_v10  ;;  %v2606_v52 = vadd.f32 %v2487_v6, %v2050_v16  ;;  %v2042_v39 = vadd.f32 %v17149_v19, %v1382_v57  ;;  %v2600_v36 = vadd.f32 %v17150_v13, %v2044_v2  ;;  %v17153_v16 = vld [vmem:[#allocation22_spill] sm:$0xff]  ;;  %v17161_v58 = vld [vmem:[#allocation75_spill] sm:$0xff]  ;;  %v17207_v44 = vld [vmem:[#allocation44_spill] sm:$0xff] }
 0x18b   : > { %17144 = vst [vmem:[#allocation78_spill] sm:$0xff] %v13161_v45  ;;  %v13168_v5 = vpop.f32.mrf.mxu0  ;;  %v2657_v8 = vadd.f32 %v13150_v56, %v2602_v33  ;;  %v13222_v0 = vmax.f32 %v2659_v26, 0.0  ;;  %v2584_v6 = vadd.f32 %v17152_v50, %v2028_v48  ;;  %v2041_v46 = vadd.f32 %v17154_v15, %v17153_v16  ;;  %v17162_v48 = vld [vmem:[#allocation53_spill] sm:$0xff]  ;;  %v17171_v15 = vld [vmem:[#allocation58_spill] sm:$0xff] }
 0x18c   : > { %17145 = vst [vmem:[#allocation79_spill] sm:$0xff] %v13168_v5  ;;  %v13170_v18 = vpop.f32.mrf.mxu1  ;;  %v13173_v24 = vmax.f32 %v2662_v38, 0.0  ;;  %v2661_v29 = vadd.f32 %v13150_v56, %v2606_v52  ;;  %v2656_v4 = vadd.f32 %v13150_v56, %v2601_v55  ;;  %v13240_v28 = vmax.f32 %v2658_v53, 0.0  ;;  %v17157_v38 = vld [vmem:[#allocation15_spill] sm:$0xff] }
 0x18d   : > { %17146 = vst [vmem:[#allocation80_spill] sm:$0xff] %v13170_v18  ;;  %v13182_v54 = vpop.f32.mrf.mxu0  ;;  %v1292_v52 = vadd.f32 %v17157_v38, %v17156_v40  ;;  %v2640_v22 = vadd.f32 %v13150_v56, %v2585_v9  ;;  %v13248_v17 = vmax.f32 %v2642_v7, 0.0  ;;  %v2040_v25 = vadd.f32 %v17160_v32, %v1372_v49  ;;  %v17164_v49 = vld [vmem:[#allocation19_spill] sm:$0xff]  ;;  %v17165_v7 = vld [vmem:[#allocation65_spill] sm:$0xff] }
 0x18e   : > { %v13184_v47 = vpop.f32.mrf.mxu1  ;;  %v13188_v34 = vmax.f32 %v2661_v29, 0.0  ;;  %9683 = vmatprep.subr.mxu0 %v13173_v24  ;;  %v2598_v2 = vadd.f32 %v17161_v58, %v2042_v39  ;;  %v2655_v33 = vadd.f32 %v13150_v56, %v2600_v36  ;;  %v13258_v26 = vmax.f32 %v2657_v8, 0.0  ;;  %v17166_v39 = vld [vmem:[#allocation70_spill] sm:$0xff] }
 0x18f   : > { %v13196_v14 = vpop.f32.mrf.mxu0  ;;  %9684 = vmatpush3.msra.mxu0 %v13180_v12  ;;  %v2024_v1 = vadd.f32 %v17162_v48, %v1292_v52  ;;  %v2582_v61 = vadd.f32 %v17163_v31, %v2026_v23  ;;  %v2639_v55 = vadd.f32 %v13150_v56, %v2584_v6  ;;  %v13264_v53 = vmax.f32 %v2641_v42, 0.0  ;;  %v17168_v23 = vld [vmem:[#allocation13_spill] sm:$0xff]  ;;  %v17170_v42 = vld [vmem:[#allocation18_spill] sm:$0xff]  ;;  %v17173_v52 = vld [vmem:[#allocation72_spill] sm:$0xff] }
 0x190   : > { %v13198_v51 = vpop.f32.mrf.mxu1  ;;  %9685 = vmatprep.subr.mxu0 %v13188_v34  ;;  %v2039_v19 = vadd.f32 %v17165_v7, %v17164_v49  ;;  %v2597_v13 = vadd.f32 %v17166_v39, %v2041_v46  ;;  %v2654_v36 = vadd.f32 %v13150_v56, %v2599_v59  ;;  %v13275_v8 = vmax.f32 %v2656_v4, 0.0  ;;  %v17169_v6 = vld [vmem:[#allocation17_spill] sm:$0xff]  ;;  %v17172_v59 = vld [vmem:[#allocation67_spill] sm:$0xff]  ;;  %v17174_v58 = vld [vmem:[#allocation50_spill] sm:$0xff] }
 0x191   : > { %17147 = vst [vmem:[#allocation81_spill] sm:$0xff] %v13198_v51  ;;  %v13214_v43 = vpop.f32.mrf.mxu0  ;;  %9686 = vmatpush3.msra.mxu0 %v13194_v20  ;;  %v1282_v50 = vadd.f32 %v17168_v23, %v17167_v35  ;;  %v1352_v16 = vadd.f32 %v17170_v42, %v17169_v6  ;;  %v2638_v3 = vadd.f32 %v13150_v56, %v17171_v15  ;;  %v13284_v40 = vmax.f32 %v2640_v22, 0.0  ;;  %v17175_v22 = vld [vmem:[#allocation54_spill] sm:$0xff]  ;;  %v17182_v42 = vld [vmem:[#allocation55_spill] sm:$0xff] }
 0x192   : > { %v13216_v37 = vpop.f32.mrf.mxu1  ;;  %9687 = vmatprep.subr.mxu0 %v13205_v41  ;;  %v2038_v4 = vadd.f32 %v17172_v59, %v1362_v21  ;;  %v2596_v63 = vadd.f32 %v17173_v52, %v2040_v25  ;;  %v2653_v30 = vadd.f32 %v13150_v56, %v2598_v2  ;;  %v13294_v32 = vmax.f32 %v2655_v33, 0.0  ;;  %v17176_v21 = vld [vmem:[#allocation16_spill] sm:$0xff]  ;;  %v17177_v25 = vld [vmem:[#allocation61_spill] sm:$0xff]  ;;  %v17178_v33 = vld [vmem:[#allocation66_spill] sm:$0xff] }
 0x193   : > { %v13231_v10 = vpop.f32.mrf.mxu0  ;;  %9688 = vmatpush3.msra.mxu0 %v13212_v11  ;;  %v2022_v48 = vadd.f32 %v17174_v58, %v1282_v50  ;;  %v2580_v31 = vadd.f32 %v17175_v22, %v2024_v1  ;;  %v2637_v49 = vadd.f32 %v13150_v56, %v2582_v61  ;;  %v13300_v7 = vmax.f32 %v2639_v55, 0.0  ;;  %v17180_v1 = vld [vmem:[#allocation10_spill] sm:$0xff]  ;;  %v17181_v61 = vld [vmem:[#allocation11_spill] sm:$0xff] }
 0x194   : > { %v13233_v57 = vpop.f32.mrf.mxu1  ;;  %9689 = vmatprep.subr.mxu0 %v13222_v0  ;;  %v2037_v2 = vadd.f32 %v17177_v25, %v17176_v21  ;;  %v2595_v23 = vadd.f32 %v17178_v33, %v2039_v19  ;;  %v2652_v6 = vadd.f32 %v13150_v56, %v2597_v13  ;;  %v13311_v50 = vmax.f32 %v2654_v36, 0.0  ;;  %v17184_v19 = vld [vmem:[#allocation63_spill] sm:$0xff]  ;;  %v17185_v36 = vld [vmem:[#allocation68_spill] sm:$0xff] }
 0x195   : > { %v13250_v27 = vpop.f32.mrf.mxu0  ;;  %9690 = vmatpush3.msra.mxu0 %v13229_v60  ;;  %v1272_v55 = vadd.f32 %v17181_v61, %v17180_v1  ;;  %v2636_v15 = vadd.f32 %v13150_v56, %v17182_v42  ;;  %v13318_v59 = vmax.f32 %v2638_v3, 0.0  ;;  %v2036_v13 = vadd.f32 %v17184_v19, %v1352_v16  ;;  %v17187_v33 = vld [vmem:[#allocation47_spill] sm:$0xff]  ;;  %v17190_v16 = vld [vmem:[#allocation62_spill] sm:$0xff] }
 0x196   : > { %v13252_v29 = vpop.f32.mrf.mxu1  ;;  %9691 = vmatprep.subr.mxu0 %v13240_v28  ;;  %17179 = vst [vmem:[#allocation59_spill] sm:$0xff] %v13311_v50  ;;  %v2594_v22 = vadd.f32 %v17185_v36, %v2038_v4  ;;  %v2651_v21 = vadd.f32 %v13150_v56, %v2596_v63  ;;  %v13328_v25 = vmax.f32 %v2653_v30, 0.0  ;;  %v17188_v3 = vld [vmem:[#allocation51_spill] sm:$0xff]  ;;  %v2635_v42 = vadd.f32 %v13150_v56, %v2580_v31  ;;  %v17194_v36 = vld [vmem:[#allocation64_spill] sm:$0xff] }
 0x197   : > { %v13266_v62 = vpop.f32.mrf.mxu0  ;;  %9692 = vmatpush3.msra.mxu0 %v13248_v17  ;;  %17183 = vst [vmem:[#allocation74_spill] sm:$0xff] %v13318_v59  ;;  %v2020_v1 = vadd.f32 %v17187_v33, %v1272_v55  ;;  %v2578_v61 = vadd.f32 %v17188_v3, %v2022_v48  ;;  %v13334_v18 = vmax.f32 %v2637_v49, 0.0  ;;  %v2593_v4 = vadd.f32 %v17190_v16, %v2037_v2  ;;  %v17192_v55 = vld [vmem:[#allocation52_spill] sm:$0xff] }
 0x198   : > { %v13268_v9 = vpop.f32.mrf.mxu1  ;;  %9693 = vmatprep.subr.mxu0 %v13258_v26  ;;  %17186 = vst [vmem:[#allocation76_spill] sm:$0xff] %v13328_v25  ;;  %v2650_v63 = vadd.f32 %v13150_v56, %v2595_v23  ;;  %v13341_v30 = vmax.f32 %v2652_v6, 0.0  ;;  %v2634_v48 = vadd.f32 %v13150_v56, %v17192_v55  ;;  %v13346_v19 = vmax.f32 %v2636_v15, 0.0  ;;  %v17196_v23 = vld [vmem:[#allocation48_spill] sm:$0xff] }
 0x199   : > { %v13286_v38 = vpop.f32.mrf.mxu0  ;;  %9694 = vmatpush3.msra.mxu0 %v13264_v53  ;;  %17189 = vst [vmem:[#allocation56_spill] sm:$0xff] %v13334_v18  ;;  %v2592_v33 = vadd.f32 %v17194_v36, %v2036_v13  ;;  %v2649_v3 = vadd.f32 %v13150_v56, %v2594_v22  ;;  %v13351_v2 = vmax.f32 %v2651_v21, 0.0  ;;  %v2576_v6 = vadd.f32 %v17196_v23, %v2020_v1  ;;  %v17199_v13 = vld [vmem:[#allocation42_spill] sm:$0xff]  ;;  %v17200_v22 = vld [vmem:[#allocation43_spill] sm:$0xff]  ;;  %v17201_v36 = vld [vmem:[#allocation49_spill] sm:$0xff] }
 0x19a   : > { %v13288_v46 = vpop.f32.mrf.mxu1  ;;  %9695 = vmatprep.subr.mxu0 %v13275_v8  ;;  %17191 = vst [vmem:[#allocation60_spill] sm:$0xff] %v13341_v30  ;;  %17193 = vst [vmem:[#allocation22_spill] sm:$0xff] %v13346_v19  ;;  %v2633_v16 = vadd.f32 %v13150_v56, %v2578_v61  ;;  %v1492_v21 = vadd.f32 %v17200_v22, %v17199_v13  ;;  %v2632_v1 = vadd.f32 %v13150_v56, %v17201_v36  ;;  %v17203_v61 = vld [vmem:[#allocation41_spill] sm:$0xff] }
 0x19b   : > { %v13302_v39 = vpop.f32.mrf.mxu0  ;;  %9696 = vmatpush3.msra.mxu0 %v13284_v40  ;;  %17195 = vst [vmem:[#allocation69_spill] sm:$0xff] %v13351_v2  ;;  %v13367_v23 = vmax.f32 %v2634_v48, 0.0  ;;  %v2631_v48 = vadd.f32 %v13150_v56, %v2576_v6 }
 0x19c   : > { %v13304_v35 = vpop.f32.mrf.mxu1  ;;  %9697 = vmatprep.subr.mxu0 %v13294_v32  ;;  %v13379_v22 = vmax.f32 %v2633_v16, 0.0  ;;  %v17214_v16 = vld [vmem:[#allocation38_spill] sm:$0xff] }
 0x19d   : > { %v13320_v52 = vpop.f32.mrf.mxu0  ;;  %9698 = vmatpush3.msra.mxu0 %v13300_v7  ;;  %17202 = vst [vmem:[#allocation15_spill] sm:$0xff] %v13367_v23 }
 0x19e   : > { %v13322_v58 = vpop.f32.mrf.mxu1  ;;  %9699 = vmatprep.subr.mxu0 %v13311_v50  ;;  %v2647_v50 = vadd.f32 %v13150_v56, %v2592_v33  ;;  %17208 = vst [vmem:[#allocation21_spill] sm:$0xff] %v13379_v22  ;;  %v17210_v33 = vld [vmem:[#allocation39_spill] sm:$0xff] }
 0x19f   : > { %v1991_v45 = vpop.f32.mrf.mxu0  ;;  %9700 = vmatpush3.msra.mxu0 %v13318_v59  ;;  %v13360_v59 = vmax.f32 %v2650_v63, 0.0 }
 0x1a0   : > { %v13336_v5 = vpop.f32.mrf.mxu1  ;;  %9701 = vmatprep.subr.mxu0 %v13328_v25  ;;  %v13356_v25 = vmax.f32 %v2635_v42, 0.0  ;;  %v13390_v6 = vmax.f32 %v2647_v50, 0.0 }
 0x1a1   : > { %v10741_v31 = vpop.f32.mrf.mxu0  ;;  %9702 = vmatpush3.msra.mxu0 %v13334_v18  ;;  %v2648_v18 = vadd.f32 %v13150_v56, %v2593_v4  ;;  %17198 = vst [vmem:[#allocation14_spill] sm:$0xff] %v13360_v59  ;;  %v17205_v4 = vld [vmem:[#allocation46_spill] sm:$0xff] }
 0x1a2   : > { %v10829_v49 = vpop.f32.mrf.mxu1  ;;  %9703 = vmatprep.subr.mxu0 %v13341_v30  ;;  %17197 = vst [vmem:[#allocation73_spill] sm:$0xff] %v13356_v25  ;;  %v2065_v42 = vadd.f32 %v10741_v31, %v17203_v61  ;;  %17213 = vst [vmem:[#allocation53_spill] sm:$0xff] %v13390_v6 }
 0x1a3   : > { %v2001_v15 = vpop.f32.mrf.mxu0  ;;  %9704 = vmatpush3.msra.mxu0 %v13346_v19  ;;  %v17204_v19 = vld [vmem:[#allocation45_spill] sm:$0xff]  ;;  %v13382_v61 = vmax.f32 %v2648_v18, 0.0 }
 0x1a4   : > { %v2557_v55 = vpop.f32.mrf.mxu1  ;;  %9705 = vmatprep.subr.mxu0 %v13351_v2  ;;  %v1502_v63 = vadd.f32 %v17205_v4, %v17204_v19  ;;  %v13374_v2 = vmax.f32 %v2649_v3, 0.0  ;;  %v2064_v31 = vadd.f32 %v2001_v15, %v1492_v21  ;;  %v17211_v3 = vld [vmem:[#allocation40_spill] sm:$0xff]  ;;  %v2063_v15 = vadd.f32 %v13320_v52, %v17214_v16 }
 0x1a5   : > { %v10744_v30 = vpop.f32.mrf.mxu0  ;;  %9706 = vmatpush3.msra.mxu0 %v13356_v25  ;;  %17209 = vst [vmem:[#allocation71_spill] sm:$0xff] %v13382_v61  ;;  %v1482_v4 = vadd.f32 %v17211_v3, %v17210_v33  ;;  %v13396_v21 = vmax.f32 %v2631_v48, 0.0  ;;  %v2730_v3 = vld [vmem:[%s16950_s3 + $0x18] sm:$0xff] }
 0x1a6   : > { %v10832_v51 = vpop.f32.mrf.mxu1  ;;  %17206 = vst [vmem:[#allocation20_spill] sm:$0xff] %v13374_v2  ;;  %v2067_v13 = vadd.f32 %v10744_v30, %v17207_v44  ;;  %9707 = vmatprep.subr.mxu0 %v13360_v59  ;;  %v13387_v44 = vmax.f32 %v2632_v1, 0.0  ;;  %v2621_v30 = vadd.f32 %v10829_v49, %v2065_v42  ;;  %v2727_v49 = vld [vmem:[%s16950_s3] sm:$0xff]  ;;  %v2619_v52 = vadd.f32 %v13322_v58, %v2063_v15 }
 0x1a7   : > { %v2011_v36 = vpop.f32.mrf.mxu0  ;;  %9708 = vmatpush3.msra.mxu0 %v13367_v23  ;;  %17215 = vst [vmem:[#allocation57_spill] sm:$0xff] %v13396_v21  ;;  %v2062_v1 = vadd.f32 %v1991_v45, %v1482_v4  ;;  %v2731_v45 = vld [vmem:[%s16950_s3 + $0x20] sm:$0xff]  ;;  %v17219_v58 = vmov 0.0  }
 0x1a8   : > { %v2623_v25 = vadd.f32 %v10832_v51, %v2067_v13  ;;  %v2066_v19 = vadd.f32 %v2011_v36, %v1502_v63  ;;  %9709 = vmatprep.subr.mxu0 %v13374_v2  ;;  %17212 = vst [vmem:[#allocation75_spill] sm:$0xff] %v13387_v44  ;;  %v2567_v59 = vpop.f32.mrf.mxu1  ;;  %v2620_v63 = vadd.f32 %v2557_v55, %v2064_v31  ;;  %v17216_v55 = vld [vmem:[#allocation36_spill] sm:$0xff]  ;;  %v17217_v13 = vld [vmem:[#allocation37_spill] sm:$0xff]  ;;  %v17218_v31 = vld [vmem:[#allocation35_spill] sm:$0xff] }
 0x1a9   : > { %9710 = vmatpush3.msra.mxu0 %v13379_v22  ;;  %v1472_v48 = vadd.f32 %v17217_v13, %v17216_v55  ;;  %v2061_v36 = vadd.f32 %v13286_v38, %v17218_v31  ;;  %v2618_v33 = vadd.f32 %v13336_v5, %v2062_v1  ;;  %v2674_v38 = vadd.f32 %v13150_v56, %v2619_v52  ;;  %v17220_v15 = vld [vmem:[#allocation33_spill] sm:$0xff]  ;;  %v17223_v55 = vld [vmem:[#allocation30_spill] sm:$0xff]  ;;  %v17224_v13 = vld [vmem:[#allocation31_spill] sm:$0xff] }
 0x1aa   : > { %v2678_v18 = vadd.f32 %v13150_v56, %v2623_v25  ;;  %v2622_v51 = vadd.f32 %v2567_v59, %v2066_v19  ;;  %9711 = vmatprep.subr.mxu0 %v13382_v61  ;;  %v2676_v59 = vadd.f32 %v13150_v56, %v2621_v30  ;;  %v2675_v19 = vadd.f32 %v13150_v56, %v2620_v63  ;;  %v17222_v63 = vld [vmem:[#allocation32_spill] sm:$0xff]  ;;  %v17225_v31 = vld [vmem:[#allocation29_spill] sm:$0xff] }
 0x1ab   : > { %9712 = vmatpush3.msra.mxu0 %v13387_v44  ;;  %v2060_v4 = vadd.f32 %v13302_v39, %v1472_v48  ;;  %v2617_v5 = vadd.f32 %v13288_v46, %v2061_v36  ;;  %v2734_v39 = vld [vmem:[%s16950_s3 + $0x38] sm:$0xff]  ;;  %v2673_v1 = vadd.f32 %v13150_v56, %v2618_v33  ;;  %v13456_v52 = vmax.f32 %v2674_v38, 0.0  ;;  %v2736_v33 = vld [vmem:[%s16950_s3 + $0x48] sm:$0xff] }
 0x1ac   : > { %v13402_v50 = vmax.f32 %v2678_v18, 0.0  ;;  %v2677_v42 = vadd.f32 %v13150_v56, %v2622_v51  ;;  %9713 = vmatprep.subr.mxu0 %v13390_v6  ;;  %v13429_v30 = vmax.f32 %v2676_v59, 0.0  ;;  %v13436_v16 = vmax.f32 %v2675_v19, 0.0  ;;  %v17221_v18 = vld [vmem:[#allocation34_spill] sm:$0xff] }
 0x1ad   : > { %9714 = vmatpush3.msra.mxu0 %v13396_v21  ;;  %v1462_v51 = vadd.f32 %v17221_v18, %v17220_v15  ;;  %v2616_v46 = vadd.f32 %v13304_v35, %v2060_v4  ;;  %v1452_v48 = vadd.f32 %v17224_v13, %v17223_v55  ;;  %v2057_v36 = vadd.f32 %v13214_v43, %v17225_v31  ;;  %v17228_v18 = vld [vmem:[#allocation26_spill] sm:$0xff]  ;;  %v17232_v55 = vld [vmem:[#allocation77_spill] sm:$0xff]  ;;  %v17233_v31 = vld [vmem:[#allocation59_spill] sm:$0xff] }
 0x1ae   : > { %v13409_v25 = vmax.f32 %v2677_v42, 0.0  ;;  %2825 = vmatmul.mubr.f32.vlgmr.msra.gmra.mxu0 %v2727_v49  ;;  %10834 = vmatpush3.msra.mxu1 %v13402_v50  ;;  %v2059_v49 = vadd.f32 %v13250_v27, %v17222_v63  ;;  %v2733_v42 = vld [vmem:[%s16950_s3 + $0x30] sm:$0xff]  ;;  %v2672_v27 = vadd.f32 %v13150_v56, %v2617_v5 }
 0x1af   : > { %9775 = vmatprep.subr.mxu0 %v13173_v24  ;;  %10835 = vmatprep.subr.mxu1 %v17219_v58  ;;  %v2058_v59 = vadd.f32 %v13266_v62, %v1462_v51  ;;  %v2737_v62 = vld [vmem:[%s16950_s3 + $0x50] sm:$0xff]  ;;  %v2671_v19 = vadd.f32 %v13150_v56, %v2616_v46  ;;  %v2055_v51 = vadd.f32 %v13182_v54, %v17228_v18 }
 0x1b0   : > { %9776 = vmatpush3.msra.mxu0 %v13180_v12  ;;  %10836 = vmatpush3.msra.mxu1 %v13409_v25  ;;  %v2615_v35 = vadd.f32 %v13252_v29, %v2059_v49  ;;  %v13483_v4 = vmax.f32 %v2672_v27, 0.0  ;;  %v17226_v5 = vld [vmem:[#allocation27_spill] sm:$0xff]  ;;  %v2739_v49 = vld [vmem:[%s16950_s3 + $0x60] sm:$0xff] }
 0x1b1   : > { %9777 = vmatprep.subr.mxu0 %v13188_v34  ;;  %2829 = vmatprep.mubr.f32.mxu0 %v2731_v45  ;;  %v13463_v45 = vmax.f32 %v2673_v1, 0.0  ;;  %v2614_v29 = vadd.f32 %v13268_v9, %v2058_v59  ;;  %v2613_v9 = vadd.f32 %v13216_v37, %v2057_v36  ;;  %v13490_v38 = vmax.f32 %v2671_v19, 0.0  ;;  %v17229_v59 = vld [vmem:[#allocation24_spill] sm:$0xff]  ;;  %v17230_v27 = vld [vmem:[#allocation25_spill] sm:$0xff]  ;;  %v17235_v19 = vld [vmem:[#allocation74_spill] sm:$0xff] }
 0x1b2   : > { %10837 = vmatprep.subr.mxu1 %v17219_v58  ;;  %9778 = vmatpush3.msra.mxu0 %v13194_v20  ;;  %v2670_v43 = vadd.f32 %v13150_v56, %v2615_v35  ;;  %v1432_v35 = vadd.f32 %v17230_v27, %v17229_v59  ;;  %v17243_v59 = vld [vmem:[#allocation69_spill] sm:$0xff] }
 0x1b3   : > { %2830 = vmatmul.mubr.f32.gmra.mxu0 %v2730_v3  ;;  %10838 = vmatpush3.msra.mxu1 %v13429_v30  ;;  %v2056_v3 = vadd.f32 %v13231_v10, %v1452_v48  ;;  %v2740_v10 = vld [vmem:[%s16950_s3 + $0x68] sm:$0xff]  ;;  %v2669_v63 = vadd.f32 %v13150_v56, %v2614_v29  ;;  %v2668_v54 = vadd.f32 %v13150_v56, %v2613_v9  ;;  %v2742_v29 = vld [vmem:[%s16950_s3 + $0x78] sm:$0xff] }
 0x1b4   : > { %9779 = vmatprep.subr.mxu0 %v13205_v41  ;;  %10839 = vmatprep.subr.mxu1 %v17219_v58  ;;  %v13510_v46 = vmax.f32 %v2670_v43, 0.0  ;;  %v17237_v9 = vld [vmem:[#allocation76_spill] sm:$0xff] }
 0x1b5   : > { %9780 = vmatpush3.msra.mxu0 %v13212_v11  ;;  %10840 = vmatpush3.msra.mxu1 %v13436_v16  ;;  %v2612_v37 = vadd.f32 %v13233_v57, %v2056_v3  ;;  %v2611_v57 = vadd.f32 %v13184_v47, %v2055_v51  ;;  %v17234_v47 = vld [vmem:[#allocation81_spill] sm:$0xff]  ;;  %v13537_v43 = vmax.f32 %v2668_v54, 0.0  ;;  %v17242_v54 = vld [vmem:[#allocation22_spill] sm:$0xff] }
 0x1b6   : > { %9781 = vmatprep.subr.mxu0 %v13222_v0  ;;  %2834 = vmatprep.mubr.f32.mxu0 %v2734_v39  ;;  %v17227_v39 = vld [vmem:[#allocation28_spill] sm:$0xff] }
 0x1b7   : > { %10841 = vmatprep.subr.mxu1 %v17219_v58  ;;  %9782 = vmatpush3.msra.mxu0 %v13229_v60  ;;  %v1442_v15 = vadd.f32 %v17227_v39, %v17226_v5  ;;  %v2667_v48 = vadd.f32 %v13150_v56, %v2612_v37  ;;  %v17238_v5 = vld [vmem:[#allocation56_spill] sm:$0xff]  ;;  %v17239_v39 = vld [vmem:[#allocation78_spill] sm:$0xff] }
 0x1b8   : > { %2835 = vmatmul.mubr.f32.gmra.mxu0 %v2733_v42  ;;  %10842 = vmatpush3.msra.mxu1 %v13456_v52  ;;  %v13517_v42 = vmax.f32 %v2669_v63, 0.0  ;;  %v2746_v51 = vld [vmem:[%s16950_s3 + $0x98] sm:$0xff] }
 0x1b9   : > { %9783 = vmatprep.subr.mxu0 %v13240_v28  ;;  %10843 = vmatprep.subr.mxu1 %v17219_v58  ;;  %v2054_v1 = vadd.f32 %v13196_v14, %v1442_v15  ;;  %v2743_v14 = vld [vmem:[%s16950_s3 + $0x80] sm:$0xff]  ;;  %v13544_v18 = vmax.f32 %v2667_v48, 0.0  ;;  %v17240_v37 = vld [vmem:[#allocation60_spill] sm:$0xff] }
 0x1ba   : > { %9784 = vmatpush3.msra.mxu0 %v13248_v17  ;;  %10844 = vmatpush3.msra.mxu1 %v13463_v45  ;;  %v17245_v48 = vld [vmem:[#allocation14_spill] sm:$0xff] }
 0x1bb   : > { %9785 = vmatprep.subr.mxu0 %v13258_v26  ;;  %2839 = vmatprep.mubr.f32.mxu0 %v2737_v62  ;;  %v17231_v62 = vld [vmem:[#allocation23_spill] sm:$0xff]  ;;  %v2610_v36 = vadd.f32 %v17234_v47, %v2054_v1 }
 0x1bc   : > { %10845 = vmatprep.subr.mxu1 %v17219_v58  ;;  %9786 = vmatpush3.msra.mxu0 %v13264_v53  ;;  %v2053_v13 = vadd.f32 %v17232_v55, %v17231_v62  ;;  %v2749_v55 = vld [vmem:[%s16950_s3 + $0xb0] sm:$0xff]  ;;  %v2748_v47 = vld [vmem:[%s16950_s3 + $0xa8] sm:$0xff] }
 0x1bd   : > { %2840 = vmatmul.mubr.f32.gmra.mxu0 %v2736_v33  ;;  %10846 = vmatpush3.msra.mxu1 %v13483_v4  ;;  %v17236_v33 = vld [vmem:[#allocation79_spill] sm:$0xff]  ;;  %v2665_v63 = vadd.f32 %v13150_v56, %v2610_v36 }
 0x1be   : > { %9787 = vmatprep.subr.mxu0 %v13275_v8  ;;  %10847 = vmatprep.subr.mxu1 %v17219_v58  ;;  %v2052_v3 = vadd.f32 %v17236_v33, %v1432_v35  ;;  %v2609_v15 = vadd.f32 %v17239_v39, %v2053_v13  ;;  %v17244_v35 = vld [vmem:[#allocation73_spill] sm:$0xff]  ;;  %v2729_v33 = vld [vmem:[%s16950_s3 + $0x10] sm:$0xff]  ;;  %v2732_v39 = vld [vmem:[%s16950_s3 + $0x28] sm:$0xff] }
 0x1bf   : > { %9788 = vmatpush3.msra.mxu0 %v13284_v40  ;;  %10848 = vmatpush3.msra.mxu1 %v13490_v38  ;;  %v13565_v62 = vmax.f32 %v2665_v63, 0.0  ;;  %v2735_v63 = vld [vmem:[%s16950_s3 + $0x40] sm:$0xff] }
 0x1c0   : > { %9789 = vmatprep.subr.mxu0 %v13294_v32  ;;  %2844 = vmatprep.mubr.f32.mxu0 %v2740_v10  ;;  %v2666_v10 = vadd.f32 %v13150_v56, %v2611_v57  ;;  %v2745_v57 = vld [vmem:[%s16950_s3 + $0x90] sm:$0xff]  ;;  %v2664_v27 = vadd.f32 %v13150_v56, %v2609_v15  ;;  %v2754_v15 = vld [vmem:[%s16950_s3 + $0xd8] sm:$0xff] }
 0x1c1   : > { %10849 = vmatprep.subr.mxu1 %v17219_v58  ;;  %9790 = vmatpush3.msra.mxu0 %v13300_v7 }
 0x1c2   : > { %2845 = vmatmul.mubr.f32.gmra.mxu0 %v2739_v49  ;;  %10850 = vmatpush3.msra.mxu1 %v13510_v46  ;;  %v17241_v49 = vld [vmem:[#allocation80_spill] sm:$0xff]  ;;  %v13579_v36 = vmax.f32 %v2664_v27, 0.0  ;;  %v8800_v27 = vld [vmem:[%s16950_s3 + $0x108] sm:$0xff] }
 0x1c3   : > { %9791 = vmatprep.subr.mxu0 %v17233_v31  ;;  %10851 = vmatprep.subr.mxu1 %v17219_v58  ;;  %v2608_v1 = vadd.f32 %v17241_v49, %v2052_v3  ;;  %v2751_v3 = vld [vmem:[%s16950_s3 + $0xc0] sm:$0xff]  ;;  %v2757_v49 = vld [vmem:[%s16950_s3 + $0xf0] sm:$0xff] }
 0x1c4   : > { %9792 = vmatpush3.msra.mxu0 %v17235_v19  ;;  %10852 = vmatpush3.msra.mxu1 %v13517_v42 }
 0x1c5   : > { %9793 = vmatprep.subr.mxu0 %v17237_v9  ;;  %2849 = vmatprep.mubr.f32.mxu0 %v2743_v14  ;;  %v13559_v14 = vmax.f32 %v2666_v10, 0.0  ;;  %v2663_v13 = vadd.f32 %v13150_v56, %v2608_v1  ;;  %v2755_v10 = vld [vmem:[%s16950_s3 + $0xe0] sm:$0xff]  ;;  %v8801_v1 = vld [vmem:[%s16950_s3 + $0x110] sm:$0xff] }
 0x1c6   : > { %10853 = vmatprep.subr.mxu1 %v17219_v58  ;;  %9794 = vmatpush3.msra.mxu0 %v17238_v5 }
 0x1c7   : > { %2850 = vmatmul.mubr.f32.gmra.mxu0 %v2742_v29  ;;  %10854 = vmatpush3.msra.mxu1 %v13537_v43  ;;  %v13584_v56 = vmax.f32 %v2663_v13, 0.0  ;;  %v2752_v29 = vld [vmem:[%s16950_s3 + $0xc8] sm:$0xff]  ;;  %v8835_v13 = vld [vmem:[%s16951_s4 + $0x30] sm:$0xff] }
 0x1c8   : > { %9795 = vmatprep.subr.mxu0 %v17240_v37  ;;  %10855 = vmatprep.subr.mxu1 %v17219_v58 }
 0x1c9   : > { %9796 = vmatpush3.msra.mxu0 %v17242_v54  ;;  %10856 = vmatpush3.msra.mxu1 %v13544_v18 }
 0x1ca   : > { %9797 = vmatprep.subr.mxu0 %v17243_v59  ;;  %2854 = vmatprep.mubr.f32.mxu0 %v2746_v51  ;;  %v2758_v51 = vld [vmem:[%s16950_s3 + $0xf8] sm:$0xff] }
 0x1cb   : > { %10857 = vmatprep.subr.mxu1 %v17219_v58  ;;  %9798 = vmatpush3.msra.mxu0 %v17244_v35 }
 0x1cc   : > { %2855 = vmatmul.mubr.f32.gmra.mxu0 %v2745_v57  ;;  %10858 = vmatpush3.msra.mxu1 %v13559_v14  ;;  %v2738_v57 = vld [vmem:[%s16950_s3 + $0x58] sm:$0xff] }
 0x1cd   : > { %9799 = vmatprep.subr.mxu0 %v17245_v48  ;;  %10859 = vmatprep.subr.mxu1 %v17219_v58 }
 0x1ce   : > { %9800 = vmatpush3.msra.mxu0 %v13367_v23  ;;  %10860 = vmatpush3.msra.mxu1 %v13565_v62 }
 0x1cf   : > { %9801 = vmatprep.subr.mxu0 %v13374_v2  ;;  %2859 = vmatprep.mubr.f32.mxu0 %v2749_v55  ;;  %v8836_v55 = vld [vmem:[%s16951_s4 + $0x38] sm:$0xff] }
 0x1d0   : > { %10861 = vmatprep.subr.mxu1 %v17219_v58  ;;  %9802 = vmatpush3.msra.mxu0 %v13379_v22 }
 0x1d1   : > { %2860 = vmatmul.mubr.f32.gmra.mxu0 %v2748_v47  ;;  %10862 = vmatpush3.msra.mxu1 %v13579_v36  ;;  %v2741_v47 = vld [vmem:[%s16950_s3 + $0x70] sm:$0xff] }
 0x1d2   : > { %9803 = vmatprep.subr.mxu0 %v13382_v61  ;;  %10863 = vmatprep.subr.mxu1 %v17219_v58 }
 0x1d3   : > { %9804 = vmatpush3.msra.mxu0 %v13387_v44  ;;  %10864 = vmatpush3.msra.mxu1 %v13584_v56 }
 0x1d4   : > { %9805 = vmatprep.subr.mxu0 %v13390_v6  ;;  %2864 = vmatprep.mubr.f32.mxu0 %v2752_v29  ;;  %v8834_v29 = vld [vmem:[%s16951_s4 + $0x28] sm:$0xff] }
 0x1d5   : > { %10866 = vmatmul.mubr.f32.vlgmr.msra.gmra.mxu1 %v2729_v33  ;;  %9806 = vmatpush3.msra.mxu0 %v13396_v21  ;;  %v8833_v33 = vld [vmem:[%s16951_s4 + $0x20] sm:$0xff] }
 0x1d6   : > { %10898 = vmatprep.subr.mxu1 %v17219_v58  ;;  %2865 = vmatmul.mubr.f32.gmra.mxu0 %v2751_v3  ;;  %v2744_v3 = vld [vmem:[%s16950_s3 + $0x88] sm:$0xff] }
 0x1d7   : > { %10899 = vmatpush3.msra.mxu1 %v13402_v50  ;;  %10868 = vmatprep.mubr.msk.f32.mxu1 %vm11707_vm4, %v17219_v58 }
 0x1d8   : > { %10900 = vmatprep.subr.mxu1 %v17219_v58  ;;  %2869 = vmatprep.mubr.f32.mxu0 %v2755_v10  ;;  %v8804_v10 = vld [vmem:[%s16950_s3 + $0x128] sm:$0xff] }
 0x1d9   : > { %10901 = vmatpush3.msra.mxu1 %v13409_v25  ;;  %10963 = vmatprep.subr.mxu0 %v17219_v58 }
 0x1da   : > { %10869 = vmatmul.mubr.f32.gmra.mxu1 %v2732_v39  ;;  %10902 = vmatprep.subr.mxu1 %v17219_v58  ;;  %v2747_v39 = vld [vmem:[%s16950_s3 + $0xa0] sm:$0xff] }
 0x1db   : > { %2870 = vmatmul.mubr.f32.gmra.mxu0 %v2754_v15  ;;  %10903 = vmatpush3.msra.mxu1 %v13429_v30  ;;  %v8803_v15 = vld [vmem:[%s16950_s3 + $0x120] sm:$0xff] }
 0x1dc   : > { %10904 = vmatprep.subr.mxu1 %v17219_v58  ;;  %10871 = vmatprep.mubr.msk.f32.mxu1 %vm11707_vm4, %v17219_v58 }
 0x1dd   : > { %10905 = vmatpush3.msra.mxu1 %v13436_v16  ;;  %2874 = vmatprep.mubr.f32.mxu0 %v2758_v51  ;;  %v8807_v51 = vld [vmem:[%s16950_s3 + $0x140] sm:$0xff] }
 0x1de   : > { %10872 = vmatmul.mubr.f32.gmra.mxu1 %v2735_v63  ;;  %10906 = vmatprep.subr.mxu1 %v17219_v58  ;;  %v2750_v63 = vld [vmem:[%s16950_s3 + $0xb8] sm:$0xff] }
 0x1df   : > { %2875 = vmatmul.mubr.f32.gmra.mxu0 %v2757_v49  ;;  %10907 = vmatpush3.msra.mxu1 %v13456_v52  ;;  %v8806_v49 = vld [vmem:[%s16950_s3 + $0x138] sm:$0xff] }
 0x1e0   : > { %10908 = vmatprep.subr.mxu1 %v17219_v58  ;;  %10874 = vmatprep.mubr.msk.f32.mxu1 %vm11707_vm4, %v17219_v58 }
 0x1e1   : > { %10909 = vmatpush3.msra.mxu1 %v13463_v45  ;;  %3102 = vmatprep.mubr.f32.mxu0 %v8801_v1  ;;  %v8810_v1 = vld [vmem:[%s16950_s3 + $0x158] sm:$0xff] }
 0x1e2   : > { %10875 = vmatmul.mubr.f32.gmra.mxu1 %v2738_v57  ;;  %10910 = vmatprep.subr.mxu1 %v17219_v58  ;;  %v2753_v57 = vld [vmem:[%s16950_s3 + $0xd0] sm:$0xff] }
 0x1e3   : > { %3103 = vmatmul.mubr.f32.vlgmr.msra.gmra.mxu0 %v8800_v27  ;;  %10911 = vmatpush3.msra.mxu1 %v13483_v4  ;;  %v8809_v27 = vld [vmem:[%s16950_s3 + $0x150] sm:$0xff] }
 0x1e4   : > { %10964 = vmatpush3.msra.mxu0 %v8836_v55  ;;  %10912 = vmatprep.subr.mxu1 %v17219_v58  ;;  %v8813_v55 = vld [vmem:[%s16950_s3 + $0x170] sm:$0xff] }
 0x1e5   : > { %10965 = vmatprep.subr.mxu0 %v17219_v58  ;;  %10877 = vmatprep.mubr.msk.f32.mxu1 %vm11707_vm4, %v17219_v58 }
 0x1e6   : > { %10913 = vmatpush3.msra.mxu1 %v13490_v38  ;;  %10966 = vmatpush3.msra.mxu0 %v8835_v13  ;;  %v2756_v13 = vld [vmem:[%s16950_s3 + $0xe8] sm:$0xff] }
 0x1e7   : > { %10878 = vmatmul.mubr.f32.gmra.mxu1 %v2741_v47  ;;  %10914 = vmatprep.subr.mxu1 %v17219_v58  ;;  %v8812_v47 = vld [vmem:[%s16950_s3 + $0x168] sm:$0xff] }
 0x1e8   : > { %10967 = vmatprep.subr.mxu0 %v17219_v58  ;;  %10915 = vmatpush3.msra.mxu1 %v13510_v46 }
 0x1e9   : > { %10968 = vmatpush3.msra.mxu0 %v8834_v29  ;;  %10916 = vmatprep.subr.mxu1 %v17219_v58  ;;  %v8816_v29 = vld [vmem:[%s16950_s3 + $0x188] sm:$0xff] }
 0x1ea   : > { %10969 = vmatprep.subr.mxu0 %v17219_v58  ;;  %10880 = vmatprep.mubr.msk.f32.mxu1 %vm11707_vm4, %v17219_v58 }
 0x1eb   : > { %10917 = vmatpush3.msra.mxu1 %v13517_v42  ;;  %10970 = vmatpush3.msra.mxu0 %v8833_v33  ;;  %v2759_v33 = vld [vmem:[%s16950_s3 + $0x100] sm:$0xff] }
 0x1ec   : > { %10881 = vmatmul.mubr.f32.gmra.mxu1 %v2744_v3  ;;  %10918 = vmatprep.subr.mxu1 %v17219_v58  ;;  %v8815_v3 = vld [vmem:[%s16950_s3 + $0x180] sm:$0xff] }
 0x1ed   : > { %9897 = vmatprep.subr.mxu0 %v13173_v24  ;;  %10919 = vmatpush3.msra.mxu1 %v13537_v43 }
 0x1ee   : > { %10920 = vmatprep.subr.mxu1 %v17219_v58  ;;  %10883 = vmatprep.mubr.msk.f32.mxu1 %vm11707_vm4, %v17219_v58 }
 0x1ef   : > { %10921 = vmatpush3.msra.mxu1 %v13544_v18  ;;  %3107 = vmatprep.mubr.f32.mxu0 %v8804_v10  ;;  %v8819_v10 = vld [vmem:[%s16950_s3 + $0x1a0] sm:$0xff] }
 0x1f0   : > { %10884 = vmatmul.mubr.f32.gmra.mxu1 %v2747_v39  ;;  %10922 = vmatprep.subr.mxu1 %v17219_v58  ;;  %v8802_v39 = vld [vmem:[%s16950_s3 + $0x118] sm:$0xff] }
 0x1f1   : > { %10923 = vmatpush3.msra.mxu1 %v13559_v14  ;;  %10886 = vmatprep.mubr.msk.f32.mxu1 %vm11707_vm4, %v17219_v58 }
 0x1f2   : > { %10924 = vmatprep.subr.mxu1 %v17219_v58  ;;  %3108 = vmatmul.mubr.f32.gmra.mxu0 %v8803_v15  ;;  %v3003_v15 = vld [vmem:[%s16951_s4 + $0x18] sm:$0xff] }
 0x1f3   : > { %10925 = vmatpush3.msra.mxu1 %v13565_v62  ;;  %3112 = vmatprep.mubr.f32.mxu0 %v8807_v51  ;;  %v8818_v51 = vld [vmem:[%s16950_s3 + $0x198] sm:$0xff] }
 0x1f4   : > { %10887 = vmatmul.mubr.f32.gmra.mxu1 %v2750_v63  ;;  %10926 = vmatprep.subr.mxu1 %v17219_v58  ;;  %v8822_v63 = vld [vmem:[%s16950_s3 + $0x1b8] sm:$0xff] }
 0x1f5   : > { %10927 = vmatpush3.msra.mxu1 %v13579_v36  ;;  %10889 = vmatprep.mubr.msk.f32.mxu1 %vm11707_vm4, %v17219_v58 }
 0x1f6   : > { %10928 = vmatprep.subr.mxu1 %v17219_v58  ;;  %3113 = vmatmul.mubr.f32.gmra.mxu0 %v8806_v49  ;;  %v3002_v49 = vld [vmem:[%s16951_s4 + $0x10] sm:$0xff] }
 0x1f7   : > { %10929 = vmatpush3.msra.mxu1 %v13584_v56  ;;  %3117 = vmatprep.mubr.f32.mxu0 %v8810_v1  ;;  %v8805_v1 = vld [vmem:[%s16950_s3 + $0x130] sm:$0xff] }
 0x1f8   : > { %10890 = vmatmul.mubr.f32.gmra.mxu1 %v2753_v57  ;;  %11004 = vmatprep.subr.mxu1 %v17219_v58  ;;  %v3001_v57 = vld [vmem:[%s16951_s4 + $0x8] sm:$0xff] }
 0x1f9   : > { %10892 = vmatprep.mubr.msk.f32.mxu1 %vm11707_vm4, %v17219_v58 }
 0x1fa   : > { %3118 = vmatmul.mubr.f32.gmra.mxu0 %v8809_v27  ;;  %v8821_v27 = vld [vmem:[%s16950_s3 + $0x1b0] sm:$0xff] }
 0x1fb   : > { %3122 = vmatprep.mubr.f32.mxu0 %v8813_v55  ;;  %v8825_v55 = vld [vmem:[%s16950_s3 + $0x1d0] sm:$0xff] }
 0x1fc   : > { %10893 = vmatmul.mubr.f32.gmra.mxu1 %v2756_v13  ;;  %v8808_v13 = vld [vmem:[%s16950_s3 + $0x148] sm:$0xff] }
 0x1fd   : > { %10895 = vmatprep.mubr.msk.f32.mxu1 %vm11707_vm4, %v17219_v58 }
 0x1fe   : > { %3123 = vmatmul.mubr.f32.gmra.mxu0 %v8812_v47  ;;  %v8824_v47 = vld [vmem:[%s16950_s3 + $0x1c8] sm:$0xff] }
 0x1ff   : > { %3127 = vmatprep.mubr.f32.mxu0 %v8816_v29  ;;  %v8828_v29 = vld [vmem:[%s16950_s3 + $0x1e8] sm:$0xff] }
 0x200   : > { %10896 = vmatmul.mubr.f32.gmra.mxu1 %v2759_v33  ;;  %v8811_v33 = vld [vmem:[%s16950_s3 + $0x160] sm:$0xff] }
 0x201   : > { %10930 = vmatprep.mubr.msk.f32.mxu1 %vm11707_vm4, %v17219_v58 }
 0x202   : > { %3128 = vmatmul.mubr.f32.gmra.mxu0 %v8815_v3  ;;  %v8827_v3 = vld [vmem:[%s16950_s3 + $0x1e0] sm:$0xff] }
 0x203   : > { %3132 = vmatprep.mubr.f32.mxu0 %v8819_v10  ;;  %v8831_v10 = vld [vmem:[%s16950_s3 + $0x200] sm:$0xff] }
 0x204   : > { %10931 = vmatmul.mubr.f32.vlgmr.msra.gmra.mxu1 %v8802_v39  ;;  %v8814_v39 = vld [vmem:[%s16950_s3 + $0x178] sm:$0xff] }
 0x205   : > { %10933 = vmatprep.mubr.msk.f32.mxu1 %vm11707_vm4, %v17219_v58  ;;  %11005 = vmatpush3.msra.mxu1 %v3003_v15  ;;  %v8830_v15 = vld [vmem:[%s16950_s3 + $0x1f8] sm:$0xff] }
 0x206   : > { %3133 = vmatmul.mubr.f32.gmra.mxu0 %v8818_v51  ;;  %11006 = vmatprep.subr.mxu1 %v17219_v58  ;;  %v8817_v51 = vld [vmem:[%s16950_s3 + $0x190] sm:$0xff] }
 0x207   : > { %3137 = vmatprep.mubr.f32.mxu0 %v8822_v63  ;;  %11007 = vmatpush3.msra.mxu1 %v3002_v49  ;;  %v3000_v63 = vld [vmem:[%s16951_s4] sm:$0xff]  ;;  %v8820_v49 = vld [vmem:[%s16950_s3 + $0x1a8] sm:$0xff] }
 0x208   : > { %10934 = vmatmul.mubr.f32.gmra.mxu1 %v8805_v1  ;;  %11008 = vmatprep.subr.mxu1 %v17219_v58  ;;  %v8823_v1 = vld [vmem:[%s16950_s3 + $0x1c0] sm:$0xff] }
 0x209   : > { %10936 = vmatprep.mubr.msk.f32.mxu1 %vm11707_vm4, %v17219_v58  ;;  %11009 = vmatpush3.msra.mxu1 %v3001_v57  ;;  %v8826_v57 = vld [vmem:[%s16950_s3 + $0x1d8] sm:$0xff] }
 0x20a   : > { %3138 = vmatmul.mubr.f32.gmra.mxu0 %v8821_v27  ;;  %11010 = vmatprep.subr.mxu1 %v17219_v58  ;;  %v8829_v27 = vld [vmem:[%s16950_s3 + $0x1f0] sm:$0xff] }
 0x20b   : > { %3142 = vmatprep.mubr.f32.mxu0 %v8825_v55  ;;  %11011 = vmatpush3.msra.mxu1 %v3000_v63  ;;  %v8832_v55 = vld [vmem:[%s16950_s3 + $0x208] sm:$0xff] }
 0x20c   : > { %10937 = vmatmul.mubr.f32.gmra.mxu1 %v8808_v13  ;;  %11045 = vmatprep.subr.mxu1 %v17219_v58 }
 0x20d   : > { %10939 = vmatprep.mubr.msk.f32.mxu1 %vm11707_vm4, %v17219_v58 }
 0x20e   : > { %3143 = vmatmul.mubr.f32.gmra.mxu0 %v8824_v47 }
 0x20f   : > { %3147 = vmatprep.mubr.f32.mxu0 %v8828_v29 }
 0x210   : > { %10940 = vmatmul.mubr.f32.gmra.mxu1 %v8811_v33 }
 0x211   : > { %10942 = vmatprep.mubr.msk.f32.mxu1 %vm11707_vm4, %v17219_v58 }
 0x212   : > { %3148 = vmatmul.mubr.f32.gmra.mxu0 %v8827_v3 }
 0x213   : > { %3152 = vmatprep.mubr.f32.mxu0 %v8831_v10 }
 0x214   : > { %10943 = vmatmul.mubr.f32.gmra.mxu1 %v8814_v39 }
 0x215   : > { %10945 = vmatprep.mubr.msk.f32.mxu1 %vm11707_vm4, %v17219_v58 }
 0x216   : > { %3153 = vmatmul.mubr.f32.gmra.mxu0 %v8830_v15 }
 0x217   : > { %10971 = vmatprep.mubr.msk.f32.mxu0 %vm11707_vm4, %v17219_v58 }
 0x218   : > { %10946 = vmatmul.mubr.f32.gmra.mxu1 %v8817_v51 }
 0x219   : > { %10948 = vmatprep.mubr.msk.f32.mxu1 %vm11707_vm4, %v17219_v58 }
 0x21c   : > { %10949 = vmatmul.mubr.f32.gmra.mxu1 %v8820_v49 }
 0x21d   : > { %10951 = vmatprep.mubr.msk.f32.mxu1 %vm11707_vm4, %v17219_v58 }
 0x220   : > { %10952 = vmatmul.mubr.f32.gmra.mxu1 %v8823_v1 }
 0x221   : > { %10954 = vmatprep.mubr.msk.f32.mxu1 %vm11707_vm4, %v17219_v58 }
 0x224   : > { %10955 = vmatmul.mubr.f32.gmra.mxu1 %v8826_v57 }
 0x225   : > { %10957 = vmatprep.mubr.msk.f32.mxu1 %vm11707_vm4, %v17219_v58 }
 0x228   : > { %10958 = vmatmul.mubr.f32.gmra.mxu1 %v8829_v27 }
 0x229   : > { %10960 = vmatprep.mubr.msk.f32.mxu1 %vm11707_vm4, %v17219_v58 }
 0x22c   : > { %10961 = vmatmul.mubr.f32.gmra.mxu1 %v8832_v55 }
 0x22d   : > { %11012 = vmatprep.mubr.msk.f32.mxu1 %vm11707_vm4, %v17219_v58 }
 0x26e   : > { %v9715_v13 = vpop.f32.mrf.mxu0 }
 0x270   : > { %v9716_v47 = vpop.f32.mrf.mxu0 }
 0x271   : > { %v9717_v6 = vadd.f32 %v9716_v47, %v9715_v13 }
 0x273   : > { %v9718_v29 = vpop.f32.mrf.mxu0 }
 0x275   : > { %v9719_v33 = vpop.f32.mrf.mxu0 }
 0x276   : > { %v9720_v48 = vadd.f32 %v9719_v33, %v9718_v29 }
 0x278   : > { %v9721_v3 = vpop.f32.mrf.mxu0 }
 0x27a   : > { %v9722_v10 = vpop.f32.mrf.mxu0 }
 0x27d   : > { %v9724_v39 = vpop.f32.mrf.mxu0 }
 0x27f   : > { %v9725_v15 = vpop.f32.mrf.mxu0 }
 0x282   : > { %v9727_v51 = vpop.f32.mrf.mxu0 }
 0x284   : > { %v9728_v63 = vpop.f32.mrf.mxu0 }
 0x287   : > { %v9730_v49 = vpop.f32.mrf.mxu0 }
 0x289   : > { %v9731_v1 = vpop.f32.mrf.mxu0 }
 0x28c   : > { %v13855_v57 = vpop.f32.mrf.mxu0 }
 0x28e   : > { %v13857_v27 = vpop.f32.mrf.mxu0 }
 0x291   : > { %v13859_v55 = vpop.f32.mrf.mxu0 }
 0x293   : > { %v13861_v21 = vpop.f32.mrf.mxu0 }
 0x295   : > { %v2946_v44 = vpop.f32.mrf.mxu1 }
 0x296   : > { %v2947_v61 = vadd.f32 %v9717_v6, %v2946_v44  ;;  %v13863_v22 = vpop.f32.mrf.mxu0 }
 0x297   : > { %v10867_v2 = vpop.f32.mrf.mxu1 }
 0x298   : > { %11013 = vmatmul.mubr.msk.f32.vlgmr.msra.gmra.mxu1 %vm3283_vm5, %v2947_v61  ;;  %v13866_v23 = vpop.f32.mrf.mxu0  ;;  %v9723_v2 = vadd.f32 %v9722_v10, %v9721_v3 }
 0x299   : > { %11046 = vmatpush3.msra.mxu1 %v13402_v50  ;;  %11015 = vmatprep.mubr.msk.f32.mxu1 %vm11707_vm4, %v17219_v58 }
 0x29a   : > { %v2951_v35 = vpop.f32.mrf.mxu1  ;;  %11047 = vmatprep.subr.mxu1 %v17219_v58 }
 0x29b   : > { %v2952_v13 = vadd.f32 %v9720_v48, %v2951_v35  ;;  %11048 = vmatpush3.msra.mxu1 %v13409_v25  ;;  %v13873_v44 = vpop.f32.mrf.mxu0  ;;  %v9726_v48 = vadd.f32 %v9725_v15, %v9724_v39  ;;  %v9729_v39 = vadd.f32 %v9728_v63, %v9727_v51 }
 0x29c   : > { %v10870_v6 = vpop.f32.mrf.mxu1  ;;  %11049 = vmatprep.subr.mxu1 %v17219_v58 }
 0x29d   : > { %11016 = vmatmul.mubr.msk.f32.gmra.mxu1 %vm3283_vm5, %v2952_v13  ;;  %v13880_v47 = vpop.f32.mrf.mxu0 }
 0x29e   : > { %11050 = vmatpush3.msra.mxu1 %v13429_v30  ;;  %v2956_v61 = vpop.f32.mrf.mxu1  ;;  %11018 = vmatprep.mubr.msk.f32.mxu1 %vm11707_vm4, %v17219_v58 }
 0x29f   : > { %v2957_v29 = vadd.f32 %v9723_v2, %v2956_v61  ;;  %11051 = vmatprep.subr.mxu1 %v17219_v58  ;;  %v13889_v3 = vpop.f32.mrf.mxu0 }
 0x2a0   : > { %11052 = vmatpush3.msra.mxu1 %v13436_v16  ;;  %v10873_v35 = vpop.f32.mrf.mxu1 }
 0x2a1   : > { %11053 = vmatprep.subr.mxu1 %v17219_v58  ;;  %11019 = vmatmul.mubr.msk.f32.gmra.mxu1 %vm3283_vm5, %v2957_v29  ;;  %v9746_v15 = vpop.f32.mrf.mxu0  ;;  %v9732_v35 = vadd.f32 %v9731_v1, %v9730_v49 }
 0x2a2   : > { %11054 = vmatpush3.msra.mxu1 %v13456_v52  ;;  %v2961_v33 = vpop.f32.mrf.mxu1  ;;  %11021 = vmatprep.mubr.msk.f32.mxu1 %vm11707_vm4, %v17219_v58 }
 0x2a3   : > { %v2962_v10 = vadd.f32 %v9726_v48, %v2961_v33  ;;  %11055 = vmatprep.subr.mxu1 %v17219_v58  ;;  %v9807_v29 = vpop.f32.mrf.mxu0 }
 0x2a4   : > { %11056 = vmatpush3.msra.mxu1 %v13463_v45  ;;  %v10876_v13 = vpop.f32.mrf.mxu1 }
 0x2a5   : > { %11057 = vmatprep.subr.mxu1 %v17219_v58  ;;  %11022 = vmatmul.mubr.msk.f32.gmra.mxu1 %vm3283_vm5, %v2962_v10  ;;  %v9808_v33 = vpop.f32.mrf.mxu0  ;;  %v9735_v10 = vadd.f32 %v13857_v27, %v13855_v57 }
 0x2a6   : > { %11058 = vmatpush3.msra.mxu1 %v13483_v4  ;;  %11024 = vmatprep.mubr.msk.f32.mxu1 %vm11707_vm4, %v17219_v58 }
 0x2a7   : > { %v2966_v6 = vpop.f32.mrf.mxu1  ;;  %11059 = vmatprep.subr.mxu1 %v17219_v58 }
 0x2a8   : > { %v2967_v2 = vadd.f32 %v9729_v39, %v2966_v6  ;;  %11060 = vmatpush3.msra.mxu1 %v13490_v38  ;;  %v9738_v6 = vadd.f32 %v13861_v21, %v13859_v55  ;;  %v9741_v21 = vadd.f32 %v13866_v23, %v13863_v22  ;;  %v9744_v23 = vadd.f32 %v13880_v47, %v13873_v44 }
 0x2a9   : > { %v10879_v61 = vpop.f32.mrf.mxu1  ;;  %11061 = vmatprep.subr.mxu1 %v17219_v58 }
 0x2aa   : > { %11025 = vmatmul.mubr.msk.f32.gmra.mxu1 %vm3283_vm5, %v2967_v2 }
 0x2ab   : > { %11062 = vmatpush3.msra.mxu1 %v13510_v46  ;;  %11027 = vmatprep.mubr.msk.f32.mxu1 %vm11707_vm4, %v17219_v58 }
 0x2ac   : > { %v2971_v51 = vpop.f32.mrf.mxu1  ;;  %11063 = vmatprep.subr.mxu1 %v17219_v58 }
 0x2ad   : > { %v2972_v63 = vadd.f32 %v9732_v35, %v2971_v51  ;;  %11064 = vmatpush3.msra.mxu1 %v13517_v42 }
 0x2ae   : > { %v10882_v48 = vpop.f32.mrf.mxu1  ;;  %11065 = vmatprep.subr.mxu1 %v17219_v58 }
 0x2af   : > { %11028 = vmatmul.mubr.msk.f32.gmra.mxu1 %vm3283_vm5, %v2972_v63 }
 0x2b0   : > { %11066 = vmatpush3.msra.mxu1 %v13537_v43  ;;  %v2976_v49 = vpop.f32.mrf.mxu1  ;;  %11030 = vmatprep.mubr.msk.f32.mxu1 %vm11707_vm4, %v17219_v58 }
 0x2b1   : > { %v2977_v1 = vadd.f32 %v9735_v10, %v2976_v49  ;;  %11067 = vmatprep.subr.mxu1 %v17219_v58 }
 0x2b2   : > { %11068 = vmatpush3.msra.mxu1 %v13544_v18  ;;  %v10885_v13 = vpop.f32.mrf.mxu1  ;;  %v9810_v39 = vpop.f32.mrf.mxu0 }
 0x2b3   : > { %11069 = vmatprep.subr.mxu1 %v17219_v58  ;;  %11031 = vmatmul.mubr.msk.f32.gmra.mxu1 %vm3283_vm5, %v2977_v1 }
 0x2b4   : > { %11070 = vmatpush3.msra.mxu1 %v13559_v14  ;;  %v2981_v57 = vpop.f32.mrf.mxu1  ;;  %11033 = vmatprep.mubr.msk.f32.mxu1 %vm11707_vm4, %v17219_v58  ;;  %v9811_v27 = vpop.f32.mrf.mxu0 }
 0x2b5   : > { %v2982_v2 = vadd.f32 %v9738_v6, %v2981_v57  ;;  %11071 = vmatprep.subr.mxu1 %v17219_v58  ;;  %v9747_v57 = vadd.f32 %v9746_v15, %v13889_v3  ;;  %v8861_v3 = vld [vmem:[%s16950_s3 + $0x220] sm:$0xff] }
 0x2b6   : > { %11072 = vmatpush3.msra.mxu1 %v13565_v62  ;;  %v10888_v61 = vpop.f32.mrf.mxu1  ;;  %v9813_v35 = vpop.f32.mrf.mxu0 }
 0x2b7   : > { %11073 = vmatprep.subr.mxu1 %v17219_v58  ;;  %11034 = vmatmul.mubr.msk.f32.gmra.mxu1 %vm3283_vm5, %v2982_v2 }
 0x2b8   : > { %11074 = vmatpush3.msra.mxu1 %v13579_v36  ;;  %v2986_v55 = vpop.f32.mrf.mxu1  ;;  %11036 = vmatprep.mubr.msk.f32.mxu1 %vm11707_vm4, %v17219_v58  ;;  %v9814_v51 = vpop.f32.mrf.mxu0 }
 0x2b9   : > { %v2987_v63 = vadd.f32 %v9741_v21, %v2986_v55  ;;  %11075 = vmatprep.subr.mxu1 %v17219_v58  ;;  %v9809_v21 = vadd.f32 %v9808_v33, %v9807_v29 }
 0x2ba   : > { %11076 = vmatpush3.msra.mxu1 %v13584_v56  ;;  %v10891_v48 = vpop.f32.mrf.mxu1  ;;  %v9816_v10 = vpop.f32.mrf.mxu0 }
 0x2bb   : > { %10004 = vmatprep.subr.mxu1 %v13173_v24  ;;  %11037 = vmatmul.mubr.msk.f32.gmra.mxu1 %vm3283_vm5, %v2987_v63 }
 0x2bc   : > { %v2991_v22 = vpop.f32.mrf.mxu1  ;;  %11039 = vmatprep.mubr.msk.f32.mxu1 %vm11707_vm4, %v17219_v58  ;;  %v9817_v49 = vpop.f32.mrf.mxu0 }
 0x2bd   : > { %v2992_v1 = vadd.f32 %v9744_v23, %v2991_v22  ;;  %v9812_v23 = vadd.f32 %v9811_v27, %v9810_v39  ;;  %v9815_v39 = vadd.f32 %v9814_v51, %v9813_v35  ;;  %v9818_v35 = vadd.f32 %v9817_v49, %v9816_v10 }
 0x2be   : > { %v10894_v13 = vpop.f32.mrf.mxu1  ;;  %v9819_v6 = vpop.f32.mrf.mxu0 }
 0x2bf   : > { %11040 = vmatmul.mubr.msk.f32.gmra.mxu1 %vm3283_vm5, %v2992_v1 }
 0x2c0   : > { %v2996_v2 = vpop.f32.mrf.mxu1  ;;  %11042 = vmatprep.mubr.msk.f32.mxu1 %vm11707_vm4, %v17219_v58  ;;  %v9820_v44 = vpop.f32.mrf.mxu0 }
 0x2c1   : > { %v2997_v24 = vadd.f32 %v9747_v57, %v2996_v2  ;;  %v9821_v10 = vadd.f32 %v9820_v44, %v9819_v6  ;;  %v17246_v2 = vld [vmem:[#allocation73_spill] sm:$0xff] }
 0x2c2   : > { %v10897_v47 = vpop.f32.mrf.mxu1  ;;  %v13944_v61 = vpop.f32.mrf.mxu0 }
 0x2c3   : > { %11043 = vmatmul.mubr.msk.f32.gmra.mxu1 %vm3283_vm5, %v2997_v24 }
 0x2c4   : > { %v3224_v55 = vpop.f32.mrf.mxu1  ;;  %11077 = vmatprep.mubr.msk.f32.mxu1 %vm11707_vm4, %v17219_v58  ;;  %v9823_v48 = vpop.f32.mrf.mxu0 }
 0x2c5   : > { %v3225_v15 = vadd.f32 %v9809_v21, %v3224_v55  ;;  %v17249_v21 = vld [vmem:[#allocation20_spill] sm:$0xff]  ;;  %v17250_v55 = vld [vmem:[#allocation21_spill] sm:$0xff] }
 0x2c6   : > { %v10932_v63 = vpop.f32.mrf.mxu1  ;;  %v13959_v1 = vpop.f32.mrf.mxu0 }
 0x2c7   : > { %10972 = vmatmul.mubr.msk.f32.vlgmr.msra.gmra.mxu0 %vm3283_vm5, %v3225_v15  ;;  %11078 = vmatmul.mubr.f32.vlgmr.msra.gmra.mxu1 %v8861_v3  ;;  %v17251_v63 = vld [vmem:[#allocation71_spill] sm:$0xff] }
 0x2c8   : > { %9898 = vmatpush3.msra.mxu0 %v13180_v12  ;;  %10005 = vmatpush3.msra.mxu1 %v13180_v12  ;;  %v3229_v29 = vpop.f32.mrf.mxu1  ;;  %v9826_v27 = vpop.f32.mrf.mxu0 }
 0x2c9   : > { %v3230_v33 = vadd.f32 %v9812_v23, %v3229_v29  ;;  %9899 = vmatprep.subr.mxu0 %v13188_v34  ;;  %10006 = vmatprep.subr.mxu1 %v13188_v34  ;;  %v17252_v29 = vld [vmem:[#allocation75_spill] sm:$0xff] }
 0x2ca   : > { %9900 = vmatpush3.msra.mxu0 %v13194_v20  ;;  %10007 = vmatpush3.msra.mxu1 %v13194_v20  ;;  %v10935_v22 = vpop.f32.mrf.mxu1  ;;  %v9828_v51 = vpop.f32.mrf.mxu0 }
 0x2cb   : > { %10974 = vmatprep.mubr.msk.f32.mxu0 %vm11707_vm4, %v17219_v58  ;;  %9901 = vmatprep.subr.mxu0 %v13205_v41  ;;  %v17253_v22 = vld [vmem:[#allocation53_spill] sm:$0xff] }
 0x2cc   : > { %10008 = vmatprep.subr.mxu1 %v13205_v41  ;;  %10975 = vmatmul.mubr.msk.f32.gmra.mxu0 %vm3283_vm5, %v3230_v33  ;;  %v3234_v12 = vpop.f32.mrf.mxu1 }
 0x2cd   : > { %9902 = vmatpush3.msra.mxu0 %v13212_v11  ;;  %10009 = vmatpush3.msra.mxu1 %v13212_v11  ;;  %v3235_v34 = vadd.f32 %v9815_v39, %v3234_v12  ;;  %v8864_v39 = vld [vmem:[%s16950_s3 + $0x238] sm:$0xff] }
 0x2ce   : > { %9903 = vmatprep.subr.mxu0 %v13222_v0  ;;  %10010 = vmatprep.subr.mxu1 %v13222_v0  ;;  %v10938_v20 = vpop.f32.mrf.mxu1  ;;  %v17254_v12 = vld [vmem:[#allocation57_spill] sm:$0xff] }
 0x2cf   : > { %9904 = vmatpush3.msra.mxu0 %v13229_v60  ;;  %10011 = vmatpush3.msra.mxu1 %v13229_v60 }
 0x2d0   : > { %10977 = vmatprep.mubr.msk.f32.mxu0 %vm11707_vm4, %v17219_v58  ;;  %9905 = vmatprep.subr.mxu0 %v13240_v28  ;;  %v3239_v41 = vpop.f32.mrf.mxu1 }
 0x2d1   : > { %10012 = vmatprep.subr.mxu1 %v13240_v28  ;;  %10978 = vmatmul.mubr.msk.f32.gmra.mxu0 %vm3283_vm5, %v3235_v34  ;;  %v3240_v11 = vadd.f32 %v9818_v35, %v3239_v41  ;;  %v8867_v41 = vld [vmem:[%s16950_s3 + $0x250] sm:$0xff] }
 0x2d2   : > { %9906 = vmatpush3.msra.mxu0 %v13248_v17  ;;  %10013 = vmatpush3.msra.mxu1 %v13248_v17  ;;  %v10941_v0 = vpop.f32.mrf.mxu1  ;;  %v9829_v17 = vpop.f32.mrf.mxu0 }
 0x2d3   : > { %9907 = vmatprep.subr.mxu0 %v13258_v26  ;;  %10014 = vmatprep.subr.mxu1 %v13258_v26  ;;  %v9830_v44 = vadd.f32 %v9829_v17, %v9828_v51  ;;  %v8870_v51 = vld [vmem:[%s16950_s3 + $0x268] sm:$0xff]  ;;  %v8863_v17 = vld [vmem:[%s16950_s3 + $0x230] sm:$0xff] }
 0x2d4   : > { %9908 = vmatpush3.msra.mxu0 %v13264_v53  ;;  %10015 = vmatpush3.msra.mxu1 %v13264_v53  ;;  %v3244_v60 = vpop.f32.mrf.mxu1  ;;  %v9831_v13 = vpop.f32.mrf.mxu0 }
 0x2d5   : > { %10980 = vmatprep.mubr.msk.f32.mxu0 %vm11707_vm4, %v17219_v58  ;;  %9909 = vmatprep.subr.mxu0 %v13275_v8  ;;  %v3245_v26 = vadd.f32 %v9821_v10, %v3244_v60  ;;  %v8860_v60 = vld [vmem:[%s16950_s3 + $0x218] sm:$0xff]  ;;  %v8859_v10 = vld [vmem:[%s16950_s3 + $0x210] sm:$0xff] }
 0x2d6   : > { %10016 = vmatprep.subr.mxu1 %v13275_v8  ;;  %10981 = vmatmul.mubr.msk.f32.gmra.mxu0 %vm3283_vm5, %v3240_v11  ;;  %v10944_v28 = vpop.f32.mrf.mxu1  ;;  %v9824_v8 = vadd.f32 %v9823_v48, %v13944_v61  ;;  %v9832_v6 = vpop.f32.mrf.mxu0 }
 0x2d7   : > { %9910 = vmatpush3.msra.mxu0 %v13284_v40  ;;  %10017 = vmatpush3.msra.mxu1 %v13284_v40  ;;  %v9833_v15 = vadd.f32 %v9832_v6, %v9831_v13  ;;  %v8873_v28 = vld [vmem:[%s16950_s3 + $0x280] sm:$0xff]  ;;  %v8879_v13 = vld [vmem:[%s16950_s3 + $0x2b0] sm:$0xff]  ;;  %v8872_v6 = vld [vmem:[%s16950_s3 + $0x278] sm:$0xff] }
 0x2d8   : > { %9911 = vmatprep.subr.mxu0 %v13294_v32  ;;  %10018 = vmatprep.subr.mxu1 %v13294_v32  ;;  %v3249_v53 = vpop.f32.mrf.mxu1  ;;  %v9834_v57 = vpop.f32.mrf.mxu0 }
 0x2d9   : > { %9912 = vmatpush3.msra.mxu0 %v13300_v7  ;;  %10019 = vmatpush3.msra.mxu1 %v13300_v7  ;;  %v3250_v40 = vadd.f32 %v9824_v8, %v3249_v53  ;;  %v8876_v53 = vld [vmem:[%s16950_s3 + $0x298] sm:$0xff]  ;;  %v8866_v8 = vld [vmem:[%s16950_s3 + $0x248] sm:$0xff] }
 0x2da   : > { %10983 = vmatprep.mubr.msk.f32.mxu0 %vm11707_vm4, %v17219_v58  ;;  %9913 = vmatprep.subr.mxu0 %v17233_v31  ;;  %v10947_v49 = vpop.f32.mrf.mxu1  ;;  %v9835_v47 = vpop.f32.mrf.mxu0 }
 0x2db   : > { %10020 = vmatprep.subr.mxu1 %v17233_v31  ;;  %10984 = vmatmul.mubr.msk.f32.gmra.mxu0 %vm3283_vm5, %v3245_v26  ;;  %v9827_v31 = vadd.f32 %v9826_v27, %v13959_v1  ;;  %v9836_v34 = vadd.f32 %v9835_v47, %v9834_v57  ;;  %v8862_v26 = vld [vmem:[%s16950_s3 + $0x228] sm:$0xff]  ;;  %v8865_v49 = vld [vmem:[%s16950_s3 + $0x240] sm:$0xff]  ;;  %v8888_v57 = vld [vmem:[%s16950_s3 + $0x2f8] sm:$0xff] }
 0x2dc   : > { %9914 = vmatpush3.msra.mxu0 %v17235_v19  ;;  %10021 = vmatpush3.msra.mxu1 %v17235_v19  ;;  %v3254_v32 = vpop.f32.mrf.mxu1  ;;  %v9837_v48 = vpop.f32.mrf.mxu0  ;;  %v8883_v47 = vld [vmem:[%s16950_s3 + $0x2d0] sm:$0xff] }
 0x2dd   : > { %9915 = vmatprep.subr.mxu0 %v17237_v9  ;;  %10022 = vmatprep.subr.mxu1 %v17237_v9  ;;  %v3255_v9 = vadd.f32 %v9827_v31, %v3254_v32  ;;  %v8868_v32 = vld [vmem:[%s16950_s3 + $0x258] sm:$0xff]  ;;  %v8871_v31 = vld [vmem:[%s16950_s3 + $0x270] sm:$0xff] }
 0x2de   : > { %9916 = vmatpush3.msra.mxu0 %v17238_v5  ;;  %10023 = vmatpush3.msra.mxu1 %v17238_v5  ;;  %v10950_v7 = vpop.f32.mrf.mxu1  ;;  %v9838_v20 = vpop.f32.mrf.mxu0 }
 0x2df   : > { %10986 = vmatprep.mubr.msk.f32.mxu0 %vm11707_vm4, %v17219_v58  ;;  %9917 = vmatprep.subr.mxu0 %v17240_v37  ;;  %v9839_v11 = vadd.f32 %v9838_v20, %v9837_v48  ;;  %v8882_v7 = vld [vmem:[%s16950_s3 + $0x2c8] sm:$0xff] }
 0x2e0   : > { %10024 = vmatprep.subr.mxu1 %v17240_v37  ;;  %10987 = vmatmul.mubr.msk.f32.gmra.mxu0 %vm3283_vm5, %v3250_v40  ;;  %v3259_v19 = vpop.f32.mrf.mxu1  ;;  %v17247_v37 = vld [vmem:[#allocation14_spill] sm:$0xff] }
 0x2e1   : > { %9918 = vmatpush3.msra.mxu0 %v17242_v54  ;;  %10025 = vmatpush3.msra.mxu1 %v17242_v54  ;;  %v17248_v54 = vld [vmem:[#allocation15_spill] sm:$0xff]  ;;  %v8869_v40 = vld [vmem:[%s16950_s3 + $0x260] sm:$0xff] }
 0x2e2   : > { %9919 = vmatprep.subr.mxu0 %v17243_v59  ;;  %10026 = vmatprep.subr.mxu1 %v17243_v59  ;;  %v10953_v5 = vpop.f32.mrf.mxu1  ;;  %v3260_v59 = vadd.f32 %v9830_v44, %v3259_v19  ;;  %v8885_v19 = vld [vmem:[%s16950_s3 + $0x2e0] sm:$0xff]  ;;  %v8893_v48 = vld [vmem:[%s16951_s4 + $0x48] sm:$0xff] }
 0x2e3   : > { %9920 = vmatpush3.msra.mxu0 %v17246_v2  ;;  %10027 = vmatpush3.msra.mxu1 %v17246_v2  ;;  %v8874_v5 = vld [vmem:[%s16950_s3 + $0x288] sm:$0xff]  ;;  %v8877_v44 = vld [vmem:[%s16950_s3 + $0x2a0] sm:$0xff] }
 0x2e4   : > { %10989 = vmatprep.mubr.msk.f32.mxu0 %vm11707_vm4, %v17219_v58  ;;  %9921 = vmatprep.subr.mxu0 %v17247_v37  ;;  %v3264_v24 = vpop.f32.mrf.mxu1  ;;  %v8878_v2 = vld [vmem:[%s16950_s3 + $0x2a8] sm:$0xff] }
 0x2e5   : > { %10028 = vmatprep.subr.mxu1 %v17247_v37  ;;  %10990 = vmatmul.mubr.msk.f32.gmra.mxu0 %vm3283_vm5, %v3255_v9  ;;  %v3265_v33 = vadd.f32 %v9833_v15, %v3264_v24  ;;  %v8875_v9 = vld [vmem:[%s16950_s3 + $0x290] sm:$0xff]  ;;  %v8881_v24 = vld [vmem:[%s16950_s3 + $0x2c0] sm:$0xff]  ;;  %v8895_v15 = vld [vmem:[%s16951_s4 + $0x58] sm:$0xff] }
 0x2e6   : > { %9922 = vmatpush3.msra.mxu0 %v17248_v54  ;;  %10029 = vmatpush3.msra.mxu1 %v17248_v54  ;;  %v10956_v61 = vpop.f32.mrf.mxu1  ;;  %v8891_v37 = vld [vmem:[%s16950_s3 + $0x310] sm:$0xff]  ;;  %v8880_v54 = vld [vmem:[%s16950_s3 + $0x2b8] sm:$0xff] }
 0x2e7   : > { %9923 = vmatprep.subr.mxu0 %v17249_v21  ;;  %10030 = vmatprep.subr.mxu1 %v17249_v21  ;;  %v8887_v61 = vld [vmem:[%s16950_s3 + $0x2f0] sm:$0xff]  ;;  %v8886_v21 = vld [vmem:[%s16950_s3 + $0x2e8] sm:$0xff] }
 0x2e8   : > { %9924 = vmatpush3.msra.mxu0 %v17250_v55  ;;  %10031 = vmatpush3.msra.mxu1 %v17250_v55  ;;  %v3269_v3 = vpop.f32.mrf.mxu1  ;;  %v8890_v55 = vld [vmem:[%s16950_s3 + $0x308] sm:$0xff] }
 0x2e9   : > { %10992 = vmatprep.mubr.msk.f32.mxu0 %vm11707_vm4, %v17219_v58  ;;  %9925 = vmatprep.subr.mxu0 %v17251_v63  ;;  %v3270_v35 = vadd.f32 %v9836_v34, %v3269_v3  ;;  %v8889_v3 = vld [vmem:[%s16950_s3 + $0x300] sm:$0xff] }
 0x2ea   : > { %10032 = vmatprep.subr.mxu1 %v17251_v63  ;;  %10993 = vmatmul.mubr.msk.f32.gmra.mxu0 %vm3283_vm5, %v3260_v59  ;;  %v10959_v23 = vpop.f32.mrf.mxu1  ;;  %v8884_v59 = vld [vmem:[%s16950_s3 + $0x2d8] sm:$0xff]  ;;  %v8894_v63 = vld [vmem:[%s16951_s4 + $0x50] sm:$0xff] }
 0x2eb   : > { %9926 = vmatpush3.msra.mxu0 %v17252_v29  ;;  %10033 = vmatpush3.msra.mxu1 %v17252_v29  ;;  %v8892_v23 = vld [vmem:[%s16951_s4 + $0x40] sm:$0xff] }
 0x2ec   : > { %9927 = vmatprep.subr.mxu0 %v17253_v22  ;;  %10034 = vmatprep.subr.mxu1 %v17253_v22  ;;  %v3274_v1 = vpop.f32.mrf.mxu1 }
 0x2ed   : > { %9928 = vmatpush3.msra.mxu0 %v17254_v12  ;;  %10035 = vmatpush3.msra.mxu1 %v17254_v12  ;;  %v3275_v0 = vadd.f32 %v9839_v11, %v3274_v1  ;;  %v8911_v11 = vld [vmem:[%s16950_s3 + $0x338] sm:$0xff] }
 0x2ee   : > { %10995 = vmatprep.mubr.msk.f32.mxu0 %vm11707_vm4, %v17219_v58  ;;  %11080 = vmatprep.mubr.msk.f32.mxu1 %vm11707_vm4, %v17219_v58  ;;  %v10962_v27 = vpop.f32.mrf.mxu1 }
 0x2ef   : > { %10996 = vmatmul.mubr.msk.f32.gmra.mxu0 %vm3283_vm5, %v3265_v33  ;;  %11081 = vmatmul.mubr.f32.gmra.mxu1 %v8864_v39  ;;  %v8908_v27 = vld [vmem:[%s16950_s3 + $0x320] sm:$0xff] }
 0x2f0   : > { %10998 = vmatprep.mubr.msk.f32.mxu0 %vm11707_vm4, %v17219_v58  ;;  %11083 = vmatprep.mubr.msk.f32.mxu1 %vm11707_vm4, %v17219_v58 }
 0x2f1   : > { %11110 = vmatprep.subr.mxu0 %v17219_v58  ;;  %11216 = vmatprep.subr.mxu1 %v17219_v58 }
 0x2f3   : > { %10999 = vmatmul.mubr.msk.f32.gmra.mxu0 %vm3283_vm5, %v3270_v35  ;;  %11084 = vmatmul.mubr.f32.gmra.mxu1 %v8867_v41  ;;  %v8907_v35 = vld [vmem:[%s16950_s3 + $0x318] sm:$0xff] }
 0x2f4   : > { %11001 = vmatprep.mubr.msk.f32.mxu0 %vm11707_vm4, %v17219_v58  ;;  %11086 = vmatprep.mubr.msk.f32.mxu1 %vm11707_vm4, %v17219_v58 }
 0x2f7   : > { %11002 = vmatmul.mubr.msk.f32.gmra.mxu0 %vm3283_vm5, %v3275_v0  ;;  %11087 = vmatmul.mubr.f32.gmra.mxu1 %v8870_v51  ;;  %v8910_v0 = vld [vmem:[%s16950_s3 + $0x330] sm:$0xff] }
 0x2f8   : > { %3688 = vmatprep.mubr.f32.mxu0 %v8860_v60  ;;  %11089 = vmatprep.mubr.msk.f32.mxu1 %vm11707_vm4, %v17219_v58  ;;  %v8914_v60 = vld [vmem:[%s16950_s3 + $0x350] sm:$0xff] }
 0x2fb   : > { %3689 = vmatmul.mubr.f32.vlgmr.msra.gmra.mxu0 %v8859_v10  ;;  %11090 = vmatmul.mubr.f32.gmra.mxu1 %v8873_v28  ;;  %v8913_v28 = vld [vmem:[%s16950_s3 + $0x348] sm:$0xff] }
 0x2fc   : > { %3693 = vmatprep.mubr.f32.mxu0 %v8863_v17  ;;  %11092 = vmatprep.mubr.msk.f32.mxu1 %vm11707_vm4, %v17219_v58 }
 0x2fd   : > { %11111 = vmatpush3.msra.mxu0 %v8895_v15 }
 0x2fe   : > { %11112 = vmatprep.subr.mxu0 %v17219_v58 }
 0x2ff   : > { %3694 = vmatmul.mubr.f32.gmra.mxu0 %v8862_v26  ;;  %11093 = vmatmul.mubr.f32.gmra.mxu1 %v8876_v53  ;;  %v8917_v26 = vld [vmem:[%s16950_s3 + $0x368] sm:$0xff] }
 0x300   : > { %3698 = vmatprep.mubr.f32.mxu0 %v8866_v8  ;;  %11095 = vmatprep.mubr.msk.f32.mxu1 %vm11707_vm4, %v17219_v58  ;;  %v8916_v8 = vld [vmem:[%s16950_s3 + $0x360] sm:$0xff] }
 0x301   : > { %11113 = vmatpush3.msra.mxu0 %v8894_v63 }
 0x302   : > { %11114 = vmatprep.subr.mxu0 %v17219_v58 }
 0x303   : > { %3699 = vmatmul.mubr.f32.gmra.mxu0 %v8865_v49  ;;  %11096 = vmatmul.mubr.f32.gmra.mxu1 %v8879_v13  ;;  %v8920_v13 = vld [vmem:[%s16950_s3 + $0x380] sm:$0xff] }
 0x304   : > { %3703 = vmatprep.mubr.f32.mxu0 %v8869_v40  ;;  %11098 = vmatprep.mubr.msk.f32.mxu1 %vm11707_vm4, %v17219_v58 }
 0x305   : > { %11115 = vmatpush3.msra.mxu0 %v8893_v48  ;;  %v8935_v48 = vld [vmem:[%s16950_s3 + $0x3f8] sm:$0xff] }
 0x306   : > { %11116 = vmatprep.subr.mxu0 %v17219_v58 }
 0x307   : > { %3704 = vmatmul.mubr.f32.gmra.mxu0 %v8868_v32  ;;  %11099 = vmatmul.mubr.f32.gmra.mxu1 %v8882_v7  ;;  %v8919_v32 = vld [vmem:[%s16950_s3 + $0x378] sm:$0xff] }
 0x308   : > { %3708 = vmatprep.mubr.f32.mxu0 %v8872_v6  ;;  %11101 = vmatprep.mubr.msk.f32.mxu1 %vm11707_vm4, %v17219_v58  ;;  %v8923_v6 = vld [vmem:[%s16950_s3 + $0x398] sm:$0xff] }
 0x309   : > { %11117 = vmatpush3.msra.mxu0 %v8892_v23  ;;  %v8934_v23 = vld [vmem:[%s16950_s3 + $0x3f0] sm:$0xff] }
 0x30a   : > { %11151 = vmatprep.subr.mxu0 %v17219_v58 }
 0x30b   : > { %3709 = vmatmul.mubr.f32.gmra.mxu0 %v8871_v31  ;;  %11102 = vmatmul.mubr.f32.gmra.mxu1 %v8885_v19  ;;  %v8922_v19 = vld [vmem:[%s16950_s3 + $0x390] sm:$0xff] }
 0x30c   : > { %3713 = vmatprep.mubr.f32.mxu0 %v8875_v9  ;;  %11104 = vmatprep.mubr.msk.f32.mxu1 %vm11707_vm4, %v17219_v58 }
 0x30f   : > { %3714 = vmatmul.mubr.f32.gmra.mxu0 %v8874_v5  ;;  %11105 = vmatmul.mubr.f32.gmra.mxu1 %v8888_v57  ;;  %v8926_v5 = vld [vmem:[%s16950_s3 + $0x3b0] sm:$0xff] }
 0x310   : > { %3718 = vmatprep.mubr.f32.mxu0 %v8878_v2  ;;  %11107 = vmatprep.mubr.msk.f32.mxu1 %vm11707_vm4, %v17219_v58  ;;  %v8925_v2 = vld [vmem:[%s16950_s3 + $0x3a8] sm:$0xff] }
 0x313   : > { %3719 = vmatmul.mubr.f32.gmra.mxu0 %v8877_v44  ;;  %11108 = vmatmul.mubr.f32.gmra.mxu1 %v8891_v37  ;;  %v8929_v37 = vld [vmem:[%s16950_s3 + $0x3c8] sm:$0xff] }
 0x314   : > { %3723 = vmatprep.mubr.f32.mxu0 %v8881_v24  ;;  %4131 = vmatprep.mubr.f32.mxu1 %v8908_v27 }
 0x317   : > { %3724 = vmatmul.mubr.f32.gmra.mxu0 %v8880_v54  ;;  %4132 = vmatmul.mubr.f32.vlgmr.msra.gmra.mxu1 %v8907_v35  ;;  %v8928_v54 = vld [vmem:[%s16950_s3 + $0x3c0] sm:$0xff] }
 0x318   : > { %3728 = vmatprep.mubr.f32.mxu0 %v8884_v59  ;;  %4136 = vmatprep.mubr.f32.mxu1 %v8911_v11 }
 0x31b   : > { %3729 = vmatmul.mubr.f32.gmra.mxu0 %v8883_v47  ;;  %4137 = vmatmul.mubr.f32.gmra.mxu1 %v8910_v0  ;;  %v8932_v47 = vld [vmem:[%s16950_s3 + $0x3e0] sm:$0xff] }
 0x31c   : > { %3733 = vmatprep.mubr.f32.mxu0 %v8887_v61  ;;  %4141 = vmatprep.mubr.f32.mxu1 %v8914_v60 }
 0x31f   : > { %3734 = vmatmul.mubr.f32.gmra.mxu0 %v8886_v21  ;;  %4142 = vmatmul.mubr.f32.gmra.mxu1 %v8913_v28 }
 0x320   : > { %3738 = vmatprep.mubr.f32.mxu0 %v8890_v55  ;;  %4146 = vmatprep.mubr.f32.mxu1 %v8917_v26  ;;  %v8931_v55 = vld [vmem:[%s16950_s3 + $0x3d8] sm:$0xff] }
 0x323   : > { %3739 = vmatmul.mubr.f32.gmra.mxu0 %v8889_v3  ;;  %4147 = vmatmul.mubr.f32.gmra.mxu1 %v8916_v8 }
 0x324   : > { %11118 = vmatprep.mubr.msk.f32.mxu0 %vm11707_vm4, %v17219_v58  ;;  %4151 = vmatprep.mubr.f32.mxu1 %v8920_v13 }
 0x327   : > { %4152 = vmatmul.mubr.f32.gmra.mxu1 %v8919_v32 }
 0x328   : > { %4156 = vmatprep.mubr.f32.mxu1 %v8923_v6 }
 0x32b   : > { %4157 = vmatmul.mubr.f32.gmra.mxu1 %v8922_v19 }
 0x32c   : > { %4161 = vmatprep.mubr.f32.mxu1 %v8926_v5 }
 0x32f   : > { %4162 = vmatmul.mubr.f32.gmra.mxu1 %v8925_v2 }
 0x330   : > { %4166 = vmatprep.mubr.f32.mxu1 %v8929_v37 }
 0x333   : > { %4167 = vmatmul.mubr.f32.gmra.mxu1 %v8928_v54 }
 0x334   : > { %4171 = vmatprep.mubr.f32.mxu1 %v8932_v47 }
 0x337   : > { %4172 = vmatmul.mubr.f32.gmra.mxu1 %v8931_v55 }
 0x338   : > { %4176 = vmatprep.mubr.f32.mxu1 %v8935_v48 }
 0x33b   : > { %4177 = vmatmul.mubr.f32.gmra.mxu1 %v8934_v23 }
 0x358   : > { %v3536_v29 = vpop.f32.mrf.mxu1 }
 0x35a   : > { %v11014_v33 = vpop.f32.mrf.mxu1 }
 0x35d   : > { %v14185_v22 = vpop.f32.mrf.mxu1 }
 0x35f   : > { %v11017_v1 = vpop.f32.mrf.mxu1 }
 0x361   : > { %v14187_v39 = vpop.f32.mrf.mxu1 }
 0x363   : > { %v11020_v12 = vpop.f32.mrf.mxu1 }
 0x365   : > { %v14189_v34 = vpop.f32.mrf.mxu1 }
 0x367   : > { %v11023_v20 = vpop.f32.mrf.mxu1 }
 0x368   : > { %v8937_v20 = vld [vmem:[%s16950_s3 + $0x408] sm:$0xff] }
 0x36a   : > { %v14197_v41 = vpop.f32.mrf.mxu1 }
 0x36c   : > { %v11026_v51 = vpop.f32.mrf.mxu1 }
 0x36f   : > { %v14208_v10 = vpop.f32.mrf.mxu1 }
 0x371   : > { %v11029_v17 = vpop.f32.mrf.mxu1 }
 0x373   : > { %v14216_v53 = vpop.f32.mrf.mxu1 }
 0x375   : > { %v11032_v49 = vpop.f32.mrf.mxu1 }
 0x377   : > { %v3571_v40 = vpop.f32.mrf.mxu1 }
 0x379   : > { %v11035_v7 = vpop.f32.mrf.mxu1 }
 0x37b   : > { %v3576_v31 = vpop.f32.mrf.mxu1 }
 0x37d   : > { %v11038_v9 = vpop.f32.mrf.mxu1 }
 0x37f   : > { %v3581_v57 = vpop.f32.mrf.mxu1 }
 0x381   : > { %v11041_v44 = vpop.f32.mrf.mxu1 }
 0x383   : > { %v3586_v24 = vpop.f32.mrf.mxu1 }
 0x385   : > { %v11044_v59 = vpop.f32.mrf.mxu1 }
 0x387   : > { %v3383_v61 = vpop.f32.mrf.mxu0  ;;  %v3810_v21 = vpop.f32.mrf.mxu1 }
 0x388   : > { %v14251_v3 = vadd.f32 %v3536_v29, %v3383_v61  ;;  %v8938_v29 = vld [vmem:[%s16950_s3 + $0x410] sm:$0xff] }
 0x389   : > { %v10973_v15 = vpop.f32.mrf.mxu0  ;;  %v11079_v63 = vpop.f32.mrf.mxu1  ;;  %4181 = vmatprep.mubr.f32.mxu1 %v8938_v29 }
 0x38a   : > { %4182 = vmatmul.mubr.f32.gmra.mxu1 %v8937_v20 }
 0x38b   : > { %11224 = vmatprep.mubr.msk.f32.mxu1 %vm11707_vm4, %v17219_v58 }
 0x38c   : > { %v3388_v33 = vpop.f32.mrf.mxu0 }
 0x38d   : > { %v14260_v1 = vadd.f32 %v14185_v22, %v3388_v33 }
 0x38e   : > { %v10976_v12 = vpop.f32.mrf.mxu0 }
 0x391   : > { %v3393_v27 = vpop.f32.mrf.mxu0 }
 0x392   : > { %v14269_v35 = vadd.f32 %v14187_v39, %v3393_v27 }
 0x393   : > { %v10979_v22 = vpop.f32.mrf.mxu0 }
 0x396   : > { %v3398_v11 = vpop.f32.mrf.mxu0 }
 0x397   : > { %v14274_v0 = vadd.f32 %v14189_v34, %v3398_v11 }
 0x398   : > { %v10982_v51 = vpop.f32.mrf.mxu0 }
 0x39b   : > { %v3403_v60 = vpop.f32.mrf.mxu0 }
 0x39c   : > { %v14277_v28 = vadd.f32 %v14197_v41, %v3403_v60 }
 0x39d   : > { %v10985_v17 = vpop.f32.mrf.mxu0 }
 0x3a0   : > { %v3408_v26 = vpop.f32.mrf.mxu0 }
 0x3a1   : > { %v14280_v8 = vadd.f32 %v14208_v10, %v3408_v26 }
 0x3a2   : > { %v10988_v39 = vpop.f32.mrf.mxu0 }
 0x3a5   : > { %v3413_v49 = vpop.f32.mrf.mxu0 }
 0x3a6   : > { %v14283_v13 = vadd.f32 %v14216_v53, %v3413_v49 }
 0x3a7   : > { %v10991_v32 = vpop.f32.mrf.mxu0 }
 0x3aa   : > { %v3418_v7 = vpop.f32.mrf.mxu0 }
 0x3ab   : > { %v14285_v6 = vadd.f32 %v3571_v40, %v3418_v7 }
 0x3ac   : > { %v10994_v34 = vpop.f32.mrf.mxu0 }
 0x3af   : > { %v3423_v19 = vpop.f32.mrf.mxu0  ;;  %v3815_v9 = vpop.f32.mrf.mxu1 }
 0x3b0   : > { %v14287_v5 = vadd.f32 %v3576_v31, %v3423_v19 }
 0x3b1   : > { %v10997_v41 = vpop.f32.mrf.mxu0  ;;  %v11082_v2 = vpop.f32.mrf.mxu1 }
 0x3b3   : > { %v3428_v44 = vpop.f32.mrf.mxu0  ;;  %v3820_v37 = vpop.f32.mrf.mxu1 }
 0x3b4   : > { %v14289_v10 = vadd.f32 %v3581_v57, %v3428_v44 }
 0x3b5   : > { %v11000_v54 = vpop.f32.mrf.mxu0  ;;  %v11085_v59 = vpop.f32.mrf.mxu1 }
 0x3b7   : > { %v3433_v47 = vpop.f32.mrf.mxu0  ;;  %v3825_v53 = vpop.f32.mrf.mxu1 }
 0x3b8   : > { %v14291_v61 = vadd.f32 %v3586_v24, %v3433_v47 }
 0x3b9   : > { %v11003_v55 = vpop.f32.mrf.mxu0  ;;  %v11088_v40 = vpop.f32.mrf.mxu1 }
 0x3bb   : > { %v9929_v15 = vpop.f32.mrf.mxu0  ;;  %v3830_v63 = vpop.f32.mrf.mxu1 }
 0x3bd   : > { %v9930_v48 = vpop.f32.mrf.mxu0  ;;  %v11091_v23 = vpop.f32.mrf.mxu1 }
 0x3be   : > { %v9931_v31 = vadd.f32 %v9930_v48, %v9929_v15 }
 0x3bf   : > { %v9932_v33 = vpop.f32.mrf.mxu0  ;;  %v3835_v12 = vpop.f32.mrf.mxu1 }
 0x3c0   : > { %v3811_v29 = vadd.f32 %v9931_v31, %v3810_v21 }
 0x3c1   : > { %v9933_v20 = vpop.f32.mrf.mxu0  ;;  %v11094_v27 = vpop.f32.mrf.mxu1 }
 0x3c2   : > { %v9934_v57 = vadd.f32 %v9933_v20, %v9932_v33  ;;  %11119 = vmatmul.mubr.msk.f32.vlgmr.msra.gmra.mxu0 %vm3283_vm5, %v3811_v29  ;;  %v8912_v29 = vld [vmem:[%s16950_s3 + $0x340] sm:$0xff]  ;;  %v8915_v20 = vld [vmem:[%s16950_s3 + $0x358] sm:$0xff]  ;;  %v8918_v27 = vld [vmem:[%s16950_s3 + $0x370] sm:$0xff] }
 0x3c3   : > { %11152 = vmatpush3.msra.mxu0 %v13402_v50  ;;  %v9935_v22 = vpop.f32.mrf.mxu0  ;;  %11121 = vmatprep.mubr.msk.f32.mxu0 %vm11707_vm4, %v17219_v58  ;;  %v3840_v24 = vpop.f32.mrf.mxu1 }
 0x3c4   : > { %v3816_v11 = vadd.f32 %v9934_v57, %v3815_v9  ;;  %11153 = vmatprep.subr.mxu0 %v17219_v58  ;;  %v8921_v57 = vld [vmem:[%s16950_s3 + $0x388] sm:$0xff] }
 0x3c5   : > { %11154 = vmatpush3.msra.mxu0 %v13409_v25  ;;  %v9936_v51 = vpop.f32.mrf.mxu0  ;;  %v11097_v60 = vpop.f32.mrf.mxu1 }
 0x3c6   : > { %v9937_v21 = vadd.f32 %v9936_v51, %v9935_v22  ;;  %11155 = vmatprep.subr.mxu0 %v17219_v58  ;;  %11122 = vmatmul.mubr.msk.f32.gmra.mxu0 %vm3283_vm5, %v3816_v11  ;;  %v8924_v22 = vld [vmem:[%s16950_s3 + $0x3a0] sm:$0xff]  ;;  %v8930_v11 = vld [vmem:[%s16950_s3 + $0x3d0] sm:$0xff]  ;;  %v8933_v51 = vld [vmem:[%s16950_s3 + $0x3e8] sm:$0xff] }
 0x3c7   : > { %11156 = vmatpush3.msra.mxu0 %v13429_v30  ;;  %v9938_v50 = vpop.f32.mrf.mxu0  ;;  %11124 = vmatprep.mubr.msk.f32.mxu0 %vm11707_vm4, %v17219_v58  ;;  %v3845_v17 = vpop.f32.mrf.mxu1  ;;  %v8936_v60 = vld [vmem:[%s16950_s3 + $0x400] sm:$0xff] }
 0x3c8   : > { %v3821_v26 = vadd.f32 %v9937_v21, %v3820_v37  ;;  %11157 = vmatprep.subr.mxu0 %v17219_v58  ;;  %v8939_v21 = vld [vmem:[%s16950_s3 + $0x418] sm:$0xff] }
 0x3c9   : > { %11158 = vmatpush3.msra.mxu0 %v13436_v16  ;;  %v9939_v25 = vpop.f32.mrf.mxu0  ;;  %v11100_v39 = vpop.f32.mrf.mxu1 }
 0x3ca   : > { %v9940_v49 = vadd.f32 %v9939_v25, %v9938_v50  ;;  %11159 = vmatprep.subr.mxu0 %v17219_v58  ;;  %11125 = vmatmul.mubr.msk.f32.gmra.mxu0 %vm3283_vm5, %v3821_v26  ;;  %v8943_v50 = vld [vmem:[%s16951_s4 + $0x78] sm:$0xff]  ;;  %v8941_v26 = vld [vmem:[%s16951_s4 + $0x68] sm:$0xff]  ;;  %v8940_v25 = vld [vmem:[%s16951_s4 + $0x60] sm:$0xff] }
 0x3cb   : > { %11160 = vmatpush3.msra.mxu0 %v13456_v52  ;;  %v9941_v30 = vpop.f32.mrf.mxu0  ;;  %11127 = vmatprep.mubr.msk.f32.mxu0 %vm11707_vm4, %v17219_v58  ;;  %v3850_v32 = vpop.f32.mrf.mxu1  ;;  %v8970_v39 = vld [vmem:[%s16952_s5 + $0xf8] sm:$0xff] }
 0x3cc   : > { %v3826_v7 = vadd.f32 %v9940_v49, %v3825_v53  ;;  %11161 = vmatprep.subr.mxu0 %v17219_v58  ;;  %11217 = vmatpush3.msra.mxu1 %v8943_v50  ;;  %v8969_v49 = vld [vmem:[%s16952_s5 + $0xf0] sm:$0xff] }
 0x3cd   : > { %11162 = vmatpush3.msra.mxu0 %v13463_v45  ;;  %v9942_v16 = vpop.f32.mrf.mxu0  ;;  %v11103_v34 = vpop.f32.mrf.mxu1  ;;  %11218 = vmatprep.subr.mxu1 %v17219_v58 }
 0x3ce   : > { %v9943_v19 = vadd.f32 %v9942_v16, %v9941_v30  ;;  %11163 = vmatprep.subr.mxu0 %v17219_v58  ;;  %11128 = vmatmul.mubr.msk.f32.gmra.mxu0 %vm3283_vm5, %v3826_v7  ;;  %v8968_v30 = vld [vmem:[%s16952_s5 + $0xe8] sm:$0xff]  ;;  %v8966_v7 = vld [vmem:[%s16952_s5 + $0xd8] sm:$0xff]  ;;  %v8965_v16 = vld [vmem:[%s16952_s5 + $0xd0] sm:$0xff] }
 0x3cf   : > { %11164 = vmatpush3.msra.mxu0 %v13483_v4  ;;  %v9944_v52 = vpop.f32.mrf.mxu0  ;;  %11130 = vmatprep.mubr.msk.f32.mxu0 %vm11707_vm4, %v17219_v58  ;;  %v3855_v9 = vpop.f32.mrf.mxu1  ;;  %v8964_v34 = vld [vmem:[%s16952_s5 + $0xc8] sm:$0xff] }
 0x3d0   : > { %v3831_v41 = vadd.f32 %v9943_v19, %v3830_v63  ;;  %11165 = vmatprep.subr.mxu0 %v17219_v58  ;;  %v8963_v19 = vld [vmem:[%s16952_s5 + $0xc0] sm:$0xff] }
 0x3d1   : > { %11166 = vmatpush3.msra.mxu0 %v13490_v38  ;;  %v9945_v45 = vpop.f32.mrf.mxu0  ;;  %v11106_v2 = vpop.f32.mrf.mxu1 }
 0x3d2   : > { %v9946_v44 = vadd.f32 %v9945_v45, %v9944_v52  ;;  %11167 = vmatprep.subr.mxu0 %v17219_v58  ;;  %11131 = vmatmul.mubr.msk.f32.gmra.mxu0 %vm3283_vm5, %v3831_v41  ;;  %v8962_v52 = vld [vmem:[%s16952_s5 + $0xb8] sm:$0xff]  ;;  %v8960_v41 = vld [vmem:[%s16952_s5 + $0xa8] sm:$0xff] }
 0x3d3   : > { %11168 = vmatpush3.msra.mxu0 %v13510_v46  ;;  %v9947_v4 = vpop.f32.mrf.mxu0  ;;  %11133 = vmatprep.mubr.msk.f32.mxu0 %vm11707_vm4, %v17219_v58  ;;  %v3860_v37 = vpop.f32.mrf.mxu1 }
 0x3d4   : > { %v3836_v54 = vadd.f32 %v9946_v44, %v3835_v12  ;;  %11169 = vmatprep.subr.mxu0 %v17219_v58 }
 0x3d5   : > { %11170 = vmatpush3.msra.mxu0 %v13517_v42  ;;  %v9948_v38 = vpop.f32.mrf.mxu0  ;;  %v11109_v59 = vpop.f32.mrf.mxu1 }
 0x3d6   : > { %v9949_v47 = vadd.f32 %v9948_v38, %v9947_v4  ;;  %11171 = vmatprep.subr.mxu0 %v17219_v58  ;;  %11134 = vmatmul.mubr.msk.f32.gmra.mxu0 %vm3283_vm5, %v3836_v54 }
 0x3d7   : > { %11172 = vmatpush3.msra.mxu0 %v13537_v43  ;;  %v9950_v46 = vpop.f32.mrf.mxu0  ;;  %11136 = vmatprep.mubr.msk.f32.mxu0 %vm11707_vm4, %v17219_v58  ;;  %v10036_v45 = vpop.f32.mrf.mxu1 }
 0x3d8   : > { %v3841_v53 = vadd.f32 %v9949_v47, %v3840_v24  ;;  %11173 = vmatprep.subr.mxu0 %v17219_v58  ;;  %v8927_v24 = vld [vmem:[%s16950_s3 + $0x3b8] sm:$0xff] }
 0x3d9   : > { %11174 = vmatpush3.msra.mxu0 %v13544_v18  ;;  %v9951_v55 = vpop.f32.mrf.mxu0  ;;  %v10037_v44 = vpop.f32.mrf.mxu1 }
 0x3da   : > { %v9952_v42 = vadd.f32 %v9951_v55, %v9950_v46  ;;  %11175 = vmatprep.subr.mxu0 %v17219_v58  ;;  %11137 = vmatmul.mubr.msk.f32.gmra.mxu0 %vm3283_vm5, %v3841_v53  ;;  %v10038_v50 = vadd.f32 %v10037_v44, %v10036_v45  ;;  %v4487_v45 = vld [vmem:[%s16952_s5 + $0x58] sm:$0xff] }
 0x3db   : > { %11176 = vmatpush3.msra.mxu0 %v13559_v14  ;;  %v9953_v40 = vpop.f32.mrf.mxu0  ;;  %11139 = vmatprep.mubr.msk.f32.mxu0 %vm11707_vm4, %v17219_v58  ;;  %v10039_v38 = vpop.f32.mrf.mxu1 }
 0x3dc   : > { %v3846_v43 = vadd.f32 %v9952_v42, %v3845_v17  ;;  %11177 = vmatprep.subr.mxu0 %v17219_v58  ;;  %v8942_v17 = vld [vmem:[%s16951_s4 + $0x70] sm:$0xff] }
 0x3dd   : > { %11178 = vmatpush3.msra.mxu0 %v13565_v62  ;;  %v9954_v15 = vpop.f32.mrf.mxu0  ;;  %11219 = vmatpush3.msra.mxu1 %v8942_v17  ;;  %v10040_v53 = vpop.f32.mrf.mxu1 }
 0x3de   : > { %v9955_v63 = vadd.f32 %v9954_v15, %v9953_v40  ;;  %11179 = vmatprep.subr.mxu0 %v17219_v58  ;;  %11140 = vmatmul.mubr.msk.f32.gmra.mxu0 %vm3283_vm5, %v3846_v43 }
 0x3df   : > { %11180 = vmatpush3.msra.mxu0 %v13579_v36  ;;  %v9956_v18 = vpop.f32.mrf.mxu0  ;;  %11142 = vmatprep.mubr.msk.f32.mxu0 %vm11707_vm4, %v17219_v58  ;;  %v10042_v43 = vpop.f32.mrf.mxu1 }
 0x3e0   : > { %v3851_v14 = vadd.f32 %v9955_v63, %v3850_v32  ;;  %11181 = vmatprep.subr.mxu0 %v17219_v58  ;;  %11220 = vmatprep.subr.mxu1 %v17219_v58  ;;  %v8967_v32 = vld [vmem:[%s16952_s5 + $0xe0] sm:$0xff] }
 0x3e1   : > { %11182 = vmatpush3.msra.mxu0 %v13584_v56  ;;  %v9957_v48 = vpop.f32.mrf.mxu0  ;;  %v8909_v56 = vld [vmem:[%s16950_s3 + $0x328] sm:$0xff]  ;;  %11221 = vmatpush3.msra.mxu1 %v8941_v26 }
 0x3e2   : > { %v9958_v23 = vadd.f32 %v9957_v48, %v9956_v18  ;;  %11143 = vmatmul.mubr.msk.f32.gmra.mxu0 %vm3283_vm5, %v3851_v14  ;;  %11257 = vmatprep.subr.mxu0 %v17219_v58  ;;  %v10043_v18 = vpop.f32.mrf.mxu1 }
 0x3e3   : > { %v9959_v62 = vpop.f32.mrf.mxu0  ;;  %11145 = vmatprep.mubr.msk.f32.mxu0 %vm11707_vm4, %v17219_v58  ;;  %11222 = vmatprep.subr.mxu1 %v17219_v58 }
 0x3e4   : > { %v3856_v36 = vadd.f32 %v9958_v23, %v3855_v9  ;;  %11223 = vmatpush3.msra.mxu1 %v8940_v25  ;;  %v8961_v9 = vld [vmem:[%s16952_s5 + $0xb0] sm:$0xff]  ;;  %v10045_v23 = vpop.f32.mrf.mxu1  ;;  %v4491_v25 = vld [vmem:[%s16952_s5 + $0x78] sm:$0xff] }
 0x3e5   : > { %v9960_v31 = vpop.f32.mrf.mxu0  ;;  %11316 = vmatprep.subr.mxu1 %v17219_v58 }
 0x3e6   : > { %v9961_v33 = vadd.f32 %v9960_v31, %v9959_v62  ;;  %11146 = vmatmul.mubr.msk.f32.gmra.mxu0 %vm3283_vm5, %v3856_v36  ;;  %v10046_v31 = vpop.f32.mrf.mxu1 }
 0x3e7   : > { %11148 = vmatprep.mubr.msk.f32.mxu0 %vm11707_vm4, %v17219_v58  ;;  %v10047_v44 = vadd.f32 %v10046_v31, %v10045_v23  ;;  %v4482_v23 = vld [vmem:[%s16952_s5 + $0x30] sm:$0xff] }
 0x3e8   : > { %v3861_v12 = vadd.f32 %v9961_v33, %v3860_v37 }
 0x3ea   : > { %11149 = vmatmul.mubr.msk.f32.gmra.mxu0 %vm3283_vm5, %v3861_v12 }
 0x3eb   : > { %11183 = vmatprep.mubr.msk.f32.mxu0 %vm11707_vm4, %v17219_v58 }
 0x3ee   : > { %11184 = vmatmul.mubr.f32.vlgmr.msra.gmra.mxu0 %v8909_v56  ;;  %v10048_v56 = vpop.f32.mrf.mxu1 }
 0x3ef   : > { %11186 = vmatprep.mubr.msk.f32.mxu0 %vm11707_vm4, %v17219_v58  ;;  %11258 = vmatpush3.msra.mxu0 %v8970_v39 }
 0x3f0   : > { %11259 = vmatprep.subr.mxu0 %v17219_v58 }
 0x3f1   : > { %11260 = vmatpush3.msra.mxu0 %v8969_v49  ;;  %v10041_v49 = vadd.f32 %v10040_v53, %v10039_v38 }
 0x3f2   : > { %11187 = vmatmul.mubr.f32.gmra.mxu0 %v8912_v29  ;;  %11261 = vmatprep.subr.mxu0 %v17219_v58 }
 0x3f3   : > { %11189 = vmatprep.mubr.msk.f32.mxu0 %vm11707_vm4, %v17219_v58  ;;  %11262 = vmatpush3.msra.mxu0 %v8968_v30 }
 0x3f4   : > { %11263 = vmatprep.subr.mxu0 %v17219_v58 }
 0x3f5   : > { %11264 = vmatpush3.msra.mxu0 %v8967_v32 }
 0x3f6   : > { %11190 = vmatmul.mubr.f32.gmra.mxu0 %v8915_v20  ;;  %11265 = vmatprep.subr.mxu0 %v17219_v58 }
 0x3f7   : > { %11192 = vmatprep.mubr.msk.f32.mxu0 %vm11707_vm4, %v17219_v58  ;;  %11266 = vmatpush3.msra.mxu0 %v8966_v7  ;;  %v4489_v7 = vld [vmem:[%s16952_s5 + $0x68] sm:$0xff] }
 0x3f8   : > { %11267 = vmatprep.subr.mxu0 %v17219_v58 }
 0x3f9   : > { %11268 = vmatpush3.msra.mxu0 %v8965_v16 }
 0x3fa   : > { %11193 = vmatmul.mubr.f32.gmra.mxu0 %v8918_v27  ;;  %11269 = vmatprep.subr.mxu0 %v17219_v58  ;;  %v10049_v27 = vpop.f32.mrf.mxu1 }
 0x3fb   : > { %11195 = vmatprep.mubr.msk.f32.mxu0 %vm11707_vm4, %v17219_v58  ;;  %11270 = vmatpush3.msra.mxu0 %v8964_v34  ;;  %v10044_v34 = vadd.f32 %v10043_v18, %v10042_v43  ;;  %v4483_v18 = vld [vmem:[%s16952_s5 + $0x38] sm:$0xff] }
 0x3fc   : > { %11271 = vmatprep.subr.mxu0 %v17219_v58 }
 0x3fd   : > { %11272 = vmatpush3.msra.mxu0 %v8963_v19  ;;  %v4488_v19 = vld [vmem:[%s16952_s5 + $0x60] sm:$0xff] }
 0x3fe   : > { %11196 = vmatmul.mubr.f32.gmra.mxu0 %v8921_v57  ;;  %11273 = vmatprep.subr.mxu0 %v17219_v58 }
 0x3ff   : > { %11198 = vmatprep.mubr.msk.f32.mxu0 %vm11707_vm4, %v17219_v58  ;;  %11274 = vmatpush3.msra.mxu0 %v8962_v52 }
 0x400   : > { %11275 = vmatprep.subr.mxu0 %v17219_v58 }
 0x401   : > { %11276 = vmatpush3.msra.mxu0 %v8961_v9 }
 0x402   : > { %11199 = vmatmul.mubr.f32.gmra.mxu0 %v8924_v22  ;;  %11277 = vmatprep.subr.mxu0 %v17219_v58 }
 0x403   : > { %11201 = vmatprep.mubr.msk.f32.mxu0 %vm11707_vm4, %v17219_v58  ;;  %11278 = vmatpush3.msra.mxu0 %v8960_v41 }
 0x404   : > { %11279 = vmatprep.subr.mxu0 %v17219_v58 }
 0x406   : > { %11202 = vmatmul.mubr.f32.gmra.mxu0 %v8927_v24  ;;  %v14500_v24 = vpop.f32.mrf.mxu1 }
 0x407   : > { %11204 = vmatprep.mubr.msk.f32.mxu0 %vm11707_vm4, %v17219_v58 }
 0x40a   : > { %11205 = vmatmul.mubr.f32.gmra.mxu0 %v8930_v11 }
 0x40b   : > { %11207 = vmatprep.mubr.msk.f32.mxu0 %vm11707_vm4, %v17219_v58 }
 0x40e   : > { %11208 = vmatmul.mubr.f32.gmra.mxu0 %v8933_v51 }
 0x40f   : > { %11210 = vmatprep.mubr.msk.f32.mxu0 %vm11707_vm4, %v17219_v58 }
 0x412   : > { %11211 = vmatmul.mubr.f32.gmra.mxu0 %v8936_v60  ;;  %v10052_v60 = vpop.f32.mrf.mxu1 }
 0x413   : > { %11213 = vmatprep.mubr.msk.f32.mxu0 %vm11707_vm4, %v17219_v58 }
 0x414   : > { %v14508_v26 = vpop.f32.mrf.mxu1 }
 0x416   : > { %11214 = vmatmul.mubr.f32.gmra.mxu0 %v8939_v21  ;;  %v10055_v30 = vpop.f32.mrf.mxu1 }
 0x417   : > { %11289 = vmatprep.mubr.msk.f32.mxu0 %vm11707_vm4, %v17219_v58 }
 0x418   : > { %v10057_v9 = vpop.f32.mrf.mxu1 }
 0x41a   : > { %v10058_v38 = vpop.f32.mrf.mxu1 }
 0x482   : > { %v3968_v2 = vpop.f32.mrf.mxu0 }
 0x483   : > { %v14474_v4 = vadd.f32 %v3968_v2, %v14251_v3 }
 0x484   : > { %v11120_v37 = vpop.f32.mrf.mxu0 }
 0x485   : > { %v4486_v37 = vld [vmem:[%s16952_s5 + $0x50] sm:$0xff] }
 0x486   : > { %v3973_v54 = vpop.f32.mrf.mxu0 }
 0x487   : > { %v14477_v59 = vadd.f32 %v3973_v54, %v14260_v1 }
 0x488   : > { %v11123_v47 = vpop.f32.mrf.mxu0 }
 0x48a   : > { %v3978_v46 = vpop.f32.mrf.mxu0 }
 0x48b   : > { %v14480_v55 = vadd.f32 %v3978_v46, %v14269_v35  ;;  %v4485_v46 = vld [vmem:[%s16952_s5 + $0x48] sm:$0xff] }
 0x48c   : > { %v11126_v42 = vpop.f32.mrf.mxu0 }
 0x48d   : > { %v10050_v42 = vadd.f32 %v10049_v27, %v10048_v56  ;;  %v10056_v56 = vadd.f32 %v10055_v30, %v14508_v26 }
 0x48e   : > { %v3983_v40 = vpop.f32.mrf.mxu0 }
 0x48f   : > { %v14483_v15 = vadd.f32 %v3983_v40, %v14274_v0  ;;  %v4484_v40 = vld [vmem:[%s16952_s5 + $0x40] sm:$0xff] }
 0x490   : > { %v11129_v3 = vpop.f32.mrf.mxu0 }
 0x491   : > { %v10060_v3 = vpop.f32.mrf.mxu1 }
 0x492   : > { %v3988_v63 = vpop.f32.mrf.mxu0 }
 0x493   : > { %v14486_v14 = vadd.f32 %v3988_v63, %v14277_v28 }
 0x494   : > { %v11132_v1 = vpop.f32.mrf.mxu0 }
 0x496   : > { %v3993_v48 = vpop.f32.mrf.mxu0 }
 0x497   : > { %v14489_v62 = vadd.f32 %v3993_v48, %v14280_v8  ;;  %v10053_v48 = vadd.f32 %v10052_v60, %v14500_v24 }
 0x498   : > { %v11135_v35 = vpop.f32.mrf.mxu0 }
 0x49a   : > { %v3998_v36 = vpop.f32.mrf.mxu0 }
 0x49b   : > { %v14492_v33 = vadd.f32 %v3998_v36, %v14283_v13  ;;  %v10061_v36 = vpop.f32.mrf.mxu1 }
 0x49c   : > { %v11138_v0 = vpop.f32.mrf.mxu0 }
 0x49d   : > { %v4481_v0 = vld [vmem:[%s16952_s5 + $0x28] sm:$0xff]  ;;  %v10063_v27 = vpop.f32.mrf.mxu1 }
 0x49e   : > { %v4003_v12 = vpop.f32.mrf.mxu0 }
 0x49f   : > { %v14495_v29 = vadd.f32 %v4003_v12, %v14285_v6 }
 0x4a0   : > { %v11141_v28 = vpop.f32.mrf.mxu0 }
 0x4a1   : > { %v4480_v28 = vld [vmem:[%s16952_s5 + $0x20] sm:$0xff] }
 0x4a2   : > { %v4008_v20 = vpop.f32.mrf.mxu0 }
 0x4a3   : > { %v14498_v57 = vadd.f32 %v4008_v20, %v14287_v5 }
 0x4a4   : > { %v11144_v8 = vpop.f32.mrf.mxu0 }
 0x4a6   : > { %v4013_v22 = vpop.f32.mrf.mxu0 }
 0x4a7   : > { %v14503_v11 = vadd.f32 %v4013_v22, %v14289_v10  ;;  %v4490_v10 = vld [vmem:[%s16952_s5 + $0x70] sm:$0xff]  ;;  %v4479_v22 = vld [vmem:[%s16952_s5 + $0x18] sm:$0xff] }
 0x4a8   : > { %v11147_v13 = vpop.f32.mrf.mxu0 }
 0x4a9   : > { %v10059_v13 = vadd.f32 %v10058_v38, %v10057_v9  ;;  %v4477_v9 = vld [vmem:[%s16952_s5 + $0x8] sm:$0xff] }
 0x4aa   : > { %v4018_v51 = vpop.f32.mrf.mxu0 }
 0x4ab   : > { %v14506_v21 = vadd.f32 %v4018_v51, %v14291_v61  ;;  %v4478_v51 = vld [vmem:[%s16952_s5 + $0x10] sm:$0xff] }
 0x4ac   : > { %v11150_v6 = vpop.f32.mrf.mxu0 }
 0x4ad   : > { %v10064_v6 = vpop.f32.mrf.mxu1 }
 0x4ae   : > { %v4253_v17 = vpop.f32.mrf.mxu0 }
 0x4af   : > { %v4254_v5 = vadd.f32 %v10038_v50, %v4253_v17  ;;  %v10066_v26 = vpop.f32.mrf.mxu1 }
 0x4b0   : > { %v11185_v39 = vpop.f32.mrf.mxu0 }
 0x4b1   : > { %11225 = vmatmul.mubr.msk.f32.vlgmr.msra.gmra.mxu1 %vm3283_vm5, %v4254_v5  ;;  %v10062_v5 = vadd.f32 %v10061_v36, %v10060_v3 }
 0x4b2   : > { %v4258_v61 = vpop.f32.mrf.mxu0  ;;  %11227 = vmatprep.mubr.msk.f32.mxu1 %vm11707_vm4, %v17219_v58  ;;  %11317 = vmatpush3.msra.mxu1 %v4491_v25 }
 0x4b3   : > { %v4259_v32 = vadd.f32 %v10041_v49, %v4258_v61  ;;  %11318 = vmatprep.subr.mxu1 %v17219_v58  ;;  %v10065_v61 = vadd.f32 %v10064_v6, %v10063_v27  ;;  %v8985_v27 = vld [vmem:[%s16952_s5 + $0x170] sm:$0xff] }
 0x4b4   : > { %v11188_v16 = vpop.f32.mrf.mxu0  ;;  %11319 = vmatpush3.msra.mxu1 %v4490_v10  ;;  %v10067_v10 = vpop.f32.mrf.mxu1 }
 0x4b5   : > { %11228 = vmatmul.mubr.msk.f32.gmra.mxu1 %vm3283_vm5, %v4259_v32  ;;  %11320 = vmatprep.subr.mxu1 %v17219_v58 }
 0x4b6   : > { %v4263_v52 = vpop.f32.mrf.mxu0  ;;  %11230 = vmatprep.mubr.msk.f32.mxu1 %vm11707_vm4, %v17219_v58  ;;  %11321 = vmatpush3.msra.mxu1 %v4489_v7  ;;  %v10068_v7 = vadd.f32 %v10067_v10, %v10066_v26 }
 0x4b7   : > { %v4264_v41 = vadd.f32 %v10044_v34, %v4263_v52  ;;  %11322 = vmatprep.subr.mxu1 %v17219_v58 }
 0x4b8   : > { %v11191_v2 = vpop.f32.mrf.mxu0  ;;  %11323 = vmatpush3.msra.mxu1 %v4488_v19 }
 0x4b9   : > { %11231 = vmatmul.mubr.msk.f32.gmra.mxu1 %vm3283_vm5, %v4264_v41  ;;  %11324 = vmatprep.subr.mxu1 %v17219_v58  ;;  %v8959_v41 = vld [vmem:[%s16952_s5 + $0xa0] sm:$0xff]  ;;  %v8958_v2 = vld [vmem:[%s16952_s5 + $0x98] sm:$0xff] }
 0x4ba   : > { %v4268_v54 = vpop.f32.mrf.mxu0  ;;  %11233 = vmatprep.mubr.msk.f32.mxu1 %vm11707_vm4, %v17219_v58  ;;  %11325 = vmatpush3.msra.mxu1 %v4487_v45  ;;  %v4476_v45 = vld [vmem:[%s16952_s5] sm:$0xff] }
 0x4bb   : > { %v4269_v47 = vadd.f32 %v10047_v44, %v4268_v54  ;;  %11326 = vmatprep.subr.mxu1 %v17219_v58  ;;  %11280 = vmatpush3.msra.mxu0 %v8959_v41  ;;  %v8957_v44 = vld [vmem:[%s16952_s5 + $0x90] sm:$0xff]  ;;  %v8955_v54 = vld [vmem:[%s16952_s5 + $0x80] sm:$0xff] }
 0x4bc   : > { %v11194_v53 = vpop.f32.mrf.mxu0  ;;  %11327 = vmatpush3.msra.mxu1 %v4486_v37  ;;  %11281 = vmatprep.subr.mxu0 %v17219_v58  ;;  %v8956_v37 = vld [vmem:[%s16952_s5 + $0x88] sm:$0xff]  ;;  %v8981_v41 = vld [vmem:[%s16952_s5 + $0x150] sm:$0xff] }
 0x4bd   : > { %11234 = vmatmul.mubr.msk.f32.gmra.mxu1 %vm3283_vm5, %v4269_v47  ;;  %11328 = vmatprep.subr.mxu1 %v17219_v58 }
 0x4be   : > { %v4273_v43 = vpop.f32.mrf.mxu0  ;;  %11236 = vmatprep.mubr.msk.f32.mxu1 %vm11707_vm4, %v17219_v58  ;;  %11329 = vmatpush3.msra.mxu1 %v4485_v46  ;;  %v9002_v46 = vld [vmem:[%s16952_s5 + $0x1f8] sm:$0xff] }
 0x4bf   : > { %v4274_v63 = vadd.f32 %v10050_v42, %v4273_v43  ;;  %11330 = vmatprep.subr.mxu1 %v17219_v58  ;;  %11282 = vmatpush3.msra.mxu0 %v8958_v2  ;;  %v9001_v42 = vld [vmem:[%s16952_s5 + $0x1f0] sm:$0xff] }
 0x4c0   : > { %v11197_v1 = vpop.f32.mrf.mxu0  ;;  %11331 = vmatpush3.msra.mxu1 %v4484_v40  ;;  %11283 = vmatprep.subr.mxu0 %v17219_v58 }
 0x4c1   : > { %11237 = vmatmul.mubr.msk.f32.gmra.mxu1 %vm3283_vm5, %v4274_v63  ;;  %11332 = vmatprep.subr.mxu1 %v17219_v58  ;;  %v8999_v1 = vld [vmem:[%s16952_s5 + $0x1e0] sm:$0xff] }
 0x4c2   : > { %v4278_v35 = vpop.f32.mrf.mxu0  ;;  %11239 = vmatprep.mubr.msk.f32.mxu1 %vm11707_vm4, %v17219_v58  ;;  %11333 = vmatpush3.msra.mxu1 %v4483_v18 }
 0x4c3   : > { %v4279_v31 = vadd.f32 %v10053_v48, %v4278_v35  ;;  %11334 = vmatprep.subr.mxu1 %v17219_v58  ;;  %11284 = vmatpush3.msra.mxu0 %v8957_v44  ;;  %v8986_v35 = vld [vmem:[%s16952_s5 + $0x178] sm:$0xff] }
 0x4c4   : > { %v11200_v12 = vpop.f32.mrf.mxu0  ;;  %11335 = vmatpush3.msra.mxu1 %v4482_v23  ;;  %11285 = vmatprep.subr.mxu0 %v17219_v58 }
 0x4c5   : > { %11240 = vmatmul.mubr.msk.f32.gmra.mxu1 %vm3283_vm5, %v4279_v31  ;;  %11336 = vmatprep.subr.mxu1 %v17219_v58 }
 0x4c6   : > { %v4283_v20 = vpop.f32.mrf.mxu0  ;;  %11242 = vmatprep.mubr.msk.f32.mxu1 %vm11707_vm4, %v17219_v58  ;;  %11337 = vmatpush3.msra.mxu1 %v4481_v0 }
 0x4c7   : > { %v4284_v8 = vadd.f32 %v10056_v56, %v4283_v20  ;;  %11338 = vmatprep.subr.mxu1 %v17219_v58  ;;  %11286 = vmatpush3.msra.mxu0 %v8956_v37 }
 0x4c8   : > { %v11203_v24 = vpop.f32.mrf.mxu0  ;;  %11339 = vmatpush3.msra.mxu1 %v4480_v28  ;;  %11287 = vmatprep.subr.mxu0 %v17219_v58 }
 0x4c9   : > { %11243 = vmatmul.mubr.msk.f32.gmra.mxu1 %vm3283_vm5, %v4284_v8  ;;  %11340 = vmatprep.subr.mxu1 %v17219_v58 }
 0x4ca   : > { %v4288_v60 = vpop.f32.mrf.mxu0  ;;  %11245 = vmatprep.mubr.msk.f32.mxu1 %vm11707_vm4, %v17219_v58  ;;  %11341 = vmatpush3.msra.mxu1 %v4479_v22 }
 0x4cb   : > { %v4289_v50 = vadd.f32 %v10059_v13, %v4288_v60  ;;  %11342 = vmatprep.subr.mxu1 %v17219_v58  ;;  %11288 = vmatpush3.msra.mxu0 %v8955_v54  ;;  %v8997_v13 = vld [vmem:[%s16952_s5 + $0x1d0] sm:$0xff]  ;;  %v8984_v60 = vld [vmem:[%s16952_s5 + $0x168] sm:$0xff] }
 0x4cc   : > { %v11206_v17 = vpop.f32.mrf.mxu0  ;;  %11343 = vmatpush3.msra.mxu1 %v4478_v51  ;;  %11375 = vmatprep.subr.mxu0 %v17219_v58 }
 0x4cd   : > { %11246 = vmatmul.mubr.msk.f32.gmra.mxu1 %vm3283_vm5, %v4289_v50  ;;  %11344 = vmatprep.subr.mxu1 %v17219_v58 }
 0x4ce   : > { %v4293_v25 = vpop.f32.mrf.mxu0  ;;  %11248 = vmatprep.mubr.msk.f32.mxu1 %vm11707_vm4, %v17219_v58  ;;  %11345 = vmatpush3.msra.mxu1 %v4477_v9 }
 0x4cf   : > { %v4294_v39 = vadd.f32 %v10062_v5, %v4293_v25  ;;  %11346 = vmatprep.subr.mxu1 %v17219_v58  ;;  %v8996_v5 = vld [vmem:[%s16952_s5 + $0x1c8] sm:$0xff] }
 0x4d0   : > { %v11209_v49 = vpop.f32.mrf.mxu0  ;;  %11347 = vmatpush3.msra.mxu1 %v4476_v45 }
 0x4d1   : > { %11249 = vmatmul.mubr.msk.f32.gmra.mxu1 %vm3283_vm5, %v4294_v39  ;;  %11434 = vmatprep.subr.mxu1 %v17219_v58  ;;  %v8983_v39 = vld [vmem:[%s16952_s5 + $0x160] sm:$0xff] }
 0x4d2   : > { %v4298_v30 = vpop.f32.mrf.mxu0  ;;  %11251 = vmatprep.mubr.msk.f32.mxu1 %vm11707_vm4, %v17219_v58 }
 0x4d3   : > { %v4299_v32 = vadd.f32 %v10065_v61, %v4298_v30  ;;  %v8995_v30 = vld [vmem:[%s16952_s5 + $0x1c0] sm:$0xff] }
 0x4d4   : > { %v11212_v16 = vpop.f32.mrf.mxu0 }
 0x4d5   : > { %11252 = vmatmul.mubr.msk.f32.gmra.mxu1 %vm3283_vm5, %v4299_v32 }
 0x4d6   : > { %v4303_v34 = vpop.f32.mrf.mxu0  ;;  %11254 = vmatprep.mubr.msk.f32.mxu1 %vm11707_vm4, %v17219_v58 }
 0x4d7   : > { %v4304_v19 = vadd.f32 %v10068_v7, %v4303_v34 }
 0x4d8   : > { %v11215_v52 = vpop.f32.mrf.mxu0 }
 0x4d9   : > { %11255 = vmatmul.mubr.msk.f32.gmra.mxu1 %vm3283_vm5, %v4304_v19  ;;  %v8994_v52 = vld [vmem:[%s16952_s5 + $0x1b8] sm:$0xff] }
 0x4da   : > { %11348 = vmatprep.mubr.msk.f32.mxu1 %vm11707_vm4, %v17219_v58 }
 0x571   : > { %v4411_v38 = vpop.f32.mrf.mxu1 }
 0x572   : > { %v4465_v47 = vadd.f32 %v4411_v38, %v14474_v4  ;;  %v9000_v4 = vld [vmem:[%s16952_s5 + $0x1e8] sm:$0xff] }
 0x573   : > { %v11226_v53 = vpop.f32.mrf.mxu1  ;;  %v8980_v38 = vld [vmem:[%s16952_s5 + $0x148] sm:$0xff] }
 0x574   : > { %11349 = vmatmul.mubr.f32.vlgmr.msra.gmra.mxu1 %v4465_v47  ;;  %v4519_v63 = vrot.slane %v4465_v47, 1 }
 0x575   : > { %v4416_v40 = vpop.f32.mrf.mxu1  ;;  %11351 = vmatprep.mubr.msk.f32.mxu1 %vm11707_vm4, %v17219_v58  ;;  %11435 = vmatpush3.msra.mxu1 %v9002_v46 }
 0x576   : > { %v4466_v43 = vadd.f32 %v4416_v40, %v14477_v59  ;;  %11436 = vmatprep.subr.mxu1 %v17219_v58  ;;  %v8992_v40 = vld [vmem:[%s16952_s5 + $0x1a8] sm:$0xff] }
 0x577   : > { %v11229_v3 = vpop.f32.mrf.mxu1  ;;  %11437 = vmatpush3.msra.mxu1 %v9001_v42 }
 0x578   : > { %v4520_v18 = vrot.slane %v4466_v43, 1  ;;  %11352 = vmatmul.mubr.f32.gmra.mxu1 %v4466_v43  ;;  %11438 = vmatprep.subr.mxu1 %v17219_v58  ;;  %v4925_v31 = vrot.slane %v4466_v43, 2 }
 0x579   : > { %v4421_v48 = vpop.f32.mrf.mxu1  ;;  %11354 = vmatprep.mubr.msk.f32.mxu1 %vm11707_vm4, %v17219_v58  ;;  %11439 = vmatpush3.msra.mxu1 %v9000_v4 }
 0x57a   : > { %v4467_v59 = vadd.f32 %v4421_v48, %v14480_v55  ;;  %v4521_v23 = vsel %vm609_vm0, %v4519_v63, %v4520_v18  ;;  %11440 = vmatprep.subr.mxu1 %v17219_v58  ;;  %v8998_v55 = vld [vmem:[%s16952_s5 + $0x1d8] sm:$0xff] }
 0x57b   : > { %v11232_v36 = vpop.f32.mrf.mxu1  ;;  %11290 = vmatmul.mubr.f32.vlgmr.msra.gmra.mxu0 %v4521_v23  ;;  %11441 = vmatpush3.msra.mxu1 %v8999_v1  ;;  %v8978_v23 = vld [vmem:[%s16952_s5 + $0x138] sm:$0xff] }
 0x57c   : > { %v4522_v0 = vrot.slane %v4467_v59, 1  ;;  %v4926_v12 = vrot.slane %v4467_v59, 2  ;;  %11355 = vmatmul.mubr.f32.gmra.mxu1 %v4467_v59  ;;  %11292 = vmatprep.mubr.msk.f32.mxu0 %vm11707_vm4, %v17219_v58 }
 0x57d   : > { %v4426_v56 = vpop.f32.mrf.mxu1  ;;  %11357 = vmatprep.mubr.msk.f32.mxu1 %vm11707_vm4, %v17219_v58  ;;  %11376 = vmatpush3.msra.mxu0 %v8986_v35 }
 0x57e   : > { %v4468_v28 = vadd.f32 %v4426_v56, %v14483_v15  ;;  %v14664_v20 = vsel %vm609_vm0, %v4520_v18, %v4522_v0  ;;  %11442 = vmatprep.subr.mxu1 %v17219_v58  ;;  %11377 = vmatprep.subr.mxu0 %v17219_v58  ;;  %v14672_v8 = vsel %vm4924_vm6, %v4925_v31, %v4926_v12  ;;  %v8991_v18 = vld [vmem:[%s16952_s5 + $0x1a0] sm:$0xff]  ;;  %v8990_v31 = vld [vmem:[%s16952_s5 + $0x198] sm:$0xff] }
 0x57f   : > { %v11235_v22 = vpop.f32.mrf.mxu1  ;;  %11293 = vmatmul.mubr.f32.gmra.mxu0 %v14664_v20  ;;  %11443 = vmatpush3.msra.mxu1 %v8998_v55 }
 0x580   : > { %v4524_v24 = vrot.slane %v4468_v28, 1  ;;  %v4928_v15 = vrot.slane %v4468_v28, 2  ;;  %11358 = vmatmul.mubr.f32.gmra.mxu1 %v4468_v28  ;;  %11295 = vmatprep.mubr.msk.f32.mxu0 %vm11707_vm4, %v17219_v58  ;;  %v8989_v22 = vld [vmem:[%s16952_s5 + $0x190] sm:$0xff] }
 0x581   : > { %v4431_v51 = vpop.f32.mrf.mxu1  ;;  %11378 = vmatpush3.msra.mxu0 %v8985_v27  ;;  %11444 = vmatprep.subr.mxu1 %v17219_v58 }
 0x582   : > { %v4469_v6 = vadd.f32 %v4431_v51, %v14486_v14  ;;  %v14686_v50 = vsel %vm609_vm0, %v4522_v0, %v4524_v24  ;;  %11360 = vmatprep.mubr.msk.f32.mxu1 %vm11707_vm4, %v17219_v58  ;;  %11379 = vmatprep.subr.mxu0 %v17219_v58  ;;  %v14692_v17 = vsel %vm4924_vm6, %v4926_v12, %v4928_v15  ;;  %v8977_v12 = vld [vmem:[%s16952_s5 + $0x130] sm:$0xff] }
 0x583   : > { %v11238_v26 = vpop.f32.mrf.mxu1  ;;  %11296 = vmatmul.mubr.f32.gmra.mxu0 %v14686_v50  ;;  %11445 = vmatpush3.msra.mxu1 %v8997_v13 }
 0x584   : > { %v4526_v14 = vrot.slane %v4469_v6, 1  ;;  %v4930_v25 = vrot.slane %v4469_v6, 2  ;;  %11361 = vmatmul.mubr.f32.gmra.mxu1 %v4469_v6  ;;  %11380 = vmatpush3.msra.mxu0 %v8984_v60  ;;  %v8988_v26 = vld [vmem:[%s16952_s5 + $0x188] sm:$0xff] }
 0x585   : > { %11446 = vmatprep.subr.mxu1 %v17219_v58  ;;  %v4436_v49 = vpop.f32.mrf.mxu1  ;;  %11381 = vmatprep.subr.mxu0 %v17219_v58 }
 0x586   : > { %v4470_v10 = vadd.f32 %v4436_v49, %v14489_v62  ;;  %11447 = vmatpush3.msra.mxu1 %v8996_v5  ;;  %11298 = vmatprep.mubr.msk.f32.mxu0 %vm11707_vm4, %v17219_v58  ;;  %v14707_v61 = vsel %vm609_vm0, %v4524_v24, %v4526_v14  ;;  %v14713_v32 = vsel %vm4924_vm6, %v4928_v15, %v4930_v25  ;;  %v8982_v62 = vld [vmem:[%s16952_s5 + $0x158] sm:$0xff]  ;;  %v8976_v15 = vld [vmem:[%s16952_s5 + $0x128] sm:$0xff] }
 0x587   : > { %11382 = vmatpush3.msra.mxu0 %v8983_v39  ;;  %11448 = vmatprep.subr.mxu1 %v17219_v58  ;;  %v11241_v7 = vpop.f32.mrf.mxu1  ;;  %v8987_v39 = vld [vmem:[%s16952_s5 + $0x180] sm:$0xff] }
 0x588   : > { %v4528_v16 = vrot.slane %v4470_v10, 1  ;;  %v4932_v34 = vrot.slane %v4470_v10, 2  ;;  %11299 = vmatmul.mubr.f32.gmra.mxu0 %v14707_v61  ;;  %11363 = vmatprep.mubr.msk.f32.mxu1 %vm11707_vm4, %v17219_v58  ;;  %v8973_v7 = vld [vmem:[%s16952_s5 + $0x110] sm:$0xff] }
 0x589   : > { %11383 = vmatprep.subr.mxu0 %v17219_v58  ;;  %11449 = vmatpush3.msra.mxu1 %v8995_v30  ;;  %v4441_v19 = vpop.f32.mrf.mxu1  ;;  %v8974_v30 = vld [vmem:[%s16952_s5 + $0x118] sm:$0xff] }
 0x58a   : > { %11364 = vmatmul.mubr.f32.gmra.mxu1 %v4470_v10  ;;  %11384 = vmatpush3.msra.mxu0 %v8982_v62  ;;  %v4471_v9 = vadd.f32 %v4441_v19, %v14492_v33  ;;  %v14731_v45 = vsel %vm609_vm0, %v4526_v14, %v4528_v16  ;;  %v14734_v2 = vsel %vm4924_vm6, %v4930_v25, %v4932_v34  ;;  %v8993_v33 = vld [vmem:[%s16952_s5 + $0x1b0] sm:$0xff]  ;;  %v8972_v62 = vld [vmem:[%s16952_s5 + $0x108] sm:$0xff] }
 0x58b   : > { %11450 = vmatprep.subr.mxu1 %v17219_v58  ;;  %11385 = vmatprep.subr.mxu0 %v17219_v58  ;;  %v11244_v44 = vpop.f32.mrf.mxu1 }
 0x58c   : > { %v4530_v37 = vrot.slane %v4471_v9, 1  ;;  %v4934_v54 = vrot.slane %v4471_v9, 2  ;;  %11451 = vmatpush3.msra.mxu1 %v8994_v52  ;;  %11301 = vmatprep.mubr.msk.f32.mxu0 %vm11707_vm4, %v17219_v58 }
 0x58d   : > { %11386 = vmatpush3.msra.mxu0 %v8981_v41  ;;  %11452 = vmatprep.subr.mxu1 %v17219_v58  ;;  %v4446_v47 = vpop.f32.mrf.mxu1 }
 0x58e   : > { %11302 = vmatmul.mubr.f32.gmra.mxu0 %v14731_v45  ;;  %11366 = vmatprep.mubr.msk.f32.mxu1 %vm11707_vm4, %v17219_v58  ;;  %v4472_v46 = vadd.f32 %v4446_v47, %v14495_v29  ;;  %v14752_v53 = vsel %vm609_vm0, %v4528_v16, %v4530_v37  ;;  %v14755_v42 = vsel %vm4924_vm6, %v4932_v34, %v4934_v54  ;;  %v8979_v29 = vld [vmem:[%s16952_s5 + $0x140] sm:$0xff] }
 0x58f   : > { %11387 = vmatprep.subr.mxu0 %v17219_v58  ;;  %11453 = vmatpush3.msra.mxu1 %v8993_v33  ;;  %v11247_v43 = vpop.f32.mrf.mxu1 }
 0x590   : > { %11367 = vmatmul.mubr.f32.gmra.mxu1 %v4471_v9  ;;  %11388 = vmatpush3.msra.mxu0 %v8980_v38  ;;  %v4532_v4 = vrot.slane %v4472_v46, 1  ;;  %v4936_v3 = vrot.slane %v4472_v46, 2 }
 0x591   : > { %11454 = vmatprep.subr.mxu1 %v17219_v58  ;;  %11389 = vmatprep.subr.mxu0 %v17219_v58  ;;  %v4451_v63 = vpop.f32.mrf.mxu1 }
 0x592   : > { %11455 = vmatpush3.msra.mxu1 %v8992_v40  ;;  %11304 = vmatprep.mubr.msk.f32.mxu0 %vm11707_vm4, %v17219_v58  ;;  %v4473_v1 = vadd.f32 %v4451_v63, %v14498_v57  ;;  %v14773_v48 = vsel %vm609_vm0, %v4530_v37, %v4532_v4  ;;  %v14776_v59 = vsel %vm4924_vm6, %v4934_v54, %v4936_v3 }
 0x593   : > { %11390 = vmatpush3.msra.mxu0 %v8979_v29  ;;  %11456 = vmatprep.subr.mxu1 %v17219_v58  ;;  %v11250_v35 = vpop.f32.mrf.mxu1 }
 0x594   : > { %11305 = vmatmul.mubr.f32.gmra.mxu0 %v14752_v53  ;;  %11369 = vmatprep.mubr.msk.f32.mxu1 %vm11707_vm4, %v17219_v58  ;;  %v4534_v57 = vrot.slane %v4473_v1, 1  ;;  %v4938_v36 = vrot.slane %v4473_v1, 2 }
 0x595   : > { %11391 = vmatprep.subr.mxu0 %v17219_v58  ;;  %11457 = vmatpush3.msra.mxu1 %v8991_v18  ;;  %v4456_v0 = vpop.f32.mrf.mxu1 }
 0x596   : > { %11370 = vmatmul.mubr.f32.gmra.mxu1 %v4472_v46  ;;  %11392 = vmatpush3.msra.mxu0 %v8978_v23  ;;  %v4474_v55 = vadd.f32 %v4456_v0, %v14503_v11  ;;  %v14794_v56 = vsel %vm609_vm0, %v4532_v4, %v4534_v57  ;;  %v14797_v28 = vsel %vm4924_vm6, %v4936_v3, %v4938_v36 }
 0x597   : > { %11458 = vmatprep.subr.mxu1 %v17219_v58  ;;  %11393 = vmatprep.subr.mxu0 %v17219_v58  ;;  %v11253_v27 = vpop.f32.mrf.mxu1 }
 0x598   : > { %11459 = vmatpush3.msra.mxu1 %v8990_v31  ;;  %11307 = vmatprep.mubr.msk.f32.mxu0 %vm11707_vm4, %v17219_v58  ;;  %v4536_v11 = vrot.slane %v4474_v55, 1  ;;  %v4940_v24 = vrot.slane %v4474_v55, 2 }
 0x599   : > { %11394 = vmatpush3.msra.mxu0 %v8977_v12  ;;  %11460 = vmatprep.subr.mxu1 %v17219_v58  ;;  %v4461_v13 = vpop.f32.mrf.mxu1 }
 0x59a   : > { %11308 = vmatmul.mubr.f32.gmra.mxu0 %v14773_v48  ;;  %11372 = vmatprep.mubr.msk.f32.mxu1 %vm11707_vm4, %v17219_v58  ;;  %v4475_v51 = vadd.f32 %v4461_v13, %v14506_v21  ;;  %v14815_v60 = vsel %vm609_vm0, %v4534_v57, %v4536_v11  ;;  %v14818_v6 = vsel %vm4924_vm6, %v4938_v36, %v4940_v24  ;;  %v8975_v21 = vld [vmem:[%s16952_s5 + $0x120] sm:$0xff] }
 0x59b   : > { %11395 = vmatprep.subr.mxu0 %v17219_v58  ;;  %11461 = vmatpush3.msra.mxu1 %v8989_v22  ;;  %v11256_v5 = vpop.f32.mrf.mxu1 }
 0x59c   : > { %11373 = vmatmul.mubr.f32.gmra.mxu1 %v4473_v1  ;;  %11396 = vmatpush3.msra.mxu0 %v8976_v15  ;;  %v4785_v14 = vrot.slane %v4475_v51, 1  ;;  %v4942_v25 = vrot.slane %v4475_v51, 2 }
 0x59d   : > { %11462 = vmatprep.subr.mxu1 %v17219_v58  ;;  %11397 = vmatprep.subr.mxu0 %v17219_v58 }
 0x59e   : > { %11463 = vmatpush3.msra.mxu1 %v8988_v26  ;;  %11310 = vmatprep.mubr.msk.f32.mxu0 %vm11707_vm4, %v17219_v58  ;;  %v4943_v49 = vsel %vm4924_vm6, %v4940_v24, %v4942_v25  ;;  %v4786_v10 = vsel %vm609_vm0, %v4536_v11, %v4785_v14 }
 0x59f   : > { %11398 = vmatpush3.msra.mxu0 %v8975_v21  ;;  %11464 = vmatprep.subr.mxu1 %v17219_v58 }
 0x5a0   : > { %11311 = vmatmul.mubr.f32.gmra.mxu0 %v14794_v56  ;;  %11399 = vmatprep.subr.mxu0 %v17219_v58 }
 0x5a1   : > { %11465 = vmatpush3.msra.mxu1 %v8987_v39  ;;  %11466 = vmatprep.mubr.msk.f32.mxu1 %vm11707_vm4, %v17219_v58 }
 0x5a2   : > { %11400 = vmatpush3.msra.mxu0 %v8974_v30  ;;  %11467 = vmatmul.mubr.f32.vlgmr.msra.gmra.mxu1 %v14672_v8  ;;  %v8971_v8 = vld [vmem:[%s16952_s5 + $0x100] sm:$0xff] }
 0x5a3   : > { %11401 = vmatprep.subr.mxu0 %v17219_v58  ;;  %11313 = vmatprep.mubr.msk.f32.mxu0 %vm11707_vm4, %v17219_v58 }
 0x5a4   : > { %11402 = vmatpush3.msra.mxu0 %v8973_v7  ;;  %11469 = vmatprep.mubr.msk.f32.mxu1 %vm11707_vm4, %v17219_v58 }
 0x5a5   : > { %11314 = vmatmul.mubr.f32.gmra.mxu0 %v14815_v60  ;;  %11403 = vmatprep.subr.mxu0 %v17219_v58 }
 0x5a6   : > { %11404 = vmatpush3.msra.mxu0 %v8972_v62  ;;  %11470 = vmatmul.mubr.f32.gmra.mxu1 %v14692_v17 }
 0x5a7   : > { %11405 = vmatprep.subr.mxu0 %v17219_v58  ;;  %11407 = vmatprep.mubr.msk.f32.mxu0 %vm11707_vm4, %v17219_v58 }
 0x5a8   : > { %11406 = vmatpush3.msra.mxu0 %v8971_v8  ;;  %11472 = vmatprep.mubr.msk.f32.mxu1 %vm11707_vm4, %v17219_v58 }
 0x5a9   : > { %11408 = vmatmul.mubr.f32.vlgmr.msra.gmra.mxu0 %v14664_v20  ;;  %11493 = vmatprep.subr.mxu0 %v17219_v58 }
 0x5aa   : > { %11473 = vmatmul.mubr.f32.gmra.mxu1 %v14713_v32  ;;  %11410 = vmatprep.mubr.msk.f32.mxu0 %vm11707_vm4, %v17219_v58 }
 0x5ab   : > { %11475 = vmatprep.mubr.msk.f32.mxu1 %vm11707_vm4, %v17219_v58  ;;  %11520 = vmatprep.subr.mxu1 %v17219_v58 }
 0x5ad   : > { %11411 = vmatmul.mubr.f32.gmra.mxu0 %v14686_v50 }
 0x5ae   : > { %11476 = vmatmul.mubr.f32.gmra.mxu1 %v14734_v2  ;;  %11413 = vmatprep.mubr.msk.f32.mxu0 %vm11707_vm4, %v17219_v58 }
 0x5af   : > { %11478 = vmatprep.mubr.msk.f32.mxu1 %vm11707_vm4, %v17219_v58 }
 0x5b1   : > { %11414 = vmatmul.mubr.f32.gmra.mxu0 %v14707_v61 }
 0x5b2   : > { %11479 = vmatmul.mubr.f32.gmra.mxu1 %v14755_v42  ;;  %11416 = vmatprep.mubr.msk.f32.mxu0 %vm11707_vm4, %v17219_v58 }
 0x5b3   : > { %11481 = vmatprep.mubr.msk.f32.mxu1 %vm11707_vm4, %v17219_v58 }
 0x5b5   : > { %11417 = vmatmul.mubr.f32.gmra.mxu0 %v14731_v45 }
 0x5b6   : > { %11482 = vmatmul.mubr.f32.gmra.mxu1 %v14776_v59  ;;  %11419 = vmatprep.mubr.msk.f32.mxu0 %vm11707_vm4, %v17219_v58 }
 0x5b7   : > { %11484 = vmatprep.mubr.msk.f32.mxu1 %vm11707_vm4, %v17219_v58 }
 0x5b9   : > { %11420 = vmatmul.mubr.f32.gmra.mxu0 %v14752_v53 }
 0x5ba   : > { %11485 = vmatmul.mubr.f32.gmra.mxu1 %v14797_v28  ;;  %11422 = vmatprep.mubr.msk.f32.mxu0 %vm11707_vm4, %v17219_v58 }
 0x5bb   : > { %11487 = vmatprep.mubr.msk.f32.mxu1 %vm11707_vm4, %v17219_v58 }
 0x5bd   : > { %11423 = vmatmul.mubr.f32.gmra.mxu0 %v14773_v48 }
 0x5be   : > { %11488 = vmatmul.mubr.f32.gmra.mxu1 %v14818_v6  ;;  %11425 = vmatprep.mubr.msk.f32.mxu0 %vm11707_vm4, %v17219_v58 }
 0x5bf   : > { %11490 = vmatprep.mubr.msk.f32.mxu1 %vm11707_vm4, %v17219_v58 }
 0x5c1   : > { %11426 = vmatmul.mubr.f32.gmra.mxu0 %v14794_v56 }
 0x5c2   : > { %11491 = vmatmul.mubr.f32.gmra.mxu1 %v4943_v49  ;;  %11428 = vmatprep.mubr.msk.f32.mxu0 %vm11707_vm4, %v17219_v58 }
 0x5c3   : > { %11538 = vmatprep.mubr.msk.f32.mxu1 %vm11707_vm4, %v17219_v58 }
 0x5c5   : > { %11429 = vmatmul.mubr.f32.gmra.mxu0 %v14815_v60 }
 0x5c6   : > { %11431 = vmatprep.mubr.msk.f32.mxu0 %vm11707_vm4, %v17219_v58 }
 0x5c9   : > { %11432 = vmatmul.mubr.f32.gmra.mxu0 %v4786_v10 }
 0x5ca   : > { %11511 = vmatprep.mubr.msk.f32.mxu0 %vm11707_vm4, %v17219_v58 }
 0x634   : > { %v4723_v20 = vpop.f32.mrf.mxu1 }
 0x636   : > { %v11350_v50 = vpop.f32.mrf.mxu1 }
 0x638   : > { %v4728_v17 = vpop.f32.mrf.mxu1 }
 0x63a   : > { %v11353_v61 = vpop.f32.mrf.mxu1 }
 0x63b   : > { %v4613_v32 = vpop.f32.mrf.mxu0 }
 0x63c   : > { %v14915_v16 = vadd.f32 %v4723_v20, %v4613_v32  ;;  %v4733_v34 = vpop.f32.mrf.mxu1 }
 0x63d   : > { %v11291_v19 = vpop.f32.mrf.mxu0 }
 0x63e   : > { %v11356_v52 = vpop.f32.mrf.mxu1 }
 0x63f   : > { %v4618_v9 = vpop.f32.mrf.mxu0 }
 0x640   : > { %v14917_v41 = vadd.f32 %v4728_v17, %v4618_v9  ;;  %v4738_v45 = vpop.f32.mrf.mxu1 }
 0x641   : > { %v11294_v2 = vpop.f32.mrf.mxu0 }
 0x642   : > { %v11359_v44 = vpop.f32.mrf.mxu1 }
 0x643   : > { %v4623_v37 = vpop.f32.mrf.mxu0 }
 0x644   : > { %v14919_v54 = vadd.f32 %v4733_v34, %v4623_v37  ;;  %v4743_v33 = vpop.f32.mrf.mxu1 }
 0x645   : > { %v11297_v38 = vpop.f32.mrf.mxu0 }
 0x646   : > { %v11362_v47 = vpop.f32.mrf.mxu1 }
 0x648   : > { %v4628_v46 = vpop.f32.mrf.mxu0 }
 0x649   : > { %v14921_v53 = vadd.f32 %v4738_v45, %v4628_v46 }
 0x64a   : > { %v4748_v42 = vpop.f32.mrf.mxu1  ;;  %v11300_v40 = vpop.f32.mrf.mxu0 }
 0x64c   : > { %v11365_v43 = vpop.f32.mrf.mxu1 }
 0x64e   : > { %v4633_v4 = vpop.f32.mrf.mxu0 }
 0x64f   : > { %v4744_v3 = vadd.f32 %v4743_v33, %v4633_v4 }
 0x650   : > { %v4753_v29 = vpop.f32.mrf.mxu1  ;;  %v11303_v63 = vpop.f32.mrf.mxu0 }
 0x652   : > { %v11368_v18 = vpop.f32.mrf.mxu1 }
 0x654   : > { %v4638_v1 = vpop.f32.mrf.mxu0 }
 0x655   : > { %v4749_v47 = vadd.f32 %v4748_v42, %v4638_v1 }
 0x656   : > { %v4758_v48 = vpop.f32.mrf.mxu1  ;;  %v11306_v59 = vpop.f32.mrf.mxu0 }
 0x658   : > { %v11371_v23 = vpop.f32.mrf.mxu1 }
 0x65a   : > { %v4643_v35 = vpop.f32.mrf.mxu0 }
 0x65b   : > { %v4754_v37 = vadd.f32 %v4753_v29, %v4643_v35 }
 0x65c   : > { %v4763_v57 = vpop.f32.mrf.mxu1  ;;  %v11309_v36 = vpop.f32.mrf.mxu0 }
 0x65e   : > { %v11374_v31 = vpop.f32.mrf.mxu1 }
 0x660   : > { %v4648_v0 = vpop.f32.mrf.mxu0 }
 0x661   : > { %v4759_v45 = vadd.f32 %v4758_v48, %v4648_v0  ;;  %v9003_v48 = vld [vmem:[%s16953_s6] ss:$0 sm:$0xff] }
 0x662   : > { %v14923_v12 = vpop.f32.mrf.mxu1  ;;  %v11312_v55 = vpop.f32.mrf.mxu0 }
 0x664   : > { %v11468_v56 = vpop.f32.mrf.mxu1 }
 0x665   : > { %v4653_v28 = vpop.f32.mrf.mxu0 }
 0x666   : > { %v14925_v27 = vpop.f32.mrf.mxu1  ;;  %v4764_v46 = vadd.f32 %v4763_v57, %v4653_v28 }
 0x667   : > { %v11315_v22 = vpop.f32.mrf.mxu0 }
 0x668   : > { %v11471_v11 = vpop.f32.mrf.mxu1 }
 0x669   : > { %v4854_v24 = vpop.f32.mrf.mxu0 }
 0x66a   : > { %v5029_v15 = vpop.f32.mrf.mxu1 }
 0x66b   : > { %v11409_v13 = vpop.f32.mrf.mxu0 }
 0x66c   : > { %v11474_v51 = vpop.f32.mrf.mxu1 }
 0x66d   : > { %v4859_v60 = vpop.f32.mrf.mxu0 }
 0x66e   : > { %v5034_v6 = vpop.f32.mrf.mxu1  ;;  %v4899_v28 = vadd.f32 %v4859_v60, %v14917_v41 }
 0x66f   : > { %v11412_v26 = vpop.f32.mrf.mxu0 }
 0x670   : > { %v11477_v5 = vpop.f32.mrf.mxu1  ;;  %v5064_v41 = vadd.f32 %v14925_v27, %v4899_v28 }
 0x671   : > { %v4864_v21 = vpop.f32.mrf.mxu0 }
 0x672   : > { %v5039_v14 = vpop.f32.mrf.mxu1  ;;  %v4900_v42 = vadd.f32 %v4864_v21, %v14919_v54  ;;  %v4898_v54 = vadd.f32 %v4854_v24, %v14915_v16  ;;  %v5080_v27 = vadd.f32 %v9003_v48, %v5064_v41 }
 0x673   : > { %v11415_v25 = vpop.f32.mrf.mxu0 }
 0x674   : > { %v11480_v39 = vpop.f32.mrf.mxu1  ;;  %v5063_v16 = vadd.f32 %v14923_v12, %v4898_v54  ;;  %v14974_v21 = vmax.f32 %v5080_v27, 0.0  ;;  %v9007_v25 = vld [vmem:[%s16954_s7 + $0x18] sm:$0xff] }
 0x675   : > { %v4869_v49 = vpop.f32.mrf.mxu0  ;;  %v5097_v39 = vld [vmem:[%s16954_s7] sm:$0xff] }
 0x676   : > { %v5044_v10 = vpop.f32.mrf.mxu1  ;;  %v4901_v0 = vadd.f32 %v4869_v49, %v14921_v53  ;;  %v5065_v53 = vadd.f32 %v5029_v15, %v4900_v42  ;;  %v5079_v12 = vadd.f32 %v9003_v48, %v5063_v16  ;;  %v9028_v49 = vld [vmem:[%s16955_s8 + $0xf8] sm:$0xff]  ;;  %v9054_v16 = vld [vmem:[%s16955_s8 + $0x168] sm:$0xff] }
 0x677   : > { %v11418_v30 = vpop.f32.mrf.mxu0 }
 0x678   : > { %v11483_v7 = vpop.f32.mrf.mxu1  ;;  %v5081_v24 = vadd.f32 %v9003_v48, %v5065_v53  ;;  %v9008_v30 = vld [vmem:[%s16954_s7 + $0x20] sm:$0xff] }
 0x679   : > { %v4874_v62 = vpop.f32.mrf.mxu0  ;;  %v5098_v7 = vld [vmem:[%s16954_s7 + $0x8] sm:$0xff] }
 0x67a   : > { %v5049_v8 = vpop.f32.mrf.mxu1  ;;  %v4902_v23 = vadd.f32 %v4874_v62, %v4744_v3  ;;  %v5066_v3 = vadd.f32 %v5034_v6, %v4901_v0  ;;  %v14968_v5 = vmax.f32 %v5081_v24, 0.0  ;;  %v9026_v62 = vld [vmem:[%s16955_s8 + $0xe8] sm:$0xff]  ;;  %v5192_v0 = vld [vmem:[%s16955_s8 + $0x10] sm:$0xff] }
 0x67b   : > { %v11421_v20 = vpop.f32.mrf.mxu0 }
 0x67c   : > { %v11486_v50 = vpop.f32.mrf.mxu1  ;;  %v5067_v1 = vadd.f32 %v5039_v14, %v4902_v23  ;;  %v5082_v60 = vadd.f32 %v9003_v48, %v5066_v3  ;;  %v14980_v14 = vmax.f32 %v5079_v12, 0.0  ;;  %v9009_v20 = vld [vmem:[%s16954_s7 + $0x28] sm:$0xff]  ;;  %v5196_v23 = vld [vmem:[%s16955_s8 + $0x30] sm:$0xff]  ;;  %v9053_v12 = vld [vmem:[%s16955_s8 + $0x160] sm:$0xff] }
 0x67d   : > { %v4879_v17 = vpop.f32.mrf.mxu0  ;;  %v5099_v50 = vld [vmem:[%s16954_s7 + $0x10] sm:$0xff] }
 0x67e   : > { %v5054_v61 = vpop.f32.mrf.mxu1  ;;  %v4903_v4 = vadd.f32 %v4879_v17, %v4749_v47  ;;  %v5083_v13 = vadd.f32 %v9003_v48, %v5067_v1  ;;  %v14962_v26 = vmax.f32 %v5082_v60, 0.0  ;;  %v9024_v17 = vld [vmem:[%s16955_s8 + $0xd8] sm:$0xff]  ;;  %v5204_v47 = vld [vmem:[%s16955_s8 + $0x70] sm:$0xff] }
 0x67f   : > { %v11424_v32 = vpop.f32.mrf.mxu0 }
 0x680   : > { %v11489_v34 = vpop.f32.mrf.mxu1  ;;  %v5068_v29 = vadd.f32 %v5044_v10, %v4903_v4  ;;  %v14956_v15 = vmax.f32 %v5083_v13, 0.0  ;;  %v9027_v10 = vld [vmem:[%s16955_s8 + $0xf0] sm:$0xff]  ;;  %v9022_v32 = vld [vmem:[%s16955_s8 + $0xc8] sm:$0xff] }
 0x681   : > { %v4884_v19 = vpop.f32.mrf.mxu0  ;;  %v9021_v34 = vld [vmem:[%s16955_s8 + $0xc0] sm:$0xff]  ;;  %v5200_v4 = vld [vmem:[%s16955_s8 + $0x50] sm:$0xff] }
 0x682   : > { %v5059_v52 = vpop.f32.mrf.mxu1  ;;  %v4904_v40 = vadd.f32 %v4884_v19, %v4754_v37  ;;  %v5084_v22 = vadd.f32 %v9003_v48, %v5068_v29  ;;  %v9020_v19 = vld [vmem:[%s16955_s8 + $0xb8] sm:$0xff]  ;;  %v9014_v37 = vld [vmem:[%s16955_s8 + $0x88] sm:$0xff] }
 0x683   : > { %v11427_v9 = vpop.f32.mrf.mxu0  ;;  %v5191_v29 = vld [vmem:[%s16955_s8 + $0x8] sm:$0xff] }
 0x684   : > { %v11492_v2 = vpop.f32.mrf.mxu1  ;;  %v5069_v36 = vadd.f32 %v5049_v8, %v4904_v40  ;;  %v14949_v6 = vmax.f32 %v5084_v22, 0.0  ;;  %v9025_v8 = vld [vmem:[%s16955_s8 + $0xe0] sm:$0xff]  ;;  %v9018_v9 = vld [vmem:[%s16955_s8 + $0xa8] sm:$0xff] }
 0x685   : > { %v4889_v44 = vpop.f32.mrf.mxu0  ;;  %v9016_v2 = vld [vmem:[%s16955_s8 + $0x98] sm:$0xff]  ;;  %v5202_v40 = vld [vmem:[%s16955_s8 + $0x60] sm:$0xff] }
 0x686   : > { %v4905_v33 = vadd.f32 %v4889_v44, %v4759_v45  ;;  %v5085_v57 = vadd.f32 %v9003_v48, %v5069_v36  ;;  %v9017_v45 = vld [vmem:[%s16955_s8 + $0xa0] sm:$0xff]  ;;  %v9015_v44 = vld [vmem:[%s16955_s8 + $0x90] sm:$0xff]  ;;  %v5195_v36 = vld [vmem:[%s16955_s8 + $0x28] sm:$0xff] }
 0x687   : > { %v11430_v38 = vpop.f32.mrf.mxu0 }
 0x688   : > { %v5070_v63 = vadd.f32 %v5054_v61, %v4905_v33  ;;  %v14942_v51 = vmax.f32 %v5085_v57, 0.0  ;;  %v9023_v61 = vld [vmem:[%s16955_s8 + $0xd0] sm:$0xff]  ;;  %v9013_v33 = vld [vmem:[%s16955_s8 + $0x80] sm:$0xff]  ;;  %v5205_v38 = vld [vmem:[%s16955_s8 + $0x78] sm:$0xff] }
 0x689   : > { %v4894_v43 = vpop.f32.mrf.mxu0  ;;  %v9055_v57 = vld [vmem:[%s16955_s8 + $0x170] sm:$0xff] }
 0x68a   : > { %v4906_v18 = vadd.f32 %v4894_v43, %v4764_v46  ;;  %v5086_v35 = vadd.f32 %v9003_v48, %v5070_v63  ;;  %v5203_v46 = vld [vmem:[%s16955_s8 + $0x68] sm:$0xff]  ;;  %v5201_v43 = vld [vmem:[%s16955_s8 + $0x58] sm:$0xff] }
 0x68b   : > { %v11433_v59 = vpop.f32.mrf.mxu0  ;;  %v5199_v63 = vld [vmem:[%s16955_s8 + $0x48] sm:$0xff] }
 0x68c   : > { %v5071_v31 = vadd.f32 %v5059_v52, %v4906_v18  ;;  %v14935_v11 = vmax.f32 %v5086_v35, 0.0  ;;  %v9019_v52 = vld [vmem:[%s16955_s8 + $0xb0] sm:$0xff]  ;;  %v5198_v18 = vld [vmem:[%s16955_s8 + $0x40] sm:$0xff]  ;;  %v5197_v59 = vld [vmem:[%s16955_s8 + $0x38] sm:$0xff] }
 0x68d   : > { %v5190_v35 = vld [vmem:[%s16955_s8] sm:$0xff] }
 0x68e   : > { %v5087_v55 = vadd.f32 %v9003_v48, %v5071_v31  ;;  %v5194_v31 = vld [vmem:[%s16955_s8 + $0x20] sm:$0xff]  ;;  %v5193_v48 = vld [vmem:[%s16955_s8 + $0x18] sm:$0xff] }
 0x690   : > { %v14932_v56 = vmax.f32 %v5087_v55, 0.0  ;;  %v9056_v55 = vld [vmem:[%s16955_s8 + $0x178] sm:$0xff] }
 0x692   : > { %11494 = vmatpush3.msra.mxu0 %v14932_v56  ;;  %11521 = vmatpush3.msra.mxu1 %v14932_v56 }
 0x693   : > { %11495 = vmatprep.subr.mxu0 %v17219_v58  ;;  %11522 = vmatprep.subr.mxu1 %v17219_v58 }
 0x694   : > { %11496 = vmatpush3.msra.mxu0 %v14935_v11  ;;  %11523 = vmatpush3.msra.mxu1 %v14935_v11 }
 0x695   : > { %11497 = vmatprep.subr.mxu0 %v17219_v58  ;;  %11524 = vmatprep.subr.mxu1 %v17219_v58 }
 0x696   : > { %11498 = vmatpush3.msra.mxu0 %v14942_v51  ;;  %11525 = vmatpush3.msra.mxu1 %v14942_v51 }
 0x697   : > { %11499 = vmatprep.subr.mxu0 %v17219_v58  ;;  %11526 = vmatprep.subr.mxu1 %v17219_v58 }
 0x698   : > { %11500 = vmatpush3.msra.mxu0 %v14949_v6  ;;  %11527 = vmatpush3.msra.mxu1 %v14949_v6 }
 0x699   : > { %11501 = vmatprep.subr.mxu0 %v17219_v58  ;;  %11528 = vmatprep.subr.mxu1 %v17219_v58 }
 0x69a   : > { %11502 = vmatpush3.msra.mxu0 %v14956_v15  ;;  %11529 = vmatpush3.msra.mxu1 %v14956_v15 }
 0x69b   : > { %11503 = vmatprep.subr.mxu0 %v17219_v58  ;;  %11530 = vmatprep.subr.mxu1 %v17219_v58 }
 0x69c   : > { %11504 = vmatpush3.msra.mxu0 %v14962_v26  ;;  %11531 = vmatpush3.msra.mxu1 %v14962_v26 }
 0x69d   : > { %11505 = vmatprep.subr.mxu0 %v17219_v58  ;;  %11532 = vmatprep.subr.mxu1 %v17219_v58 }
 0x69e   : > { %11506 = vmatpush3.msra.mxu0 %v14968_v5  ;;  %11533 = vmatpush3.msra.mxu1 %v14968_v5 }
 0x69f   : > { %11507 = vmatprep.subr.mxu0 %v17219_v58  ;;  %11534 = vmatprep.subr.mxu1 %v17219_v58 }
 0x6a0   : > { %11508 = vmatpush3.msra.mxu0 %v14974_v21  ;;  %11535 = vmatpush3.msra.mxu1 %v14974_v21 }
 0x6a1   : > { %11509 = vmatprep.subr.mxu0 %v17219_v58  ;;  %11536 = vmatprep.subr.mxu1 %v17219_v58 }
 0x6a2   : > { %11510 = vmatpush3.msra.mxu0 %v14980_v14  ;;  %11537 = vmatpush3.msra.mxu1 %v14980_v14 }
 0x6a3   : > { %11539 = vmatmul.mubr.msk.f32.vlgmr.msra.gmra.mxu1 %vm5100_vm7, %v9007_v25  ;;  %11512 = vmatmul.mubr.msk.f32.vlgmr.msra.gmra.mxu0 %vm5100_vm7, %v5097_v39  ;;  %v9035_v25 = vld [vmem:[%s16954_s7 + $0x30] sm:$0xff]  ;;  %v9036_v39 = vld [vmem:[%s16954_s7 + $0x38] sm:$0xff] }
 0x6a4   : > { %11541 = vmatprep.mubr.msk.f32.mxu1 %vm11707_vm4, %v17219_v58  ;;  %11514 = vmatprep.mubr.msk.f32.mxu0 %vm11707_vm4, %v17219_v58 }
 0x6a5   : > { %5341 = vmatprep.subr.mxu0 %v9028_v49  ;;  %5433 = vmatprep.subr.mxu1 %v5205_v38  ;;  %v9037_v49 = vld [vmem:[%s16954_s7 + $0x40] sm:$0xff] }
 0x6a6   : > { %5342 = vmatpush1.msra.mxu0 %v9027_v10  ;;  %5434 = vmatpush1.msra.mxu1 %v5204_v47  ;;  %v9052_v10 = vld [vmem:[%s16955_s8 + $0x158] sm:$0xff] }
 0x6a7   : > { %11542 = vmatmul.mubr.msk.f32.gmra.mxu1 %vm5100_vm7, %v9008_v30  ;;  %11515 = vmatmul.mubr.msk.f32.gmra.mxu0 %vm5100_vm7, %v5098_v7  ;;  %v9051_v30 = vld [vmem:[%s16955_s8 + $0x150] sm:$0xff]  ;;  %v9050_v7 = vld [vmem:[%s16955_s8 + $0x148] sm:$0xff] }
 0x6a8   : > { %11544 = vmatprep.mubr.msk.f32.mxu1 %vm11707_vm4, %v17219_v58  ;;  %11517 = vmatprep.mubr.msk.f32.mxu0 %vm11707_vm4, %v17219_v58 }
 0x6a9   : > { %5343 = vmatprep.subr.mxu0 %v9026_v62  ;;  %5435 = vmatprep.subr.mxu1 %v5203_v46  ;;  %v9049_v62 = vld [vmem:[%s16955_s8 + $0x140] sm:$0xff] }
 0x6aa   : > { %5344 = vmatpush1.msra.mxu0 %v9025_v8  ;;  %5436 = vmatpush1.msra.mxu1 %v5202_v40  ;;  %v9048_v8 = vld [vmem:[%s16955_s8 + $0x138] sm:$0xff] }
 0x6ab   : > { %11545 = vmatmul.mubr.msk.f32.gmra.mxu1 %vm5100_vm7, %v9009_v20  ;;  %11518 = vmatmul.mubr.msk.f32.gmra.mxu0 %vm5100_vm7, %v5099_v50  ;;  %v9047_v20 = vld [vmem:[%s16955_s8 + $0x130] sm:$0xff]  ;;  %v9046_v50 = vld [vmem:[%s16955_s8 + $0x128] sm:$0xff] }
 0x6ac   : > { %5345 = vmatprep.subr.mxu0 %v9024_v17  ;;  %5389 = vmatprep.mubr.f32.mxu0 %v17219_v58  ;;  %v9045_v17 = vld [vmem:[%s16955_s8 + $0x120] sm:$0xff] }
 0x6ad   : > { %5346 = vmatpush1.msra.mxu0 %v9023_v61  ;;  %5481 = vmatprep.mubr.f32.mxu1 %v17219_v58  ;;  %v9044_v61 = vld [vmem:[%s16955_s8 + $0x118] sm:$0xff] }
 0x6ae   : > { %5347 = vmatprep.subr.mxu0 %v9022_v32  ;;  %5437 = vmatprep.subr.mxu1 %v5201_v43  ;;  %v9043_v32 = vld [vmem:[%s16955_s8 + $0x110] sm:$0xff] }
 0x6af   : > { %5348 = vmatpush1.msra.mxu0 %v9021_v34  ;;  %5438 = vmatpush1.msra.mxu1 %v5200_v4  ;;  %v9042_v34 = vld [vmem:[%s16955_s8 + $0x108] sm:$0xff] }
 0x6b0   : > { %5349 = vmatprep.subr.mxu0 %v9020_v19  ;;  %5439 = vmatprep.subr.mxu1 %v5199_v63  ;;  %v9041_v19 = vld [vmem:[%s16955_s8 + $0x100] sm:$0xff] }
 0x6b1   : > { %5350 = vmatpush1.msra.mxu0 %v9019_v52  ;;  %5440 = vmatpush1.msra.mxu1 %v5198_v18 }
 0x6b2   : > { %5351 = vmatprep.subr.mxu0 %v9018_v9  ;;  %5441 = vmatprep.subr.mxu1 %v5197_v59 }
 0x6b3   : > { %5352 = vmatpush1.msra.mxu0 %v9017_v45  ;;  %5442 = vmatpush1.msra.mxu1 %v5196_v23 }
 0x6b4   : > { %5353 = vmatprep.subr.mxu0 %v9016_v2  ;;  %5443 = vmatprep.subr.mxu1 %v5195_v36 }
 0x6b5   : > { %5354 = vmatpush1.msra.mxu0 %v9015_v44  ;;  %5444 = vmatpush1.msra.mxu1 %v5194_v31 }
 0x6b6   : > { %5355 = vmatprep.subr.mxu0 %v9014_v37  ;;  %5445 = vmatprep.subr.mxu1 %v5193_v48 }
 0x6b7   : > { %5356 = vmatpush1.msra.mxu0 %v9013_v33  ;;  %5446 = vmatpush1.msra.mxu1 %v5192_v0  ;;  %v9077_v0 = vld [vmem:[%s16955_s8 + $0x1d8] sm:$0xff] }
 0x6b8   : > { %11547 = vmatprep.subr.mxu0 %v17219_v58  ;;  %5447 = vmatprep.subr.mxu1 %v5191_v29  ;;  %v9076_v29 = vld [vmem:[%s16955_s8 + $0x1d0] sm:$0xff] }
 0x6b9   : > { %5448 = vmatpush1.msra.mxu1 %v5190_v35  ;;  %v9075_v35 = vld [vmem:[%s16955_s8 + $0x1c8] sm:$0xff] }
 0x6ba   : > { %5635 = vmatprep.subr.mxu1 %v9056_v55  ;;  %v9074_v55 = vld [vmem:[%s16955_s8 + $0x1c0] sm:$0xff] }
 0x763   : > { %v5285_v42 = vpop.f32.mrf.mxu1  ;;  %v5176_v1 = vpop.f32.mrf.mxu0 }
 0x764   : > { %9029 = vmatmul.mubr.msk.f32.vlgmr.msra.gmra.mxu0 %vm707_vm1, %v5285_v42  ;;  %9032 = vmatmul.mubr.msk.f32.vlgmr.msra.gmra.mxu1 %vm707_vm1, %v5176_v1  ;;  %v9073_v42 = vld [vmem:[%s16955_s8 + $0x1b8] sm:$0xff]  ;;  %v9072_v1 = vld [vmem:[%s16955_s8 + $0x1b0] sm:$0xff] }
 0x765   : > { %11548 = vmatpush3.msra.mxu0 %v14932_v56  ;;  %v11540_v28 = vpop.f32.mrf.mxu1  ;;  %5395 = vmatprep.mubr.f32.mxu0 %v17219_v58  ;;  %v11513_v3 = vpop.f32.mrf.mxu0 }
 0x766   : > { %11549 = vmatprep.subr.mxu0 %v17219_v58  ;;  %5487 = vmatprep.mubr.f32.mxu1 %v17219_v58  ;;  %v9070_v28 = vld [vmem:[%s16955_s8 + $0x1a0] sm:$0xff]  ;;  %v9069_v3 = vld [vmem:[%s16955_s8 + $0x198] sm:$0xff] }
 0x767   : > { %11550 = vmatpush3.msra.mxu0 %v14935_v11  ;;  %v5290_v22 = vpop.f32.mrf.mxu1  ;;  %v5181_v54 = vpop.f32.mrf.mxu0  ;;  %5636 = vmatpush1.msra.mxu1 %v9055_v57  ;;  %v9071_v57 = vld [vmem:[%s16955_s8 + $0x1a8] sm:$0xff] }
 0x768   : > { %11551 = vmatprep.subr.mxu0 %v17219_v58  ;;  %9030 = vmatmul.mubr.msk.f32.gmra.mxu0 %vm707_vm1, %v5290_v22  ;;  %v9068_v22 = vld [vmem:[%s16955_s8 + $0x190] sm:$0xff] }
 0x769   : > { %11552 = vmatpush3.msra.mxu0 %v14942_v51  ;;  %v11543_v53 = vpop.f32.mrf.mxu1  ;;  %5401 = vmatprep.mubr.f32.mxu0 %v17219_v58  ;;  %v11516_v13 = vpop.f32.mrf.mxu0 }
 0x76a   : > { %11553 = vmatprep.subr.mxu0 %v17219_v58  ;;  %9033 = vmatmul.mubr.msk.f32.gmra.mxu1 %vm707_vm1, %v5181_v54  ;;  %v9067_v54 = vld [vmem:[%s16955_s8 + $0x188] sm:$0xff]  ;;  %v9066_v53 = vld [vmem:[%s16955_s8 + $0x180] sm:$0xff]  ;;  %v5947_v13 = vld [vmem:[%s16956_s9 + $0xf8] sm:$0xff] }
 0x76b   : > { %11554 = vmatpush3.msra.mxu0 %v14949_v6  ;;  %v5295_v41 = vpop.f32.mrf.mxu1  ;;  %v5186_v60 = vpop.f32.mrf.mxu0  ;;  %5493 = vmatprep.mubr.f32.mxu1 %v17219_v58 }
 0x76c   : > { %11555 = vmatprep.subr.mxu0 %v17219_v58  ;;  %9031 = vmatmul.mubr.msk.f32.gmra.mxu0 %vm707_vm1, %v5295_v41  ;;  %v5931_v41 = vld [vmem:[%s16956_s9 + $0x78] sm:$0xff] }
 0x76d   : > { %11556 = vmatpush3.msra.mxu0 %v14956_v15  ;;  %11565 = vmatprep.mubr.msk.f32.mxu0 %vm11707_vm4, %v17219_v58  ;;  %v11546_v24 = vpop.f32.mrf.mxu1  ;;  %v11519_v27 = vpop.f32.mrf.mxu0 }
 0x76e   : > { %11557 = vmatprep.subr.mxu0 %v17219_v58  ;;  %9034 = vmatmul.mubr.msk.f32.gmra.mxu1 %vm707_vm1, %v5186_v60  ;;  %v5946_v60 = vld [vmem:[%s16956_s9 + $0xf0] sm:$0xff]  ;;  %v5945_v24 = vld [vmem:[%s16956_s9 + $0xe8] sm:$0xff]  ;;  %v9116_v27 = vld [vmem:[%s16956_s9 + $0x1f8] sm:$0xff] }
 0x76f   : > { %11558 = vmatpush3.msra.mxu0 %v14962_v26  ;;  %5637 = vmatprep.subr.mxu1 %v9054_v16  ;;  %v5930_v16 = vld [vmem:[%s16956_s9 + $0x70] sm:$0xff] }
 0x770   : > { %11559 = vmatprep.subr.mxu0 %v17219_v58  ;;  %5638 = vmatpush1.msra.mxu1 %v9053_v12  ;;  %v5929_v12 = vld [vmem:[%s16956_s9 + $0x68] sm:$0xff] }
 0x771   : > { %11560 = vmatpush3.msra.mxu0 %v14968_v5  ;;  %5683 = vmatprep.mubr.f32.mxu1 %v17219_v58 }
 0x772   : > { %11561 = vmatprep.subr.mxu0 %v17219_v58  ;;  %5639 = vmatprep.subr.mxu1 %v9052_v10  ;;  %v5927_v10 = vld [vmem:[%s16956_s9 + $0x58] sm:$0xff] }
 0x773   : > { %11562 = vmatpush3.msra.mxu0 %v14974_v21  ;;  %5640 = vmatpush1.msra.mxu1 %v9051_v30  ;;  %v5942_v30 = vld [vmem:[%s16956_s9 + $0xd0] sm:$0xff] }
 0x774   : > { %11563 = vmatprep.subr.mxu0 %v17219_v58  ;;  %5641 = vmatprep.subr.mxu1 %v9050_v7  ;;  %v5926_v7 = vld [vmem:[%s16956_s9 + $0x50] sm:$0xff] }
 0x775   : > { %11564 = vmatpush3.msra.mxu0 %v14980_v14  ;;  %5642 = vmatpush1.msra.mxu1 %v9049_v62  ;;  %v5941_v62 = vld [vmem:[%s16956_s9 + $0xc8] sm:$0xff] }
 0x776   : > { %11566 = vmatmul.mubr.msk.f32.vlgmr.msra.gmra.mxu0 %vm5100_vm7, %v9035_v25  ;;  %5643 = vmatprep.subr.mxu1 %v9048_v8  ;;  %v5944_v25 = vld [vmem:[%s16956_s9 + $0xe0] sm:$0xff]  ;;  %v5925_v8 = vld [vmem:[%s16956_s9 + $0x48] sm:$0xff] }
 0x777   : > { %11568 = vmatprep.mubr.msk.f32.mxu0 %vm11707_vm4, %v17219_v58  ;;  %5644 = vmatpush1.msra.mxu1 %v9047_v20  ;;  %v5940_v20 = vld [vmem:[%s16956_s9 + $0xc0] sm:$0xff] }
 0x778   : > { %5645 = vmatprep.subr.mxu1 %v9046_v50  ;;  %v5924_v50 = vld [vmem:[%s16956_s9 + $0x40] sm:$0xff] }
 0x779   : > { %5646 = vmatpush1.msra.mxu1 %v9045_v17  ;;  %v5939_v17 = vld [vmem:[%s16956_s9 + $0xb8] sm:$0xff] }
 0x77a   : > { %11569 = vmatmul.mubr.msk.f32.gmra.mxu0 %vm5100_vm7, %v9036_v39  ;;  %5647 = vmatprep.subr.mxu1 %v9044_v61  ;;  %v5928_v39 = vld [vmem:[%s16956_s9 + $0x60] sm:$0xff]  ;;  %v5923_v61 = vld [vmem:[%s16956_s9 + $0x38] sm:$0xff] }
 0x77b   : > { %11571 = vmatprep.mubr.msk.f32.mxu0 %vm11707_vm4, %v17219_v58  ;;  %5648 = vmatpush1.msra.mxu1 %v9043_v32  ;;  %v5938_v32 = vld [vmem:[%s16956_s9 + $0xb0] sm:$0xff] }
 0x77c   : > { %5649 = vmatprep.subr.mxu1 %v9042_v34  ;;  %v5922_v34 = vld [vmem:[%s16956_s9 + $0x30] sm:$0xff] }
 0x77d   : > { %5650 = vmatpush1.msra.mxu1 %v9041_v19  ;;  %v5937_v19 = vld [vmem:[%s16956_s9 + $0xa8] sm:$0xff] }
 0x77e   : > { %11572 = vmatmul.mubr.msk.f32.gmra.mxu0 %vm5100_vm7, %v9037_v49  ;;  %11574 = vmatprep.subr.mxu1 %v17219_v58  ;;  %v5943_v49 = vld [vmem:[%s16956_s9 + $0xd8] sm:$0xff] }
 0x77f   : > { %5891 = vmatprep.mubr.f32.mxu0 %v17219_v58 }
 0x824   : > { %v5391_v52 = vpop.f32.mrf.mxu0  ;;  %v5483_v9 = vpop.f32.mrf.mxu1 }
 0x825   : > { %v15215_v45 = vadd.f32 %v5483_v9, %v5391_v52  ;;  %v5921_v52 = vld [vmem:[%s16956_s9 + $0x28] sm:$0xff]  ;;  %v5936_v9 = vld [vmem:[%s16956_s9 + $0xa0] sm:$0xff] }
 0x826   : > { %v5393_v2 = vpop.f32.mrf.mxu0  ;;  %v5485_v44 = vpop.f32.mrf.mxu1 }
 0x827   : > { %v15217_v37 = vadd.f32 %v5485_v44, %v5393_v2  ;;  %v5920_v2 = vld [vmem:[%s16956_s9 + $0x20] sm:$0xff]  ;;  %v5935_v44 = vld [vmem:[%s16956_s9 + $0x98] sm:$0xff] }
 0x828   : > { %v5397_v33 = vpop.f32.mrf.mxu0 }
 0x82a   : > { %v5399_v38 = vpop.f32.mrf.mxu0  ;;  %v5489_v47 = vpop.f32.mrf.mxu1 }
 0x82b   : > { %v15219_v46 = vadd.f32 %v5489_v47, %v5397_v33  ;;  %v5919_v33 = vld [vmem:[%s16956_s9 + $0x18] sm:$0xff] }
 0x82c   : > { %v5491_v40 = vpop.f32.mrf.mxu1  ;;  %v5403_v4 = vpop.f32.mrf.mxu0 }
 0x82d   : > { %v15221_v43 = vadd.f32 %v5491_v40, %v5399_v38  ;;  %v5934_v38 = vld [vmem:[%s16956_s9 + $0x90] sm:$0xff] }
 0x82e   : > { %v5495_v63 = vpop.f32.mrf.mxu1  ;;  %v15225_v59 = vpop.f32.mrf.mxu0 }
 0x82f   : > { %v15223_v18 = vadd.f32 %v5495_v63, %v5403_v4 }
 0x830   : > { %v5497_v47 = vpop.f32.mrf.mxu1 }
 0x836   : > { %v5579_v23 = vpop.f32.mrf.mxu0 }
 0x837   : > { %9057 = vmatmul.mubr.msk.f32.vlgmr.msra.gmra.mxu1 %vm707_vm1, %v5579_v23 }
 0x838   : > { %11575 = vmatpush3.msra.mxu1 %v14932_v56  ;;  %v11567_v36 = vpop.f32.mrf.mxu0  ;;  %5689 = vmatprep.mubr.f32.mxu1 %v17219_v58 }
 0x839   : > { %11576 = vmatprep.subr.mxu1 %v17219_v58 }
 0x83a   : > { %11577 = vmatpush3.msra.mxu1 %v14935_v11  ;;  %v5584_v31 = vpop.f32.mrf.mxu0 }
 0x83b   : > { %11578 = vmatprep.subr.mxu1 %v17219_v58  ;;  %9058 = vmatmul.mubr.msk.f32.gmra.mxu1 %vm707_vm1, %v5584_v31 }
 0x83c   : > { %11579 = vmatpush3.msra.mxu1 %v14942_v51  ;;  %v11570_v48 = vpop.f32.mrf.mxu0  ;;  %5695 = vmatprep.mubr.f32.mxu1 %v17219_v58  ;;  %v9060_v51 = vld [vmem:[%s16954_s7 + $0x48] sm:$0xff] }
 0x83d   : > { %11580 = vmatprep.subr.mxu1 %v17219_v58 }
 0x83e   : > { %11581 = vmatpush3.msra.mxu1 %v14949_v6  ;;  %v5589_v56 = vpop.f32.mrf.mxu0  ;;  %v9061_v6 = vld [vmem:[%s16954_s7 + $0x50] sm:$0xff] }
 0x83f   : > { %11582 = vmatprep.subr.mxu1 %v17219_v58  ;;  %9059 = vmatmul.mubr.msk.f32.gmra.mxu1 %vm707_vm1, %v5589_v56 }
 0x840   : > { %11583 = vmatpush3.msra.mxu1 %v14956_v15  ;;  %11592 = vmatprep.mubr.msk.f32.mxu1 %vm11707_vm4, %v17219_v58  ;;  %v11573_v11 = vpop.f32.mrf.mxu0  ;;  %v9062_v15 = vld [vmem:[%s16954_s7 + $0x58] sm:$0xff] }
 0x841   : > { %11584 = vmatprep.subr.mxu1 %v17219_v58 }
 0x842   : > { %11585 = vmatpush3.msra.mxu1 %v14962_v26  ;;  %v9081_v26 = vld [vmem:[%s16955_s8 + $0x1f8] sm:$0xff] }
 0x843   : > { %11586 = vmatprep.subr.mxu1 %v17219_v58  ;;  %5843 = vmatprep.subr.mxu0 %v9081_v26 }
 0x844   : > { %11587 = vmatpush3.msra.mxu1 %v14968_v5  ;;  %v9080_v5 = vld [vmem:[%s16955_s8 + $0x1f0] sm:$0xff] }
 0x845   : > { %11588 = vmatprep.subr.mxu1 %v17219_v58  ;;  %5844 = vmatpush1.msra.mxu0 %v9080_v5  ;;  %v9098_v5 = vld [vmem:[%s16956_s9 + $0x168] sm:$0xff] }
 0x846   : > { %11589 = vmatpush3.msra.mxu1 %v14974_v21  ;;  %v9079_v21 = vld [vmem:[%s16955_s8 + $0x1e8] sm:$0xff] }
 0x847   : > { %11590 = vmatprep.subr.mxu1 %v17219_v58  ;;  %5845 = vmatprep.subr.mxu0 %v9079_v21 }
 0x848   : > { %11591 = vmatpush3.msra.mxu1 %v14980_v14  ;;  %v9078_v14 = vld [vmem:[%s16955_s8 + $0x1e0] sm:$0xff] }
 0x849   : > { %11593 = vmatmul.mubr.msk.f32.vlgmr.msra.gmra.mxu1 %vm5100_vm7, %v9060_v51  ;;  %5846 = vmatpush1.msra.mxu0 %v9078_v14  ;;  %v5498_v51 = vadd.f32 %v5497_v47, %v15225_v59  ;;  %v9114_v59 = vld [vmem:[%s16956_s9 + $0x1e8] sm:$0xff]  ;;  %v9113_v14 = vld [vmem:[%s16956_s9 + $0x1e0] sm:$0xff]  ;;  %v9164_v47 = vld [vmem:[%s16956_s9 + $0x378] sm:$0xff] }
 0x84a   : > { %11595 = vmatprep.mubr.msk.f32.mxu1 %vm11707_vm4, %v17219_v58  ;;  %5847 = vmatprep.subr.mxu0 %v9077_v0  ;;  %v9097_v0 = vld [vmem:[%s16956_s9 + $0x160] sm:$0xff] }
 0x84b   : > { %5848 = vmatpush1.msra.mxu0 %v9076_v29  ;;  %10297 = vmatprep.subr.mxu1 %v5947_v13  ;;  %v9108_v13 = vld [vmem:[%s16956_s9 + $0x1b8] sm:$0xff] }
 0x84c   : > { %5849 = vmatprep.subr.mxu0 %v9075_v35  ;;  %10298 = vmatpush3.msra.mxu1 %v5931_v41  ;;  %v9112_v35 = vld [vmem:[%s16956_s9 + $0x1d8] sm:$0xff] }
 0x84d   : > { %11596 = vmatmul.mubr.msk.f32.gmra.mxu1 %vm5100_vm7, %v9061_v6  ;;  %5850 = vmatpush1.msra.mxu0 %v9074_v55  ;;  %v9096_v55 = vld [vmem:[%s16956_s9 + $0x158] sm:$0xff] }
 0x84e   : > { %11598 = vmatprep.mubr.msk.f32.mxu1 %vm11707_vm4, %v17219_v58  ;;  %5851 = vmatprep.subr.mxu0 %v9073_v42  ;;  %v9092_v41 = vld [vmem:[%s16956_s9 + $0x138] sm:$0xff] }
 0x84f   : > { %5852 = vmatpush1.msra.mxu0 %v9072_v1  ;;  %10299 = vmatprep.subr.mxu1 %v5946_v60  ;;  %v9111_v1 = vld [vmem:[%s16956_s9 + $0x1d0] sm:$0xff] }
 0x850   : > { %5853 = vmatprep.subr.mxu0 %v9071_v57  ;;  %10300 = vmatpush3.msra.mxu1 %v5930_v16  ;;  %v9095_v57 = vld [vmem:[%s16956_s9 + $0x150] sm:$0xff] }
 0x851   : > { %11599 = vmatmul.mubr.msk.f32.gmra.mxu1 %vm5100_vm7, %v9062_v15  ;;  %5854 = vmatpush1.msra.mxu0 %v9070_v28  ;;  %v9107_v60 = vld [vmem:[%s16956_s9 + $0x1b0] sm:$0xff] }
 0x852   : > { %5855 = vmatprep.subr.mxu0 %v9069_v3  ;;  %10301 = vmatprep.subr.mxu1 %v5945_v24  ;;  %v9110_v3 = vld [vmem:[%s16956_s9 + $0x1c8] sm:$0xff]  ;;  %v9091_v16 = vld [vmem:[%s16956_s9 + $0x130] sm:$0xff] }
 0x853   : > { %5856 = vmatpush1.msra.mxu0 %v9068_v22  ;;  %10302 = vmatpush3.msra.mxu1 %v5929_v12  ;;  %v9094_v22 = vld [vmem:[%s16956_s9 + $0x148] sm:$0xff] }
 0x854   : > { %5857 = vmatprep.subr.mxu0 %v9067_v54  ;;  %10303 = vmatprep.subr.mxu1 %v5944_v25  ;;  %v9109_v54 = vld [vmem:[%s16956_s9 + $0x1c0] sm:$0xff]  ;;  %v9106_v24 = vld [vmem:[%s16956_s9 + $0x1a8] sm:$0xff] }
 0x855   : > { %5858 = vmatpush1.msra.mxu0 %v9066_v53  ;;  %10304 = vmatpush3.msra.mxu1 %v5928_v39  ;;  %v9093_v53 = vld [vmem:[%s16956_s9 + $0x140] sm:$0xff]  ;;  %v9090_v12 = vld [vmem:[%s16956_s9 + $0x128] sm:$0xff] }
 0x856   : > { %10259 = vmatprep.subr.mxu0 %v9116_v27  ;;  %10305 = vmatprep.subr.mxu1 %v5943_v49  ;;  %v5918_v27 = vld [vmem:[%s16956_s9 + $0x10] sm:$0xff]  ;;  %v5933_v25 = vld [vmem:[%s16956_s9 + $0x88] sm:$0xff]  ;;  %v9105_v39 = vld [vmem:[%s16956_s9 + $0x1a0] sm:$0xff] }
 0x857   : > { %10306 = vmatpush3.msra.mxu1 %v5927_v10  ;;  %v5917_v49 = vld [vmem:[%s16956_s9 + $0x8] sm:$0xff]  ;;  %v9089_v10 = vld [vmem:[%s16956_s9 + $0x120] sm:$0xff] }
 0x858   : > { %10307 = vmatprep.subr.mxu1 %v5942_v30  ;;  %v5932_v30 = vld [vmem:[%s16956_s9 + $0x80] sm:$0xff] }
 0x859   : > { %10308 = vmatpush3.msra.mxu1 %v5926_v7  ;;  %v9104_v7 = vld [vmem:[%s16956_s9 + $0x198] sm:$0xff] }
 0x85a   : > { %10309 = vmatprep.subr.mxu1 %v5941_v62  ;;  %v5916_v62 = vld [vmem:[%s16956_s9] sm:$0xff] }
 0x85b   : > { %10310 = vmatpush3.msra.mxu1 %v5925_v8  ;;  %v9088_v8 = vld [vmem:[%s16956_s9 + $0x118] sm:$0xff] }
 0x85c   : > { %10311 = vmatprep.subr.mxu1 %v5940_v20  ;;  %v9180_v20 = vld [vmem:[%s16956_s9 + $0x3f8] sm:$0xff] }
 0x85d   : > { %10312 = vmatpush3.msra.mxu1 %v5924_v50  ;;  %v9103_v50 = vld [vmem:[%s16956_s9 + $0x190] sm:$0xff] }
 0x85e   : > { %10313 = vmatprep.subr.mxu1 %v5939_v17  ;;  %v9087_v17 = vld [vmem:[%s16956_s9 + $0x110] sm:$0xff] }
 0x85f   : > { %10314 = vmatpush3.msra.mxu1 %v5923_v61  ;;  %v9102_v61 = vld [vmem:[%s16956_s9 + $0x188] sm:$0xff] }
 0x860   : > { %10315 = vmatprep.subr.mxu1 %v5938_v32  ;;  %v9086_v32 = vld [vmem:[%s16956_s9 + $0x108] sm:$0xff] }
 0x861   : > { %10316 = vmatpush3.msra.mxu1 %v5922_v34  ;;  %v9101_v34 = vld [vmem:[%s16956_s9 + $0x180] sm:$0xff] }
 0x862   : > { %10317 = vmatprep.subr.mxu1 %v5937_v19  ;;  %v9085_v19 = vld [vmem:[%s16956_s9 + $0x100] sm:$0xff] }
 0x863   : > { %10318 = vmatpush3.msra.mxu1 %v5921_v52  ;;  %v9148_v52 = vld [vmem:[%s16956_s9 + $0x2f8] sm:$0xff] }
 0x864   : > { %10319 = vmatprep.subr.mxu1 %v5936_v9 }
 0x865   : > { %10320 = vmatpush3.msra.mxu1 %v5920_v2 }
 0x866   : > { %10321 = vmatprep.subr.mxu1 %v5935_v44 }
 0x867   : > { %10322 = vmatpush3.msra.mxu1 %v5919_v33 }
 0x868   : > { %10323 = vmatprep.subr.mxu1 %v5934_v38 }
 0x869   : > { %10324 = vmatpush3.msra.mxu1 %v5918_v27 }
 0x86a   : > { %10325 = vmatprep.subr.mxu1 %v5933_v25 }
 0x86b   : > { %10326 = vmatpush3.msra.mxu1 %v5917_v49  ;;  %v9175_v49 = vld [vmem:[%s16956_s9 + $0x3d0] sm:$0xff] }
 0x86c   : > { %10327 = vmatprep.subr.mxu1 %v5932_v30 }
 0x86d   : > { %10328 = vmatpush3.msra.mxu1 %v5916_v62  ;;  %v9146_v62 = vld [vmem:[%s16956_s9 + $0x2e8] sm:$0xff] }
 0x86e   : > { %10373 = vmatprep.subr.mxu1 %v9180_v20 }
 0x8f7   : > { %v5685_v40 = vpop.f32.mrf.mxu1 }
 0x8f8   : > { %v15400_v4 = vadd.f32 %v5685_v40, %v15215_v45 }
 0x8f9   : > { %v5687_v63 = vpop.f32.mrf.mxu1 }
 0x8fa   : > { %v15403_v23 = vadd.f32 %v5687_v63, %v15217_v37  ;;  %v9100_v37 = vld [vmem:[%s16956_s9 + $0x178] sm:$0xff]  ;;  %v9179_v63 = vld [vmem:[%s16956_s9 + $0x3f0] sm:$0xff] }
 0x8fb   : > { %v5691_v36 = vpop.f32.mrf.mxu1 }
 0x8fc   : > { %v15406_v31 = vadd.f32 %v5691_v36, %v15219_v46  ;;  %v9115_v46 = vld [vmem:[%s16956_s9 + $0x1f0] sm:$0xff] }
 0x8fd   : > { %v5693_v48 = vpop.f32.mrf.mxu1 }
 0x8fe   : > { %v15409_v56 = vadd.f32 %v5693_v48, %v15221_v43  ;;  %v9099_v43 = vld [vmem:[%s16956_s9 + $0x170] sm:$0xff] }
 0x8ff   : > { %v5697_v11 = vpop.f32.mrf.mxu1 }
 0x900   : > { %v15413_v6 = vadd.f32 %v5697_v11, %v15223_v18 }
 0x901   : > { %v5699_v45 = vpop.f32.mrf.mxu1 }
 0x902   : > { %v15415_v15 = vadd.f32 %v5699_v45, %v5498_v51 }
 0x909   : > { %v5787_v26 = vpop.f32.mrf.mxu1 }
 0x90a   : > { %9082 = vmatmul.mubr.msk.f32.vlgmr.msra.gmra.mxu0 %vm707_vm1, %v5787_v26 }
 0x90b   : > { %v11594_v18 = vpop.f32.mrf.mxu1  ;;  %5897 = vmatprep.mubr.f32.mxu0 %v17219_v58  ;;  %10260 = vmatpush3.msra.mxu0 %v9100_v37 }
 0x90c   : > { %10261 = vmatprep.subr.mxu0 %v9115_v46 }
 0x90d   : > { %v5792_v21 = vpop.f32.mrf.mxu1  ;;  %10262 = vmatpush3.msra.mxu0 %v9099_v43  ;;  %v9162_v43 = vld [vmem:[%s16956_s9 + $0x368] sm:$0xff] }
 0x90e   : > { %9083 = vmatmul.mubr.msk.f32.gmra.mxu0 %vm707_vm1, %v5792_v21  ;;  %10263 = vmatprep.subr.mxu0 %v9114_v59 }
 0x90f   : > { %v11597_v29 = vpop.f32.mrf.mxu1  ;;  %5903 = vmatprep.mubr.f32.mxu0 %v17219_v58  ;;  %10264 = vmatpush3.msra.mxu0 %v9098_v5 }
 0x910   : > { %10265 = vmatprep.subr.mxu0 %v9113_v14 }
 0x911   : > { %v5797_v42 = vpop.f32.mrf.mxu1  ;;  %10266 = vmatpush3.msra.mxu0 %v9097_v0 }
 0x912   : > { %9084 = vmatmul.mubr.msk.f32.gmra.mxu0 %vm707_vm1, %v5797_v42  ;;  %10267 = vmatprep.subr.mxu0 %v9112_v35  ;;  %v9161_v35 = vld [vmem:[%s16956_s9 + $0x360] sm:$0xff] }
 0x913   : > { %v11600_v28 = vpop.f32.mrf.mxu1  ;;  %10268 = vmatpush3.msra.mxu0 %v9096_v55 }
 0x914   : > { %10269 = vmatprep.subr.mxu0 %v9111_v1 }
 0x915   : > { %10270 = vmatpush3.msra.mxu0 %v9095_v57 }
 0x916   : > { %10271 = vmatprep.subr.mxu0 %v9110_v3 }
 0x917   : > { %10272 = vmatpush3.msra.mxu0 %v9094_v22 }
 0x918   : > { %10273 = vmatprep.subr.mxu0 %v9109_v54 }
 0x919   : > { %10274 = vmatpush3.msra.mxu0 %v9093_v53 }
 0x91a   : > { %10275 = vmatprep.subr.mxu0 %v9108_v13  ;;  %v9132_v13 = vld [vmem:[%s16956_s9 + $0x278] sm:$0xff] }
 0x91b   : > { %10276 = vmatpush3.msra.mxu0 %v9092_v41  ;;  %v9176_v41 = vld [vmem:[%s16956_s9 + $0x3d8] sm:$0xff] }
 0x91c   : > { %10277 = vmatprep.subr.mxu0 %v9107_v60 }
 0x91d   : > { %10278 = vmatpush3.msra.mxu0 %v9091_v16 }
 0x91e   : > { %10279 = vmatprep.subr.mxu0 %v9106_v24 }
 0x91f   : > { %10280 = vmatpush3.msra.mxu0 %v9090_v12  ;;  %v9160_v12 = vld [vmem:[%s16956_s9 + $0x358] sm:$0xff] }
 0x920   : > { %10281 = vmatprep.subr.mxu0 %v9105_v39  ;;  %v9131_v39 = vld [vmem:[%s16956_s9 + $0x270] sm:$0xff] }
 0x921   : > { %10282 = vmatpush3.msra.mxu0 %v9089_v10 }
 0x922   : > { %10283 = vmatprep.subr.mxu0 %v9104_v7 }
 0x923   : > { %10284 = vmatpush3.msra.mxu0 %v9088_v8 }
 0x924   : > { %10285 = vmatprep.subr.mxu0 %v9103_v50  ;;  %v9159_v50 = vld [vmem:[%s16956_s9 + $0x350] sm:$0xff] }
 0x925   : > { %10286 = vmatpush3.msra.mxu0 %v9087_v17  ;;  %v9130_v17 = vld [vmem:[%s16956_s9 + $0x268] sm:$0xff] }
 0x926   : > { %10287 = vmatprep.subr.mxu0 %v9102_v61  ;;  %v9174_v61 = vld [vmem:[%s16956_s9 + $0x3c8] sm:$0xff] }
 0x927   : > { %10288 = vmatpush3.msra.mxu0 %v9086_v32  ;;  %v9145_v32 = vld [vmem:[%s16956_s9 + $0x2e0] sm:$0xff] }
 0x928   : > { %10289 = vmatprep.subr.mxu0 %v9101_v34  ;;  %v9158_v34 = vld [vmem:[%s16956_s9 + $0x348] sm:$0xff] }
 0x929   : > { %10290 = vmatpush3.msra.mxu0 %v9085_v19  ;;  %v9129_v19 = vld [vmem:[%s16956_s9 + $0x260] sm:$0xff] }
 0x92a   : > { %10335 = vmatprep.subr.mxu0 %v9148_v52  ;;  %v9173_v52 = vld [vmem:[%s16956_s9 + $0x3c0] sm:$0xff] }
 0x9ca   : > { %v5893_v9 = vpop.f32.mrf.mxu0 }
 0x9cb   : > { %v5910_v2 = vadd.f32 %v5893_v9, %v15400_v4  ;;  %v9163_v4 = vld [vmem:[%s16956_s9 + $0x370] sm:$0xff]  ;;  %v9144_v9 = vld [vmem:[%s16956_s9 + $0x2d8] sm:$0xff] }
 0x9cc   : > { %v5895_v44 = vpop.f32.mrf.mxu0 }
 0x9cd   : > { %v5911_v33 = vadd.f32 %v5895_v44, %v15403_v23  ;;  %v5987_v36 = vrot.slane %v5910_v2, 1  ;;  %v6184_v37 = vrot.slane %v5910_v2, 4  ;;  %v6308_v26 = vrot.slane %v5910_v2, 5  ;;  %v9128_v44 = vld [vmem:[%s16956_s9 + $0x258] sm:$0xff] }
 0x9ce   : > { %v5899_v38 = vpop.f32.mrf.mxu0 }
 0x9cf   : > { %v5912_v40 = vadd.f32 %v5899_v38, %v15406_v31  ;;  %6140 = vmatprep.mubr.f32.mxu1 %v5911_v33  ;;  %v9178_v31 = vld [vmem:[%s16956_s9 + $0x3e8] sm:$0xff]  ;;  %v5990_v18 = vrot.slane %v5911_v33, 1  ;;  %v6311_v59 = vrot.slane %v5911_v33, 5  ;;  %v6187_v55 = vrot.slane %v5911_v33, 4  ;;  %v9172_v33 = vld [vmem:[%s16956_s9 + $0x3b8] sm:$0xff]  ;;  %v9143_v38 = vld [vmem:[%s16956_s9 + $0x2d0] sm:$0xff] }
 0x9d0   : > { %v5901_v48 = vpop.f32.mrf.mxu0  ;;  %6141 = vmatmul.mubr.f32.vlgmr.msra.gmra.mxu1 %v5910_v2  ;;  %v9157_v2 = vld [vmem:[%s16956_s9 + $0x340] sm:$0xff] }
 0x9d1   : > { %v5988_v23 = vrot.slane %v5912_v40, 1  ;;  %v6185_v11 = vrot.slane %v5912_v40, 4  ;;  %v6309_v51 = vrot.slane %v5912_v40, 5  ;;  %v5913_v45 = vadd.f32 %v5901_v48, %v15409_v56  ;;  %10374 = vmatpush3.msra.mxu1 %v9164_v47  ;;  %v9177_v56 = vld [vmem:[%s16956_s9 + $0x3e0] sm:$0xff]  ;;  %v9156_v47 = vld [vmem:[%s16956_s9 + $0x338] sm:$0xff]  ;;  %v9155_v48 = vld [vmem:[%s16956_s9 + $0x330] sm:$0xff] }
 0x9d2   : > { %10375 = vmatprep.subr.mxu1 %v9179_v63  ;;  %v5905_v46 = vpop.f32.mrf.mxu0  ;;  %v9171_v63 = vld [vmem:[%s16956_s9 + $0x3b0] sm:$0xff] }
 0x9d3   : > { %v5914_v5 = vadd.f32 %v5905_v46, %v15413_v6  ;;  %10376 = vmatpush3.msra.mxu1 %v9163_v4  ;;  %6145 = vmatprep.mubr.f32.mxu1 %v5913_v45  ;;  %v5991_v21 = vrot.slane %v5913_v45, 1  ;;  %v6312_v14 = vrot.slane %v5913_v45, 5  ;;  %v5989_v0 = vsel %vm609_vm0, %v5987_v36, %v5988_v23  ;;  %v9142_v36 = vld [vmem:[%s16956_s9 + $0x2c8] sm:$0xff]  ;;  %v9124_v46 = vld [vmem:[%s16956_s9 + $0x238] sm:$0xff] }
 0x9d4   : > { %10377 = vmatprep.subr.mxu1 %v9178_v31  ;;  %v5907_v29 = vpop.f32.mrf.mxu0  ;;  %6146 = vmatmul.mubr.f32.gmra.mxu1 %v5912_v40  ;;  %v6188_v42 = vrot.slane %v5913_v45, 4  ;;  %v15564_v6 = vsel %vm2077_vm3, %v6308_v26, %v6309_v51  ;;  %v15567_v1 = vsel %vm1521_vm2, %v6184_v37, %v6185_v11  ;;  %v9127_v40 = vld [vmem:[%s16956_s9 + $0x250] sm:$0xff]  ;;  %v9126_v4 = vld [vmem:[%s16956_s9 + $0x248] sm:$0xff]  ;;  %v9125_v45 = vld [vmem:[%s16956_s9 + $0x240] sm:$0xff] }
 0x9d5   : > { %v5993_v57 = vrot.slane %v5914_v5, 1  ;;  %v6190_v28 = vrot.slane %v5914_v5, 4  ;;  %v6314_v3 = vrot.slane %v5914_v5, 5  ;;  %v5915_v22 = vadd.f32 %v5907_v29, %v15415_v15  ;;  %10378 = vmatpush3.msra.mxu1 %v9162_v43  ;;  %v9147_v15 = vld [vmem:[%s16956_s9 + $0x2f0] sm:$0xff]  ;;  %v9169_v31 = vld [vmem:[%s16956_s9 + $0x3a0] sm:$0xff]  ;;  %v9140_v37 = vld [vmem:[%s16956_s9 + $0x2b8] sm:$0xff] }
 0x9d6   : > { %10379 = vmatprep.subr.mxu1 %v9177_v56  ;;  %v5992_v54 = vsel %vm609_vm0, %v5990_v18, %v5991_v21  ;;  %v6313_v53 = vsel %vm2077_vm3, %v6311_v59, %v6312_v14  ;;  %v6189_v60 = vsel %vm1521_vm2, %v6187_v55, %v6188_v42  ;;  %v9153_v26 = vld [vmem:[%s16956_s9 + $0x320] sm:$0xff]  ;;  %v9168_v43 = vld [vmem:[%s16956_s9 + $0x398] sm:$0xff]  ;;  %v9139_v18 = vld [vmem:[%s16956_s9 + $0x2b0] sm:$0xff] }
 0x9d7   : > { %v5995_v16 = vrot.slane %v5915_v22, 1  ;;  %v6192_v24 = vrot.slane %v5915_v22, 4  ;;  %v6316_v27 = vrot.slane %v5915_v22, 5  ;;  %6065 = vmatprep.mubr.f32.mxu0 %v5992_v54  ;;  %10380 = vmatpush3.msra.mxu1 %v9161_v35  ;;  %v5994_v25 = vsel %vm609_vm0, %v5988_v23, %v5993_v57  ;;  %v9170_v23 = vld [vmem:[%s16956_s9 + $0x3a8] sm:$0xff]  ;;  %v9152_v59 = vld [vmem:[%s16956_s9 + $0x318] sm:$0xff]  ;;  %v9123_v5 = vld [vmem:[%s16956_s9 + $0x230] sm:$0xff] }
 0x9d8   : > { %6386 = vmatprep.mubr.f32.mxu1 %v6313_v53  ;;  %6066 = vmatmul.mubr.f32.vlgmr.msra.gmra.mxu0 %v5989_v0  ;;  %v15593_v10 = vsel %vm2077_vm3, %v6309_v51, %v6314_v3  ;;  %v15596_v30 = vsel %vm1521_vm2, %v6185_v11, %v6190_v28  ;;  %v9141_v11 = vld [vmem:[%s16956_s9 + $0x2c0] sm:$0xff]  ;;  %v9154_v51 = vld [vmem:[%s16956_s9 + $0x328] sm:$0xff]  ;;  %v9167_v56 = vld [vmem:[%s16956_s9 + $0x390] sm:$0xff] }
 0x9d9   : > { %10336 = vmatpush3.msra.mxu0 %v9132_v13  ;;  %10381 = vmatprep.subr.mxu1 %v9176_v41  ;;  %v5996_v7 = vsel %vm609_vm0, %v5991_v21, %v5995_v16  ;;  %v15603_v8 = vsel %vm2077_vm3, %v6312_v14, %v6316_v27  ;;  %v15606_v20 = vsel %vm1521_vm2, %v6188_v42, %v6192_v24  ;;  %v9138_v21 = vld [vmem:[%s16956_s9 + $0x2a8] sm:$0xff]  ;;  %v9151_v14 = vld [vmem:[%s16956_s9 + $0x310] sm:$0xff]  ;;  %v9137_v35 = vld [vmem:[%s16956_s9 + $0x2a0] sm:$0xff] }
 0x9da   : > { %10337 = vmatprep.subr.mxu0 %v9147_v15  ;;  %10382 = vmatpush3.msra.mxu1 %v9160_v12  ;;  %v9122_v0 = vld [vmem:[%s16956_s9 + $0x228] sm:$0xff]  ;;  %v9121_v42 = vld [vmem:[%s16956_s9 + $0x220] sm:$0xff]  ;;  %v9136_v28 = vld [vmem:[%s16956_s9 + $0x298] sm:$0xff] }
 0x9db   : > { %10338 = vmatpush3.msra.mxu0 %v9131_v39  ;;  %10383 = vmatprep.subr.mxu1 %v9175_v49  ;;  %v9166_v29 = vld [vmem:[%s16956_s9 + $0x388] sm:$0xff]  ;;  %v9165_v57 = vld [vmem:[%s16956_s9 + $0x380] sm:$0xff]  ;;  %v9120_v22 = vld [vmem:[%s16956_s9 + $0x218] sm:$0xff] }
 0x9dc   : > { %6070 = vmatprep.mubr.f32.mxu0 %v5996_v7  ;;  %10339 = vmatprep.subr.mxu0 %v9146_v62  ;;  %v9150_v55 = vld [vmem:[%s16956_s9 + $0x308] sm:$0xff]  ;;  %v9149_v3 = vld [vmem:[%s16956_s9 + $0x300] sm:$0xff]  ;;  %v9135_v54 = vld [vmem:[%s16956_s9 + $0x290] sm:$0xff] }
 0x9dd   : > { %10384 = vmatpush3.msra.mxu1 %v9159_v50  ;;  %6071 = vmatmul.mubr.f32.gmra.mxu0 %v5994_v25  ;;  %v9119_v53 = vld [vmem:[%s16956_s9 + $0x210] sm:$0xff]  ;;  %v9134_v13 = vld [vmem:[%s16956_s9 + $0x288] sm:$0xff]  ;;  %v9117_v16 = vld [vmem:[%s16956_s9 + $0x200] sm:$0xff] }
 0x9de   : > { %10340 = vmatpush3.msra.mxu0 %v9130_v17  ;;  %10385 = vmatprep.subr.mxu1 %v9174_v61  ;;  %v9118_v41 = vld [vmem:[%s16956_s9 + $0x208] sm:$0xff]  ;;  %v6442_v24 = vld [vmem:[%s16958_s11 + $0xf8] sm:$0xff]  ;;  %v6441_v27 = vld [vmem:[%s16958_s11 + $0xf0] sm:$0xff] }
 0x9df   : > { %10341 = vmatprep.subr.mxu0 %v9145_v32  ;;  %6262 = vmatprep.mubr.f32.mxu0 %v6189_v60  ;;  %v9133_v60 = vld [vmem:[%s16956_s9 + $0x280] sm:$0xff]  ;;  %v6436_v15 = vld [vmem:[%s16958_s11 + $0xc8] sm:$0xff]  ;;  %v6438_v12 = vld [vmem:[%s16958_s11 + $0xd8] sm:$0xff] }
 0x9e0   : > { %10386 = vmatpush3.msra.mxu1 %v9158_v34  ;;  %10342 = vmatpush3.msra.mxu0 %v9129_v19  ;;  %v6435_v25 = vld [vmem:[%s16958_s11 + $0xc0] sm:$0xff]  ;;  %v6437_v39 = vld [vmem:[%s16958_s11 + $0xd0] sm:$0xff]  ;;  %v6432_v49 = vld [vmem:[%s16958_s11 + $0xa8] sm:$0xff] }
 0x9e1   : > { %10387 = vmatprep.subr.mxu1 %v9173_v52  ;;  %10343 = vmatprep.subr.mxu0 %v9144_v9  ;;  %v6433_v7 = vld [vmem:[%s16958_s11 + $0xb0] sm:$0xff]  ;;  %v6428_v62 = vld [vmem:[%s16958_s11 + $0x88] sm:$0xff]  ;;  %v6426_v61 = vld [vmem:[%s16958_s11 + $0x78] sm:$0xff] }
 0x9e2   : > { %10388 = vmatpush3.msra.mxu1 %v9157_v2  ;;  %10344 = vmatpush3.msra.mxu0 %v9128_v44  ;;  %v6429_v50 = vld [vmem:[%s16958_s11 + $0x90] sm:$0xff]  ;;  %v6424_v17 = vld [vmem:[%s16958_s11 + $0x68] sm:$0xff]  ;;  %v6423_v32 = vld [vmem:[%s16958_s11 + $0x60] sm:$0xff] }
 0x9e3   : > { %10389 = vmatprep.subr.mxu1 %v9172_v33  ;;  %10345 = vmatprep.subr.mxu0 %v9143_v38  ;;  %v6425_v34 = vld [vmem:[%s16958_s11 + $0x70] sm:$0xff]  ;;  %v6420_v19 = vld [vmem:[%s16958_s11 + $0x48] sm:$0xff]  ;;  %v6422_v52 = vld [vmem:[%s16958_s11 + $0x58] sm:$0xff] }
 0x9e4   : > { %10390 = vmatpush3.msra.mxu1 %v9156_v47  ;;  %10346 = vmatpush3.msra.mxu0 %v9127_v40  ;;  %v6419_v9 = vld [vmem:[%s16958_s11 + $0x40] sm:$0xff]  ;;  %v6421_v2 = vld [vmem:[%s16958_s11 + $0x50] sm:$0xff]  ;;  %v6416_v44 = vld [vmem:[%s16958_s11 + $0x28] sm:$0xff] }
 0x9e5   : > { %10391 = vmatprep.subr.mxu1 %v9171_v63  ;;  %10347 = vmatprep.subr.mxu0 %v9142_v36  ;;  %v6418_v33 = vld [vmem:[%s16958_s11 + $0x38] sm:$0xff]  ;;  %v6415_v38 = vld [vmem:[%s16958_s11 + $0x20] sm:$0xff]  ;;  %v6417_v47 = vld [vmem:[%s16958_s11 + $0x30] sm:$0xff] }
 0x9e6   : > { %10392 = vmatpush3.msra.mxu1 %v9155_v48  ;;  %10348 = vmatpush3.msra.mxu0 %v9126_v4  ;;  %v6412_v40 = vld [vmem:[%s16958_s11 + $0x8] sm:$0xff]  ;;  %v6414_v63 = vld [vmem:[%s16958_s11 + $0x18] sm:$0xff]  ;;  %v6411_v36 = vld [vmem:[%s16958_s11] sm:$0xff] }
 0x9e7   : > { %10393 = vmatprep.subr.mxu1 %v9170_v23  ;;  %10349 = vmatprep.subr.mxu0 %v9141_v11  ;;  %v6413_v48 = vld [vmem:[%s16958_s11 + $0x10] sm:$0xff]  ;;  %v9213_v4 = vld [vmem:[%s16958_s11 + $0x1e8] sm:$0xff]  ;;  %v9215_v23 = vld [vmem:[%s16958_s11 + $0x1f8] sm:$0xff] }
 0x9e8   : > { %10394 = vmatpush3.msra.mxu1 %v9154_v51  ;;  %10350 = vmatpush3.msra.mxu0 %v9125_v45 }
 0x9e9   : > { %10395 = vmatprep.subr.mxu1 %v9169_v31  ;;  %10351 = vmatprep.subr.mxu0 %v9140_v37 }
 0x9ea   : > { %10396 = vmatpush3.msra.mxu1 %v9153_v26  ;;  %10352 = vmatpush3.msra.mxu0 %v9124_v46 }
 0x9eb   : > { %10397 = vmatprep.subr.mxu1 %v9168_v43  ;;  %10353 = vmatprep.subr.mxu0 %v9139_v18 }
 0x9ec   : > { %10398 = vmatpush3.msra.mxu1 %v9152_v59  ;;  %10354 = vmatpush3.msra.mxu0 %v9123_v5 }
 0x9ed   : > { %10399 = vmatprep.subr.mxu1 %v9167_v56  ;;  %10355 = vmatprep.subr.mxu0 %v9138_v21 }
 0x9ee   : > { %10400 = vmatpush3.msra.mxu1 %v9151_v14  ;;  %10356 = vmatpush3.msra.mxu0 %v9122_v0 }
 0x9ef   : > { %10401 = vmatprep.subr.mxu1 %v9166_v29  ;;  %10357 = vmatprep.subr.mxu0 %v9137_v35 }
 0x9f0   : > { %10402 = vmatpush3.msra.mxu1 %v9150_v55  ;;  %10358 = vmatpush3.msra.mxu0 %v9121_v42 }
 0x9f1   : > { %10403 = vmatprep.subr.mxu1 %v9165_v57  ;;  %10359 = vmatprep.subr.mxu0 %v9136_v28 }
 0x9f2   : > { %10404 = vmatpush3.msra.mxu1 %v9149_v3  ;;  %10360 = vmatpush3.msra.mxu0 %v9120_v22 }
 0x9f3   : > { %6387 = vmatmul.mubr.f32.vlgmr.msra.gmra.mxu1 %v15564_v6  ;;  %10361 = vmatprep.subr.mxu0 %v9135_v54  ;;  %v6440_v6 = vld [vmem:[%s16958_s11 + $0xe8] sm:$0xff] }
 0x9f4   : > { %6391 = vmatprep.mubr.f32.mxu1 %v15603_v8  ;;  %10362 = vmatpush3.msra.mxu0 %v9119_v53  ;;  %v6430_v8 = vld [vmem:[%s16958_s11 + $0x98] sm:$0xff]  ;;  %v9181_v53 = vld [vmem:[%s16957_s10] ss:$0 sm:$0xff] }
 0x9f5   : > { %10363 = vmatprep.subr.mxu0 %v9134_v13  ;;  %6533 = vmatprep.subr.mxu1 %v6442_v24 }
 0x9f6   : > { %10364 = vmatpush3.msra.mxu0 %v9118_v41  ;;  %6534 = vmatpush1.msra.mxu1 %v6441_v27 }
 0x9f7   : > { %6392 = vmatmul.mubr.f32.gmra.mxu1 %v15593_v10  ;;  %10365 = vmatprep.subr.mxu0 %v9133_v60  ;;  %v6434_v10 = vld [vmem:[%s16958_s11 + $0xb8] sm:$0xff] }
 0x9f8   : > { %10366 = vmatpush3.msra.mxu0 %v9117_v16  ;;  %6581 = vmatprep.mubr.f32.mxu1 %v17219_v58 }
 0x9f9   : > { %6263 = vmatmul.mubr.f32.vlgmr.msra.gmra.mxu0 %v15567_v1  ;;  %6462 = vmatprep.subr.mxu0 %v6440_v6  ;;  %v6439_v1 = vld [vmem:[%s16958_s11 + $0xe0] sm:$0xff] }
 0x9fa   : > { %6267 = vmatprep.mubr.f32.mxu0 %v15606_v20  ;;  %6463 = vmatpush1.msra.mxu0 %v6439_v1  ;;  %v6427_v20 = vld [vmem:[%s16958_s11 + $0x80] sm:$0xff] }
 0x9fb   : > { %6464 = vmatprep.subr.mxu0 %v6436_v15  ;;  %6535 = vmatprep.subr.mxu1 %v6438_v12  ;;  %v9212_v15 = vld [vmem:[%s16958_s11 + $0x1e0] sm:$0xff]  ;;  %v9214_v12 = vld [vmem:[%s16958_s11 + $0x1f0] sm:$0xff] }
 0x9fc   : > { %6465 = vmatpush1.msra.mxu0 %v6435_v25  ;;  %6536 = vmatpush1.msra.mxu1 %v6437_v39  ;;  %v9209_v25 = vld [vmem:[%s16958_s11 + $0x1c8] sm:$0xff]  ;;  %v9211_v39 = vld [vmem:[%s16958_s11 + $0x1d8] sm:$0xff] }
 0x9fd   : > { %6268 = vmatmul.mubr.f32.gmra.mxu0 %v15596_v30  ;;  %6466 = vmatprep.subr.mxu0 %v6432_v49  ;;  %v6431_v30 = vld [vmem:[%s16958_s11 + $0xa0] sm:$0xff] }
 0x9fe   : > { %6510 = vmatprep.mubr.f32.mxu0 %v17219_v58  ;;  %6537 = vmatprep.subr.mxu1 %v6434_v10  ;;  %v9208_v10 = vld [vmem:[%s16958_s11 + $0x1c0] sm:$0xff] }
 0x9ff   : > { %6467 = vmatpush1.msra.mxu0 %v6431_v30  ;;  %6538 = vmatpush1.msra.mxu1 %v6433_v7  ;;  %v9210_v30 = vld [vmem:[%s16958_s11 + $0x1d0] sm:$0xff]  ;;  %v9205_v7 = vld [vmem:[%s16958_s11 + $0x1a8] sm:$0xff] }
 0xa00   : > { %6468 = vmatprep.subr.mxu0 %v6428_v62  ;;  %6539 = vmatprep.subr.mxu1 %v6430_v8  ;;  %v9207_v62 = vld [vmem:[%s16958_s11 + $0x1b8] sm:$0xff]  ;;  %v9204_v8 = vld [vmem:[%s16958_s11 + $0x1a0] sm:$0xff] }
 0xa01   : > { %6469 = vmatpush1.msra.mxu0 %v6427_v20  ;;  %6540 = vmatpush1.msra.mxu1 %v6429_v50  ;;  %v9206_v20 = vld [vmem:[%s16958_s11 + $0x1b0] sm:$0xff]  ;;  %v9201_v50 = vld [vmem:[%s16958_s11 + $0x188] sm:$0xff] }
 0xa02   : > { %6470 = vmatprep.subr.mxu0 %v6424_v17  ;;  %6541 = vmatprep.subr.mxu1 %v6426_v61  ;;  %v9203_v17 = vld [vmem:[%s16958_s11 + $0x198] sm:$0xff]  ;;  %v9200_v61 = vld [vmem:[%s16958_s11 + $0x180] sm:$0xff] }
 0xa03   : > { %6471 = vmatpush1.msra.mxu0 %v6423_v32  ;;  %6542 = vmatpush1.msra.mxu1 %v6425_v34  ;;  %v9202_v32 = vld [vmem:[%s16958_s11 + $0x190] sm:$0xff]  ;;  %v9197_v34 = vld [vmem:[%s16958_s11 + $0x168] sm:$0xff] }
 0xa04   : > { %6472 = vmatprep.subr.mxu0 %v6420_v19  ;;  %6543 = vmatprep.subr.mxu1 %v6422_v52  ;;  %v9199_v19 = vld [vmem:[%s16958_s11 + $0x178] sm:$0xff]  ;;  %v9196_v52 = vld [vmem:[%s16958_s11 + $0x160] sm:$0xff] }
 0xa05   : > { %6473 = vmatpush1.msra.mxu0 %v6419_v9  ;;  %6544 = vmatpush1.msra.mxu1 %v6421_v2  ;;  %v9198_v9 = vld [vmem:[%s16958_s11 + $0x170] sm:$0xff]  ;;  %v9193_v2 = vld [vmem:[%s16958_s11 + $0x148] sm:$0xff] }
 0xa06   : > { %6474 = vmatprep.subr.mxu0 %v6416_v44  ;;  %6545 = vmatprep.subr.mxu1 %v6418_v33  ;;  %v9195_v44 = vld [vmem:[%s16958_s11 + $0x158] sm:$0xff]  ;;  %v9192_v33 = vld [vmem:[%s16958_s11 + $0x140] sm:$0xff] }
 0xa07   : > { %6475 = vmatpush1.msra.mxu0 %v6415_v38  ;;  %6546 = vmatpush1.msra.mxu1 %v6417_v47  ;;  %v9194_v38 = vld [vmem:[%s16958_s11 + $0x150] sm:$0xff]  ;;  %v9189_v47 = vld [vmem:[%s16958_s11 + $0x128] sm:$0xff] }
 0xa08   : > { %6476 = vmatprep.subr.mxu0 %v6412_v40  ;;  %6547 = vmatprep.subr.mxu1 %v6414_v63  ;;  %v9191_v40 = vld [vmem:[%s16958_s11 + $0x138] sm:$0xff]  ;;  %v9188_v63 = vld [vmem:[%s16958_s11 + $0x120] sm:$0xff] }
 0xa09   : > { %6477 = vmatpush1.msra.mxu0 %v6411_v36  ;;  %6548 = vmatpush1.msra.mxu1 %v6413_v48  ;;  %v9190_v36 = vld [vmem:[%s16958_s11 + $0x130] sm:$0xff]  ;;  %v9185_v48 = vld [vmem:[%s16958_s11 + $0x108] sm:$0xff] }
 0xa0a   : > { %6670 = vmatprep.subr.mxu0 %v9213_v4  ;;  %6741 = vmatprep.subr.mxu1 %v9215_v23  ;;  %v9187_v4 = vld [vmem:[%s16958_s11 + $0x118] sm:$0xff]  ;;  %v9184_v23 = vld [vmem:[%s16958_s11 + $0x100] sm:$0xff] }
 0xa90   : > { %v10329_v11 = vpop.f32.mrf.mxu1 }
 0xa92   : > { %v10330_v51 = vpop.f32.mrf.mxu1 }
 0xa93   : > { %v10331_v29 = vadd.f32 %v10330_v51, %v10329_v11  ;;  %v9186_v11 = vld [vmem:[%s16958_s11 + $0x110] sm:$0xff] }
 0xa94   : > { %v10332_v45 = vpop.f32.mrf.mxu1 }
 0xa96   : > { %v10333_v31 = vpop.f32.mrf.mxu1 }
 0xa97   : > { %v10334_v37 = vadd.f32 %v10333_v31, %v10332_v45  ;;  %v9247_v45 = vld [vmem:[%s16958_s11 + $0x2e8] sm:$0xff]  ;;  %v9249_v31 = vld [vmem:[%s16958_s11 + $0x2f8] sm:$0xff] }
 0xa98   : > { %v10291_v26 = vpop.f32.mrf.mxu0 }
 0xa9a   : > { %v10292_v46 = vpop.f32.mrf.mxu0 }
 0xa9b   : > { %v10293_v14 = vadd.f32 %v10292_v46, %v10291_v26  ;;  %v9248_v26 = vld [vmem:[%s16958_s11 + $0x2f0] sm:$0xff]  ;;  %v9243_v46 = vld [vmem:[%s16958_s11 + $0x2c8] sm:$0xff] }
 0xa9d   : > { %v10294_v43 = vpop.f32.mrf.mxu0  ;;  %v6143_v42 = vadd.f32 %v10331_v29, %v10293_v14  ;;  %v9240_v14 = vld [vmem:[%s16958_s11 + $0x2b0] sm:$0xff]  ;;  %v9237_v29 = vld [vmem:[%s16958_s11 + $0x298] sm:$0xff] }
 0xa9f   : > { %v10295_v18 = vpop.f32.mrf.mxu0 }
 0xaa0   : > { %v10296_v59 = vadd.f32 %v10295_v18, %v10294_v43  ;;  %v9245_v43 = vld [vmem:[%s16958_s11 + $0x2d8] sm:$0xff]  ;;  %v9242_v18 = vld [vmem:[%s16958_s11 + $0x2c0] sm:$0xff] }
 0xaa2   : > { %v6148_v5 = vadd.f32 %v10334_v37, %v10296_v59  ;;  %v9246_v37 = vld [vmem:[%s16958_s11 + $0x2e0] sm:$0xff]  ;;  %v9244_v59 = vld [vmem:[%s16958_s11 + $0x2d0] sm:$0xff] }
 0xab3   : > { %v10405_v56 = vpop.f32.mrf.mxu1 }
 0xab5   : > { %v10406_v21 = vpop.f32.mrf.mxu1 }
 0xab6   : > { %v10407_v3 = vadd.f32 %v10406_v21, %v10405_v56  ;;  %v9241_v56 = vld [vmem:[%s16958_s11 + $0x2b8] sm:$0xff]  ;;  %v9238_v21 = vld [vmem:[%s16958_s11 + $0x2a0] sm:$0xff] }
 0xab7   : > { %v10408_v35 = vpop.f32.mrf.mxu1 }
 0xab9   : > { %v10367_v0 = vpop.f32.mrf.mxu0  ;;  %v10409_v54 = vpop.f32.mrf.mxu1 }
 0xaba   : > { %v10410_v16 = vadd.f32 %v10409_v54, %v10408_v35  ;;  %v9234_v35 = vld [vmem:[%s16958_s11 + $0x280] sm:$0xff]  ;;  %v9229_v54 = vld [vmem:[%s16958_s11 + $0x258] sm:$0xff] }
 0xabb   : > { %v10368_v55 = vpop.f32.mrf.mxu0 }
 0xabc   : > { %v10369_v57 = vadd.f32 %v10368_v55, %v10367_v0  ;;  %v9235_v0 = vld [vmem:[%s16958_s11 + $0x288] sm:$0xff]  ;;  %v9236_v55 = vld [vmem:[%s16958_s11 + $0x290] sm:$0xff] }
 0xabd   : > { %v10370_v28 = vpop.f32.mrf.mxu0 }
 0xabe   : > { %v6273_v22 = vadd.f32 %v10369_v57, %v6143_v42  ;;  %v9231_v42 = vld [vmem:[%s16958_s11 + $0x268] sm:$0xff]  ;;  %v9233_v57 = vld [vmem:[%s16958_s11 + $0x278] sm:$0xff] }
 0xabf   : > { %v10371_v13 = vpop.f32.mrf.mxu0 }
 0xac0   : > { %v6397_v41 = vadd.f32 %v10407_v3, %v6273_v22  ;;  %v10372_v60 = vadd.f32 %v10371_v13, %v10370_v28  ;;  %v9230_v28 = vld [vmem:[%s16958_s11 + $0x260] sm:$0xff]  ;;  %v9232_v3 = vld [vmem:[%s16958_s11 + $0x270] sm:$0xff]  ;;  %v9227_v22 = vld [vmem:[%s16958_s11 + $0x248] sm:$0xff] }
 0xac1   : > { %v9228_v13 = vld [vmem:[%s16958_s11 + $0x250] sm:$0xff] }
 0xac2   : > { %v6406_v6 = vadd.f32 %v9181_v53, %v6397_v41  ;;  %v6274_v24 = vadd.f32 %v10372_v60, %v6148_v5  ;;  %v9239_v5 = vld [vmem:[%s16958_s11 + $0x2a8] sm:$0xff]  ;;  %v9225_v60 = vld [vmem:[%s16958_s11 + $0x238] sm:$0xff] }
 0xac3   : > { %v9223_v41 = vld [vmem:[%s16958_s11 + $0x228] sm:$0xff] }
 0xac4   : > { %v15865_v1 = vmax.f32 %v6406_v6, 0.0  ;;  %v6398_v27 = vadd.f32 %v10410_v16, %v6274_v24  ;;  %v9222_v16 = vld [vmem:[%s16958_s11 + $0x220] sm:$0xff]  ;;  %v9224_v6 = vld [vmem:[%s16958_s11 + $0x230] sm:$0xff]  ;;  %v9219_v24 = vld [vmem:[%s16958_s11 + $0x208] sm:$0xff] }
 0xac6   : > { %v15879_v49 = vadd.f32 %v9181_v53, %v6398_v27  ;;  %9182 = vmatmul.mubr.msk.f32.vlgmr.msra.gmra.mxu0 %vm707_vm1, %v15865_v1  ;;  %9183 = vmatmul.mubr.msk.f32.vlgmr.msra.gmra.mxu1 %vm707_vm1, %v15865_v1  ;;  %v6651_v51 = vrot.slane %v15865_v1, 1  ;;  %v9226_v53 = vld [vmem:[%s16958_s11 + $0x240] sm:$0xff]  ;;  %v9221_v27 = vld [vmem:[%s16958_s11 + $0x218] sm:$0xff] }
 0xac7   : > { %6671 = vmatpush1.msra.mxu0 %v9212_v15  ;;  %6742 = vmatpush1.msra.mxu1 %v9214_v12  ;;  %v9218_v15 = vld [vmem:[%s16958_s11 + $0x200] sm:$0xff]  ;;  %v9220_v12 = vld [vmem:[%s16958_s11 + $0x210] sm:$0xff] }
 0xac8   : > { %6672 = vmatprep.subr.mxu0 %v9209_v25  ;;  %6743 = vmatprep.subr.mxu1 %v9211_v39  ;;  %v6859_v25 = vrot.slane %v15865_v1, 2  ;;  %v9281_v39 = vld [vmem:[%s16958_s11 + $0x3e8] sm:$0xff] }
 0xac9   : > { %6673 = vmatpush1.msra.mxu0 %v9208_v10  ;;  %6744 = vmatpush1.msra.mxu1 %v9210_v30  ;;  %v9283_v10 = vld [vmem:[%s16958_s11 + $0x3f8] sm:$0xff]  ;;  %v9280_v30 = vld [vmem:[%s16958_s11 + $0x3e0] sm:$0xff] }
 0xaca   : > { %6674 = vmatprep.subr.mxu0 %v9205_v7  ;;  %6745 = vmatprep.subr.mxu1 %v9207_v62  ;;  %v9282_v7 = vld [vmem:[%s16958_s11 + $0x3f0] sm:$0xff]  ;;  %v9277_v62 = vld [vmem:[%s16958_s11 + $0x3c8] sm:$0xff] }
 0xacb   : > { %6675 = vmatpush1.msra.mxu0 %v9204_v8  ;;  %6746 = vmatpush1.msra.mxu1 %v9206_v20  ;;  %v9279_v8 = vld [vmem:[%s16958_s11 + $0x3d8] sm:$0xff]  ;;  %v9276_v20 = vld [vmem:[%s16958_s11 + $0x3c0] sm:$0xff] }
 0xacc   : > { %6676 = vmatprep.subr.mxu0 %v9201_v50  ;;  %6747 = vmatprep.subr.mxu1 %v9203_v17  ;;  %v9278_v50 = vld [vmem:[%s16958_s11 + $0x3d0] sm:$0xff]  ;;  %v9273_v17 = vld [vmem:[%s16958_s11 + $0x3a8] sm:$0xff] }
 0xacd   : > { %6677 = vmatpush1.msra.mxu0 %v9200_v61  ;;  %6748 = vmatpush1.msra.mxu1 %v9202_v32  ;;  %v9275_v61 = vld [vmem:[%s16958_s11 + $0x3b8] sm:$0xff]  ;;  %v9272_v32 = vld [vmem:[%s16958_s11 + $0x3a0] sm:$0xff] }
 0xace   : > { %6678 = vmatprep.subr.mxu0 %v9197_v34  ;;  %6749 = vmatprep.subr.mxu1 %v9199_v19  ;;  %v9274_v34 = vld [vmem:[%s16958_s11 + $0x3b0] sm:$0xff]  ;;  %v9269_v19 = vld [vmem:[%s16958_s11 + $0x388] sm:$0xff] }
 0xacf   : > { %6679 = vmatpush1.msra.mxu0 %v9196_v52  ;;  %6750 = vmatpush1.msra.mxu1 %v9198_v9  ;;  %v9271_v52 = vld [vmem:[%s16958_s11 + $0x398] sm:$0xff]  ;;  %v9268_v9 = vld [vmem:[%s16958_s11 + $0x380] sm:$0xff] }
 0xad0   : > { %6680 = vmatprep.subr.mxu0 %v9193_v2  ;;  %6751 = vmatprep.subr.mxu1 %v9195_v44  ;;  %v9270_v2 = vld [vmem:[%s16958_s11 + $0x390] sm:$0xff]  ;;  %v9265_v44 = vld [vmem:[%s16958_s11 + $0x368] sm:$0xff] }
 0xad1   : > { %6681 = vmatpush1.msra.mxu0 %v9192_v33  ;;  %6752 = vmatpush1.msra.mxu1 %v9194_v38  ;;  %v9267_v33 = vld [vmem:[%s16958_s11 + $0x378] sm:$0xff]  ;;  %v9264_v38 = vld [vmem:[%s16958_s11 + $0x360] sm:$0xff] }
 0xad2   : > { %6682 = vmatprep.subr.mxu0 %v9189_v47  ;;  %6753 = vmatprep.subr.mxu1 %v9191_v40  ;;  %v9266_v47 = vld [vmem:[%s16958_s11 + $0x370] sm:$0xff]  ;;  %v9261_v40 = vld [vmem:[%s16958_s11 + $0x348] sm:$0xff] }
 0xad3   : > { %6683 = vmatpush1.msra.mxu0 %v9188_v63  ;;  %6754 = vmatpush1.msra.mxu1 %v9190_v36  ;;  %v9263_v63 = vld [vmem:[%s16958_s11 + $0x358] sm:$0xff]  ;;  %v9260_v36 = vld [vmem:[%s16958_s11 + $0x340] sm:$0xff] }
 0xad4   : > { %6684 = vmatprep.subr.mxu0 %v9185_v48  ;;  %6755 = vmatprep.subr.mxu1 %v9187_v4  ;;  %v9262_v48 = vld [vmem:[%s16958_s11 + $0x350] sm:$0xff]  ;;  %v9257_v4 = vld [vmem:[%s16958_s11 + $0x328] sm:$0xff] }
 0xad5   : > { %6685 = vmatpush1.msra.mxu0 %v9184_v23  ;;  %6718 = vmatprep.mubr.f32.mxu0 %v17219_v58  ;;  %v9259_v23 = vld [vmem:[%s16958_s11 + $0x338] sm:$0xff] }
 0xad6   : > { %6756 = vmatpush1.msra.mxu1 %v9186_v11  ;;  %6789 = vmatprep.mubr.f32.mxu1 %v17219_v58  ;;  %v9256_v11 = vld [vmem:[%s16958_s11 + $0x320] sm:$0xff] }
 0xad7   : > { %9216 = vmatmul.mubr.msk.f32.vlgmr.msra.gmra.mxu0 %vm707_vm1, %v6651_v51  ;;  %9217 = vmatmul.mubr.msk.f32.vlgmr.msra.gmra.mxu1 %vm707_vm1, %v6651_v51  ;;  %v9258_v51 = vld [vmem:[%s16958_s11 + $0x330] sm:$0xff] }
 0xad8   : > { %6878 = vmatprep.subr.mxu0 %v9247_v45  ;;  %6949 = vmatprep.subr.mxu1 %v9249_v31  ;;  %v9253_v45 = vld [vmem:[%s16958_s11 + $0x308] sm:$0xff]  ;;  %v9255_v31 = vld [vmem:[%s16958_s11 + $0x318] sm:$0xff] }
 0xad9   : > { %6879 = vmatpush1.msra.mxu0 %v9246_v37  ;;  %6950 = vmatpush1.msra.mxu1 %v9248_v26  ;;  %v9252_v37 = vld [vmem:[%s16958_s11 + $0x300] sm:$0xff]  ;;  %v9254_v26 = vld [vmem:[%s16958_s11 + $0x310] sm:$0xff] }
 0xada   : > { %6880 = vmatprep.subr.mxu0 %v9243_v46  ;;  %6951 = vmatprep.subr.mxu1 %v9245_v43  ;;  %v7067_v46 = vrot.slane %v15865_v1, 4  ;;  %v9315_v43 = vld [vmem:[%s16958_s11 + $0x4e8] sm:$0xff] }
 0xadb   : > { %6881 = vmatpush1.msra.mxu0 %v9242_v18  ;;  %6952 = vmatpush1.msra.mxu1 %v9244_v59  ;;  %v9317_v18 = vld [vmem:[%s16958_s11 + $0x4f8] sm:$0xff]  ;;  %v9314_v59 = vld [vmem:[%s16958_s11 + $0x4e0] sm:$0xff] }
 0xadc   : > { %6882 = vmatprep.subr.mxu0 %v9239_v5  ;;  %6953 = vmatprep.subr.mxu1 %v9241_v56  ;;  %v9316_v5 = vld [vmem:[%s16958_s11 + $0x4f0] sm:$0xff]  ;;  %v9311_v56 = vld [vmem:[%s16958_s11 + $0x4c8] sm:$0xff] }
 0xadd   : > { %6883 = vmatpush1.msra.mxu0 %v9238_v21  ;;  %6954 = vmatpush1.msra.mxu1 %v9240_v14  ;;  %v9313_v21 = vld [vmem:[%s16958_s11 + $0x4d8] sm:$0xff]  ;;  %v9310_v14 = vld [vmem:[%s16958_s11 + $0x4c0] sm:$0xff] }
 0xade   : > { %6884 = vmatprep.subr.mxu0 %v9235_v0  ;;  %6955 = vmatprep.subr.mxu1 %v9237_v29  ;;  %v9312_v0 = vld [vmem:[%s16958_s11 + $0x4d0] sm:$0xff]  ;;  %v9307_v29 = vld [vmem:[%s16958_s11 + $0x4a8] sm:$0xff] }
 0xadf   : > { %6885 = vmatpush1.msra.mxu0 %v9234_v35  ;;  %6956 = vmatpush1.msra.mxu1 %v9236_v55  ;;  %v9309_v35 = vld [vmem:[%s16958_s11 + $0x4b8] sm:$0xff]  ;;  %v9306_v55 = vld [vmem:[%s16958_s11 + $0x4a0] sm:$0xff] }
 0xae0   : > { %6886 = vmatprep.subr.mxu0 %v9231_v42  ;;  %6957 = vmatprep.subr.mxu1 %v9233_v57  ;;  %v9308_v42 = vld [vmem:[%s16958_s11 + $0x4b0] sm:$0xff]  ;;  %v9303_v57 = vld [vmem:[%s16958_s11 + $0x488] sm:$0xff] }
 0xae1   : > { %6887 = vmatpush1.msra.mxu0 %v9230_v28  ;;  %6958 = vmatpush1.msra.mxu1 %v9232_v3  ;;  %v9305_v28 = vld [vmem:[%s16958_s11 + $0x498] sm:$0xff]  ;;  %v9302_v3 = vld [vmem:[%s16958_s11 + $0x480] sm:$0xff] }
 0xae2   : > { %6888 = vmatprep.subr.mxu0 %v9227_v22  ;;  %6959 = vmatprep.subr.mxu1 %v9229_v54  ;;  %v9304_v22 = vld [vmem:[%s16958_s11 + $0x490] sm:$0xff]  ;;  %v9299_v54 = vld [vmem:[%s16958_s11 + $0x468] sm:$0xff] }
 0xae3   : > { %6889 = vmatpush1.msra.mxu0 %v9226_v53  ;;  %6960 = vmatpush1.msra.mxu1 %v9228_v13  ;;  %v9301_v53 = vld [vmem:[%s16958_s11 + $0x478] sm:$0xff]  ;;  %v9298_v13 = vld [vmem:[%s16958_s11 + $0x460] sm:$0xff] }
 0xae4   : > { %6890 = vmatprep.subr.mxu0 %v9223_v41  ;;  %6961 = vmatprep.subr.mxu1 %v9225_v60  ;;  %v9300_v41 = vld [vmem:[%s16958_s11 + $0x470] sm:$0xff]  ;;  %v9295_v60 = vld [vmem:[%s16958_s11 + $0x448] sm:$0xff] }
 0xae5   : > { %6891 = vmatpush1.msra.mxu0 %v9222_v16  ;;  %6962 = vmatpush1.msra.mxu1 %v9224_v6  ;;  %v9297_v16 = vld [vmem:[%s16958_s11 + $0x458] sm:$0xff]  ;;  %v9294_v6 = vld [vmem:[%s16958_s11 + $0x440] sm:$0xff] }
 0xae6   : > { %6892 = vmatprep.subr.mxu0 %v9219_v24  ;;  %6963 = vmatprep.subr.mxu1 %v9221_v27  ;;  %v9296_v24 = vld [vmem:[%s16958_s11 + $0x450] sm:$0xff]  ;;  %v9291_v27 = vld [vmem:[%s16958_s11 + $0x428] sm:$0xff] }
 0xae7   : > { %6893 = vmatpush1.msra.mxu0 %v9218_v15  ;;  %6926 = vmatprep.mubr.f32.mxu0 %v17219_v58  ;;  %v9293_v15 = vld [vmem:[%s16958_s11 + $0x438] sm:$0xff] }
 0xae8   : > { %6964 = vmatpush1.msra.mxu1 %v9220_v12  ;;  %6997 = vmatprep.mubr.f32.mxu1 %v17219_v58  ;;  %v9290_v12 = vld [vmem:[%s16958_s11 + $0x420] sm:$0xff] }
 0xae9   : > { %9250 = vmatmul.mubr.msk.f32.vlgmr.msra.gmra.mxu0 %vm707_vm1, %v6859_v25  ;;  %9251 = vmatmul.mubr.msk.f32.vlgmr.msra.gmra.mxu1 %vm707_vm1, %v6859_v25  ;;  %v9292_v25 = vld [vmem:[%s16958_s11 + $0x430] sm:$0xff] }
 0xaea   : > { %7086 = vmatprep.subr.mxu0 %v9281_v39  ;;  %7157 = vmatprep.subr.mxu1 %v9283_v10  ;;  %v9287_v39 = vld [vmem:[%s16958_s11 + $0x408] sm:$0xff]  ;;  %v9289_v10 = vld [vmem:[%s16958_s11 + $0x418] sm:$0xff] }
 0xaeb   : > { %7087 = vmatpush1.msra.mxu0 %v9280_v30  ;;  %7158 = vmatpush1.msra.mxu1 %v9282_v7  ;;  %v9286_v30 = vld [vmem:[%s16958_s11 + $0x400] sm:$0xff]  ;;  %v9288_v7 = vld [vmem:[%s16958_s11 + $0x410] sm:$0xff] }
 0xaec   : > { %7088 = vmatprep.subr.mxu0 %v9277_v62  ;;  %7159 = vmatprep.subr.mxu1 %v9279_v8  ;;  %v7275_v62 = vrot.slane %v15865_v1, 5  ;;  %v9349_v8 = vld [vmem:[%s16958_s11 + $0x5e8] sm:$0xff] }
 0xaed   : > { %7089 = vmatpush1.msra.mxu0 %v9276_v20  ;;  %7160 = vmatpush1.msra.mxu1 %v9278_v50  ;;  %v9351_v20 = vld [vmem:[%s16958_s11 + $0x5f8] sm:$0xff]  ;;  %v9348_v50 = vld [vmem:[%s16958_s11 + $0x5e0] sm:$0xff] }
 0xaee   : > { %7090 = vmatprep.subr.mxu0 %v9273_v17  ;;  %7161 = vmatprep.subr.mxu1 %v9275_v61  ;;  %v9350_v17 = vld [vmem:[%s16958_s11 + $0x5f0] sm:$0xff]  ;;  %v9345_v61 = vld [vmem:[%s16958_s11 + $0x5c8] sm:$0xff] }
 0xaef   : > { %7091 = vmatpush1.msra.mxu0 %v9272_v32  ;;  %7162 = vmatpush1.msra.mxu1 %v9274_v34  ;;  %v9347_v32 = vld [vmem:[%s16958_s11 + $0x5d8] sm:$0xff]  ;;  %v9344_v34 = vld [vmem:[%s16958_s11 + $0x5c0] sm:$0xff] }
 0xaf0   : > { %7092 = vmatprep.subr.mxu0 %v9269_v19  ;;  %7163 = vmatprep.subr.mxu1 %v9271_v52  ;;  %v9346_v19 = vld [vmem:[%s16958_s11 + $0x5d0] sm:$0xff]  ;;  %v9341_v52 = vld [vmem:[%s16958_s11 + $0x5a8] sm:$0xff] }
 0xaf1   : > { %7093 = vmatpush1.msra.mxu0 %v9268_v9  ;;  %7164 = vmatpush1.msra.mxu1 %v9270_v2  ;;  %v9343_v9 = vld [vmem:[%s16958_s11 + $0x5b8] sm:$0xff]  ;;  %v9340_v2 = vld [vmem:[%s16958_s11 + $0x5a0] sm:$0xff] }
 0xaf2   : > { %7094 = vmatprep.subr.mxu0 %v9265_v44  ;;  %7165 = vmatprep.subr.mxu1 %v9267_v33  ;;  %v9342_v44 = vld [vmem:[%s16958_s11 + $0x5b0] sm:$0xff]  ;;  %v9337_v33 = vld [vmem:[%s16958_s11 + $0x588] sm:$0xff] }
 0xaf3   : > { %7095 = vmatpush1.msra.mxu0 %v9264_v38  ;;  %7166 = vmatpush1.msra.mxu1 %v9266_v47  ;;  %v9339_v38 = vld [vmem:[%s16958_s11 + $0x598] sm:$0xff]  ;;  %v9336_v47 = vld [vmem:[%s16958_s11 + $0x580] sm:$0xff] }
 0xaf4   : > { %7096 = vmatprep.subr.mxu0 %v9261_v40  ;;  %7167 = vmatprep.subr.mxu1 %v9263_v63  ;;  %v9338_v40 = vld [vmem:[%s16958_s11 + $0x590] sm:$0xff]  ;;  %v9333_v63 = vld [vmem:[%s16958_s11 + $0x568] sm:$0xff] }
 0xaf5   : > { %7097 = vmatpush1.msra.mxu0 %v9260_v36  ;;  %7168 = vmatpush1.msra.mxu1 %v9262_v48  ;;  %v9335_v36 = vld [vmem:[%s16958_s11 + $0x578] sm:$0xff]  ;;  %v9332_v48 = vld [vmem:[%s16958_s11 + $0x560] sm:$0xff] }
 0xaf6   : > { %7098 = vmatprep.subr.mxu0 %v9257_v4  ;;  %7169 = vmatprep.subr.mxu1 %v9259_v23  ;;  %v9334_v4 = vld [vmem:[%s16958_s11 + $0x570] sm:$0xff]  ;;  %v9329_v23 = vld [vmem:[%s16958_s11 + $0x548] sm:$0xff] }
 0xaf7   : > { %7099 = vmatpush1.msra.mxu0 %v9256_v11  ;;  %7170 = vmatpush1.msra.mxu1 %v9258_v51  ;;  %v9331_v11 = vld [vmem:[%s16958_s11 + $0x558] sm:$0xff]  ;;  %v9328_v51 = vld [vmem:[%s16958_s11 + $0x540] sm:$0xff] }
 0xaf8   : > { %7100 = vmatprep.subr.mxu0 %v9253_v45  ;;  %7171 = vmatprep.subr.mxu1 %v9255_v31  ;;  %v9330_v45 = vld [vmem:[%s16958_s11 + $0x550] sm:$0xff]  ;;  %v9325_v31 = vld [vmem:[%s16958_s11 + $0x528] sm:$0xff] }
 0xaf9   : > { %7101 = vmatpush1.msra.mxu0 %v9252_v37  ;;  %7134 = vmatprep.mubr.f32.mxu0 %v17219_v58  ;;  %v9327_v37 = vld [vmem:[%s16958_s11 + $0x538] sm:$0xff] }
 0xafa   : > { %7172 = vmatpush1.msra.mxu1 %v9254_v26  ;;  %7205 = vmatprep.mubr.f32.mxu1 %v17219_v58  ;;  %v9324_v26 = vld [vmem:[%s16958_s11 + $0x520] sm:$0xff] }
 0xafb   : > { %9284 = vmatmul.mubr.msk.f32.vlgmr.msra.gmra.mxu0 %vm707_vm1, %v7067_v46  ;;  %9285 = vmatmul.mubr.msk.f32.vlgmr.msra.gmra.mxu1 %vm707_vm1, %v7067_v46  ;;  %v9326_v46 = vld [vmem:[%s16958_s11 + $0x530] sm:$0xff] }
 0xafc   : > { %7294 = vmatprep.subr.mxu0 %v9315_v43  ;;  %7365 = vmatprep.subr.mxu1 %v9317_v18  ;;  %v9321_v43 = vld [vmem:[%s16958_s11 + $0x508] sm:$0xff]  ;;  %v9323_v18 = vld [vmem:[%s16958_s11 + $0x518] sm:$0xff] }
 0xafd   : > { %7295 = vmatpush1.msra.mxu0 %v9314_v59  ;;  %7366 = vmatpush1.msra.mxu1 %v9316_v5  ;;  %v9320_v59 = vld [vmem:[%s16958_s11 + $0x500] sm:$0xff]  ;;  %v9322_v5 = vld [vmem:[%s16958_s11 + $0x510] sm:$0xff] }
 0xafe   : > { %7296 = vmatprep.subr.mxu0 %v9311_v56  ;;  %7367 = vmatprep.subr.mxu1 %v9313_v21  ;;  %v7483_v56 = vrot.slane %v15865_v1, 6  ;;  %v9383_v21 = vld [vmem:[%s16958_s11 + $0x6e8] sm:$0xff] }
 0xaff   : > { %7297 = vmatpush1.msra.mxu0 %v9310_v14  ;;  %7368 = vmatpush1.msra.mxu1 %v9312_v0  ;;  %v9385_v14 = vld [vmem:[%s16958_s11 + $0x6f8] sm:$0xff]  ;;  %v9382_v0 = vld [vmem:[%s16958_s11 + $0x6e0] sm:$0xff]  ;;  %v9379_v1 = vld [vmem:[%s16958_s11 + $0x6c8] sm:$0xff] }
 0xb00   : > { %7298 = vmatprep.subr.mxu0 %v9307_v29  ;;  %7369 = vmatprep.subr.mxu1 %v9309_v35  ;;  %v9384_v29 = vld [vmem:[%s16958_s11 + $0x6f0] sm:$0xff]  ;;  %v9381_v35 = vld [vmem:[%s16958_s11 + $0x6d8] sm:$0xff] }
 0xb01   : > { %7299 = vmatpush1.msra.mxu0 %v9306_v55  ;;  %7370 = vmatpush1.msra.mxu1 %v9308_v42  ;;  %v9378_v55 = vld [vmem:[%s16958_s11 + $0x6c0] sm:$0xff]  ;;  %v9380_v42 = vld [vmem:[%s16958_s11 + $0x6d0] sm:$0xff] }
 0xb02   : > { %7300 = vmatprep.subr.mxu0 %v9303_v57  ;;  %7371 = vmatprep.subr.mxu1 %v9305_v28  ;;  %v9375_v57 = vld [vmem:[%s16958_s11 + $0x6a8] sm:$0xff]  ;;  %v9377_v28 = vld [vmem:[%s16958_s11 + $0x6b8] sm:$0xff] }
 0xb03   : > { %7301 = vmatpush1.msra.mxu0 %v9302_v3  ;;  %7372 = vmatpush1.msra.mxu1 %v9304_v22  ;;  %v9374_v3 = vld [vmem:[%s16958_s11 + $0x6a0] sm:$0xff]  ;;  %v9376_v22 = vld [vmem:[%s16958_s11 + $0x6b0] sm:$0xff] }
 0xb04   : > { %7302 = vmatprep.subr.mxu0 %v9299_v54  ;;  %7373 = vmatprep.subr.mxu1 %v9301_v53  ;;  %v9371_v54 = vld [vmem:[%s16958_s11 + $0x688] sm:$0xff]  ;;  %v9373_v53 = vld [vmem:[%s16958_s11 + $0x698] sm:$0xff] }
 0xb05   : > { %7303 = vmatpush1.msra.mxu0 %v9298_v13  ;;  %7374 = vmatpush1.msra.mxu1 %v9300_v41  ;;  %v9370_v13 = vld [vmem:[%s16958_s11 + $0x680] sm:$0xff]  ;;  %v9372_v41 = vld [vmem:[%s16958_s11 + $0x690] sm:$0xff] }
 0xb06   : > { %7304 = vmatprep.subr.mxu0 %v9295_v60  ;;  %7375 = vmatprep.subr.mxu1 %v9297_v16  ;;  %v9367_v60 = vld [vmem:[%s16958_s11 + $0x668] sm:$0xff]  ;;  %v9369_v16 = vld [vmem:[%s16958_s11 + $0x678] sm:$0xff] }
 0xb07   : > { %7305 = vmatpush1.msra.mxu0 %v9294_v6  ;;  %7376 = vmatpush1.msra.mxu1 %v9296_v24  ;;  %v9366_v6 = vld [vmem:[%s16958_s11 + $0x660] sm:$0xff]  ;;  %v9368_v24 = vld [vmem:[%s16958_s11 + $0x670] sm:$0xff] }
 0xb08   : > { %7306 = vmatprep.subr.mxu0 %v9291_v27  ;;  %7377 = vmatprep.subr.mxu1 %v9293_v15  ;;  %v9363_v27 = vld [vmem:[%s16958_s11 + $0x648] sm:$0xff]  ;;  %v9365_v15 = vld [vmem:[%s16958_s11 + $0x658] sm:$0xff] }
 0xb09   : > { %7307 = vmatpush1.msra.mxu0 %v9290_v12  ;;  %7378 = vmatpush1.msra.mxu1 %v9292_v25  ;;  %v9362_v12 = vld [vmem:[%s16958_s11 + $0x640] sm:$0xff]  ;;  %v9364_v25 = vld [vmem:[%s16958_s11 + $0x650] sm:$0xff] }
 0xb0a   : > { %7308 = vmatprep.subr.mxu0 %v9287_v39  ;;  %7379 = vmatprep.subr.mxu1 %v9289_v10  ;;  %v9359_v39 = vld [vmem:[%s16958_s11 + $0x628] sm:$0xff]  ;;  %v9361_v10 = vld [vmem:[%s16958_s11 + $0x638] sm:$0xff] }
 0xb0b   : > { %7309 = vmatpush1.msra.mxu0 %v9286_v30  ;;  %7342 = vmatprep.mubr.f32.mxu0 %v17219_v58  ;;  %v9358_v30 = vld [vmem:[%s16958_s11 + $0x620] sm:$0xff] }
 0xb0c   : > { %7380 = vmatpush1.msra.mxu1 %v9288_v7  ;;  %7413 = vmatprep.mubr.f32.mxu1 %v17219_v58  ;;  %v9360_v7 = vld [vmem:[%s16958_s11 + $0x630] sm:$0xff] }
 0xb0d   : > { %9318 = vmatmul.mubr.msk.f32.vlgmr.msra.gmra.mxu0 %vm707_vm1, %v7275_v62  ;;  %9319 = vmatmul.mubr.msk.f32.vlgmr.msra.gmra.mxu1 %vm707_vm1, %v7275_v62  ;;  %v9355_v62 = vld [vmem:[%s16958_s11 + $0x608] sm:$0xff] }
 0xb0e   : > { %7502 = vmatprep.subr.mxu0 %v9349_v8  ;;  %7573 = vmatprep.subr.mxu1 %v9351_v20  ;;  %v9357_v8 = vld [vmem:[%s16958_s11 + $0x618] sm:$0xff]  ;;  %v9354_v20 = vld [vmem:[%s16958_s11 + $0x600] sm:$0xff] }
 0xb0f   : > { %7503 = vmatpush1.msra.mxu0 %v9348_v50  ;;  %7574 = vmatpush1.msra.mxu1 %v9350_v17  ;;  %v9356_v50 = vld [vmem:[%s16958_s11 + $0x610] sm:$0xff]  ;;  %v16469_v17 = vmax.f32 %v15879_v49, 0.0 }
 0xb10   : > { %7504 = vmatprep.subr.mxu0 %v9345_v61  ;;  %7575 = vmatprep.subr.mxu1 %v9347_v32  ;;  %v9417_v61 = vld [vmem:[%s16958_s11 + $0x7e8] sm:$0xff]  ;;  %v9419_v32 = vld [vmem:[%s16958_s11 + $0x7f8] sm:$0xff]  ;;  %v9418_v49 = vld [vmem:[%s16958_s11 + $0x7f0] sm:$0xff] }
 0xb11   : > { %7505 = vmatpush1.msra.mxu0 %v9344_v34  ;;  %7576 = vmatpush1.msra.mxu1 %v9346_v19  ;;  %v9416_v34 = vld [vmem:[%s16958_s11 + $0x7e0] sm:$0xff]  ;;  %v9413_v19 = vld [vmem:[%s16958_s11 + $0x7c8] sm:$0xff] }
 0xb12   : > { %7506 = vmatprep.subr.mxu0 %v9341_v52  ;;  %7577 = vmatprep.subr.mxu1 %v9343_v9  ;;  %v9415_v52 = vld [vmem:[%s16958_s11 + $0x7d8] sm:$0xff]  ;;  %v9412_v9 = vld [vmem:[%s16958_s11 + $0x7c0] sm:$0xff] }
 0xb13   : > { %7507 = vmatpush1.msra.mxu0 %v9340_v2  ;;  %7578 = vmatpush1.msra.mxu1 %v9342_v44  ;;  %v9414_v2 = vld [vmem:[%s16958_s11 + $0x7d0] sm:$0xff]  ;;  %v9409_v44 = vld [vmem:[%s16958_s11 + $0x7a8] sm:$0xff] }
 0xb14   : > { %7508 = vmatprep.subr.mxu0 %v9337_v33  ;;  %7579 = vmatprep.subr.mxu1 %v9339_v38  ;;  %v9411_v33 = vld [vmem:[%s16958_s11 + $0x7b8] sm:$0xff]  ;;  %v9408_v38 = vld [vmem:[%s16958_s11 + $0x7a0] sm:$0xff] }
 0xb15   : > { %7509 = vmatpush1.msra.mxu0 %v9336_v47  ;;  %7580 = vmatpush1.msra.mxu1 %v9338_v40  ;;  %v9410_v47 = vld [vmem:[%s16958_s11 + $0x7b0] sm:$0xff]  ;;  %v9405_v40 = vld [vmem:[%s16958_s11 + $0x788] sm:$0xff] }
 0xb16   : > { %7510 = vmatprep.subr.mxu0 %v9333_v63  ;;  %7581 = vmatprep.subr.mxu1 %v9335_v36  ;;  %v9407_v63 = vld [vmem:[%s16958_s11 + $0x798] sm:$0xff]  ;;  %v9404_v36 = vld [vmem:[%s16958_s11 + $0x780] sm:$0xff] }
 0xb17   : > { %7511 = vmatpush1.msra.mxu0 %v9332_v48  ;;  %7582 = vmatpush1.msra.mxu1 %v9334_v4  ;;  %v9406_v48 = vld [vmem:[%s16958_s11 + $0x790] sm:$0xff]  ;;  %v9401_v4 = vld [vmem:[%s16958_s11 + $0x768] sm:$0xff] }
 0xb18   : > { %7512 = vmatprep.subr.mxu0 %v9329_v23  ;;  %7583 = vmatprep.subr.mxu1 %v9331_v11  ;;  %v9403_v23 = vld [vmem:[%s16958_s11 + $0x778] sm:$0xff]  ;;  %v9400_v11 = vld [vmem:[%s16958_s11 + $0x760] sm:$0xff] }
 0xb19   : > { %7513 = vmatpush1.msra.mxu0 %v9328_v51  ;;  %7584 = vmatpush1.msra.mxu1 %v9330_v45  ;;  %v9402_v51 = vld [vmem:[%s16958_s11 + $0x770] sm:$0xff]  ;;  %v9397_v45 = vld [vmem:[%s16958_s11 + $0x748] sm:$0xff] }
 0xb1a   : > { %7514 = vmatprep.subr.mxu0 %v9325_v31  ;;  %7585 = vmatprep.subr.mxu1 %v9327_v37  ;;  %v9399_v31 = vld [vmem:[%s16958_s11 + $0x758] sm:$0xff]  ;;  %v9396_v37 = vld [vmem:[%s16958_s11 + $0x740] sm:$0xff] }
 0xb1b   : > { %7515 = vmatpush1.msra.mxu0 %v9324_v26  ;;  %7586 = vmatpush1.msra.mxu1 %v9326_v46  ;;  %v9398_v26 = vld [vmem:[%s16958_s11 + $0x750] sm:$0xff]  ;;  %v9393_v46 = vld [vmem:[%s16958_s11 + $0x728] sm:$0xff] }
 0xb1c   : > { %7516 = vmatprep.subr.mxu0 %v9321_v43  ;;  %7587 = vmatprep.subr.mxu1 %v9323_v18  ;;  %v9395_v43 = vld [vmem:[%s16958_s11 + $0x738] sm:$0xff]  ;;  %v9392_v18 = vld [vmem:[%s16958_s11 + $0x720] sm:$0xff] }
 0xb1d   : > { %7517 = vmatpush1.msra.mxu0 %v9320_v59  ;;  %7550 = vmatprep.mubr.f32.mxu0 %v17219_v58  ;;  %v9394_v59 = vld [vmem:[%s16958_s11 + $0x730] sm:$0xff] }
 0xb1e   : > { %7588 = vmatpush1.msra.mxu1 %v9322_v5  ;;  %7621 = vmatprep.mubr.f32.mxu1 %v17219_v58  ;;  %v9389_v5 = vld [vmem:[%s16958_s11 + $0x708] sm:$0xff] }
 0xb1f   : > { %9352 = vmatmul.mubr.msk.f32.vlgmr.msra.gmra.mxu0 %vm707_vm1, %v7483_v56  ;;  %9353 = vmatmul.mubr.msk.f32.vlgmr.msra.gmra.mxu1 %vm707_vm1, %v7483_v56  ;;  %v9391_v56 = vld [vmem:[%s16958_s11 + $0x718] sm:$0xff] }
 0xb20   : > { %7710 = vmatprep.subr.mxu0 %v9383_v21  ;;  %7781 = vmatprep.subr.mxu1 %v9385_v14  ;;  %v9388_v21 = vld [vmem:[%s16958_s11 + $0x700] sm:$0xff]  ;;  %v9390_v14 = vld [vmem:[%s16958_s11 + $0x710] sm:$0xff] }
 0xb21   : > { %7711 = vmatpush1.msra.mxu0 %v9382_v0  ;;  %7782 = vmatpush1.msra.mxu1 %v9384_v29  ;;  %v7899_v0 = vrot.slane %v16469_v17, 1  ;;  %v9451_v29 = vld [vmem:[%s16958_s11 + $0x8e8] sm:$0xff] }
 0xb22   : > { %7712 = vmatprep.subr.mxu0 %v9379_v1  ;;  %7783 = vmatprep.subr.mxu1 %v9381_v35  ;;  %v9453_v1 = vld [vmem:[%s16958_s11 + $0x8f8] sm:$0xff]  ;;  %v9450_v35 = vld [vmem:[%s16958_s11 + $0x8e0] sm:$0xff] }
 0xb23   : > { %7713 = vmatpush1.msra.mxu0 %v9378_v55  ;;  %7784 = vmatpush1.msra.mxu1 %v9380_v42  ;;  %v9452_v55 = vld [vmem:[%s16958_s11 + $0x8f0] sm:$0xff]  ;;  %v9447_v42 = vld [vmem:[%s16958_s11 + $0x8c8] sm:$0xff] }
 0xb24   : > { %7714 = vmatprep.subr.mxu0 %v9375_v57  ;;  %7785 = vmatprep.subr.mxu1 %v9377_v28  ;;  %v9449_v57 = vld [vmem:[%s16958_s11 + $0x8d8] sm:$0xff]  ;;  %v9446_v28 = vld [vmem:[%s16958_s11 + $0x8c0] sm:$0xff] }
 0xb25   : > { %7715 = vmatpush1.msra.mxu0 %v9374_v3  ;;  %7786 = vmatpush1.msra.mxu1 %v9376_v22  ;;  %v9448_v3 = vld [vmem:[%s16958_s11 + $0x8d0] sm:$0xff]  ;;  %v9443_v22 = vld [vmem:[%s16958_s11 + $0x8a8] sm:$0xff] }
 0xb26   : > { %7716 = vmatprep.subr.mxu0 %v9371_v54  ;;  %7787 = vmatprep.subr.mxu1 %v9373_v53  ;;  %v9445_v54 = vld [vmem:[%s16958_s11 + $0x8b8] sm:$0xff]  ;;  %v9442_v53 = vld [vmem:[%s16958_s11 + $0x8a0] sm:$0xff] }
 0xb27   : > { %7717 = vmatpush1.msra.mxu0 %v9370_v13  ;;  %7788 = vmatpush1.msra.mxu1 %v9372_v41  ;;  %v9444_v13 = vld [vmem:[%s16958_s11 + $0x8b0] sm:$0xff]  ;;  %v9439_v41 = vld [vmem:[%s16958_s11 + $0x888] sm:$0xff] }
 0xb28   : > { %7718 = vmatprep.subr.mxu0 %v9367_v60  ;;  %7789 = vmatprep.subr.mxu1 %v9369_v16  ;;  %v9441_v60 = vld [vmem:[%s16958_s11 + $0x898] sm:$0xff]  ;;  %v9438_v16 = vld [vmem:[%s16958_s11 + $0x880] sm:$0xff] }
 0xb29   : > { %7719 = vmatpush1.msra.mxu0 %v9366_v6  ;;  %7790 = vmatpush1.msra.mxu1 %v9368_v24  ;;  %v9440_v6 = vld [vmem:[%s16958_s11 + $0x890] sm:$0xff]  ;;  %v9435_v24 = vld [vmem:[%s16958_s11 + $0x868] sm:$0xff] }
 0xb2a   : > { %7720 = vmatprep.subr.mxu0 %v9363_v27  ;;  %7791 = vmatprep.subr.mxu1 %v9365_v15  ;;  %v9437_v27 = vld [vmem:[%s16958_s11 + $0x878] sm:$0xff]  ;;  %v9434_v15 = vld [vmem:[%s16958_s11 + $0x860] sm:$0xff] }
 0xb2b   : > { %7721 = vmatpush1.msra.mxu0 %v9362_v12  ;;  %7792 = vmatpush1.msra.mxu1 %v9364_v25  ;;  %v9436_v12 = vld [vmem:[%s16958_s11 + $0x870] sm:$0xff]  ;;  %v9431_v25 = vld [vmem:[%s16958_s11 + $0x848] sm:$0xff] }
 0xb2c   : > { %7722 = vmatprep.subr.mxu0 %v9359_v39  ;;  %7793 = vmatprep.subr.mxu1 %v9361_v10  ;;  %v9433_v39 = vld [vmem:[%s16958_s11 + $0x858] sm:$0xff]  ;;  %v9430_v10 = vld [vmem:[%s16958_s11 + $0x840] sm:$0xff] }
 0xb2d   : > { %7723 = vmatpush1.msra.mxu0 %v9358_v30  ;;  %7794 = vmatpush1.msra.mxu1 %v9360_v7  ;;  %v9432_v30 = vld [vmem:[%s16958_s11 + $0x850] sm:$0xff]  ;;  %v9427_v7 = vld [vmem:[%s16958_s11 + $0x828] sm:$0xff] }
 0xb2e   : > { %7724 = vmatprep.subr.mxu0 %v9355_v62  ;;  %7795 = vmatprep.subr.mxu1 %v9357_v8  ;;  %v9429_v62 = vld [vmem:[%s16958_s11 + $0x838] sm:$0xff]  ;;  %v9426_v8 = vld [vmem:[%s16958_s11 + $0x820] sm:$0xff] }
 0xb2f   : > { %7725 = vmatpush1.msra.mxu0 %v9354_v20  ;;  %7758 = vmatprep.mubr.f32.mxu0 %v17219_v58  ;;  %v9428_v20 = vld [vmem:[%s16958_s11 + $0x830] sm:$0xff] }
 0xb30   : > { %7796 = vmatpush1.msra.mxu1 %v9356_v50  ;;  %7829 = vmatprep.mubr.f32.mxu1 %v17219_v58  ;;  %v9423_v50 = vld [vmem:[%s16958_s11 + $0x808] sm:$0xff] }
 0xb31   : > { %9386 = vmatmul.mubr.msk.f32.vlgmr.msra.gmra.mxu0 %vm707_vm1, %v16469_v17  ;;  %9387 = vmatmul.mubr.msk.f32.vlgmr.msra.gmra.mxu1 %vm707_vm1, %v16469_v17 }
 0xb32   : > { %7918 = vmatprep.subr.mxu0 %v9417_v61  ;;  %7989 = vmatprep.subr.mxu1 %v9419_v32  ;;  %v9425_v61 = vld [vmem:[%s16958_s11 + $0x818] sm:$0xff]  ;;  %v9422_v32 = vld [vmem:[%s16958_s11 + $0x800] sm:$0xff] }
 0xb33   : > { %7919 = vmatpush1.msra.mxu0 %v9416_v34  ;;  %7990 = vmatpush1.msra.mxu1 %v9418_v49  ;;  %v9424_v34 = vld [vmem:[%s16958_s11 + $0x810] sm:$0xff]  ;;  %v8107_v49 = vrot.slane %v16469_v17, 2  ;;  %v8298_v17 = vld [vmem:[%s16960_s13 + $0x78] sm:$0xff] }
 0xb34   : > { %7920 = vmatprep.subr.mxu0 %v9413_v19  ;;  %7991 = vmatprep.subr.mxu1 %v9415_v52  ;;  %v8314_v19 = vld [vmem:[%s16960_s13 + $0xf8] sm:$0xff] }
 0xb35   : > { %7921 = vmatpush1.msra.mxu0 %v9412_v9  ;;  %7992 = vmatpush1.msra.mxu1 %v9414_v2  ;;  %v8346_v52 = vld [vmem:[%s16960_s13 + $0x1f8] sm:$0xff]  ;;  %v8313_v9 = vld [vmem:[%s16960_s13 + $0xf0] sm:$0xff] }
 0xb36   : > { %7922 = vmatprep.subr.mxu0 %v9409_v44  ;;  %7993 = vmatprep.subr.mxu1 %v9411_v33  ;;  %v8345_v2 = vld [vmem:[%s16960_s13 + $0x1f0] sm:$0xff] }
 0xb37   : > { %7923 = vmatpush1.msra.mxu0 %v9408_v38  ;;  %7994 = vmatpush1.msra.mxu1 %v9410_v47  ;;  %v8297_v44 = vld [vmem:[%s16960_s13 + $0x70] sm:$0xff]  ;;  %v8312_v38 = vld [vmem:[%s16960_s13 + $0xe8] sm:$0xff] }
 0xb38   : > { %7924 = vmatprep.subr.mxu0 %v9405_v40  ;;  %7995 = vmatprep.subr.mxu1 %v9407_v63  ;;  %v8329_v33 = vld [vmem:[%s16960_s13 + $0x170] sm:$0xff]  ;;  %v8344_v47 = vld [vmem:[%s16960_s13 + $0x1e8] sm:$0xff] }
 0xb39   : > { %7925 = vmatpush1.msra.mxu0 %v9404_v36  ;;  %7996 = vmatpush1.msra.mxu1 %v9406_v48  ;;  %v8296_v40 = vld [vmem:[%s16960_s13 + $0x68] sm:$0xff]  ;;  %v8311_v36 = vld [vmem:[%s16960_s13 + $0xe0] sm:$0xff] }
 0xb3a   : > { %7926 = vmatprep.subr.mxu0 %v9401_v4  ;;  %7997 = vmatprep.subr.mxu1 %v9403_v23  ;;  %v8328_v63 = vld [vmem:[%s16960_s13 + $0x168] sm:$0xff]  ;;  %v8343_v48 = vld [vmem:[%s16960_s13 + $0x1e0] sm:$0xff] }
 0xb3b   : > { %7927 = vmatpush1.msra.mxu0 %v9400_v11  ;;  %7998 = vmatpush1.msra.mxu1 %v9402_v51  ;;  %v8295_v4 = vld [vmem:[%s16960_s13 + $0x60] sm:$0xff]  ;;  %v8310_v11 = vld [vmem:[%s16960_s13 + $0xd8] sm:$0xff] }
 0xb3c   : > { %7928 = vmatprep.subr.mxu0 %v9397_v45  ;;  %7999 = vmatprep.subr.mxu1 %v9399_v31  ;;  %v8327_v23 = vld [vmem:[%s16960_s13 + $0x160] sm:$0xff]  ;;  %v8342_v51 = vld [vmem:[%s16960_s13 + $0x1d8] sm:$0xff] }
 0xb3d   : > { %7929 = vmatpush1.msra.mxu0 %v9396_v37  ;;  %8000 = vmatpush1.msra.mxu1 %v9398_v26  ;;  %v8294_v45 = vld [vmem:[%s16960_s13 + $0x58] sm:$0xff]  ;;  %v8309_v37 = vld [vmem:[%s16960_s13 + $0xd0] sm:$0xff] }
 0xb3e   : > { %7930 = vmatprep.subr.mxu0 %v9393_v46  ;;  %8001 = vmatprep.subr.mxu1 %v9395_v43  ;;  %v8326_v31 = vld [vmem:[%s16960_s13 + $0x158] sm:$0xff]  ;;  %v8341_v26 = vld [vmem:[%s16960_s13 + $0x1d0] sm:$0xff] }
 0xb3f   : > { %7931 = vmatpush1.msra.mxu0 %v9392_v18  ;;  %8002 = vmatpush1.msra.mxu1 %v9394_v59  ;;  %v8293_v46 = vld [vmem:[%s16960_s13 + $0x50] sm:$0xff]  ;;  %v8308_v18 = vld [vmem:[%s16960_s13 + $0xc8] sm:$0xff] }
 0xb40   : > { %7932 = vmatprep.subr.mxu0 %v9389_v5  ;;  %8003 = vmatprep.subr.mxu1 %v9391_v56  ;;  %v8325_v43 = vld [vmem:[%s16960_s13 + $0x150] sm:$0xff]  ;;  %v8340_v59 = vld [vmem:[%s16960_s13 + $0x1c8] sm:$0xff] }
 0xb41   : > { %7933 = vmatpush1.msra.mxu0 %v9388_v21  ;;  %7966 = vmatprep.mubr.f32.mxu0 %v17219_v58  ;;  %v8292_v5 = vld [vmem:[%s16960_s13 + $0x48] sm:$0xff]  ;;  %v8307_v21 = vld [vmem:[%s16960_s13 + $0xc0] sm:$0xff] }
 0xb42   : > { %8004 = vmatpush1.msra.mxu1 %v9390_v14  ;;  %8037 = vmatprep.mubr.f32.mxu1 %v17219_v58  ;;  %v8324_v56 = vld [vmem:[%s16960_s13 + $0x148] sm:$0xff]  ;;  %v8339_v14 = vld [vmem:[%s16960_s13 + $0x1c0] sm:$0xff] }
 0xb43   : > { %9420 = vmatmul.mubr.msk.f32.vlgmr.msra.gmra.mxu0 %vm707_vm1, %v7899_v0  ;;  %9421 = vmatmul.mubr.msk.f32.vlgmr.msra.gmra.mxu1 %vm707_vm1, %v7899_v0  ;;  %v8291_v0 = vld [vmem:[%s16960_s13 + $0x40] sm:$0xff] }
 0xb44   : > { %8126 = vmatprep.subr.mxu0 %v9451_v29  ;;  %8197 = vmatprep.subr.mxu1 %v9453_v1  ;;  %v8323_v29 = vld [vmem:[%s16960_s13 + $0x140] sm:$0xff]  ;;  %v8306_v1 = vld [vmem:[%s16960_s13 + $0xb8] sm:$0xff] }
 0xb45   : > { %8127 = vmatpush1.msra.mxu0 %v9450_v35  ;;  %8198 = vmatpush1.msra.mxu1 %v9452_v55  ;;  %v8338_v35 = vld [vmem:[%s16960_s13 + $0x1b8] sm:$0xff] }
 0xb46   : > { %8128 = vmatprep.subr.mxu0 %v9447_v42  ;;  %8199 = vmatprep.subr.mxu1 %v9449_v57  ;;  %v8290_v55 = vld [vmem:[%s16960_s13 + $0x38] sm:$0xff]  ;;  %v8305_v57 = vld [vmem:[%s16960_s13 + $0xb0] sm:$0xff] }
 0xb47   : > { %8129 = vmatpush1.msra.mxu0 %v9446_v28  ;;  %8200 = vmatpush1.msra.mxu1 %v9448_v3  ;;  %v8322_v42 = vld [vmem:[%s16960_s13 + $0x138] sm:$0xff]  ;;  %v8337_v28 = vld [vmem:[%s16960_s13 + $0x1b0] sm:$0xff] }
 0xb48   : > { %8130 = vmatprep.subr.mxu0 %v9443_v22  ;;  %8201 = vmatprep.subr.mxu1 %v9445_v54  ;;  %v8289_v3 = vld [vmem:[%s16960_s13 + $0x30] sm:$0xff]  ;;  %v8304_v54 = vld [vmem:[%s16960_s13 + $0xa8] sm:$0xff] }
 0xb49   : > { %8131 = vmatpush1.msra.mxu0 %v9442_v53  ;;  %8202 = vmatpush1.msra.mxu1 %v9444_v13  ;;  %v8321_v22 = vld [vmem:[%s16960_s13 + $0x130] sm:$0xff]  ;;  %v8336_v53 = vld [vmem:[%s16960_s13 + $0x1a8] sm:$0xff] }
 0xb4a   : > { %8132 = vmatprep.subr.mxu0 %v9439_v41  ;;  %8203 = vmatprep.subr.mxu1 %v9441_v60  ;;  %v8288_v13 = vld [vmem:[%s16960_s13 + $0x28] sm:$0xff]  ;;  %v8303_v60 = vld [vmem:[%s16960_s13 + $0xa0] sm:$0xff] }
 0xb4b   : > { %8133 = vmatpush1.msra.mxu0 %v9438_v16  ;;  %8204 = vmatpush1.msra.mxu1 %v9440_v6  ;;  %v8320_v41 = vld [vmem:[%s16960_s13 + $0x128] sm:$0xff]  ;;  %v8335_v16 = vld [vmem:[%s16960_s13 + $0x1a0] sm:$0xff] }
 0xb4c   : > { %8134 = vmatprep.subr.mxu0 %v9435_v24  ;;  %8205 = vmatprep.subr.mxu1 %v9437_v27  ;;  %v8287_v6 = vld [vmem:[%s16960_s13 + $0x20] sm:$0xff]  ;;  %v8302_v27 = vld [vmem:[%s16960_s13 + $0x98] sm:$0xff] }
 0xb4d   : > { %8135 = vmatpush1.msra.mxu0 %v9434_v15  ;;  %8206 = vmatpush1.msra.mxu1 %v9436_v12  ;;  %v8319_v24 = vld [vmem:[%s16960_s13 + $0x120] sm:$0xff]  ;;  %v8334_v15 = vld [vmem:[%s16960_s13 + $0x198] sm:$0xff] }
 0xb4e   : > { %8136 = vmatprep.subr.mxu0 %v9431_v25  ;;  %8207 = vmatprep.subr.mxu1 %v9433_v39  ;;  %v8286_v12 = vld [vmem:[%s16960_s13 + $0x18] sm:$0xff]  ;;  %v8301_v39 = vld [vmem:[%s16960_s13 + $0x90] sm:$0xff] }
 0xb4f   : > { %8137 = vmatpush1.msra.mxu0 %v9430_v10  ;;  %8208 = vmatpush1.msra.mxu1 %v9432_v30  ;;  %v8318_v25 = vld [vmem:[%s16960_s13 + $0x118] sm:$0xff]  ;;  %v8333_v10 = vld [vmem:[%s16960_s13 + $0x190] sm:$0xff] }
 0xb50   : > { %8138 = vmatprep.subr.mxu0 %v9427_v7  ;;  %8209 = vmatprep.subr.mxu1 %v9429_v62  ;;  %v8285_v30 = vld [vmem:[%s16960_s13 + $0x10] sm:$0xff]  ;;  %v8300_v62 = vld [vmem:[%s16960_s13 + $0x88] sm:$0xff] }
 0xb51   : > { %8139 = vmatpush1.msra.mxu0 %v9426_v8  ;;  %8210 = vmatpush1.msra.mxu1 %v9428_v20  ;;  %v8317_v7 = vld [vmem:[%s16960_s13 + $0x110] sm:$0xff]  ;;  %v8332_v8 = vld [vmem:[%s16960_s13 + $0x188] sm:$0xff] }
 0xb52   : > { %8140 = vmatprep.subr.mxu0 %v9423_v50  ;;  %8211 = vmatprep.subr.mxu1 %v9425_v61  ;;  %v8284_v20 = vld [vmem:[%s16960_s13 + $0x8] sm:$0xff]  ;;  %v8299_v61 = vld [vmem:[%s16960_s13 + $0x80] sm:$0xff] }
 0xb53   : > { %8141 = vmatpush1.msra.mxu0 %v9422_v32  ;;  %8174 = vmatprep.mubr.f32.mxu0 %v17219_v58  ;;  %v8316_v50 = vld [vmem:[%s16960_s13 + $0x108] sm:$0xff]  ;;  %v8331_v32 = vld [vmem:[%s16960_s13 + $0x180] sm:$0xff] }
 0xb54   : > { %8212 = vmatpush1.msra.mxu1 %v9424_v34  ;;  %8245 = vmatprep.mubr.f32.mxu1 %v17219_v58  ;;  %v8330_v58 = vld [vmem:[%s16960_s13 + $0x178] sm:$0xff]  ;;  %v8283_v34 = vld [vmem:[%s16960_s13] sm:$0xff] }
 0xb55   : > { %9454 = vmatmul.mubr.msk.f32.vlgmr.msra.gmra.mxu0 %vm707_vm1, %v8107_v49  ;;  %9455 = vmatmul.mubr.msk.f32.vlgmr.msra.gmra.mxu1 %vm707_vm1, %v8107_v49  ;;  %v8315_v49 = vld [vmem:[%s16960_s13 + $0x100] sm:$0xff] }
 0xb56   : > { %10411 = vmatprep.subr.mxu0 %v8314_v19  ;;  %10446 = vmatprep.subr.mxu1 %v8346_v52 }
 0xb57   : > { %10412 = vmatpush3.msra.mxu0 %v8298_v17  ;;  %10447 = vmatpush3.msra.mxu1 %v8330_v58 }
 0xb58   : > { %10413 = vmatprep.subr.mxu0 %v8313_v9  ;;  %10448 = vmatprep.subr.mxu1 %v8345_v2 }
 0xb59   : > { %10414 = vmatpush3.msra.mxu0 %v8297_v44  ;;  %10449 = vmatpush3.msra.mxu1 %v8329_v33 }
 0xb5a   : > { %10415 = vmatprep.subr.mxu0 %v8312_v38  ;;  %10450 = vmatprep.subr.mxu1 %v8344_v47 }
 0xb5b   : > { %10416 = vmatpush3.msra.mxu0 %v8296_v40  ;;  %10451 = vmatpush3.msra.mxu1 %v8328_v63 }
 0xb5c   : > { %10417 = vmatprep.subr.mxu0 %v8311_v36  ;;  %10452 = vmatprep.subr.mxu1 %v8343_v48 }
 0xb5d   : > { %10418 = vmatpush3.msra.mxu0 %v8295_v4  ;;  %10453 = vmatpush3.msra.mxu1 %v8327_v23 }
 0xb5e   : > { %10419 = vmatprep.subr.mxu0 %v8310_v11  ;;  %10454 = vmatprep.subr.mxu1 %v8342_v51 }
 0xb5f   : > { %10420 = vmatpush3.msra.mxu0 %v8294_v45  ;;  %10455 = vmatpush3.msra.mxu1 %v8326_v31  ;;  %v11708_v45 = vmov 1966171168  }
 0xb60   : > { %10421 = vmatprep.subr.mxu0 %v8309_v37  ;;  %10456 = vmatprep.subr.mxu1 %v8341_v26  ;;  %v6595_v31 = vunpack.c.l.s4 %v11708_v45  ;;  %v6597_v37 = vlaneseq }
 0xb61   : > { %10422 = vmatpush3.msra.mxu0 %v8293_v46  ;;  %10457 = vmatpush3.msra.mxu1 %v8325_v43 }
 0xb62   : > { %10423 = vmatprep.subr.mxu0 %v8308_v18  ;;  %10458 = vmatprep.subr.mxu1 %v8340_v59  ;;  %v6596_v43 = vunpack.c.0.s8 %v6595_v31  ;;  %v16871_v18 = vshrl.u32 %v6597_v37, 7 }
 0xb63   : > { %10424 = vmatpush3.msra.mxu0 %v8292_v5  ;;  %10459 = vmatpush3.msra.mxu1 %v8324_v56 }
 0xb64   : > { %10425 = vmatprep.subr.mxu0 %v8307_v21  ;;  %10460 = vmatprep.subr.mxu1 %v8339_v14  ;;  %v16874_v21 = vsub.s32 %v6596_v43, %v16871_v18 }
 0xb65   : > { %10426 = vmatpush3.msra.mxu0 %v8291_v0  ;;  %10461 = vmatpush3.msra.mxu1 %v8323_v29 }
 0xb66   : > { %10427 = vmatprep.subr.mxu0 %v8306_v1  ;;  %10462 = vmatprep.subr.mxu1 %v8338_v35 }
 0xb67   : > { %10428 = vmatpush3.msra.mxu0 %v8290_v55  ;;  %10463 = vmatpush3.msra.mxu1 %v8322_v42 }
 0xb68   : > { %10429 = vmatprep.subr.mxu0 %v8305_v57  ;;  %10464 = vmatprep.subr.mxu1 %v8337_v28 }
 0xb69   : > { %10430 = vmatpush3.msra.mxu0 %v8289_v3  ;;  %10465 = vmatpush3.msra.mxu1 %v8321_v22 }
 0xb6a   : > { %10431 = vmatprep.subr.mxu0 %v8304_v54  ;;  %10466 = vmatprep.subr.mxu1 %v8336_v53 }
 0xb6b   : > { %10432 = vmatpush3.msra.mxu0 %v8288_v13  ;;  %10467 = vmatpush3.msra.mxu1 %v8320_v41 }
 0xb6c   : > { %10433 = vmatprep.subr.mxu0 %v8303_v60  ;;  %10468 = vmatprep.subr.mxu1 %v8335_v16 }
 0xb6d   : > { %10434 = vmatpush3.msra.mxu0 %v8287_v6  ;;  %10469 = vmatpush3.msra.mxu1 %v8319_v24 }
 0xb6e   : > { %10435 = vmatprep.subr.mxu0 %v8302_v27  ;;  %10470 = vmatprep.subr.mxu1 %v8334_v15 }
 0xb6f   : > { %10436 = vmatpush3.msra.mxu0 %v8286_v12  ;;  %10471 = vmatpush3.msra.mxu1 %v8318_v25 }
 0xb70   : > { %10437 = vmatprep.subr.mxu0 %v8301_v39  ;;  %10472 = vmatprep.subr.mxu1 %v8333_v10 }
 0xb71   : > { %10438 = vmatpush3.msra.mxu0 %v8285_v30  ;;  %10473 = vmatpush3.msra.mxu1 %v8317_v7 }
 0xb72   : > { %10439 = vmatprep.subr.mxu0 %v8300_v62  ;;  %10474 = vmatprep.subr.mxu1 %v8332_v8 }
 0xb73   : > { %10440 = vmatpush3.msra.mxu0 %v8284_v20  ;;  %10475 = vmatpush3.msra.mxu1 %v8316_v50 }
 0xb74   : > { %10441 = vmatprep.subr.mxu0 %v8299_v61  ;;  %10476 = vmatprep.subr.mxu1 %v8331_v32 }
 0xb75   : > { %10442 = vmatpush3.msra.mxu0 %v8283_v34  ;;  %10477 = vmatpush3.msra.mxu1 %v8315_v49  ;;  %v6410_v34 = vld [vmem:[%s16959_s12] sm:$0xf] }
 0xb86   : > { %v6512_v19 = vpop.f32.mrf.mxu0  ;;  %v6583_v52 = vpop.f32.mrf.mxu1 }
 0xb88   : > { %v6514_v17 = vpop.f32.mrf.mxu0  ;;  %v6585_v58 = vpop.f32.mrf.mxu1 }
 0xb89   : > { %v6592_v56 = vcombine.low %v6512_v19, %v6514_v17  ;;  %v6593_v14 = vcombine.low %v6583_v52, %v6585_v58 }
 0xb8b   : > { %v6600_v57 = vrot.slane %v6592_v56, %v16874_v21  ;;  %v6607_v28 = vrot.slane %v6593_v14, %v16874_v21 }
 0xb8d   : > { %v6608_v6 = vcombine.low %v6600_v57, %v6607_v28 }
 0xb8f   : > { %v6615_v20 = vrot.slane %v6608_v6, %v16874_v21  ;;  %v8351_v6 = vsub.s32 0, %v16871_v18 }
 0xb97   : > { %v6720_v9 = vpop.f32.mrf.mxu0  ;;  %v6791_v2 = vpop.f32.mrf.mxu1 }
 0xb99   : > { %v6722_v44 = vpop.f32.mrf.mxu0  ;;  %v6793_v33 = vpop.f32.mrf.mxu1 }
 0xb9a   : > { %v6800_v1 = vcombine.low %v6720_v9, %v6722_v44  ;;  %v6801_v35 = vcombine.low %v6791_v2, %v6793_v33 }
 0xb9c   : > { %v6808_v54 = vrot.slane %v6800_v1, %v16874_v21  ;;  %v6815_v53 = vrot.slane %v6801_v35, %v16874_v21 }
 0xb9e   : > { %v6816_v10 = vcombine.low %v6808_v54, %v6815_v53 }
 0xba0   : > { %v6823_v58 = vrot.slane %v6816_v10, %v16874_v21 }
 0xba9   : > { %v6928_v38 = vpop.f32.mrf.mxu0  ;;  %v6999_v47 = vpop.f32.mrf.mxu1 }
 0xbab   : > { %v6930_v40 = vpop.f32.mrf.mxu0  ;;  %v7001_v63 = vpop.f32.mrf.mxu1 }
 0xbac   : > { %v7008_v3 = vcombine.low %v6928_v38, %v6930_v40  ;;  %v7009_v22 = vcombine.low %v6999_v47, %v7001_v63  ;;  %v6617_v47 = vadd.f32 %v6615_v20, %v6410_v34 }
 0xbae   : > { %v7016_v24 = vrot.slane %v7008_v3, %v16874_v21  ;;  %v7023_v27 = vrot.slane %v7009_v22, %v16874_v21 }
 0xbb0   : > { %v7024_v50 = vcombine.low %v7016_v24, %v7023_v27  ;;  %v8359_v24 = vsub.s32 2, %v16871_v18 }
 0xbb2   : > { %v7031_v40 = vrot.slane %v7024_v50, %v16874_v21 }
 0xbbb   : > { %v7136_v36 = vpop.f32.mrf.mxu0  ;;  %v7207_v48 = vpop.f32.mrf.mxu1 }
 0xbbd   : > { %v7138_v4 = vpop.f32.mrf.mxu0  ;;  %v7209_v23 = vpop.f32.mrf.mxu1 }
 0xbbe   : > { %v7216_v13 = vcombine.low %v7136_v36, %v7138_v4  ;;  %v7217_v41 = vcombine.low %v7207_v48, %v7209_v23  ;;  %v6825_v4 = vadd.f32 %v6823_v58, %v6617_v47 }
 0xbc0   : > { %v7224_v30 = vrot.slane %v7216_v13, %v16874_v21  ;;  %v7231_v7 = vrot.slane %v7217_v41, %v16874_v21  ;;  %v7033_v31 = vadd.f32 %v7031_v40, %v6825_v4  ;;  %v8355_v41 = vsub.s32 1, %v16871_v18 }
 0xbc2   : > { %v7232_v9 = vcombine.low %v7224_v30, %v7231_v7  ;;  %v8347_v30 = vld [vmem:[%s16961_s14] sm:$0x1] }
 0xbc4   : > { %v7239_v23 = vrot.slane %v7232_v9, %v16874_v21 }
 0xbcd   : > { %v7344_v11 = vpop.f32.mrf.mxu0  ;;  %v7415_v51 = vpop.f32.mrf.mxu1 }
 0xbcf   : > { %v7346_v26 = vpop.f32.mrf.mxu0  ;;  %v7417_v46 = vpop.f32.mrf.mxu1 }
 0xbd0   : > { %v7424_v25 = vcombine.low %v7344_v11, %v7346_v26  ;;  %v7425_v39 = vcombine.low %v7415_v51, %v7417_v46 }
 0xbd2   : > { %v7432_v49 = vrot.slane %v7424_v25, %v16874_v21  ;;  %v7439_v19 = vrot.slane %v7425_v39, %v16874_v21 }
 0xbd4   : > { %v7440_v63 = vcombine.low %v7432_v49, %v7439_v19 }
 0xbd6   : > { %v7447_v37 = vrot.slane %v7440_v63, %v16874_v21 }
 0xbdf   : > { %v7552_v59 = vpop.f32.mrf.mxu0  ;;  %v7623_v5 = vpop.f32.mrf.mxu1 }
 0xbe1   : > { %v7554_v0 = vpop.f32.mrf.mxu0  ;;  %v7625_v29 = vpop.f32.mrf.mxu1 }
 0xbe2   : > { %v7632_v62 = vcombine.low %v7552_v59, %v7554_v0  ;;  %v7633_v8 = vcombine.low %v7623_v5, %v7625_v29  ;;  %v7241_v59 = vadd.f32 %v7239_v23, %v7033_v31 }
 0xbe4   : > { %v7640_v2 = vrot.slane %v7632_v62, %v16874_v21  ;;  %v7647_v44 = vrot.slane %v7633_v8, %v16874_v21  ;;  %v7449_v29 = vadd.f32 %v7447_v37, %v7241_v59 }
 0xbe6   : > { %v7648_v11 = vcombine.low %v7640_v2, %v7647_v44 }
 0xbe8   : > { %v7655_v5 = vrot.slane %v7648_v11, %v16874_v21 }
 0xbf1   : > { %v7760_v55 = vpop.f32.mrf.mxu0  ;;  %v7831_v42 = vpop.f32.mrf.mxu1 }
 0xbf3   : > { %v7762_v60 = vpop.f32.mrf.mxu0  ;;  %v7833_v16 = vpop.f32.mrf.mxu1 }
 0xbf4   : > { %v7840_v52 = vcombine.low %v7760_v55, %v7762_v60  ;;  %v7841_v17 = vcombine.low %v7831_v42, %v7833_v16  ;;  %v7657_v42 = vadd.f32 %v7655_v5, %v7449_v29  ;;  %v8363_v16 = vsub.s32 3, %v16871_v18 }
 0xbf6   : > { %v7848_v36 = vrot.slane %v7840_v52, %v16874_v21  ;;  %v7855_v48 = vrot.slane %v7841_v17, %v16874_v21 }
 0xbf8   : > { %v7856_v26 = vcombine.low %v7848_v36, %v7855_v48 }
 0xbfa   : > { %v7863_v1 = vrot.slane %v7856_v26, %v16874_v21 }
 0xbfc   : > { %v7865_v22 = vadd.f32 %v7863_v1, %v7657_v42 }
 0xc03   : > { %v7968_v15 = vpop.f32.mrf.mxu0  ;;  %v8039_v12 = vpop.f32.mrf.mxu1 }
 0xc05   : > { %v7970_v61 = vpop.f32.mrf.mxu0  ;;  %v8041_v32 = vpop.f32.mrf.mxu1 }
 0xc06   : > { %v8048_v33 = vcombine.low %v7968_v15, %v7970_v61  ;;  %v8049_v38 = vcombine.low %v8039_v12, %v8041_v32 }
 0xc08   : > { %v8056_v51 = vrot.slane %v8048_v33, %v16874_v21  ;;  %v8063_v45 = vrot.slane %v8049_v38, %v16874_v21 }
 0xc0a   : > { %v8064_v56 = vcombine.low %v8056_v51, %v8063_v45 }
 0xc0c   : > { %v8071_v57 = vrot.slane %v8064_v56, %v16874_v21 }
 0xc0e   : > { %v8073_v53 = vadd.f32 %v8071_v57, %v7865_v22 }
 0xc15   : > { %v8176_v46 = vpop.f32.mrf.mxu0  ;;  %v8247_v43 = vpop.f32.mrf.mxu1 }
 0xc17   : > { %v8178_v14 = vpop.f32.mrf.mxu0  ;;  %v8249_v0 = vpop.f32.mrf.mxu1 }
 0xc18   : > { %v8256_v35 = vcombine.low %v8176_v46, %v8178_v14  ;;  %v8257_v55 = vcombine.low %v8247_v43, %v8249_v0 }
 0xc1a   : > { %v8264_v28 = vrot.slane %v8256_v35, %v16874_v21  ;;  %v8271_v3 = vrot.slane %v8257_v55, %v16874_v21 }
 0xc1c   : > { %v8272_v54 = vcombine.low %v8264_v28, %v8271_v3 }
 0xc1e   : > { %v8279_v13 = vrot.slane %v8272_v54, %v16874_v21 }
 0xc20   : > { %v8281_v60 = vadd.f32 %v8279_v13, %v8073_v53 }
 0xc22   : > { %v8282_v27 = vmax.f32 %v8281_v60, 0.0 }
 0xc24   : > { %v8356_v15 = vrot.slane %v8282_v27, %v8355_v41  ;;  %v8364_v12 = vrot.slane %v8282_v27, %v8363_v16  ;;  %v8352_v25 = vrot.slane %v8282_v27, %v8351_v6  ;;  %v8360_v39 = vrot.slane %v8282_v27, %v8359_v24 }
 0xc26   : > { %8433 = vmatprep.mubr.f32.mxu0 %v8356_v15  ;;  %8503 = vmatprep.mubr.f32.mxu1 %v8364_v12 }
 0xc27   : > { %8434 = vmatmul.mubr.f32.vlgmr.msra.gmra.mxu0 %v8352_v25  ;;  %8504 = vmatmul.mubr.f32.vlgmr.msra.gmra.mxu1 %v8360_v39 }
 0xce7   : > { %v10443_v21 = vpop.f32.mrf.mxu0  ;;  %v10478_v10 = vpop.f32.mrf.mxu1 }
 0xce9   : > { %v10444_v7 = vpop.f32.mrf.mxu0  ;;  %v10479_v18 = vpop.f32.mrf.mxu1 }
 0xcea   : > { %v10445_v62 = vadd.f32 %v10444_v7, %v10443_v21  ;;  %v10480_v20 = vadd.f32 %v10479_v18, %v10478_v10 }
 0xcec   : > { %v8436_v8 = vadd.f32 %v10445_v62, %v8347_v30 }
 0xcee   : > { %v8506_v50 = vadd.f32 %v10480_v20, %v8436_v8 }
 0xcf0   : > { %8509 = vst [vmem:[%s486_s20] sm:$0x1] %v8506_v50 }
 0xcf1   : > { %11657 = shalt.err (!%p11654_p3)
}
 0xcf2   : > { %s11658_s0 = scalar_lea.hbm %s8521_s18, 16  ;;  %s11662_s20 = scalar_lea.hbm %s16962_s15, 32 }
 0xcf3   : > { %p11659_p4 = scmp.ne.s32.totalorder %s8521_s18, %s11658_s0  ;;  %p11663_p9 = scmp.lt.s32.totalorder %s8521_s18, %s16962_s15 }
 0xcf4   : > { %p11664_p10 = scmp.lt.s32.totalorder %s11662_s20, %s11658_s0 }
 0xcf5   : > { %p11660_p7 = pnand %p11659_p4, %p11828_p5 }
 0xcf6   : > { %p11665_p11 = por %p11664_p10, %p11663_p9 }
 0xcf7   : > { %p11661_p8 = pneg %p11660_p7 }
 0xcf9   : > { %p11666_p12 = pnand %p11665_p11, %p11661_p8 }
 0xcfb   : > { %11669 = shalt.err (!%p11666_p12)
}
 0xcfc   : > { %11602 = dma.vmem_to_hbm [thread:$0]  (%p11828_p5), %s8524_s27, 16, %s8521_s18, %s8511_s29  }
 0xcfd PF: > { %s17255_s30 = sld [smem:[#allocation5_spill]]  ;;  %p11608_p13 = scmp.ge.s32.totalorder %s11704_s21, 2 }
 0xcff   : > { %p11605_p0 = pnand %p11608_p13, %p11832_p6 }
 0xd01   : > { %p11606_p1 = pneg %p11605_p0 }
 0xd03   : > { %s8535_s25 = sand.u32 1, %s17255_s30  }
 0xd04   : > { %s8536_s22 = scalar_lea.sflag [#allocation3], %s8535_s25 }
 0xd05   : > { %11687 = dma.done.wait (%p11606_p1), %s8536_s22, 16  }
 0xd06   : > { %11689 = vsyncadd (%p11606_p1), %s8536_s22, 4294967280  ;;  %s17257_s21 = sld [smem:[#allocation7_spill]]  ;;  %s17260_s18 = smov %s11696_s19 }
 0xd07   : > { %s17258_s0 = sld [smem:[#allocation6_spill]] }
 0xd08   : > { %s17259_s20 = sld [smem:[#allocation8_spill]] }
 0xd0c   : > { %p25_p2 = scmp.ge.s32.totalorder %s17257_s21, 4  }
 0xd0d   : > { %s17261_s19 = smov %s17258_s0 }
 0xd0e   :  { %27 = sbr.rel (!%p25_p2) target bundleno = 5 (0x5), region = 144 }
 0xd13   :  { %8540 = vsyncpa [#allocation3], 1 }
 0xd14   :  { %8542 = vsyncpa [#allocation3 + $0x1], 1 }

</bundles_post_ra>
